<compile_context>
chip_gen: v5e
topology: v5e:2x2
jax: 0.10.0
libtpu: 0.0.40
codegen_flags: <defaults>
</compile_context>

<pallas_src>
import functools

import jax
import jax.numpy as jnp
from jax.experimental import pallas as pl
from jax.experimental.pallas import tpu as pltpu

BN_EPS = 1e-5


# ------------------------------ fused kernel --------------------------------

def _resnest_fused_kernel(
    x_ref,       # (1, H, W, cin)            f32
    w1_ref,      # (kk, cin, cout)           bf16   first KxK conv
    bn1_ref,     # (2, cout)                 f32    [scale; bias]
    wb1_ref,     # (cout, gw)                bf16   bottleneck 1x1 conv
    bnb1_ref,    # (2, gw)                   f32
    wsa_ref,     # (kk, gw, radix*gw)        bf16   block-diagonal grouped conv
    bn0_ref,     # (2, radix*gw)             f32
    wfc1_ref,    # (gw, inter)               bf16
    fc1p_ref,    # (2, inter)                f32    [scale; fc1_bias folded thru BN]
    wfc2_ref,    # (inter, radix*gw)         bf16
    fc2b_ref,    # (1, radix*gw)             f32
    wb3_ref,     # (gw, cout)                bf16   final 1x1 conv
    bn3_ref,     # (2, cout)                 f32
    bno_ref,     # (2, cout)                 f32    outer BN
    out_ref,     # (1, Ho, Wo, cout)         f32
    xp_scr,      # (H+kh-1, w_off+W+pr_w, cin) f32  zero-padded input
    zp_scr,      # (H+kh-1, w_off+W+pr_w, gw)  f32  zero-padded z
    o_scr,       # (H*W, cout)               f32    pre-pool activation
    *, H, W, kh, kw, cin, cout, gw, radix, pool_k, pool_s, pool_type, w_off,
):
    f32 = jnp.float32
    bf16 = jnp.bfloat16
    HW = H * W
    kk = kh * kw
    rgw = radix * gw
    pl_h = (kh - 1) // 2
    pl_w = (kw - 1) // 2
    Ho, Wo = H // pool_s, W // pool_s

    # ---- in-kernel 'same' padding of the input (interior write is at a
    #      sublane-aligned column offset w_off, a multiple of 8)
    xp_scr[...] = jnp.zeros(xp_scr.shape, f32)
    xp_scr[pl_h:pl_h + H, w_off:w_off + W, :] = x_ref[0]

    # ---- stage 1: KxK conv ('same') + BN + ReLU  (tap accumulation on the MXU)
    acc = jnp.zeros((HW, cout), f32)
    for t in range(kk):
        ti, tj = t // kw, t % kw
        c0 = w_off - pl_w + tj
        patch = xp_scr[ti:ti + H, c0:c0 + W, :].reshape(HW, cin).astype(bf16)
        acc = acc + jnp.dot(patch, w1_ref[t], preferred_element_type=f32)
    y = jnp.maximum(acc * bn1_ref[0:1, :] + bn1_ref[1:2, :], 0.0)        # (HW, cout)

    # ---- bottleneck 1x1 conv + BN + ReLU
    z = jnp.dot(y.astype(bf16), wb1_ref[...], preferred_element_type=f32)
    z = jnp.maximum(z * bnb1_ref[0:1, :] + bnb1_ref[1:2, :], 0.0)        # (HW, gw)

    # ---- zero-padded copy of z (same aligned-write scheme as the input)
    zp_scr[...] = jnp.zeros(zp_scr.shape, f32)
    zp_scr[pl_h:pl_h + H, w_off:w_off + W, :] = z.reshape(H, W, gw)

    # ---- split-attention grouped KxK conv (all radix branches as one
    #      block-diagonal matmul per tap) + BN0 + ReLU
    uacc = jnp.zeros((HW, rgw), f32)
    for t in range(kk):
        ti, tj = t // kw, t % kw
        c0 = w_off - pl_w + tj
        patch = zp_scr[ti:ti + H, c0:c0 + W, :].reshape(HW, gw).astype(bf16)
        uacc = uacc + jnp.dot(patch, wsa_ref[t], preferred_element_type=f32)
    u = jnp.maximum(uacc * bn0_ref[0:1, :] + bn0_ref[1:2, :], 0.0)       # (HW, R*gw)

    # ---- global average pool of the radix sum
    us = u[:, 0:gw]
    for r in range(1, radix):
        us = us + u[:, r * gw:(r + 1) * gw]
    gap = jnp.sum(us, axis=0, keepdims=True) * (1.0 / HW)                # (1, gw)

    # ---- fc1 (+BN1) + ReLU, fc2 -> rSoftMax logits
    g1 = jnp.dot(gap.astype(bf16), wfc1_ref[...], preferred_element_type=f32)
    g1 = jnp.maximum(g1 * fc1p_ref[0:1, :] + fc1p_ref[1:2, :], 0.0)      # (1, inter)
    logits = jnp.dot(g1.astype(bf16), wfc2_ref[...], preferred_element_type=f32)
    logits = logits + fc2b_ref[...]                                      # (1, R*gw)

    # ---- rSoftMax over radix (groups == 1), via lane slices (no reshape)
    es = [logits[:, r * gw:(r + 1) * gw] for r in range(radix)]
    m = es[0]
    for r in range(1, radix):
        m = jnp.maximum(m, es[r])
    es = [jnp.exp(e - m) for e in es]
    den = es[0]
    for r in range(1, radix):
        den = den + es[r]
    inv = pl.reciprocal(den, approx=True)                                # (1, gw)

    # ---- attention-weighted sum of the radix branches
    sa = u[:, 0:gw] * (es[0] * inv)
    for r in range(1, radix):
        sa = sa + u[:, r * gw:(r + 1) * gw] * (es[r] * inv)              # (HW, gw)

    # ---- final 1x1 conv + BN + residual + ReLU
    o = jnp.dot(sa.astype(bf16), wb3_ref[...], preferred_element_type=f32)
    o = jnp.maximum(o * bn3_ref[0:1, :] + bn3_ref[1:2, :] + y, 0.0)

    # ---- outer BN + ReLU
    o = jnp.maximum(o * bno_ref[0:1, :] + bno_ref[1:2, :], 0.0)          # (HW, cout)

    # ---- fused pooling (pool_k == pool_s, H/W divisible): W-direction via
    #      sublane-strided VMEM reads, H-direction via a major-dim reshape.
    o_scr[...] = o
    is_max = (pool_type == "max2d")

    def _wrows(dj):
        if pool_s == 1:
            return o_scr[pl.ds(dj, H * Wo), :]
        return o_scr[pl.ds(dj, H * Wo, stride=pool_s), :]

    wp = _wrows(0)
    for dj in range(1, pool_k):
        v = _wrows(dj)
        wp = jnp.maximum(wp, v) if is_max else wp + v                    # (H*Wo, cout)
    wp4 = wp.reshape(Ho, pool_s, Wo, cout)
    pooled = wp4[:, 0]
    for di in range(1, pool_k):
        v = wp4[:, di]
        pooled = jnp.maximum(pooled, v) if is_max else pooled + v        # (Ho, Wo, cout)
    if not is_max:
        pooled = pooled * (1.0 / (pool_k * pool_k))
    out_ref[0] = pooled.astype(out_ref.dtype)


# --------------------------------- glue -------------------------------------

def _pair(k):
    return (k, k) if isinstance(k, int) else tuple(k)


def _fold_bn(bn):
    scale = bn["gamma"] * jax.lax.rsqrt(bn["var"] + BN_EPS)
    bias = bn["beta"] - bn["mean"] * scale
    return scale, bias


def _pack(scale, bias):
    return jnp.stack([scale, bias], axis=0).astype(jnp.float32)          # (2, C)


def _bn_init(key, c):
    k1, k2, k3, k4 = jax.random.split(key, 4)
    return dict(
        gamma=1.0 + 0.1 * jax.random.normal(k1, (c,), jnp.float32),
        beta=0.1 * jax.random.normal(k2, (c,), jnp.float32),
        mean=0.1 * jax.random.normal(k3, (c,), jnp.float32),
        var=0.5 + jax.random.uniform(k4, (c,), jnp.float32),
    )


def init_params(key, cfg, expansion=4):
    cin, cout = cfg["in_channels"], cfg["out_channels"]
    kh, kw = _pair(cfg["kernel"])
    radix, groups = cfg["radix"], cfg["groups"]
    assert radix >= 2, "only the radix>1 (softmax) split-attention path is implemented"
    assert groups == 1  # TODO(synk): cardinality groups > 1 not implemented (demo uses groups=1)
    ch = cout // expansion
    gw = int(ch * (64 / 64.0)) * groups                 # group_width
    inter = max(gw * radix // 4, 32)                    # SplAt reduction_factor = 4
    kk = kh * kw
    cin_per = gw // (groups * radix)

    keys = jax.random.split(key, 16)

    def w(k, shape, fan_in):
        return jax.random.normal(k, shape, jnp.float32) / jnp.sqrt(float(fan_in))

    p = {
        "conv1_w": w(keys[0], (kk, cin, cout), kk * cin),
        "conv1_bn": _bn_init(keys[1], cout),
        "b1_w": w(keys[2], (cout, gw), cout),
        "b1_bn": _bn_init(keys[3], gw),
        "sa_w": w(keys[4], (radix, kk, cin_per, gw), kk * cin_per),
        "sa_bn0": _bn_init(keys[5], gw * radix),
        "fc1_w": w(keys[6], (gw, inter), gw),
        "fc1_b": 0.1 * jax.random.normal(keys[7], (inter,), jnp.float32),
        "sa_bn1": _bn_init(keys[8], inter),
        "fc2_w": w(keys[9], (inter, gw * radix), inter),
        "fc2_b": 0.1 * jax.random.normal(keys[10], (gw * radix,), jnp.float32),
        "b3_w": w(keys[11], (gw, cout), gw),
        "b3_bn": _bn_init(keys[12], cout),
        "outer_bn": _bn_init(keys[13], cout),
    }
    dims = dict(cin=cin, cout=cout, kh=kh, kw=kw, radix=radix, groups=groups,
                gw=gw, inter=inter, cin_per=cin_per)
    return p, dims


def resnest_block_forward(x_nchw, params, dims, pooling_dict, dropout_dict=None):
    del dropout_dict                                   # Dropout == identity (eval)
    x = jnp.transpose(x_nchw, (0, 2, 3, 1)).astype(jnp.float32)   # NCHW -> NHWC
    N, H, W, cin = x.shape
    cout, kh, kw = dims["cout"], dims["kh"], dims["kw"]
    radix, gw, inter = dims["radix"], dims["gw"], dims["inter"]
    cin_per = dims["cin_per"]
    kk = kh * kw
    rgw = radix * gw

    # 'same' padding geometry for the two KxK convs (PyTorch convention);
    # the padding itself is applied inside the kernel (VMEM scratch).
    pl_w, pr_w = (kw - 1) // 2, kw - 1 - (kw - 1) // 2

    pool_k = pooling_dict["pooling_kernel"]
    pool_s = pooling_dict["pooling_stride"]
    pool_type = pooling_dict["pooling_type"]
    if pool_type not in ("max2d", "ave2d"):
        raise ValueError(f"unsupported pooling type {pool_type}")
    # TODO(synk): general pooling geometries (kernel != stride / non-divisible H,W)
    assert pool_k == pool_s and H % pool_s == 0 and W % pool_s == 0
    Ho, Wo = H // pool_s, W // pool_s

    # ---- fold BatchNorms into per-channel scale/bias (inference mode) ----
    bn1p = _pack(*_fold_bn(params["conv1_bn"]))
    bnb1p = _pack(*_fold_bn(params["b1_bn"]))
    bn0p = _pack(*_fold_bn(params["sa_bn0"]))
    s_fc1, b_fc1 = _fold_bn(params["sa_bn1"])
    fc1p = _pack(s_fc1, params["fc1_b"] * s_fc1 + b_fc1)  # fc1 bias folded thru BN1
    bn3p = _pack(*_fold_bn(params["b3_bn"]))
    bnop = _pack(*_fold_bn(params["outer_bn"]))
    fc2b = params["fc2_b"].reshape(1, rgw).astype(jnp.float32)

    # ---- block-diagonal combined split-attention conv weight: (kk, gw, R*gw)
    wsa = jnp.zeros((kk, gw, rgw), jnp.float32)
    for r in range(radix):
        wsa = wsa.at[:, r * cin_per:(r + 1) * cin_per, r * gw:(r + 1) * gw].set(
            params["sa_w"][r])

    bf16 = jnp.bfloat16
    w1 = params["conv1_w"].astype(bf16)
    wb1 = params["b1_w"].astype(bf16)
    wsa = wsa.astype(bf16)
    wfc1 = params["fc1_w"].astype(bf16)
    wfc2 = params["fc2_w"].astype(bf16)
    wb3 = params["b3_w"].astype(bf16)

    # padded scratches: data placed at a sublane-aligned column offset >= left pad
    w_off = max(8, ((pl_w + 7) // 8) * 8)
    Hpad = H + kh - 1
    Wpad = w_off + W + pr_w

    kernel = functools.partial(
        _resnest_fused_kernel,
        H=H, W=W, kh=kh, kw=kw, cin=cin, cout=cout, gw=gw, radix=radix,
        pool_k=pool_k, pool_s=pool_s, pool_type=pool_type, w_off=w_off)

    out = pl.pallas_call(
        kernel,
        out_shape=jax.ShapeDtypeStruct((N, Ho, Wo, cout), jnp.float32),
        grid=(N,),
        in_specs=[
            pl.BlockSpec((1, H, W, cin), lambda n: (n, 0, 0, 0)),
            pl.BlockSpec((kk, cin, cout), lambda n: (0, 0, 0)),
            pl.BlockSpec((2, cout), lambda n: (0, 0)),
            pl.BlockSpec((cout, gw), lambda n: (0, 0)),
            pl.BlockSpec((2, gw), lambda n: (0, 0)),
            pl.BlockSpec((kk, gw, rgw), lambda n: (0, 0, 0)),
            pl.BlockSpec((2, rgw), lambda n: (0, 0)),
            pl.BlockSpec((gw, inter), lambda n: (0, 0)),
            pl.BlockSpec((2, inter), lambda n: (0, 0)),
            pl.BlockSpec((inter, rgw), lambda n: (0, 0)),
            pl.BlockSpec((1, rgw), lambda n: (0, 0)),
            pl.BlockSpec((gw, cout), lambda n: (0, 0)),
            pl.BlockSpec((2, cout), lambda n: (0, 0)),
            pl.BlockSpec((2, cout), lambda n: (0, 0)),
        ],
        out_specs=pl.BlockSpec((1, Ho, Wo, cout), lambda n: (n, 0, 0, 0)),
        scratch_shapes=[
            pltpu.VMEM((Hpad, Wpad, cin), jnp.float32),   # zero-padded input
            pltpu.VMEM((Hpad, Wpad, gw), jnp.float32),    # zero-padded z
            pltpu.VMEM((H * W, cout), jnp.float32),       # pre-pool activation
        ],
        compiler_params=pltpu.CompilerParams(
            dimension_semantics=("parallel",)),
    )(x, w1, bn1p, wb1, bnb1p, wsa, bn0p, wfc1, fc1p, wfc2, fc2b, wb3,
      bn3p, bnop)

    return jnp.transpose(out, (0, 3, 1, 2))            # NHWC -> NCHW


# --------------------------------- main --------------------------------------

if __name__ == "__main__":
    resnestconv_dict = dict(in_channels=4, out_channels=16, kernel=(3, 3),
                            radix=2, groups=1)
    pooling_dict = dict(pooling_type="max2d", pooling_kernel=2, pooling_stride=2)
    dropout_dict = dict(drop_rate=0.5)   # identity in inference mode

    key = jax.random.PRNGKey(0)
    kx, kp = jax.random.split(key)
    x = jax.random.normal(kx, (2, 4, 16, 16), jnp.float32)   # NCHW, like PyTorch

    params, dims = init_params(kp, resnestconv_dict)
    out = resnest_block_forward(x, params, dims, pooling_dict, dropout_dict)
    out = jax.block_until_ready(out)
    assert out.shape == (2, 16, 8, 8), out.shape
    assert bool(jnp.all(jnp.isfinite(out)))
    print("KERNEL_OK")
</pallas_src>

<mosaic_0001>
module attributes {stable_mosaic.version = 11 : i64} {
  func.func @_resnest_fused_kernel(%arg0: i32, %arg1: memref<1x16x16x4xf32, #tpu.memory_space<vmem>>, %arg2: memref<9x4x16xbf16, #tpu.memory_space<vmem>>, %arg3: memref<2x16xf32, #tpu.memory_space<vmem>>, %arg4: memref<16x4xbf16, #tpu.memory_space<vmem>>, %arg5: memref<2x4xf32, #tpu.memory_space<vmem>>, %arg6: memref<9x4x8xbf16, #tpu.memory_space<vmem>>, %arg7: memref<2x8xf32, #tpu.memory_space<vmem>>, %arg8: memref<4x32xbf16, #tpu.memory_space<vmem>>, %arg9: memref<2x32xf32, #tpu.memory_space<vmem>>, %arg10: memref<32x8xbf16, #tpu.memory_space<vmem>>, %arg11: memref<1x8xf32, #tpu.memory_space<vmem>>, %arg12: memref<4x16xbf16, #tpu.memory_space<vmem>>, %arg13: memref<2x16xf32, #tpu.memory_space<vmem>>, %arg14: memref<2x16xf32, #tpu.memory_space<vmem>>, %arg15: memref<1x8x8x16xf32, #tpu.memory_space<vmem>>, %arg16: memref<18x25x4xf32, #tpu.memory_space<vmem>>, %arg17: memref<18x25x4xf32, #tpu.memory_space<vmem>>, %arg18: memref<256x16xf32, #tpu.memory_space<vmem>>) attributes {dimension_semantics = [#tpu.dimension_semantics<parallel>], iteration_bounds = array<i64: 2>, scalar_prefetch = 0 : i64, scratch_operands = 3 : i64, tpu.core_type = #tpu.core_type<tc>, window_params = [{transform_indices = @transform_0, window_bounds = array<i64: 1, 16, 16, 4>}, {pipeline_mode = #tpu.pipeline_mode<synchronous>, transform_indices = @transform_1, window_bounds = array<i64: 9, 4, 16>}, {pipeline_mode = #tpu.pipeline_mode<synchronous>, transform_indices = @transform_2, window_bounds = array<i64: 2, 16>}, {pipeline_mode = #tpu.pipeline_mode<synchronous>, transform_indices = @transform_3, window_bounds = array<i64: 16, 4>}, {pipeline_mode = #tpu.pipeline_mode<synchronous>, transform_indices = @transform_4, window_bounds = array<i64: 2, 4>}, {pipeline_mode = #tpu.pipeline_mode<synchronous>, transform_indices = @transform_5, window_bounds = array<i64: 9, 4, 8>}, {pipeline_mode = #tpu.pipeline_mode<synchronous>, transform_indices = @transform_6, window_bounds = array<i64: 2, 8>}, {pipeline_mode = #tpu.pipeline_mode<synchronous>, transform_indices = @transform_7, window_bounds = array<i64: 4, 32>}, {pipeline_mode = #tpu.pipeline_mode<synchronous>, transform_indices = @transform_8, window_bounds = array<i64: 2, 32>}, {pipeline_mode = #tpu.pipeline_mode<synchronous>, transform_indices = @transform_9, window_bounds = array<i64: 32, 8>}, {pipeline_mode = #tpu.pipeline_mode<synchronous>, transform_indices = @transform_10, window_bounds = array<i64: 1, 8>}, {pipeline_mode = #tpu.pipeline_mode<synchronous>, transform_indices = @transform_11, window_bounds = array<i64: 4, 16>}, {pipeline_mode = #tpu.pipeline_mode<synchronous>, transform_indices = @transform_12, window_bounds = array<i64: 2, 16>}, {pipeline_mode = #tpu.pipeline_mode<synchronous>, transform_indices = @transform_13, window_bounds = array<i64: 2, 16>}, {transform_indices = @transform_14, window_bounds = array<i64: 1, 8, 8, 16>}]} {
    %cst = arith.constant 0.000000e+00 : f32
    %0 = vector.broadcast %cst : f32 to vector<18x25x4xf32>
    %c0 = arith.constant 0 : index
    %c0_0 = arith.constant 0 : index
    %c0_1 = arith.constant 0 : index
    %1 = vector.load %arg16[%c0, %c0_0, %c0_1] : memref<18x25x4xf32, #tpu.memory_space<vmem>>, vector<18x25x4xf32>
    tpu.vector_store %arg16[%c0, %c0_0, %c0_1], %0 {strides = array<i32>} : memref<18x25x4xf32, #tpu.memory_space<vmem>>, vector<18x25x4xf32>,
    %c0_2 = arith.constant 0 : index
    %c0_3 = arith.constant 0 : index
    %c0_4 = arith.constant 0 : index
    %c0_5 = arith.constant 0 : index
    %2 = vector.load %arg1[%c0_2, %c0_3, %c0_4, %c0_5] : memref<1x16x16x4xf32, #tpu.memory_space<vmem>>, vector<1x16x16x4xf32>
    %3 = vector.shape_cast %2 : vector<1x16x16x4xf32> to vector<16x16x4xf32>
    %c1 = arith.constant 1 : index
    %c8 = arith.constant 8 : index
    %c0_6 = arith.constant 0 : index
    %4 = vector.load %arg16[%c1, %c8, %c0_6] : memref<18x25x4xf32, #tpu.memory_space<vmem>>, vector<16x16x4xf32>
    tpu.vector_store %arg16[%c1, %c8, %c0_6], %3 {strides = array<i32>} : memref<18x25x4xf32, #tpu.memory_space<vmem>>, vector<16x16x4xf32>,
    %cst_7 = arith.constant 0.000000e+00 : f32
    %5 = vector.broadcast %cst_7 : f32 to vector<256x16xf32>
    %c0_8 = arith.constant 0 : index
    %c7 = arith.constant 7 : index
    %c0_9 = arith.constant 0 : index
    %6 = vector.load %arg16[%c0_8, %c7, %c0_9] : memref<18x25x4xf32, #tpu.memory_space<vmem>>, vector<16x16x4xf32>
    %7 = vector.shape_cast %6 : vector<16x16x4xf32> to vector<256x4xf32>
    %8 = arith.truncf %7 : vector<256x4xf32> to vector<256x4xbf16>
    %c0_10 = arith.constant 0 : index
    %c0_11 = arith.constant 0 : index
    %c0_12 = arith.constant 0 : index
    %9 = vector.load %arg2[%c0_10, %c0_11, %c0_12] : memref<9x4x16xbf16, #tpu.memory_space<vmem>>, vector<1x4x16xbf16>
    %10 = vector.shape_cast %9 : vector<1x4x16xbf16> to vector<4x16xbf16>
    %cst_13 = arith.constant dense<0.000000e+00> : vector<256x16xf32>
    %11 = tpu.matmul %8, %10, %cst_13 {dimension_numbers = #tpu.dot_dimension_numbers<[1], [0], [0], [1], [0, 0, 1, 1], [], []>} : vector<256x4xbf16>, vector<4x16xbf16>, vector<256x16xf32> -> vector<256x16xf32>
    %12 = arith.addf %5, %11 : vector<256x16xf32>
    %c0_14 = arith.constant 0 : index
    %c8_15 = arith.constant 8 : index
    %c0_16 = arith.constant 0 : index
    %13 = vector.load %arg16[%c0_14, %c8_15, %c0_16] : memref<18x25x4xf32, #tpu.memory_space<vmem>>, vector<16x16x4xf32>
    %14 = vector.shape_cast %13 : vector<16x16x4xf32> to vector<256x4xf32>
    %15 = arith.truncf %14 : vector<256x4xf32> to vector<256x4xbf16>
    %c1_17 = arith.constant 1 : index
    %c0_18 = arith.constant 0 : index
    %c0_19 = arith.constant 0 : index
    %16 = vector.load %arg2[%c1_17, %c0_18, %c0_19] : memref<9x4x16xbf16, #tpu.memory_space<vmem>>, vector<1x4x16xbf16>
    %17 = vector.shape_cast %16 : vector<1x4x16xbf16> to vector<4x16xbf16>
    %cst_20 = arith.constant dense<0.000000e+00> : vector<256x16xf32>
    %18 = tpu.matmul %15, %17, %cst_20 {dimension_numbers = #tpu.dot_dimension_numbers<[1], [0], [0], [1], [0, 0, 1, 1], [], []>} : vector<256x4xbf16>, vector<4x16xbf16>, vector<256x16xf32> -> vector<256x16xf32>
    %19 = arith.addf %12, %18 : vector<256x16xf32>
    %c0_21 = arith.constant 0 : index
    %c9 = arith.constant 9 : index
    %c0_22 = arith.constant 0 : index
    %20 = vector.load %arg16[%c0_21, %c9, %c0_22] : memref<18x25x4xf32, #tpu.memory_space<vmem>>, vector<16x16x4xf32>
    %21 = vector.shape_cast %20 : vector<16x16x4xf32> to vector<256x4xf32>
    %22 = arith.truncf %21 : vector<256x4xf32> to vector<256x4xbf16>
    %c2 = arith.constant 2 : index
    %c0_23 = arith.constant 0 : index
    %c0_24 = arith.constant 0 : index
    %23 = vector.load %arg2[%c2, %c0_23, %c0_24] : memref<9x4x16xbf16, #tpu.memory_space<vmem>>, vector<1x4x16xbf16>
    %24 = vector.shape_cast %23 : vector<1x4x16xbf16> to vector<4x16xbf16>
    %cst_25 = arith.constant dense<0.000000e+00> : vector<256x16xf32>
    %25 = tpu.matmul %22, %24, %cst_25 {dimension_numbers = #tpu.dot_dimension_numbers<[1], [0], [0], [1], [0, 0, 1, 1], [], []>} : vector<256x4xbf16>, vector<4x16xbf16>, vector<256x16xf32> -> vector<256x16xf32>
    %26 = arith.addf %19, %25 : vector<256x16xf32>
    %c1_26 = arith.constant 1 : index
    %c7_27 = arith.constant 7 : index
    %c0_28 = arith.constant 0 : index
    %27 = vector.load %arg16[%c1_26, %c7_27, %c0_28] : memref<18x25x4xf32, #tpu.memory_space<vmem>>, vector<16x16x4xf32>
    %28 = vector.shape_cast %27 : vector<16x16x4xf32> to vector<256x4xf32>
    %29 = arith.truncf %28 : vector<256x4xf32> to vector<256x4xbf16>
    %c3 = arith.constant 3 : index
    %c0_29 = arith.constant 0 : index
    %c0_30 = arith.constant 0 : index
    %30 = vector.load %arg2[%c3, %c0_29, %c0_30] : memref<9x4x16xbf16, #tpu.memory_space<vmem>>, vector<1x4x16xbf16>
    %31 = vector.shape_cast %30 : vector<1x4x16xbf16> to vector<4x16xbf16>
    %cst_31 = arith.constant dense<0.000000e+00> : vector<256x16xf32>
    %32 = tpu.matmul %29, %31, %cst_31 {dimension_numbers = #tpu.dot_dimension_numbers<[1], [0], [0], [1], [0, 0, 1, 1], [], []>} : vector<256x4xbf16>, vector<4x16xbf16>, vector<256x16xf32> -> vector<256x16xf32>
    %33 = arith.addf %26, %32 : vector<256x16xf32>
    %c1_32 = arith.constant 1 : index
    %c8_33 = arith.constant 8 : index
    %c0_34 = arith.constant 0 : index
    %34 = vector.load %arg16[%c1_32, %c8_33, %c0_34] : memref<18x25x4xf32, #tpu.memory_space<vmem>>, vector<16x16x4xf32>
    %35 = vector.shape_cast %34 : vector<16x16x4xf32> to vector<256x4xf32>
    %36 = arith.truncf %35 : vector<256x4xf32> to vector<256x4xbf16>
    %c4 = arith.constant 4 : index
    %c0_35 = arith.constant 0 : index
    %c0_36 = arith.constant 0 : index
    %37 = vector.load %arg2[%c4, %c0_35, %c0_36] : memref<9x4x16xbf16, #tpu.memory_space<vmem>>, vector<1x4x16xbf16>
    %38 = vector.shape_cast %37 : vector<1x4x16xbf16> to vector<4x16xbf16>
    %cst_37 = arith.constant dense<0.000000e+00> : vector<256x16xf32>
    %39 = tpu.matmul %36, %38, %cst_37 {dimension_numbers = #tpu.dot_dimension_numbers<[1], [0], [0], [1], [0, 0, 1, 1], [], []>} : vector<256x4xbf16>, vector<4x16xbf16>, vector<256x16xf32> -> vector<256x16xf32>
    %40 = arith.addf %33, %39 : vector<256x16xf32>
    %c1_38 = arith.constant 1 : index
    %c9_39 = arith.constant 9 : index
    %c0_40 = arith.constant 0 : index
    %41 = vector.load %arg16[%c1_38, %c9_39, %c0_40] : memref<18x25x4xf32, #tpu.memory_space<vmem>>, vector<16x16x4xf32>
    %42 = vector.shape_cast %41 : vector<16x16x4xf32> to vector<256x4xf32>
    %43 = arith.truncf %42 : vector<256x4xf32> to vector<256x4xbf16>
    %c5 = arith.constant 5 : index
    %c0_41 = arith.constant 0 : index
    %c0_42 = arith.constant 0 : index
    %44 = vector.load %arg2[%c5, %c0_41, %c0_42] : memref<9x4x16xbf16, #tpu.memory_space<vmem>>, vector<1x4x16xbf16>
    %45 = vector.shape_cast %44 : vector<1x4x16xbf16> to vector<4x16xbf16>
    %cst_43 = arith.constant dense<0.000000e+00> : vector<256x16xf32>
    %46 = tpu.matmul %43, %45, %cst_43 {dimension_numbers = #tpu.dot_dimension_numbers<[1], [0], [0], [1], [0, 0, 1, 1], [], []>} : vector<256x4xbf16>, vector<4x16xbf16>, vector<256x16xf32> -> vector<256x16xf32>
    %47 = arith.addf %40, %46 : vector<256x16xf32>
    %c2_44 = arith.constant 2 : index
    %c7_45 = arith.constant 7 : index
    %c0_46 = arith.constant 0 : index
    %48 = vector.load %arg16[%c2_44, %c7_45, %c0_46] : memref<18x25x4xf32, #tpu.memory_space<vmem>>, vector<16x16x4xf32>
    %49 = vector.shape_cast %48 : vector<16x16x4xf32> to vector<256x4xf32>
    %50 = arith.truncf %49 : vector<256x4xf32> to vector<256x4xbf16>
    %c6 = arith.constant 6 : index
    %c0_47 = arith.constant 0 : index
    %c0_48 = arith.constant 0 : index
    %51 = vector.load %arg2[%c6, %c0_47, %c0_48] : memref<9x4x16xbf16, #tpu.memory_space<vmem>>, vector<1x4x16xbf16>
    %52 = vector.shape_cast %51 : vector<1x4x16xbf16> to vector<4x16xbf16>
    %cst_49 = arith.constant dense<0.000000e+00> : vector<256x16xf32>
    %53 = tpu.matmul %50, %52, %cst_49 {dimension_numbers = #tpu.dot_dimension_numbers<[1], [0], [0], [1], [0, 0, 1, 1], [], []>} : vector<256x4xbf16>, vector<4x16xbf16>, vector<256x16xf32> -> vector<256x16xf32>
    %54 = arith.addf %47, %53 : vector<256x16xf32>
    %c2_50 = arith.constant 2 : index
    %c8_51 = arith.constant 8 : index
    %c0_52 = arith.constant 0 : index
    %55 = vector.load %arg16[%c2_50, %c8_51, %c0_52] : memref<18x25x4xf32, #tpu.memory_space<vmem>>, vector<16x16x4xf32>
    %56 = vector.shape_cast %55 : vector<16x16x4xf32> to vector<256x4xf32>
    %57 = arith.truncf %56 : vector<256x4xf32> to vector<256x4xbf16>
    %c7_53 = arith.constant 7 : index
    %c0_54 = arith.constant 0 : index
    %c0_55 = arith.constant 0 : index
    %58 = vector.load %arg2[%c7_53, %c0_54, %c0_55] : memref<9x4x16xbf16, #tpu.memory_space<vmem>>, vector<1x4x16xbf16>
    %59 = vector.shape_cast %58 : vector<1x4x16xbf16> to vector<4x16xbf16>
    %cst_56 = arith.constant dense<0.000000e+00> : vector<256x16xf32>
    %60 = tpu.matmul %57, %59, %cst_56 {dimension_numbers = #tpu.dot_dimension_numbers<[1], [0], [0], [1], [0, 0, 1, 1], [], []>} : vector<256x4xbf16>, vector<4x16xbf16>, vector<256x16xf32> -> vector<256x16xf32>
    %61 = arith.addf %54, %60 : vector<256x16xf32>
    %c2_57 = arith.constant 2 : index
    %c9_58 = arith.constant 9 : index
    %c0_59 = arith.constant 0 : index
    %62 = vector.load %arg16[%c2_57, %c9_58, %c0_59] : memref<18x25x4xf32, #tpu.memory_space<vmem>>, vector<16x16x4xf32>
    %63 = vector.shape_cast %62 : vector<16x16x4xf32> to vector<256x4xf32>
    %64 = arith.truncf %63 : vector<256x4xf32> to vector<256x4xbf16>
    %c8_60 = arith.constant 8 : index
    %c0_61 = arith.constant 0 : index
    %c0_62 = arith.constant 0 : index
    %65 = vector.load %arg2[%c8_60, %c0_61, %c0_62] : memref<9x4x16xbf16, #tpu.memory_space<vmem>>, vector<1x4x16xbf16>
    %66 = vector.shape_cast %65 : vector<1x4x16xbf16> to vector<4x16xbf16>
    %cst_63 = arith.constant dense<0.000000e+00> : vector<256x16xf32>
    %67 = tpu.matmul %64, %66, %cst_63 {dimension_numbers = #tpu.dot_dimension_numbers<[1], [0], [0], [1], [0, 0, 1, 1], [], []>} : vector<256x4xbf16>, vector<4x16xbf16>, vector<256x16xf32> -> vector<256x16xf32>
    %68 = arith.addf %61, %67 : vector<256x16xf32>
    %c0_64 = arith.constant 0 : index
    %c0_65 = arith.constant 0 : index
    %69 = vector.load %arg3[%c0_64, %c0_65] : memref<2x16xf32, #tpu.memory_space<vmem>>, vector<1x16xf32>
    %70 = vector.broadcast %69 : vector<1x16xf32> to vector<256x16xf32>
    %71 = arith.mulf %68, %70 : vector<256x16xf32>
    %c1_66 = arith.constant 1 : index
    %c0_67 = arith.constant 0 : index
    %72 = vector.load %arg3[%c1_66, %c0_67] : memref<2x16xf32, #tpu.memory_space<vmem>>, vector<1x16xf32>
    %73 = vector.broadcast %72 : vector<1x16xf32> to vector<256x16xf32>
    %74 = arith.addf %71, %73 : vector<256x16xf32>
    %cst_68 = arith.constant 0.000000e+00 : f32
    %75 = vector.broadcast %cst_68 : f32 to vector<256x16xf32>
    %76 = arith.maximumf %74, %75 : vector<256x16xf32>
    %77 = arith.truncf %76 : vector<256x16xf32> to vector<256x16xbf16>
    %c0_69 = arith.constant 0 : index
    %c0_70 = arith.constant 0 : index
    %78 = vector.load %arg4[%c0_69, %c0_70] : memref<16x4xbf16, #tpu.memory_space<vmem>>, vector<16x4xbf16>
    %cst_71 = arith.constant dense<0.000000e+00> : vector<256x4xf32>
    %79 = tpu.matmul %77, %78, %cst_71 {dimension_numbers = #tpu.dot_dimension_numbers<[1], [0], [0], [1], [0, 0, 1, 1], [], []>} : vector<256x16xbf16>, vector<16x4xbf16>, vector<256x4xf32> -> vector<256x4xf32>
    %c0_72 = arith.constant 0 : index
    %c0_73 = arith.constant 0 : index
    %80 = vector.load %arg5[%c0_72, %c0_73] : memref<2x4xf32, #tpu.memory_space<vmem>>, vector<1x4xf32>
    %81 = vector.broadcast %80 : vector<1x4xf32> to vector<256x4xf32>
    %82 = arith.mulf %79, %81 : vector<256x4xf32>
    %c1_74 = arith.constant 1 : index
    %c0_75 = arith.constant 0 : index
    %83 = vector.load %arg5[%c1_74, %c0_75] : memref<2x4xf32, #tpu.memory_space<vmem>>, vector<1x4xf32>
    %84 = vector.broadcast %83 : vector<1x4xf32> to vector<256x4xf32>
    %85 = arith.addf %82, %84 : vector<256x4xf32>
    %cst_76 = arith.constant 0.000000e+00 : f32
    %86 = vector.broadcast %cst_76 : f32 to vector<256x4xf32>
    %87 = arith.maximumf %85, %86 : vector<256x4xf32>
    %cst_77 = arith.constant 0.000000e+00 : f32
    %88 = vector.broadcast %cst_77 : f32 to vector<18x25x4xf32>
    %c0_78 = arith.constant 0 : index
    %c0_79 = arith.constant 0 : index
    %c0_80 = arith.constant 0 : index
    %89 = vector.load %arg17[%c0_78, %c0_79, %c0_80] : memref<18x25x4xf32, #tpu.memory_space<vmem>>, vector<18x25x4xf32>
    tpu.vector_store %arg17[%c0_78, %c0_79, %c0_80], %88 {strides = array<i32>} : memref<18x25x4xf32, #tpu.memory_space<vmem>>, vector<18x25x4xf32>,
    %90 = vector.shape_cast %87 : vector<256x4xf32> to vector<16x16x4xf32>
    %c1_81 = arith.constant 1 : index
    %c8_82 = arith.constant 8 : index
    %c0_83 = arith.constant 0 : index
    %91 = vector.load %arg17[%c1_81, %c8_82, %c0_83] : memref<18x25x4xf32, #tpu.memory_space<vmem>>, vector<16x16x4xf32>
    tpu.vector_store %arg17[%c1_81, %c8_82, %c0_83], %90 {strides = array<i32>} : memref<18x25x4xf32, #tpu.memory_space<vmem>>, vector<16x16x4xf32>,
    %cst_84 = arith.constant 0.000000e+00 : f32
    %92 = vector.broadcast %cst_84 : f32 to vector<256x8xf32>
    %c0_85 = arith.constant 0 : index
    %c7_86 = arith.constant 7 : index
    %c0_87 = arith.constant 0 : index
    %93 = vector.load %arg17[%c0_85, %c7_86, %c0_87] : memref<18x25x4xf32, #tpu.memory_space<vmem>>, vector<16x16x4xf32>
    %94 = vector.shape_cast %93 : vector<16x16x4xf32> to vector<256x4xf32>
    %95 = arith.truncf %94 : vector<256x4xf32> to vector<256x4xbf16>
    %c0_88 = arith.constant 0 : index
    %c0_89 = arith.constant 0 : index
    %c0_90 = arith.constant 0 : index
    %96 = vector.load %arg6[%c0_88, %c0_89, %c0_90] : memref<9x4x8xbf16, #tpu.memory_space<vmem>>, vector<1x4x8xbf16>
    %97 = vector.shape_cast %96 : vector<1x4x8xbf16> to vector<4x8xbf16>
    %cst_91 = arith.constant dense<0.000000e+00> : vector<256x8xf32>
    %98 = tpu.matmul %95, %97, %cst_91 {dimension_numbers = #tpu.dot_dimension_numbers<[1], [0], [0], [1], [0, 0, 1, 1], [], []>} : vector<256x4xbf16>, vector<4x8xbf16>, vector<256x8xf32> -> vector<256x8xf32>
    %99 = arith.addf %92, %98 : vector<256x8xf32>
    %c0_92 = arith.constant 0 : index
    %c8_93 = arith.constant 8 : index
    %c0_94 = arith.constant 0 : index
    %100 = vector.load %arg17[%c0_92, %c8_93, %c0_94] : memref<18x25x4xf32, #tpu.memory_space<vmem>>, vector<16x16x4xf32>
    %101 = vector.shape_cast %100 : vector<16x16x4xf32> to vector<256x4xf32>
    %102 = arith.truncf %101 : vector<256x4xf32> to vector<256x4xbf16>
    %c1_95 = arith.constant 1 : index
    %c0_96 = arith.constant 0 : index
    %c0_97 = arith.constant 0 : index
    %103 = vector.load %arg6[%c1_95, %c0_96, %c0_97] : memref<9x4x8xbf16, #tpu.memory_space<vmem>>, vector<1x4x8xbf16>
    %104 = vector.shape_cast %103 : vector<1x4x8xbf16> to vector<4x8xbf16>
    %cst_98 = arith.constant dense<0.000000e+00> : vector<256x8xf32>
    %105 = tpu.matmul %102, %104, %cst_98 {dimension_numbers = #tpu.dot_dimension_numbers<[1], [0], [0], [1], [0, 0, 1, 1], [], []>} : vector<256x4xbf16>, vector<4x8xbf16>, vector<256x8xf32> -> vector<256x8xf32>
    %106 = arith.addf %99, %105 : vector<256x8xf32>
    %c0_99 = arith.constant 0 : index
    %c9_100 = arith.constant 9 : index
    %c0_101 = arith.constant 0 : index
    %107 = vector.load %arg17[%c0_99, %c9_100, %c0_101] : memref<18x25x4xf32, #tpu.memory_space<vmem>>, vector<16x16x4xf32>
    %108 = vector.shape_cast %107 : vector<16x16x4xf32> to vector<256x4xf32>
    %109 = arith.truncf %108 : vector<256x4xf32> to vector<256x4xbf16>
    %c2_102 = arith.constant 2 : index
    %c0_103 = arith.constant 0 : index
    %c0_104 = arith.constant 0 : index
    %110 = vector.load %arg6[%c2_102, %c0_103, %c0_104] : memref<9x4x8xbf16, #tpu.memory_space<vmem>>, vector<1x4x8xbf16>
    %111 = vector.shape_cast %110 : vector<1x4x8xbf16> to vector<4x8xbf16>
    %cst_105 = arith.constant dense<0.000000e+00> : vector<256x8xf32>
    %112 = tpu.matmul %109, %111, %cst_105 {dimension_numbers = #tpu.dot_dimension_numbers<[1], [0], [0], [1], [0, 0, 1, 1], [], []>} : vector<256x4xbf16>, vector<4x8xbf16>, vector<256x8xf32> -> vector<256x8xf32>
    %113 = arith.addf %106, %112 : vector<256x8xf32>
    %c1_106 = arith.constant 1 : index
    %c7_107 = arith.constant 7 : index
    %c0_108 = arith.constant 0 : index
    %114 = vector.load %arg17[%c1_106, %c7_107, %c0_108] : memref<18x25x4xf32, #tpu.memory_space<vmem>>, vector<16x16x4xf32>
    %115 = vector.shape_cast %114 : vector<16x16x4xf32> to vector<256x4xf32>
    %116 = arith.truncf %115 : vector<256x4xf32> to vector<256x4xbf16>
    %c3_109 = arith.constant 3 : index
    %c0_110 = arith.constant 0 : index
    %c0_111 = arith.constant 0 : index
    %117 = vector.load %arg6[%c3_109, %c0_110, %c0_111] : memref<9x4x8xbf16, #tpu.memory_space<vmem>>, vector<1x4x8xbf16>
    %118 = vector.shape_cast %117 : vector<1x4x8xbf16> to vector<4x8xbf16>
    %cst_112 = arith.constant dense<0.000000e+00> : vector<256x8xf32>
    %119 = tpu.matmul %116, %118, %cst_112 {dimension_numbers = #tpu.dot_dimension_numbers<[1], [0], [0], [1], [0, 0, 1, 1], [], []>} : vector<256x4xbf16>, vector<4x8xbf16>, vector<256x8xf32> -> vector<256x8xf32>
    %120 = arith.addf %113, %119 : vector<256x8xf32>
    %c1_113 = arith.constant 1 : index
    %c8_114 = arith.constant 8 : index
    %c0_115 = arith.constant 0 : index
    %121 = vector.load %arg17[%c1_113, %c8_114, %c0_115] : memref<18x25x4xf32, #tpu.memory_space<vmem>>, vector<16x16x4xf32>
    %122 = vector.shape_cast %121 : vector<16x16x4xf32> to vector<256x4xf32>
    %123 = arith.truncf %122 : vector<256x4xf32> to vector<256x4xbf16>
    %c4_116 = arith.constant 4 : index
    %c0_117 = arith.constant 0 : index
    %c0_118 = arith.constant 0 : index
    %124 = vector.load %arg6[%c4_116, %c0_117, %c0_118] : memref<9x4x8xbf16, #tpu.memory_space<vmem>>, vector<1x4x8xbf16>
    %125 = vector.shape_cast %124 : vector<1x4x8xbf16> to vector<4x8xbf16>
    %cst_119 = arith.constant dense<0.000000e+00> : vector<256x8xf32>
    %126 = tpu.matmul %123, %125, %cst_119 {dimension_numbers = #tpu.dot_dimension_numbers<[1], [0], [0], [1], [0, 0, 1, 1], [], []>} : vector<256x4xbf16>, vector<4x8xbf16>, vector<256x8xf32> -> vector<256x8xf32>
    %127 = arith.addf %120, %126 : vector<256x8xf32>
    %c1_120 = arith.constant 1 : index
    %c9_121 = arith.constant 9 : index
    %c0_122 = arith.constant 0 : index
    %128 = vector.load %arg17[%c1_120, %c9_121, %c0_122] : memref<18x25x4xf32, #tpu.memory_space<vmem>>, vector<16x16x4xf32>
    %129 = vector.shape_cast %128 : vector<16x16x4xf32> to vector<256x4xf32>
    %130 = arith.truncf %129 : vector<256x4xf32> to vector<256x4xbf16>
    %c5_123 = arith.constant 5 : index
    %c0_124 = arith.constant 0 : index
    %c0_125 = arith.constant 0 : index
    %131 = vector.load %arg6[%c5_123, %c0_124, %c0_125] : memref<9x4x8xbf16, #tpu.memory_space<vmem>>, vector<1x4x8xbf16>
    %132 = vector.shape_cast %131 : vector<1x4x8xbf16> to vector<4x8xbf16>
    %cst_126 = arith.constant dense<0.000000e+00> : vector<256x8xf32>
    %133 = tpu.matmul %130, %132, %cst_126 {dimension_numbers = #tpu.dot_dimension_numbers<[1], [0], [0], [1], [0, 0, 1, 1], [], []>} : vector<256x4xbf16>, vector<4x8xbf16>, vector<256x8xf32> -> vector<256x8xf32>
    %134 = arith.addf %127, %133 : vector<256x8xf32>
    %c2_127 = arith.constant 2 : index
    %c7_128 = arith.constant 7 : index
    %c0_129 = arith.constant 0 : index
    %135 = vector.load %arg17[%c2_127, %c7_128, %c0_129] : memref<18x25x4xf32, #tpu.memory_space<vmem>>, vector<16x16x4xf32>
    %136 = vector.shape_cast %135 : vector<16x16x4xf32> to vector<256x4xf32>
    %137 = arith.truncf %136 : vector<256x4xf32> to vector<256x4xbf16>
    %c6_130 = arith.constant 6 : index
    %c0_131 = arith.constant 0 : index
    %c0_132 = arith.constant 0 : index
    %138 = vector.load %arg6[%c6_130, %c0_131, %c0_132] : memref<9x4x8xbf16, #tpu.memory_space<vmem>>, vector<1x4x8xbf16>
    %139 = vector.shape_cast %138 : vector<1x4x8xbf16> to vector<4x8xbf16>
    %cst_133 = arith.constant dense<0.000000e+00> : vector<256x8xf32>
    %140 = tpu.matmul %137, %139, %cst_133 {dimension_numbers = #tpu.dot_dimension_numbers<[1], [0], [0], [1], [0, 0, 1, 1], [], []>} : vector<256x4xbf16>, vector<4x8xbf16>, vector<256x8xf32> -> vector<256x8xf32>
    %141 = arith.addf %134, %140 : vector<256x8xf32>
    %c2_134 = arith.constant 2 : index
    %c8_135 = arith.constant 8 : index
    %c0_136 = arith.constant 0 : index
    %142 = vector.load %arg17[%c2_134, %c8_135, %c0_136] : memref<18x25x4xf32, #tpu.memory_space<vmem>>, vector<16x16x4xf32>
    %143 = vector.shape_cast %142 : vector<16x16x4xf32> to vector<256x4xf32>
    %144 = arith.truncf %143 : vector<256x4xf32> to vector<256x4xbf16>
    %c7_137 = arith.constant 7 : index
    %c0_138 = arith.constant 0 : index
    %c0_139 = arith.constant 0 : index
    %145 = vector.load %arg6[%c7_137, %c0_138, %c0_139] : memref<9x4x8xbf16, #tpu.memory_space<vmem>>, vector<1x4x8xbf16>
    %146 = vector.shape_cast %145 : vector<1x4x8xbf16> to vector<4x8xbf16>
    %cst_140 = arith.constant dense<0.000000e+00> : vector<256x8xf32>
    %147 = tpu.matmul %144, %146, %cst_140 {dimension_numbers = #tpu.dot_dimension_numbers<[1], [0], [0], [1], [0, 0, 1, 1], [], []>} : vector<256x4xbf16>, vector<4x8xbf16>, vector<256x8xf32> -> vector<256x8xf32>
    %148 = arith.addf %141, %147 : vector<256x8xf32>
    %c2_141 = arith.constant 2 : index
    %c9_142 = arith.constant 9 : index
    %c0_143 = arith.constant 0 : index
    %149 = vector.load %arg17[%c2_141, %c9_142, %c0_143] : memref<18x25x4xf32, #tpu.memory_space<vmem>>, vector<16x16x4xf32>
    %150 = vector.shape_cast %149 : vector<16x16x4xf32> to vector<256x4xf32>
    %151 = arith.truncf %150 : vector<256x4xf32> to vector<256x4xbf16>
    %c8_144 = arith.constant 8 : index
    %c0_145 = arith.constant 0 : index
    %c0_146 = arith.constant 0 : index
    %152 = vector.load %arg6[%c8_144, %c0_145, %c0_146] : memref<9x4x8xbf16, #tpu.memory_space<vmem>>, vector<1x4x8xbf16>
    %153 = vector.shape_cast %152 : vector<1x4x8xbf16> to vector<4x8xbf16>
    %cst_147 = arith.constant dense<0.000000e+00> : vector<256x8xf32>
    %154 = tpu.matmul %151, %153, %cst_147 {dimension_numbers = #tpu.dot_dimension_numbers<[1], [0], [0], [1], [0, 0, 1, 1], [], []>} : vector<256x4xbf16>, vector<4x8xbf16>, vector<256x8xf32> -> vector<256x8xf32>
    %155 = arith.addf %148, %154 : vector<256x8xf32>
    %c0_148 = arith.constant 0 : index
    %c0_149 = arith.constant 0 : index
    %156 = vector.load %arg7[%c0_148, %c0_149] : memref<2x8xf32, #tpu.memory_space<vmem>>, vector<1x8xf32>
    %157 = vector.broadcast %156 : vector<1x8xf32> to vector<256x8xf32>
    %158 = arith.mulf %155, %157 : vector<256x8xf32>
    %c1_150 = arith.constant 1 : index
    %c0_151 = arith.constant 0 : index
    %159 = vector.load %arg7[%c1_150, %c0_151] : memref<2x8xf32, #tpu.memory_space<vmem>>, vector<1x8xf32>
    %160 = vector.broadcast %159 : vector<1x8xf32> to vector<256x8xf32>
    %161 = arith.addf %158, %160 : vector<256x8xf32>
    %cst_152 = arith.constant 0.000000e+00 : f32
    %162 = vector.broadcast %cst_152 : f32 to vector<256x8xf32>
    %163 = arith.maximumf %161, %162 : vector<256x8xf32>
    %164 = vector.extract_strided_slice %163 {offsets = [0, 0], sizes = [256, 4], strides = [1, 1]} : vector<256x8xf32> to vector<256x4xf32>
    %165 = vector.extract_strided_slice %163 {offsets = [0, 4], sizes = [256, 4], strides = [1, 1]} : vector<256x8xf32> to vector<256x4xf32>
    %166 = arith.addf %164, %165 : vector<256x4xf32>
    %cst_153 = arith.constant dense<0.000000e+00> : vector<4xf32>
    %167 = vector.multi_reduction <add>, %166, %cst_153 [0] : vector<256x4xf32> to vector<4xf32>
    %168 = vector.shape_cast %167 : vector<4xf32> to vector<1x4xf32>
    %cst_154 = arith.constant 3.906250e-03 : f32
    %169 = vector.broadcast %cst_154 : f32 to vector<1x4xf32>
    %170 = arith.mulf %168, %169 : vector<1x4xf32>
    %171 = arith.truncf %170 : vector<1x4xf32> to vector<1x4xbf16>
    %c0_155 = arith.constant 0 : index
    %c0_156 = arith.constant 0 : index
    %172 = vector.load %arg8[%c0_155, %c0_156] : memref<4x32xbf16, #tpu.memory_space<vmem>>, vector<4x32xbf16>
    %cst_157 = arith.constant dense<0.000000e+00> : vector<1x32xf32>
    %173 = tpu.matmul %171, %172, %cst_157 {dimension_numbers = #tpu.dot_dimension_numbers<[1], [0], [0], [1], [0, 0, 1, 1], [], []>} : vector<1x4xbf16>, vector<4x32xbf16>, vector<1x32xf32> -> vector<1x32xf32>
    %c0_158 = arith.constant 0 : index
    %c0_159 = arith.constant 0 : index
    %174 = vector.load %arg9[%c0_158, %c0_159] : memref<2x32xf32, #tpu.memory_space<vmem>>, vector<1x32xf32>
    %175 = arith.mulf %173, %174 : vector<1x32xf32>
    %c1_160 = arith.constant 1 : index
    %c0_161 = arith.constant 0 : index
    %176 = vector.load %arg9[%c1_160, %c0_161] : memref<2x32xf32, #tpu.memory_space<vmem>>, vector<1x32xf32>
    %177 = arith.addf %175, %176 : vector<1x32xf32>
    %cst_162 = arith.constant 0.000000e+00 : f32
    %178 = vector.broadcast %cst_162 : f32 to vector<1x32xf32>
    %179 = arith.maximumf %177, %178 : vector<1x32xf32>
    %180 = arith.truncf %179 : vector<1x32xf32> to vector<1x32xbf16>
    %c0_163 = arith.constant 0 : index
    %c0_164 = arith.constant 0 : index
    %181 = vector.load %arg10[%c0_163, %c0_164] : memref<32x8xbf16, #tpu.memory_space<vmem>>, vector<32x8xbf16>
    %cst_165 = arith.constant dense<0.000000e+00> : vector<1x8xf32>
    %182 = tpu.matmul %180, %181, %cst_165 {dimension_numbers = #tpu.dot_dimension_numbers<[1], [0], [0], [1], [0, 0, 1, 1], [], []>} : vector<1x32xbf16>, vector<32x8xbf16>, vector<1x8xf32> -> vector<1x8xf32>
    %c0_166 = arith.constant 0 : index
    %c0_167 = arith.constant 0 : index
    %183 = vector.load %arg11[%c0_166, %c0_167] : memref<1x8xf32, #tpu.memory_space<vmem>>, vector<1x8xf32>
    %184 = arith.addf %182, %183 : vector<1x8xf32>
    %185 = vector.extract_strided_slice %184 {offsets = [0, 0], sizes = [1, 4], strides = [1, 1]} : vector<1x8xf32> to vector<1x4xf32>
    %186 = vector.extract_strided_slice %184 {offsets = [0, 4], sizes = [1, 4], strides = [1, 1]} : vector<1x8xf32> to vector<1x4xf32>
    %187 = arith.maximumf %185, %186 : vector<1x4xf32>
    %188 = arith.subf %185, %187 : vector<1x4xf32>
    %189 = math.exp %188 : vector<1x4xf32>
    %190 = arith.subf %186, %187 : vector<1x4xf32>
    %191 = math.exp %190 : vector<1x4xf32>
    %192 = arith.addf %189, %191 : vector<1x4xf32>
    %193 = tpu.reciprocal %192 {approx = true} : vector<1x4xf32> -> vector<1x4xf32>
    %194 = vector.extract_strided_slice %163 {offsets = [0, 0], sizes = [256, 4], strides = [1, 1]} : vector<256x8xf32> to vector<256x4xf32>
    %195 = arith.mulf %189, %193 : vector<1x4xf32>
    %196 = vector.broadcast %195 : vector<1x4xf32> to vector<256x4xf32>
    %197 = arith.mulf %194, %196 : vector<256x4xf32>
    %198 = vector.extract_strided_slice %163 {offsets = [0, 4], sizes = [256, 4], strides = [1, 1]} : vector<256x8xf32> to vector<256x4xf32>
    %199 = arith.mulf %191, %193 : vector<1x4xf32>
    %200 = vector.broadcast %199 : vector<1x4xf32> to vector<256x4xf32>
    %201 = arith.mulf %198, %200 : vector<256x4xf32>
    %202 = arith.addf %197, %201 : vector<256x4xf32>
    %203 = arith.truncf %202 : vector<256x4xf32> to vector<256x4xbf16>
    %c0_168 = arith.constant 0 : index
    %c0_169 = arith.constant 0 : index
    %204 = vector.load %arg12[%c0_168, %c0_169] : memref<4x16xbf16, #tpu.memory_space<vmem>>, vector<4x16xbf16>
    %cst_170 = arith.constant dense<0.000000e+00> : vector<256x16xf32>
    %205 = tpu.matmul %203, %204, %cst_170 {dimension_numbers = #tpu.dot_dimension_numbers<[1], [0], [0], [1], [0, 0, 1, 1], [], []>} : vector<256x4xbf16>, vector<4x16xbf16>, vector<256x16xf32> -> vector<256x16xf32>
    %c0_171 = arith.constant 0 : index
    %c0_172 = arith.constant 0 : index
    %206 = vector.load %arg13[%c0_171, %c0_172] : memref<2x16xf32, #tpu.memory_space<vmem>>, vector<1x16xf32>
    %207 = vector.broadcast %206 : vector<1x16xf32> to vector<256x16xf32>
    %208 = arith.mulf %205, %207 : vector<256x16xf32>
    %c1_173 = arith.constant 1 : index
    %c0_174 = arith.constant 0 : index
    %209 = vector.load %arg13[%c1_173, %c0_174] : memref<2x16xf32, #tpu.memory_space<vmem>>, vector<1x16xf32>
    %210 = vector.broadcast %209 : vector<1x16xf32> to vector<256x16xf32>
    %211 = arith.addf %208, %210 : vector<256x16xf32>
    %212 = arith.addf %211, %76 : vector<256x16xf32>
    %cst_175 = arith.constant 0.000000e+00 : f32
    %213 = vector.broadcast %cst_175 : f32 to vector<256x16xf32>
    %214 = arith.maximumf %212, %213 : vector<256x16xf32>
    %c0_176 = arith.constant 0 : index
    %c0_177 = arith.constant 0 : index
    %215 = vector.load %arg14[%c0_176, %c0_177] : memref<2x16xf32, #tpu.memory_space<vmem>>, vector<1x16xf32>
    %216 = vector.broadcast %215 : vector<1x16xf32> to vector<256x16xf32>
    %217 = arith.mulf %214, %216 : vector<256x16xf32>
    %c1_178 = arith.constant 1 : index
    %c0_179 = arith.constant 0 : index
    %218 = vector.load %arg14[%c1_178, %c0_179] : memref<2x16xf32, #tpu.memory_space<vmem>>, vector<1x16xf32>
    %219 = vector.broadcast %218 : vector<1x16xf32> to vector<256x16xf32>
    %220 = arith.addf %217, %219 : vector<256x16xf32>
    %cst_180 = arith.constant 0.000000e+00 : f32
    %221 = vector.broadcast %cst_180 : f32 to vector<256x16xf32>
    %222 = arith.maximumf %220, %221 : vector<256x16xf32>
    %c0_181 = arith.constant 0 : index
    %c0_182 = arith.constant 0 : index
    %223 = vector.load %arg18[%c0_181, %c0_182] : memref<256x16xf32, #tpu.memory_space<vmem>>, vector<256x16xf32>
    tpu.vector_store %arg18[%c0_181, %c0_182], %222 {strides = array<i32>} : memref<256x16xf32, #tpu.memory_space<vmem>>, vector<256x16xf32>,
    %c0_183 = arith.constant 0 : index
    %c0_184 = arith.constant 0 : index
    %224 = tpu.strided_load %arg18[%c0_183, %c0_184] {strides = array<i32: 2, 1>} : memref<256x16xf32, #tpu.memory_space<vmem>>, vector<128x16xf32>
    %c1_185 = arith.constant 1 : index
    %c0_186 = arith.constant 0 : index
    %225 = tpu.strided_load %arg18[%c1_185, %c0_186] {strides = array<i32: 2, 1>} : memref<256x16xf32, #tpu.memory_space<vmem>>, vector<128x16xf32>
    %226 = arith.maximumf %224, %225 : vector<128x16xf32>
    %227 = vector.shape_cast %226 : vector<128x16xf32> to vector<8x2x8x16xf32>
    %228 = vector.extract_strided_slice %227 {offsets = [0, 0, 0, 0], sizes = [8, 1, 8, 16], strides = [1, 1, 1, 1]} : vector<8x2x8x16xf32> to vector<8x1x8x16xf32>
    %229 = vector.shape_cast %228 : vector<8x1x8x16xf32> to vector<8x8x16xf32>
    %230 = vector.extract_strided_slice %227 {offsets = [0, 1, 0, 0], sizes = [8, 1, 8, 16], strides = [1, 1, 1, 1]} : vector<8x2x8x16xf32> to vector<8x1x8x16xf32>
    %231 = vector.shape_cast %230 : vector<8x1x8x16xf32> to vector<8x8x16xf32>
    %232 = arith.maximumf %229, %231 : vector<8x8x16xf32>
    %c0_187 = arith.constant 0 : index
    %c0_188 = arith.constant 0 : index
    %c0_189 = arith.constant 0 : index
    %c0_190 = arith.constant 0 : index
    %233 = vector.load %arg15[%c0_187, %c0_188, %c0_189, %c0_190] : memref<1x8x8x16xf32, #tpu.memory_space<vmem>>, vector<1x8x8x16xf32>
    %234 = vector.shape_cast %233 : vector<1x8x8x16xf32> to vector<8x8x16xf32>
    %235 = vector.shape_cast %232 : vector<8x8x16xf32> to vector<1x8x8x16xf32>
    tpu.vector_store %arg15[%c0_187, %c0_188, %c0_189, %c0_190], %235 {strides = array<i32>} : memref<1x8x8x16xf32, #tpu.memory_space<vmem>>, vector<1x8x8x16xf32>,
    return
  }
  func.func @transform_0(%arg0: i32) -> (i32, i32, i32, i32) {
    %c0_i32 = arith.constant 0 : i32
    %c0_i32_0 = arith.constant 0 : i32
    %c0_i32_1 = arith.constant 0 : i32
    %c0_i32_2 = arith.constant 0 : i32
    return %arg0, %c0_i32, %c0_i32_0, %c0_i32_1 : i32, i32, i32, i32
  }
  func.func @transform_1(%arg0: i32) -> (i32, i32, i32) {
    %c0_i32 = arith.constant 0 : i32
    %c0_i32_0 = arith.constant 0 : i32
    %c0_i32_1 = arith.constant 0 : i32
    %c0_i32_2 = arith.constant 0 : i32
    return %c0_i32, %c0_i32_0, %c0_i32_1 : i32, i32, i32
  }
  func.func @transform_2(%arg0: i32) -> (i32, i32) {
    %c0_i32 = arith.constant 0 : i32
    %c0_i32_0 = arith.constant 0 : i32
    %c0_i32_1 = arith.constant 0 : i32
    return %c0_i32, %c0_i32_0 : i32, i32
  }
  func.func @transform_3(%arg0: i32) -> (i32, i32) {
    %c0_i32 = arith.constant 0 : i32
    %c0_i32_0 = arith.constant 0 : i32
    %c0_i32_1 = arith.constant 0 : i32
    return %c0_i32, %c0_i32_0 : i32, i32
  }
  func.func @transform_4(%arg0: i32) -> (i32, i32) {
    %c0_i32 = arith.constant 0 : i32
    %c0_i32_0 = arith.constant 0 : i32
    %c0_i32_1 = arith.constant 0 : i32
    return %c0_i32, %c0_i32_0 : i32, i32
  }
  func.func @transform_5(%arg0: i32) -> (i32, i32, i32) {
    %c0_i32 = arith.constant 0 : i32
    %c0_i32_0 = arith.constant 0 : i32
    %c0_i32_1 = arith.constant 0 : i32
    %c0_i32_2 = arith.constant 0 : i32
    return %c0_i32, %c0_i32_0, %c0_i32_1 : i32, i32, i32
  }
  func.func @transform_6(%arg0: i32) -> (i32, i32) {
    %c0_i32 = arith.constant 0 : i32
    %c0_i32_0 = arith.constant 0 : i32
    %c0_i32_1 = arith.constant 0 : i32
    return %c0_i32, %c0_i32_0 : i32, i32
  }
  func.func @transform_7(%arg0: i32) -> (i32, i32) {
    %c0_i32 = arith.constant 0 : i32
    %c0_i32_0 = arith.constant 0 : i32
    %c0_i32_1 = arith.constant 0 : i32
    return %c0_i32, %c0_i32_0 : i32, i32
  }
  func.func @transform_8(%arg0: i32) -> (i32, i32) {
    %c0_i32 = arith.constant 0 : i32
    %c0_i32_0 = arith.constant 0 : i32
    %c0_i32_1 = arith.constant 0 : i32
    return %c0_i32, %c0_i32_0 : i32, i32
  }
  func.func @transform_9(%arg0: i32) -> (i32, i32) {
    %c0_i32 = arith.constant 0 : i32
    %c0_i32_0 = arith.constant 0 : i32
    %c0_i32_1 = arith.constant 0 : i32
    return %c0_i32, %c0_i32_0 : i32, i32
  }
  func.func @transform_10(%arg0: i32) -> (i32, i32) {
    %c0_i32 = arith.constant 0 : i32
    %c0_i32_0 = arith.constant 0 : i32
    %c0_i32_1 = arith.constant 0 : i32
    return %c0_i32, %c0_i32_0 : i32, i32
  }
  func.func @transform_11(%arg0: i32) -> (i32, i32) {
    %c0_i32 = arith.constant 0 : i32
    %c0_i32_0 = arith.constant 0 : i32
    %c0_i32_1 = arith.constant 0 : i32
    return %c0_i32, %c0_i32_0 : i32, i32
  }
  func.func @transform_12(%arg0: i32) -> (i32, i32) {
    %c0_i32 = arith.constant 0 : i32
    %c0_i32_0 = arith.constant 0 : i32
    %c0_i32_1 = arith.constant 0 : i32
    return %c0_i32, %c0_i32_0 : i32, i32
  }
  func.func @transform_13(%arg0: i32) -> (i32, i32) {
    %c0_i32 = arith.constant 0 : i32
    %c0_i32_0 = arith.constant 0 : i32
    %c0_i32_1 = arith.constant 0 : i32
    return %c0_i32, %c0_i32_0 : i32, i32
  }
  func.func @transform_14(%arg0: i32) -> (i32, i32, i32, i32) {
    %c0_i32 = arith.constant 0 : i32
    %c0_i32_0 = arith.constant 0 : i32
    %c0_i32_1 = arith.constant 0 : i32
    %c0_i32_2 = arith.constant 0 : i32
    return %arg0, %c0_i32, %c0_i32_0, %c0_i32_1 : i32, i32, i32, i32
  }
}

</mosaic_0001>

<bundles_post_ra>
// kernel: tpu_custom_call.1
= control target key start
LH: loop header
LB: loop body
LE: loop exit
PB: predicated region body
PF: predicated region fallthrough
CT: control target
= control target key end

     0   :  { %s9720_s0 = inlined_call_operand.vmem [shape: f32[2,16,16,4], index: 0, kind: input, shape index: {}]   ;;  %s9721_s1 = inlined_call_operand.vmem [shape: bf16[9,4,16], index: 1, kind: input, shape index: {}]   ;;  %s9722_s2 = inlined_call_operand.vmem [shape: f32[2,16], index: 2, kind: input, shape index: {}]   ;;  %s9723_s3 = inlined_call_operand.vmem [shape: bf16[16,4], index: 3, kind: input, shape index: {}]   ;;  %s9724_s4 = inlined_call_operand.vmem [shape: f32[2,4], index: 4, kind: input, shape index: {}]   ;;  %s9725_s5 = inlined_call_operand.vmem [shape: bf16[9,4,8], index: 5, kind: input, shape index: {}]   ;;  %s9726_s6 = inlined_call_operand.vmem [shape: f32[2,8], index: 6, kind: input, shape index: {}]   ;;  %s9727_s7 = inlined_call_operand.vmem [shape: bf16[4,32], index: 7, kind: input, shape index: {}]   ;;  %s9728_s8 = inlined_call_operand.vmem [shape: f32[2,32], index: 8, kind: input, shape index: {}]   ;;  %s9729_s9 = inlined_call_operand.vmem [shape: bf16[32,8], index: 9, kind: input, shape index: {}]   ;;  %s9730_s10 = inlined_call_operand.vmem [shape: f32[1,8], index: 10, kind: input, shape index: {}]   ;;  %s9731_s11 = inlined_call_operand.vmem [shape: bf16[4,16], index: 11, kind: input, shape index: {}]   ;;  %s9732_s12 = inlined_call_operand.vmem [shape: f32[2,16], index: 12, kind: input, shape index: {}]   ;;  %s9733_s13 = inlined_call_operand.vmem [shape: f32[2,16], index: 13, kind: input, shape index: {}]   ;;  %s9734_s14 = inlined_call_operand.hbm [shape: f32[2,8,8,16], index: 14, kind: output, shape index: {}]  }
   0x1   :  { %9819 = sst [smem:[#allocation52_spill]] %s9720_s0 }
   0x2   :  { %9820 = sst [smem:[#allocation53_spill]] %s9721_s1 }
   0x3   :  { %9821 = sst [smem:[#allocation54_spill]] %s9722_s2 }
   0x4   :  { %9822 = sst [smem:[#allocation55_spill]] %s9723_s3 }
   0x5   :  { %19 = vsyncpa [#allocation6], 0 }
   0x6   :  { %21 = vsyncpa [#allocation6 + $0x1], 0  ;;  %s6754_s29 = smov 0   ;;  %s6756_s30 = smov 0  }
   0x7   :  { %s6758_s15 = smov 0   ;;  %s6760_s16 = smov 0  }
   0x8 LB: > { %s6775_s17 = sadd.s32 4294967295, %s6672_s16   ;;  %s6180_s18 = sadd.s32 4294967294, %s6672_s16   ;;  %s6672_s16 = sphi %s6760_s16, %s9982_s16   ;;  %s6668_s15 = sphi %s6758_s15, %s9981_s15   ;;  %s6664_s30 = sphi %s6756_s30, %s9980_s30   ;;  %s6660_s29 = sphi %s6754_s29, %s9979_s29  }
   0x9   : > { %s6779_s19 = sadd.s32 1, %s6672_s16   ;;  %s333_s20 = sadd.s32 1, %s6668_s15 }
   0xa   : > { %s330_s21 = ssub.s32 %s6672_s16, %s6779_s19  ;;  %p343_p0 = scmp.ne.s32.totalorder %s6668_s15, %s6664_s30 }
   0xb   : > { %p331_p1 = scmp.eq.s32.totalorder %s330_s21, 0  ;;  %p344_p2 = scmp.eq.s32.totalorder %s6775_s17, 1 }
   0xc   : > { %p349_p3 = scmp.ne.s32.totalorder %s6664_s30, %s6660_s29  ;;  %p350_p4 = scmp.eq.s32.totalorder %s6180_s18, 1 }
   0xd   : > { %s6790_s22 = scalar_select %p331_p1, %s6668_s15, %s333_s20  }
   0xe   : > { %p6792_p5 = por %p344_p2, %p343_p0  ;;  %p6796_p6 = por %p350_p4, %p349_p3 }
   0xf   : > { %p6183_p7 = scmp.ge.s32.totalorder %s6672_s16, 1  ;;  %p415_p8 = scmp.lt.s32.totalorder %s6672_s16, 3 }
  0x11   : > { %p416_p9 = pnand %p6183_p7, %p415_p8 }
  0x13   : > { %419 = sbr.rel (%p416_p9) target bundleno = 3252 (0xcb4), region = 76 }
  0x18   : > { %s9825_s1 = sld [smem:[#allocation53_spill]]  ;;  %vm753_vm0 = vcmask 1041408   ;;  %vm467_vm1 = vcmask 31744   ;;  %v6674_v6 = vmov 0.0   ;;  %vm471_vm2 = vcmask 24576   ;;  %p461_p10 = scmp.lt.s32.totalorder %s6775_s17, 1 }
  0x19   : > { %469 = vst.msk [vmem:[#allocation2 + $0x8] sm:$0xff] %vm467_vm1, %v6674_v6  ;;  %s9826_s0 = sld [smem:[#allocation52_spill]]  ;;  %vm2665_vm3 = vcmask 130048   ;;  %s9816_s28 = smov 124   ;;  %vm5316_vm4 = vcmask 261120  }
  0x1a   : > { %470 = vst.msk [vmem:[#allocation2 + $0x10] sm:$0xff] %vm467_vm1, %v6674_v6  ;;  %s462_s26 = scalar_select %p461_p10, %s6775_s17, 1 }
  0x1b   : > { %468 = vst.msk [vmem:[#allocation2] sm:$0xff] %vm467_vm1, %v6674_v6  ;;  %s9841_s3 = sld [smem:[#allocation55_spill]]  ;;  %s6676_s18 = smov 4  }
  0x1c   : > { %473 = vst.msk [vmem:[#allocation2 + $0x20] sm:$0xff] %vm467_vm1, %v6674_v6  ;;  %s6542_s27 = sshll.u32 %s462_s26, 8  ;;  %s9856_s2 = sld [smem:[#allocation54_spill]] }
  0x1d   : > { %474 = vst.msk [vmem:[#allocation2 + $0x28] sm:$0xff] %vm467_vm1, %v6674_v6  ;;  %s9818_s25 = sand.u32 1, %s6664_s30  }
  0x1e   : > { %v6187_v0 = vld [vmem:[%s9825_s1 + $0x2] sm:$0x3]  ;;  %v654_v1 = vld [vmem:[%s9825_s1] sm:$0x3]  ;;  %v6220_v4 = vld [vmem:[%s9825_s1 + $0x4] sm:$0x3] }
  0x1f   : > { %v755_v2 = vsel %vm753_vm0, %v6187_v0, 0  ;;  %v895_v3 = vsel %vm753_vm0, %v654_v1, 0  ;;  %v1085_v5 = vsel %vm753_vm0, %v6220_v4, 0  ;;  %475 = vst.msk [vmem:[#allocation2 + $0x30] sm:$0xff] %vm467_vm1, %v6674_v6  ;;  %v6237_v13 = vld [vmem:[%s9825_s1 + $0x6] sm:$0x3]  ;;  %s7104_s20 = scalar_lea.vmem %s9826_s0, %s6542_s27 }
  0x20   : > { %764 = vmatpush.bf16.msra.mxu0 %v755_v2  ;;  %904 = vmatpush.bf16.msra.mxu1 %v895_v3  ;;  %477 = vst.msk [vmem:[#allocation2 + $0x40] sm:$0xff] %vm467_vm1, %v6674_v6  ;;  %v655_v7 = vld [vmem:[#allocation2 + $0x8] sm:$0xff]  ;;  %v1307_v14 = vsel %vm753_vm0, %v6237_v13, 0  ;;  %v541_v18 = vld [vmem:[%s7104_s20] sm:$0xff]  ;;  %v543_v20 = vld [vmem:[%s7104_s20 + $0x10] sm:$0xff]  ;;  %s9913_s27 = smov 124  }
  0x21   : > { %1094 = vmatpush.bf16.msra.mxu2 %v1085_v5  ;;  %478 = vst.msk [vmem:[#allocation2 + $0x48] sm:$0xff] %vm467_vm1, %v6674_v6  ;;  %v656_v8 = vld [vmem:[#allocation2 + $0x10] sm:$0xff]  ;;  %6547 = vmatpush.bf16.msra.mxu3 %v1307_v14  ;;  %v542_v19 = vld [vmem:[%s7104_s20 + $0x8] sm:$0xff]  ;;  %v544_v21 = vld [vmem:[%s7104_s20 + $0x18] sm:$0xff]  ;;  %s6184_s26 = sshll.u32 %s9818_s25, 6  ;;  %s9978_s0 = sand.u32 1, %s6664_s30  }
  0x22   : > { %479 = vst.msk [vmem:[#allocation2 + $0x50] sm:$0xff] %vm467_vm1, %v6674_v6  ;;  %v607_v9 = vld [vmem:[#allocation2 + $0xf] sm:$0xff]  ;;  %v687_v10 = vpack.c.bf16 %v656_v8, %v655_v7  ;;  %v606_v11 = vld [vmem:[#allocation2 + $0x7] sm:$0xff]  ;;  %v548_v25 = vld [vmem:[%s7104_s20 + $0x38] sm:$0xff] }
  0x23   : > { %481 = vst.msk [vmem:[#allocation2 + $0x60] sm:$0xff] %vm467_vm1, %v6674_v6  ;;  %v638_v12 = vpack.c.bf16 %v607_v9, %v606_v11  ;;  %v986_v15 = vld [vmem:[#allocation2 + $0x9] sm:$0xff]  ;;  %v545_v22 = vld [vmem:[%s7104_s20 + $0x20] sm:$0xff]  ;;  %v552_v50 = vld [vmem:[%s7104_s20 + $0x58] sm:$0xff] }
  0x24   : > { %482 = vst.msk [vmem:[#allocation2 + $0x68] sm:$0xff] %vm467_vm1, %v6674_v6  ;;  %6188 = vmatmul.msk.bf16.vlgmr.msra.gmra.mxu0 %vm467_vm1, %v687_v10  ;;  %v546_v23 = vld [vmem:[%s7104_s20 + $0x28] sm:$0xff]  ;;  %v547_v24 = vld [vmem:[%s7104_s20 + $0x30] sm:$0xff]  ;;  %v549_v38 = vld [vmem:[%s7104_s20 + $0x40] sm:$0xff] }
  0x25   : > { %483 = vst.msk [vmem:[#allocation2 + $0x70] sm:$0xff] %vm467_vm1, %v6674_v6  ;;  %6204 = vmatmul.msk.bf16.vlgmr.msra.gmra.mxu1 %vm467_vm1, %v638_v12  ;;  %1316 = vmatpush.bf16.msrb.mxu0 %v1307_v14  ;;  %v550_v39 = vld [vmem:[%s7104_s20 + $0x48] sm:$0xff]  ;;  %v551_v49 = vld [vmem:[%s7104_s20 + $0x50] sm:$0xff]  ;;  %v553_v60 = vld [vmem:[%s7104_s20 + $0x60] sm:$0xff] }
  0x26   : > { %485 = vst.msk [vmem:[#allocation2 + $0x80] sm:$0xff] %vm467_vm1, %v6674_v6  ;;  %v554_v61 = vld [vmem:[%s7104_s20 + $0x68] sm:$0xff]  ;;  %v555_v7 = vld [vmem:[%s7104_s20 + $0x70] sm:$0xff]  ;;  %v556_v8 = vld [vmem:[%s7104_s20 + $0x78] sm:$0xff] }
  0x27   : > { %486 = vst.msk [vmem:[#allocation2 + $0x88] sm:$0xff] %vm467_vm1, %v6674_v6 }
  0x28   : > { %487 = vst.msk [vmem:[#allocation2 + $0x90] sm:$0xff] %vm467_vm1, %v6674_v6 }
  0x29   : > { %489 = vst.msk [vmem:[#allocation2 + $0xa0] sm:$0xff] %vm467_vm1, %v6674_v6 }
  0x2a   : > { %490 = vst.msk [vmem:[#allocation2 + $0xa8] sm:$0xff] %vm467_vm1, %v6674_v6 }
  0x2b   : > { %491 = vst.msk [vmem:[#allocation2 + $0xb0] sm:$0xff] %vm467_vm1, %v6674_v6 }
  0x2c   : > { %493 = vst.msk [vmem:[#allocation2 + $0xc0] sm:$0xff] %vm467_vm1, %v6674_v6 }
  0x2d   : > { %494 = vst.msk [vmem:[#allocation2 + $0xc8] sm:$0xff] %vm467_vm1, %v6674_v6 }
  0x2e   : > { %495 = vst.msk [vmem:[#allocation2 + $0xd0] sm:$0xff] %vm467_vm1, %v6674_v6 }
  0x2f   : > { %497 = vst.msk [vmem:[#allocation2 + $0xe0] sm:$0xff] %vm467_vm1, %v6674_v6 }
  0x30   : > { %498 = vst.msk [vmem:[#allocation2 + $0xe8] sm:$0xff] %vm467_vm1, %v6674_v6 }
  0x31   : > { %499 = vst.msk [vmem:[#allocation2 + $0xf0] sm:$0xff] %vm467_vm1, %v6674_v6 }
  0x32   : > { %501 = vst.msk [vmem:[#allocation2 + $0x100] sm:$0xff] %vm467_vm1, %v6674_v6 }
  0x33   : > { %502 = vst.msk [vmem:[#allocation2 + $0x108] sm:$0xff] %vm467_vm1, %v6674_v6 }
  0x34   : > { %503 = vst.msk [vmem:[#allocation2 + $0x110] sm:$0xff] %vm467_vm1, %v6674_v6 }
  0x35   : > { %505 = vst.msk [vmem:[#allocation2 + $0x120] sm:$0xff] %vm467_vm1, %v6674_v6 }
  0x36   : > { %506 = vst.msk [vmem:[#allocation2 + $0x128] sm:$0xff] %vm467_vm1, %v6674_v6 }
  0x37   : > { %507 = vst.msk [vmem:[#allocation2 + $0x130] sm:$0xff] %vm467_vm1, %v6674_v6 }
  0x38   : > { %509 = vst.msk [vmem:[#allocation2 + $0x140] sm:$0xff] %vm467_vm1, %v6674_v6 }
  0x39   : > { %510 = vst.msk [vmem:[#allocation2 + $0x148] sm:$0xff] %vm467_vm1, %v6674_v6 }
  0x3a   : > { %511 = vst.msk [vmem:[#allocation2 + $0x150] sm:$0xff] %vm467_vm1, %v6674_v6 }
  0x3b   : > { %513 = vst.msk [vmem:[#allocation2 + $0x160] sm:$0xff] %vm467_vm1, %v6674_v6 }
  0x3c   : > { %514 = vst.msk [vmem:[#allocation2 + $0x168] sm:$0xff] %vm467_vm1, %v6674_v6 }
  0x3d   : > { %515 = vst.msk [vmem:[#allocation2 + $0x170] sm:$0xff] %vm467_vm1, %v6674_v6 }
  0x3e   : > { %517 = vst.msk [vmem:[#allocation2 + $0x180] sm:$0xff] %vm467_vm1, %v6674_v6 }
  0x3f   : > { %518 = vst.msk [vmem:[#allocation2 + $0x188] sm:$0xff] %vm467_vm1, %v6674_v6 }
  0x40   : > { %519 = vst.msk [vmem:[#allocation2 + $0x190] sm:$0xff] %vm467_vm1, %v6674_v6 }
  0x41   : > { %521 = vst.msk [vmem:[#allocation2 + $0x1a0] sm:$0xff] %vm467_vm1, %v6674_v6 }
  0x42   : > { %522 = vst.msk [vmem:[#allocation2 + $0x1a8] sm:$0xff] %vm467_vm1, %v6674_v6 }
  0x43   : > { %523 = vst.msk [vmem:[#allocation2 + $0x1b0] sm:$0xff] %vm467_vm1, %v6674_v6 }
  0x44   : > { %525 = vst.msk [vmem:[#allocation2 + $0x1c0] sm:$0xff] %vm467_vm1, %v6674_v6 }
  0x45   : > { %526 = vst.msk [vmem:[#allocation2 + $0x1c8] sm:$0xff] %vm467_vm1, %v6674_v6 }
  0x46   : > { %527 = vst.msk [vmem:[#allocation2 + $0x1d0] sm:$0xff] %vm467_vm1, %v6674_v6 }
  0x47   : > { %529 = vst.msk [vmem:[#allocation2 + $0x1e0] sm:$0xff] %vm467_vm1, %v6674_v6 }
  0x48   : > { %530 = vst.msk [vmem:[#allocation2 + $0x1e8] sm:$0xff] %vm467_vm1, %v6674_v6 }
  0x49   : > { %531 = vst.msk [vmem:[#allocation2 + $0x1f0] sm:$0xff] %vm467_vm1, %v6674_v6 }
  0x4a   : > { %533 = vst.msk [vmem:[#allocation2 + $0x200] sm:$0xff] %vm467_vm1, %v6674_v6 }
  0x4b   : > { %534 = vst.msk [vmem:[#allocation2 + $0x208] sm:$0xff] %vm467_vm1, %v6674_v6 }
  0x4c   : > { %535 = vst.msk [vmem:[#allocation2 + $0x210] sm:$0xff] %vm467_vm1, %v6674_v6 }
  0x4d   : > { %537 = vst.msk [vmem:[#allocation2 + $0x220] sm:$0xff] %vm467_vm1, %v6674_v6 }
  0x4e   : > { %538 = vst.msk [vmem:[#allocation2 + $0x228] sm:$0xff] %vm467_vm1, %v6674_v6 }
  0x4f   : > { %539 = vst.msk [vmem:[#allocation2 + $0x230] sm:$0xff] %vm467_vm1, %v6674_v6 }
  0x50   : > { %2903 = vst.msk [vmem:[#allocation3] sm:$0xff] %vm467_vm1, %v6674_v6 }
  0x51   : > { %2904 = vst.msk [vmem:[#allocation3 + $0x8] sm:$0xff] %vm467_vm1, %v6674_v6 }
  0x52   : > { %2905 = vst.msk [vmem:[#allocation3 + $0x10] sm:$0xff] %vm467_vm1, %v6674_v6 }
  0x53   : > { %2907 = vst.msk [vmem:[#allocation3 + $0x20] sm:$0xff] %vm467_vm1, %v6674_v6 }
  0x54   : > { %2908 = vst.msk [vmem:[#allocation3 + $0x28] sm:$0xff] %vm467_vm1, %v6674_v6 }
  0x55   : > { %2909 = vst.msk [vmem:[#allocation3 + $0x30] sm:$0xff] %vm467_vm1, %v6674_v6 }
  0x56   : > { %2911 = vst.msk [vmem:[#allocation3 + $0x40] sm:$0xff] %vm467_vm1, %v6674_v6 }
  0x57   : > { %2912 = vst.msk [vmem:[#allocation3 + $0x48] sm:$0xff] %vm467_vm1, %v6674_v6 }
  0x58   : > { %2913 = vst.msk [vmem:[#allocation3 + $0x50] sm:$0xff] %vm467_vm1, %v6674_v6 }
  0x59   : > { %2915 = vst.msk [vmem:[#allocation3 + $0x60] sm:$0xff] %vm467_vm1, %v6674_v6 }
  0x5a   : > { %2916 = vst.msk [vmem:[#allocation3 + $0x68] sm:$0xff] %vm467_vm1, %v6674_v6 }
  0x5b   : > { %2917 = vst.msk [vmem:[#allocation3 + $0x70] sm:$0xff] %vm467_vm1, %v6674_v6 }
  0x5c   : > { %2919 = vst.msk [vmem:[#allocation3 + $0x80] sm:$0xff] %vm467_vm1, %v6674_v6 }
  0x5d   : > { %2920 = vst.msk [vmem:[#allocation3 + $0x88] sm:$0xff] %vm467_vm1, %v6674_v6 }
  0x5e   : > { %2921 = vst.msk [vmem:[#allocation3 + $0x90] sm:$0xff] %vm467_vm1, %v6674_v6 }
  0x5f   : > { %2923 = vst.msk [vmem:[#allocation3 + $0xa0] sm:$0xff] %vm467_vm1, %v6674_v6 }
  0x60   : > { %2924 = vst.msk [vmem:[#allocation3 + $0xa8] sm:$0xff] %vm467_vm1, %v6674_v6 }
  0x61   : > { %2925 = vst.msk [vmem:[#allocation3 + $0xb0] sm:$0xff] %vm467_vm1, %v6674_v6 }
  0x62   : > { %2927 = vst.msk [vmem:[#allocation3 + $0xc0] sm:$0xff] %vm467_vm1, %v6674_v6 }
  0x63   : > { %2928 = vst.msk [vmem:[#allocation3 + $0xc8] sm:$0xff] %vm467_vm1, %v6674_v6 }
  0x64   : > { %2929 = vst.msk [vmem:[#allocation3 + $0xd0] sm:$0xff] %vm467_vm1, %v6674_v6 }
  0x65   : > { %2931 = vst.msk [vmem:[#allocation3 + $0xe0] sm:$0xff] %vm467_vm1, %v6674_v6 }
  0x66   : > { %2932 = vst.msk [vmem:[#allocation3 + $0xe8] sm:$0xff] %vm467_vm1, %v6674_v6 }
  0x67   : > { %2933 = vst.msk [vmem:[#allocation3 + $0xf0] sm:$0xff] %vm467_vm1, %v6674_v6 }
  0x68   : > { %2935 = vst.msk [vmem:[#allocation3 + $0x100] sm:$0xff] %vm467_vm1, %v6674_v6 }
  0x69   : > { %2936 = vst.msk [vmem:[#allocation3 + $0x108] sm:$0xff] %vm467_vm1, %v6674_v6 }
  0x6a   : > { %2937 = vst.msk [vmem:[#allocation3 + $0x110] sm:$0xff] %vm467_vm1, %v6674_v6 }
  0x6b   : > { %2939 = vst.msk [vmem:[#allocation3 + $0x120] sm:$0xff] %vm467_vm1, %v6674_v6 }
  0x6c   : > { %2940 = vst.msk [vmem:[#allocation3 + $0x128] sm:$0xff] %vm467_vm1, %v6674_v6 }
  0x6d   : > { %2941 = vst.msk [vmem:[#allocation3 + $0x130] sm:$0xff] %vm467_vm1, %v6674_v6 }
  0x6e   : > { %2943 = vst.msk [vmem:[#allocation3 + $0x140] sm:$0xff] %vm467_vm1, %v6674_v6 }
  0x6f   : > { %2944 = vst.msk [vmem:[#allocation3 + $0x148] sm:$0xff] %vm467_vm1, %v6674_v6 }
  0x70   : > { %2945 = vst.msk [vmem:[#allocation3 + $0x150] sm:$0xff] %vm467_vm1, %v6674_v6 }
  0x71   : > { %2947 = vst.msk [vmem:[#allocation3 + $0x160] sm:$0xff] %vm467_vm1, %v6674_v6 }
  0x72   : > { %2948 = vst.msk [vmem:[#allocation3 + $0x168] sm:$0xff] %vm467_vm1, %v6674_v6 }
  0x73   : > { %2949 = vst.msk [vmem:[#allocation3 + $0x170] sm:$0xff] %vm467_vm1, %v6674_v6 }
  0x74   : > { %2951 = vst.msk [vmem:[#allocation3 + $0x180] sm:$0xff] %vm467_vm1, %v6674_v6 }
  0x75   : > { %2952 = vst.msk [vmem:[#allocation3 + $0x188] sm:$0xff] %vm467_vm1, %v6674_v6 }
  0x76   : > { %2953 = vst.msk [vmem:[#allocation3 + $0x190] sm:$0xff] %vm467_vm1, %v6674_v6 }
  0x77   : > { %2955 = vst.msk [vmem:[#allocation3 + $0x1a0] sm:$0xff] %vm467_vm1, %v6674_v6 }
  0x78   : > { %2956 = vst.msk [vmem:[#allocation3 + $0x1a8] sm:$0xff] %vm467_vm1, %v6674_v6 }
  0x79   : > { %2957 = vst.msk [vmem:[#allocation3 + $0x1b0] sm:$0xff] %vm467_vm1, %v6674_v6 }
  0x7a   : > { %2959 = vst.msk [vmem:[#allocation3 + $0x1c0] sm:$0xff] %vm467_vm1, %v6674_v6 }
  0x7b   : > { %2960 = vst.msk [vmem:[#allocation3 + $0x1c8] sm:$0xff] %vm467_vm1, %v6674_v6 }
  0x7c   : > { %2961 = vst.msk [vmem:[#allocation3 + $0x1d0] sm:$0xff] %vm467_vm1, %v6674_v6 }
  0x7d   : > { %2963 = vst.msk [vmem:[#allocation3 + $0x1e0] sm:$0xff] %vm467_vm1, %v6674_v6 }
  0x7e   : > { %2964 = vst.msk [vmem:[#allocation3 + $0x1e8] sm:$0xff] %vm467_vm1, %v6674_v6 }
  0x7f   : > { %2965 = vst.msk [vmem:[#allocation3 + $0x1f0] sm:$0xff] %vm467_vm1, %v6674_v6 }
  0x80   : > { %2967 = vst.msk [vmem:[#allocation3 + $0x200] sm:$0xff] %vm467_vm1, %v6674_v6 }
  0x81   : > { %2968 = vst.msk [vmem:[#allocation3 + $0x208] sm:$0xff] %vm467_vm1, %v6674_v6 }
  0x82   : > { %2969 = vst.msk [vmem:[#allocation3 + $0x210] sm:$0xff] %vm467_vm1, %v6674_v6 }
  0x83   : > { %2971 = vst.msk [vmem:[#allocation3 + $0x220] sm:$0xff] %vm467_vm1, %v6674_v6 }
  0x84   : > { %2972 = vst.msk [vmem:[#allocation3 + $0x228] sm:$0xff] %vm467_vm1, %v6674_v6 }
  0x85   : > { %2973 = vst.msk [vmem:[#allocation3 + $0x230] sm:$0xff] %vm467_vm1, %v6674_v6 }
  0x86   : > { %472 = vst.msk [vmem:[#allocation2 + $0x18] sm:$0x1] %vm471_vm2, %v6674_v6 }
  0x87   : > { %476 = vst.msk [vmem:[#allocation2 + $0x38] sm:$0x1] %vm471_vm2, %v6674_v6 }
  0x88   : > { %480 = vst.msk [vmem:[#allocation2 + $0x58] sm:$0x1] %vm471_vm2, %v6674_v6 }
  0x89   : > { %484 = vst.msk [vmem:[#allocation2 + $0x78] sm:$0x1] %vm471_vm2, %v6674_v6 }
  0x8a   : > { %488 = vst.msk [vmem:[#allocation2 + $0x98] sm:$0x1] %vm471_vm2, %v6674_v6 }
  0x8b   : > { %492 = vst.msk [vmem:[#allocation2 + $0xb8] sm:$0x1] %vm471_vm2, %v6674_v6 }
  0x8c   : > { %496 = vst.msk [vmem:[#allocation2 + $0xd8] sm:$0x1] %vm471_vm2, %v6674_v6 }
  0x8d   : > { %v987_v16 = vld [vmem:[#allocation2 + $0x11] sm:$0xff]  ;;  %500 = vst.msk [vmem:[#allocation2 + $0xf8] sm:$0x1] %vm471_vm2, %v6674_v6 }
  0x8e   : > { %v1018_v17 = vpack.c.bf16 %v987_v16, %v986_v15  ;;  %504 = vst.msk [vmem:[#allocation2 + $0x118] sm:$0x1] %vm471_vm2, %v6674_v6 }
  0x8f   : > { %508 = vst.msk [vmem:[#allocation2 + $0x138] sm:$0x1] %vm471_vm2, %v6674_v6 }
  0x90   : > { %6221 = vmatmul.msk.bf16.vlgmr.msra.gmra.mxu2 %vm467_vm1, %v1018_v17  ;;  %512 = vst.msk [vmem:[#allocation2 + $0x158] sm:$0x1] %vm471_vm2, %v6674_v6 }
  0x91   : > { %516 = vst.msk [vmem:[#allocation2 + $0x178] sm:$0x1] %vm471_vm2, %v6674_v6 }
  0x92   : > { %520 = vst.msk [vmem:[#allocation2 + $0x198] sm:$0x1] %vm471_vm2, %v6674_v6 }
  0x93   : > { %524 = vst.msk [vmem:[#allocation2 + $0x1b8] sm:$0x1] %vm471_vm2, %v6674_v6 }
  0x94   : > { %528 = vst.msk [vmem:[#allocation2 + $0x1d8] sm:$0x1] %vm471_vm2, %v6674_v6 }
  0x95   : > { %532 = vst.msk [vmem:[#allocation2 + $0x1f8] sm:$0x1] %vm471_vm2, %v6674_v6 }
  0x96   : > { %536 = vst.msk [vmem:[#allocation2 + $0x218] sm:$0x1] %vm471_vm2, %v6674_v6 }
  0x97   : > { %540 = vst.msk [vmem:[#allocation2 + $0x238] sm:$0x1] %vm471_vm2, %v6674_v6 }
  0x98   : > { %2906 = vst.msk [vmem:[#allocation3 + $0x18] sm:$0x1] %vm471_vm2, %v6674_v6 }
  0x99   : > { %2910 = vst.msk [vmem:[#allocation3 + $0x38] sm:$0x1] %vm471_vm2, %v6674_v6 }
  0x9a   : > { %2914 = vst.msk [vmem:[#allocation3 + $0x58] sm:$0x1] %vm471_vm2, %v6674_v6 }
  0x9b   : > { %2918 = vst.msk [vmem:[#allocation3 + $0x78] sm:$0x1] %vm471_vm2, %v6674_v6 }
  0x9c   : > { %2922 = vst.msk [vmem:[#allocation3 + $0x98] sm:$0x1] %vm471_vm2, %v6674_v6 }
  0x9d   : > { %2926 = vst.msk [vmem:[#allocation3 + $0xb8] sm:$0x1] %vm471_vm2, %v6674_v6 }
  0x9e   : > { %2930 = vst.msk [vmem:[#allocation3 + $0xd8] sm:$0x1] %vm471_vm2, %v6674_v6 }
  0x9f   : > { %2934 = vst.msk [vmem:[#allocation3 + $0xf8] sm:$0x1] %vm471_vm2, %v6674_v6 }
  0xa0   : > { %2938 = vst.msk [vmem:[#allocation3 + $0x118] sm:$0x1] %vm471_vm2, %v6674_v6 }
  0xa1   : > { %2942 = vst.msk [vmem:[#allocation3 + $0x138] sm:$0x1] %vm471_vm2, %v6674_v6 }
  0xa2   : > { %2946 = vst.msk [vmem:[#allocation3 + $0x158] sm:$0x1] %vm471_vm2, %v6674_v6 }
  0xa3   : > { %2950 = vst.msk [vmem:[#allocation3 + $0x178] sm:$0x1] %vm471_vm2, %v6674_v6 }
  0xa4   : > { %2954 = vst.msk [vmem:[#allocation3 + $0x198] sm:$0x1] %vm471_vm2, %v6674_v6 }
  0xa5   : > { %2958 = vst.msk [vmem:[#allocation3 + $0x1b8] sm:$0x1] %vm471_vm2, %v6674_v6 }
  0xa6   : > { %2962 = vst.msk [vmem:[#allocation3 + $0x1d8] sm:$0x1] %vm471_vm2, %v6674_v6 }
  0xa7   : > { %2966 = vst.msk [vmem:[#allocation3 + $0x1f8] sm:$0x1] %vm471_vm2, %v6674_v6 }
  0xa8   : > { %2970 = vst.msk [vmem:[#allocation3 + $0x218] sm:$0x1] %vm471_vm2, %v6674_v6 }
  0xa9   : > { %2974 = vst.msk [vmem:[#allocation3 + $0x238] sm:$0x1] %vm471_vm2, %v6674_v6 }
  0xaa   : > { %574 = vst.msk [vmem:[#allocation2 + $0x28] sm:$0xff] %vm467_vm1, %v541_v18  ;;  %v766_v18 = vpop.f32.mrf.mxu0 }
  0xab   : > { %575 = vst.msk [vmem:[#allocation2 + $0x30] sm:$0xff] %vm467_vm1, %v542_v19  ;;  %v906_v19 = vpop.f32.mrf.mxu1 }
  0xac   : > { %576 = vst.msk [vmem:[#allocation2 + $0x48] sm:$0xff] %vm467_vm1, %v543_v20  ;;  %v907_v20 = vadd.f32 %v906_v19, %v766_v18 }
  0xad   : > { %577 = vst.msk [vmem:[#allocation2 + $0x50] sm:$0xff] %vm467_vm1, %v544_v21  ;;  %v557_v21 = vld [vmem:[%s7104_s20 + $0x80] sm:$0xff] }
  0xae   : > { %578 = vst.msk [vmem:[#allocation2 + $0x68] sm:$0xff] %vm467_vm1, %v545_v22  ;;  %v558_v22 = vld [vmem:[%s7104_s20 + $0x88] sm:$0xff] }
  0xaf   : > { %579 = vst.msk [vmem:[#allocation2 + $0x70] sm:$0xff] %vm467_vm1, %v546_v23 }
  0xb0   : > { %580 = vst.msk [vmem:[#allocation2 + $0x88] sm:$0xff] %vm467_vm1, %v547_v24 }
  0xb1   : > { %v657_v26 = vld [vmem:[#allocation2 + $0x28] sm:$0xff]  ;;  %581 = vst.msk [vmem:[#allocation2 + $0x90] sm:$0xff] %vm467_vm1, %v548_v25 }
  0xb2   : > { %v608_v27 = vld [vmem:[#allocation2 + $0x27] sm:$0xff]  ;;  %v658_v28 = vld [vmem:[#allocation2 + $0x30] sm:$0xff]  ;;  %582 = vst.msk [vmem:[#allocation2 + $0xa8] sm:$0xff] %vm467_vm1, %v549_v38 }
  0xb3   : > { %v609_v29 = vld [vmem:[#allocation2 + $0x2f] sm:$0xff]  ;;  %v7132_v31 = vpack.c.bf16 %v658_v28, %v657_v26  ;;  %v1210_v34 = vld [vmem:[#allocation2 + $0x47] sm:$0xff]  ;;  %583 = vst.msk [vmem:[#allocation2 + $0xb0] sm:$0xff] %vm467_vm1, %v550_v39 }
  0xb4   : > { %v988_v30 = vld [vmem:[#allocation2 + $0x29] sm:$0xff]  ;;  %v7134_v32 = vpack.c.bf16 %v609_v29, %v608_v27  ;;  %v989_v33 = vld [vmem:[#allocation2 + $0x31] sm:$0xff]  ;;  %584 = vst.msk [vmem:[#allocation2 + $0xc8] sm:$0xff] %vm467_vm1, %v551_v49 }
  0xb5   : > { %v7136_v35 = vpack.c.bf16 %v989_v33, %v988_v30  ;;  %v1211_v36 = vld [vmem:[#allocation2 + $0x4f] sm:$0xff]  ;;  %6189 = vmatmul.msk.bf16.gmra.mxu0 %vm467_vm1, %v7132_v31  ;;  %v1212_v44 = vld [vmem:[#allocation2 + $0x67] sm:$0xff]  ;;  %585 = vst.msk [vmem:[#allocation2 + $0xd0] sm:$0xff] %vm467_vm1, %v552_v50 }
  0xb6   : > { %6205 = vmatmul.msk.bf16.gmra.mxu1 %vm467_vm1, %v7134_v32  ;;  %v7142_v37 = vpack.c.bf16 %v1211_v36, %v1210_v34  ;;  %v659_v40 = vld [vmem:[#allocation2 + $0x48] sm:$0xff]  ;;  %v660_v41 = vld [vmem:[#allocation2 + $0x50] sm:$0xff]  ;;  %586 = vst.msk [vmem:[#allocation2 + $0xe8] sm:$0xff] %vm467_vm1, %v553_v60  ;;  %v560_v36 = vld [vmem:[%s7104_s20 + $0x98] sm:$0xff] }
  0xb7   : > { %6222 = vmatmul.msk.bf16.gmra.mxu2 %vm467_vm1, %v7136_v35  ;;  %v990_v42 = vld [vmem:[#allocation2 + $0x49] sm:$0xff]  ;;  %v991_v43 = vld [vmem:[#allocation2 + $0x51] sm:$0xff]  ;;  %v7152_v46 = vpack.c.bf16 %v660_v41, %v659_v40  ;;  %587 = vst.msk [vmem:[#allocation2 + $0xf0] sm:$0xff] %vm467_vm1, %v554_v61 }
  0xb8   : > { %6239 = vmatmul.msk.bf16.vlgmr.msra.gmra.mxu3 %vm467_vm1, %v7142_v37  ;;  %v1213_v45 = vld [vmem:[#allocation2 + $0x6f] sm:$0xff]  ;;  %v7154_v47 = vpack.c.bf16 %v991_v43, %v990_v42  ;;  %v1214_v55 = vld [vmem:[#allocation2 + $0x87] sm:$0xff]  ;;  %588 = vst.msk [vmem:[#allocation2 + $0x108] sm:$0xff] %vm467_vm1, %v555_v7  ;;  %v7277_v7 = vpop.f32.mrf.mxu0 }
  0xb9   : > { %v7156_v48 = vpack.c.bf16 %v1213_v45, %v1212_v44  ;;  %v661_v51 = vld [vmem:[#allocation2 + $0x68] sm:$0xff]  ;;  %v662_v52 = vld [vmem:[#allocation2 + $0x70] sm:$0xff]  ;;  %589 = vst.msk [vmem:[#allocation2 + $0x110] sm:$0xff] %vm467_vm1, %v556_v8  ;;  %v7279_v8 = vpop.f32.mrf.mxu1 }
  0xba   : > { %v992_v53 = vld [vmem:[#allocation2 + $0x69] sm:$0xff]  ;;  %v993_v54 = vld [vmem:[#allocation2 + $0x71] sm:$0xff]  ;;  %v7170_v57 = vpack.c.bf16 %v662_v52, %v661_v51  ;;  %590 = vst.msk [vmem:[#allocation2 + $0x128] sm:$0xff] %vm467_vm1, %v557_v21  ;;  %v561_v52 = vld [vmem:[%s7104_s20 + $0xa0] sm:$0xff] }
  0xbb   : > { %v1215_v56 = vld [vmem:[#allocation2 + $0x8f] sm:$0xff]  ;;  %v7172_v58 = vpack.c.bf16 %v993_v54, %v992_v53  ;;  %v1216_v2 = vld [vmem:[#allocation2 + $0xa7] sm:$0xff]  ;;  %591 = vst.msk [vmem:[#allocation2 + $0x130] sm:$0xff] %vm467_vm1, %v558_v22 }
  0xbc   : > { %v7174_v59 = vpack.c.bf16 %v1215_v56, %v1214_v55  ;;  %v663_v62 = vld [vmem:[#allocation2 + $0x88] sm:$0xff]  ;;  %v664_v63 = vld [vmem:[#allocation2 + $0x90] sm:$0xff]  ;;  %593 = vst.msk [vmem:[#allocation2 + $0x150] sm:$0xff] %vm467_vm1, %v560_v36 }
  0xbd   : > { %v994_v0 = vld [vmem:[#allocation2 + $0x89] sm:$0xff]  ;;  %v995_v1 = vld [vmem:[#allocation2 + $0x91] sm:$0xff]  ;;  %v7188_v4 = vpack.c.bf16 %v664_v63, %v663_v62  ;;  %594 = vst.msk [vmem:[#allocation2 + $0x168] sm:$0xff] %vm467_vm1, %v561_v52 }
  0xbe   : > { %v1217_v3 = vld [vmem:[#allocation2 + $0xaf] sm:$0xff]  ;;  %v7190_v5 = vpack.c.bf16 %v995_v1, %v994_v0  ;;  %v1218_v13 = vld [vmem:[#allocation2 + $0xc7] sm:$0xff] }
  0xbf   : > { %v7192_v6 = vpack.c.bf16 %v1217_v3, %v1216_v2  ;;  %v665_v9 = vld [vmem:[#allocation2 + $0xa8] sm:$0xff]  ;;  %v666_v10 = vld [vmem:[#allocation2 + $0xb0] sm:$0xff] }
  0xc0   : > { %v996_v11 = vld [vmem:[#allocation2 + $0xa9] sm:$0xff]  ;;  %v997_v12 = vld [vmem:[#allocation2 + $0xb1] sm:$0xff]  ;;  %v7206_v15 = vpack.c.bf16 %v666_v10, %v665_v9 }
  0xc1   : > { %v1219_v14 = vld [vmem:[#allocation2 + $0xcf] sm:$0xff]  ;;  %v7208_v16 = vpack.c.bf16 %v997_v12, %v996_v11  ;;  %v1220_v27 = vld [vmem:[#allocation2 + $0xe7] sm:$0xff]  ;;  %v564_v10 = vld [vmem:[%s7104_s20 + $0xb8] sm:$0xff] }
  0xc2   : > { %v7210_v17 = vpack.c.bf16 %v1219_v14, %v1218_v13  ;;  %v667_v23 = vld [vmem:[#allocation2 + $0xc8] sm:$0xff]  ;;  %v668_v24 = vld [vmem:[#allocation2 + $0xd0] sm:$0xff]  ;;  %597 = vst.msk [vmem:[#allocation2 + $0x190] sm:$0xff] %vm467_vm1, %v564_v10 }
  0xc3   : > { %v998_v25 = vld [vmem:[#allocation2 + $0xc9] sm:$0xff]  ;;  %v999_v26 = vld [vmem:[#allocation2 + $0xd1] sm:$0xff]  ;;  %v7224_v29 = vpack.c.bf16 %v668_v24, %v667_v23 }
  0xc4   : > { %v1221_v28 = vld [vmem:[#allocation2 + $0xef] sm:$0xff]  ;;  %v7226_v30 = vpack.c.bf16 %v999_v26, %v998_v25  ;;  %v1222_v42 = vld [vmem:[#allocation2 + $0x107] sm:$0xff] }
  0xc5   : > { %6190 = vmatmul.msk.bf16.gmra.mxu0 %vm467_vm1, %v7152_v46  ;;  %v7228_v33 = vpack.c.bf16 %v1221_v28, %v1220_v27  ;;  %v559_v34 = vld [vmem:[%s7104_s20 + $0x90] sm:$0xff]  ;;  %v669_v38 = vld [vmem:[#allocation2 + $0xe8] sm:$0xff] }
  0xc6   : > { %6206 = vmatmul.msk.bf16.gmra.mxu1 %vm467_vm1, %v7142_v37  ;;  %v670_v39 = vld [vmem:[#allocation2 + $0xf0] sm:$0xff]  ;;  %592 = vst.msk [vmem:[#allocation2 + $0x148] sm:$0xff] %vm467_vm1, %v559_v34  ;;  %v562_v53 = vld [vmem:[%s7104_s20 + $0xa8] sm:$0xff] }
  0xc7   : > { %6223 = vmatmul.msk.bf16.gmra.mxu2 %vm467_vm1, %v7154_v47  ;;  %v1000_v40 = vld [vmem:[#allocation2 + $0xe9] sm:$0xff]  ;;  %v1001_v41 = vld [vmem:[#allocation2 + $0xf1] sm:$0xff]  ;;  %v7242_v44 = vpack.c.bf16 %v670_v39, %v669_v38  ;;  %595 = vst.msk [vmem:[#allocation2 + $0x170] sm:$0xff] %vm467_vm1, %v562_v53 }
  0xc8   : > { %6240 = vmatmul.msk.bf16.gmra.mxu3 %vm467_vm1, %v7156_v48  ;;  %v1223_v43 = vld [vmem:[#allocation2 + $0x10f] sm:$0xff]  ;;  %v7244_v45 = vpack.c.bf16 %v1001_v41, %v1000_v40  ;;  %v1224_v61 = vld [vmem:[#allocation2 + $0x127] sm:$0xff] }
  0xc9   : > { %v7246_v49 = vpack.c.bf16 %v1223_v43, %v1222_v42  ;;  %v671_v54 = vld [vmem:[#allocation2 + $0x108] sm:$0xff]  ;;  %v672_v55 = vld [vmem:[#allocation2 + $0x110] sm:$0xff]  ;;  %v565_v41 = vld [vmem:[%s7104_s20 + $0xc0] sm:$0xff] }
  0xca   : > { %v1002_v56 = vld [vmem:[#allocation2 + $0x109] sm:$0xff]  ;;  %v1003_v60 = vld [vmem:[#allocation2 + $0x111] sm:$0xff]  ;;  %v7262_v63 = vpack.c.bf16 %v672_v55, %v671_v54  ;;  %598 = vst.msk [vmem:[#allocation2 + $0x1a8] sm:$0xff] %vm467_vm1, %v565_v41 }
  0xcb   : > { %v1225_v62 = vld [vmem:[#allocation2 + $0x12f] sm:$0xff]  ;;  %v1026_v0 = vpack.c.bf16 %v1003_v60, %v1002_v56  ;;  %v6271_v2 = vld [vmem:[%s9825_s1 + $0xa] sm:$0x3] }
  0xcc   : > { %v7264_v1 = vpack.c.bf16 %v1225_v62, %v1224_v61  ;;  %v1751_v3 = vsel %vm753_vm0, %v6271_v2, 0  ;;  %v563_v9 = vld [vmem:[%s7104_s20 + $0xb0] sm:$0xff]  ;;  %v673_v11 = vld [vmem:[#allocation2 + $0x128] sm:$0xff] }
  0xcd   : > { %1760 = vmatpush.bf16.msrb.mxu1 %v1751_v3  ;;  %v674_v12 = vld [vmem:[#allocation2 + $0x130] sm:$0xff]  ;;  %596 = vst.msk [vmem:[#allocation2 + $0x188] sm:$0xff] %vm467_vm1, %v563_v9  ;;  %v1226_v19 = vld [vmem:[#allocation2 + $0x147] sm:$0xff] }
  0xce   : > { %v1004_v14 = vld [vmem:[#allocation2 + $0x129] sm:$0xff]  ;;  %v1005_v18 = vld [vmem:[#allocation2 + $0x131] sm:$0xff]  ;;  %v7287_v21 = vpack.c.bf16 %v674_v12, %v673_v11 }
  0xcf   : > { %v7289_v24 = vpack.c.bf16 %v1005_v18, %v1004_v14  ;;  %v566_v42 = vld [vmem:[%s7104_s20 + $0xc8] sm:$0xff]  ;;  %v1007_v53 = vld [vmem:[#allocation2 + $0x151] sm:$0xff] }
  0xd0   : > { %v675_v43 = vld [vmem:[#allocation2 + $0x148] sm:$0xff]  ;;  %599 = vst.msk [vmem:[#allocation2 + $0x1b0] sm:$0xff] %vm467_vm1, %v566_v42 }
  0xd1   : > { %v1006_v52 = vld [vmem:[#allocation2 + $0x149] sm:$0xff] }
  0xd2   : > { %v1228_v54 = vld [vmem:[#allocation2 + $0x167] sm:$0xff]  ;;  %v1229_v55 = vld [vmem:[#allocation2 + $0x16f] sm:$0xff]  ;;  %v7309_v2 = vpack.c.bf16 %v1007_v53, %v1006_v52 }
  0xd3   : > { %v7311_v10 = vpack.c.bf16 %v1229_v55, %v1228_v54 }
  0xd4   : > { %v1231_v41 = vld [vmem:[#allocation2 + $0x18f] sm:$0xff] }
  0xd5   : > { %6191 = vmatmul.msk.bf16.gmra.mxu0 %vm467_vm1, %v7170_v57 }
  0xd6   : > { %6207 = vmatmul.msk.bf16.gmra.mxu1 %vm467_vm1, %v7156_v48 }
  0xd7   : > { %6224 = vmatmul.msk.bf16.gmra.mxu2 %vm467_vm1, %v7172_v58 }
  0xd8   : > { %6241 = vmatmul.msk.bf16.gmra.mxu3 %vm467_vm1, %v7174_v59 }
  0xe5   : > { %6192 = vmatmul.msk.bf16.gmra.mxu0 %vm467_vm1, %v7188_v4 }
  0xe6   : > { %6208 = vmatmul.msk.bf16.gmra.mxu1 %vm467_vm1, %v7174_v59 }
  0xe7   : > { %6225 = vmatmul.msk.bf16.gmra.mxu2 %vm467_vm1, %v7190_v5 }
  0xe8   : > { %6242 = vmatmul.msk.bf16.gmra.mxu3 %vm467_vm1, %v7192_v6 }
  0xf5   : > { %6193 = vmatmul.msk.bf16.gmra.mxu0 %vm467_vm1, %v7206_v15 }
  0xf6   : > { %6209 = vmatmul.msk.bf16.gmra.mxu1 %vm467_vm1, %v7192_v6 }
  0xf7   : > { %6226 = vmatmul.msk.bf16.gmra.mxu2 %vm467_vm1, %v7208_v16 }
  0xf8   : > { %6243 = vmatmul.msk.bf16.gmra.mxu3 %vm467_vm1, %v7210_v17 }
 0x105   : > { %6194 = vmatmul.msk.bf16.gmra.mxu0 %vm467_vm1, %v7224_v29 }
 0x106   : > { %6210 = vmatmul.msk.bf16.gmra.mxu1 %vm467_vm1, %v7210_v17 }
 0x107   : > { %6227 = vmatmul.msk.bf16.gmra.mxu2 %vm467_vm1, %v7226_v30 }
 0x108   : > { %6244 = vmatmul.msk.bf16.gmra.mxu3 %vm467_vm1, %v7228_v33 }
 0x113   : > { %v1096_v50 = vpop.f32.mrf.mxu2 }
 0x114   : > { %v7248_v51 = vadd.f32 %v1096_v50, %v907_v20  ;;  %v1227_v20 = vld [vmem:[#allocation2 + $0x14f] sm:$0xff] }
 0x115   : > { %6195 = vmatmul.msk.bf16.gmra.mxu0 %vm467_vm1, %v7242_v44  ;;  %v7291_v26 = vpack.c.bf16 %v1227_v20, %v1226_v19  ;;  %v676_v50 = vld [vmem:[#allocation2 + $0x150] sm:$0xff] }
 0x116   : > { %6211 = vmatmul.msk.bf16.gmra.mxu1 %vm467_vm1, %v7228_v33  ;;  %v7307_v60 = vpack.c.bf16 %v676_v50, %v675_v43 }
 0x117   : > { %6228 = vmatmul.msk.bf16.gmra.mxu2 %vm467_vm1, %v7244_v45 }
 0x118   : > { %6245 = vmatmul.msk.bf16.gmra.mxu3 %vm467_vm1, %v7246_v49 }
 0x11b   : > { %v7284_v13 = vpop.f32.mrf.mxu2 }
 0x125   : > { %6196 = vmatmul.msk.bf16.gmra.mxu0 %vm467_vm1, %v7262_v63 }
 0x126   : > { %6212 = vmatmul.msk.bf16.gmra.mxu1 %vm467_vm1, %v7246_v49 }
 0x127   : > { %6229 = vmatmul.msk.bf16.gmra.mxu2 %vm467_vm1, %v1026_v0 }
 0x128   : > { %6246 = vmatmul.msk.bf16.gmra.mxu3 %vm467_vm1, %v7264_v1 }
 0x132   : > { %v771_v22 = vpop.f32.mrf.mxu0 }
 0x133   : > { %v911_v23 = vpop.f32.mrf.mxu1 }
 0x134   : > { %v912_v25 = vadd.f32 %v911_v23, %v771_v22 }
 0x135   : > { %6197 = vmatmul.msk.bf16.gmra.mxu0 %vm467_vm1, %v7287_v21 }
 0x136   : > { %6213 = vmatmul.msk.bf16.gmra.mxu1 %vm467_vm1, %v7264_v1 }
 0x137   : > { %6230 = vmatmul.msk.bf16.gmra.mxu2 %vm467_vm1, %v7289_v24 }
 0x138   : > { %6247 = vmatmul.msk.bf16.gmra.mxu3 %vm467_vm1, %v7291_v26 }
 0x13a   : > { %v1101_v27 = vpop.f32.mrf.mxu2  ;;  %v773_v34 = vpop.f32.mrf.mxu0 }
 0x13b   : > { %v1178_v28 = vadd.f32 %v1101_v27, %v912_v25  ;;  %v913_v36 = vpop.f32.mrf.mxu1  ;;  %v1323_v39 = vpop.f32.mrf.mxu3  ;;  %v567_v25 = vld [vmem:[%s7104_s20 + $0xd0] sm:$0xff]  ;;  %v568_v27 = vld [vmem:[%s7104_s20 + $0xd8] sm:$0xff] }
 0x13c   : > { %v914_v38 = vadd.f32 %v913_v36, %v773_v34  ;;  %v678_v34 = vld [vmem:[#allocation2 + $0x170] sm:$0xff]  ;;  %600 = vst.msk [vmem:[#allocation2 + $0x1c8] sm:$0xff] %vm467_vm1, %v567_v25  ;;  %v679_v25 = vld [vmem:[#allocation2 + $0x188] sm:$0xff] }
 0x13d   : > { %v7301_v40 = vadd.f32 %v1323_v39, %v1178_v28  ;;  %v677_v28 = vld [vmem:[#allocation2 + $0x168] sm:$0xff]  ;;  %601 = vst.msk [vmem:[#allocation2 + $0x1d0] sm:$0xff] %vm467_vm1, %v568_v27  ;;  %v680_v27 = vld [vmem:[#allocation2 + $0x190] sm:$0xff] }
 0x13e   : > { %v1008_v36 = vld [vmem:[#allocation2 + $0x169] sm:$0xff]  ;;  %v7329_v43 = vpack.c.bf16 %v678_v34, %v677_v28  ;;  %v1011_v34 = vld [vmem:[#allocation2 + $0x191] sm:$0xff] }
 0x13f   : > { %v1230_v39 = vld [vmem:[#allocation2 + $0x187] sm:$0xff] }
 0x140   : > { %v1010_v28 = vld [vmem:[#allocation2 + $0x189] sm:$0xff] }
 0x142   : > { %v1103_v56 = vpop.f32.mrf.mxu2  ;;  %v776_v62 = vpop.f32.mrf.mxu0 }
 0x143   : > { %v1179_v61 = vadd.f32 %v1103_v56, %v914_v38  ;;  %v916_v0 = vpop.f32.mrf.mxu1  ;;  %v1325_v9 = vpop.f32.mrf.mxu3  ;;  %v1009_v38 = vld [vmem:[#allocation2 + $0x171] sm:$0xff] }
 0x144   : > { %v917_v3 = vadd.f32 %v916_v0, %v776_v62  ;;  %v7331_v54 = vpack.c.bf16 %v1009_v38, %v1008_v36  ;;  %v1232_v36 = vld [vmem:[#allocation2 + $0x1a7] sm:$0xff]  ;;  %v1233_v38 = vld [vmem:[#allocation2 + $0x1af] sm:$0xff] }
 0x145   : > { %v7313_v11 = vadd.f32 %v1325_v9, %v1179_v61  ;;  %6198 = vmatmul.msk.bf16.gmra.mxu0 %vm467_vm1, %v7307_v60  ;;  %v7333_v61 = vpack.c.bf16 %v1231_v41, %v1230_v39  ;;  %v7351_v41 = vpack.c.bf16 %v680_v27, %v679_v25  ;;  %v571_v27 = vld [vmem:[%s7104_s20 + $0xf0] sm:$0xff] }
 0x146   : > { %6214 = vmatmul.msk.bf16.gmra.mxu1 %vm467_vm1, %v7291_v26  ;;  %604 = vst.msk [vmem:[#allocation2 + $0x208] sm:$0xff] %vm467_vm1, %v571_v27 }
 0x147   : > { %6231 = vmatmul.msk.bf16.gmra.mxu2 %vm467_vm1, %v7309_v2 }
 0x148   : > { %6248 = vmatmul.msk.bf16.gmra.mxu3 %vm467_vm1, %v7311_v10 }
 0x14a   : > { %v1106_v12 = vpop.f32.mrf.mxu2  ;;  %v778_v18 = vpop.f32.mrf.mxu0 }
 0x14b   : > { %v1180_v14 = vadd.f32 %v1106_v12, %v917_v3  ;;  %v918_v19 = vpop.f32.mrf.mxu1  ;;  %v1328_v22 = vpop.f32.mrf.mxu3 }
 0x14c   : > { %v919_v20 = vadd.f32 %v918_v19, %v778_v18 }
 0x14d   : > { %v7323_v23 = vadd.f32 %v1328_v22, %v1180_v14  ;;  %v570_v22 = vld [vmem:[%s7104_s20 + $0xe8] sm:$0xff] }
 0x14e   : > { %603 = vst.msk [vmem:[#allocation2 + $0x1f0] sm:$0xff] %vm467_vm1, %v570_v22 }
 0x152   : > { %v1108_v42 = vpop.f32.mrf.mxu2  ;;  %v781_v52 = vpop.f32.mrf.mxu0 }
 0x153   : > { %v1181_v50 = vadd.f32 %v1108_v42, %v919_v20  ;;  %v921_v53 = vpop.f32.mrf.mxu1  ;;  %v1330_v56 = vpop.f32.mrf.mxu3  ;;  %v569_v20 = vld [vmem:[%s7104_s20 + $0xe0] sm:$0xff] }
 0x154   : > { %v922_v55 = vadd.f32 %v921_v53, %v781_v52  ;;  %602 = vst.msk [vmem:[#allocation2 + $0x1e8] sm:$0xff] %vm467_vm1, %v569_v20  ;;  %v7353_v53 = vpack.c.bf16 %v1011_v34, %v1010_v28  ;;  %v572_v28 = vld [vmem:[%s7104_s20 + $0xf8] sm:$0xff]  ;;  %v681_v34 = vld [vmem:[#allocation2 + $0x1a8] sm:$0xff] }
 0x155   : > { %v7335_v62 = vadd.f32 %v1330_v56, %v1181_v50  ;;  %6199 = vmatmul.msk.bf16.gmra.mxu0 %vm467_vm1, %v7329_v43  ;;  %605 = vst.msk [vmem:[#allocation2 + $0x210] sm:$0xff] %vm467_vm1, %v572_v28 }
 0x156   : > { %6215 = vmatmul.msk.bf16.gmra.mxu1 %vm467_vm1, %v7311_v10 }
 0x157   : > { %9827 = vst [vmem:[#allocation8_spill] sm:$0xff] %v7335_v62  ;;  %6232 = vmatmul.msk.bf16.gmra.mxu2 %vm467_vm1, %v7331_v54 }
 0x158   : > { %6249 = vmatmul.msk.bf16.gmra.mxu3 %vm467_vm1, %v7333_v61 }
 0x15a   : > { %v1111_v0 = vpop.f32.mrf.mxu2  ;;  %v783_v9 = vpop.f32.mrf.mxu0 }
 0x15b   : > { %v1182_v3 = vadd.f32 %v1111_v0, %v922_v55  ;;  %v923_v12 = vpop.f32.mrf.mxu1  ;;  %v1333_v18 = vpop.f32.mrf.mxu3  ;;  %v7355_v0 = vpack.c.bf16 %v1233_v38, %v1232_v36  ;;  %v682_v36 = vld [vmem:[#allocation2 + $0x1b0] sm:$0xff] }
 0x15c   : > { %v924_v14 = vadd.f32 %v923_v12, %v783_v9  ;;  %v1012_v38 = vld [vmem:[#allocation2 + $0x1a9] sm:$0xff] }
 0x15d   : > { %v7345_v19 = vadd.f32 %v1333_v18, %v1182_v3 }
 0x15f   : > { %9828 = vst [vmem:[#allocation9_spill] sm:$0xff] %v7345_v19 }
 0x162   : > { %v1113_v39 = vpop.f32.mrf.mxu2  ;;  %v786_v50 = vpop.f32.mrf.mxu0 }
 0x163   : > { %v1183_v42 = vadd.f32 %v1113_v39, %v924_v14  ;;  %v926_v52 = vpop.f32.mrf.mxu1  ;;  %v1335_v56 = vpop.f32.mrf.mxu3  ;;  %v1013_v39 = vld [vmem:[#allocation2 + $0x1b1] sm:$0xff] }
 0x164   : > { %v927_v55 = vadd.f32 %v926_v52, %v786_v50  ;;  %v1235_v50 = vld [vmem:[#allocation2 + $0x1cf] sm:$0xff] }
 0x165   : > { %v7357_v3 = vadd.f32 %v1335_v56, %v1183_v42  ;;  %6200 = vmatmul.msk.bf16.gmra.mxu0 %vm467_vm1, %v7351_v41  ;;  %v1234_v42 = vld [vmem:[#allocation2 + $0x1c7] sm:$0xff] }
 0x166   : > { %6216 = vmatmul.msk.bf16.gmra.mxu1 %vm467_vm1, %v7333_v61 }
 0x167   : > { %9829 = vst [vmem:[#allocation10_spill] sm:$0xff] %v7357_v3  ;;  %6233 = vmatmul.msk.bf16.gmra.mxu2 %vm467_vm1, %v7353_v53 }
 0x168   : > { %6250 = vmatmul.msk.bf16.gmra.mxu3 %vm467_vm1, %v7355_v0 }
 0x16a   : > { %v1116_v9 = vpop.f32.mrf.mxu2  ;;  %v788_v14 = vpop.f32.mrf.mxu0 }
 0x16b   : > { %v1184_v12 = vadd.f32 %v1116_v9, %v927_v55  ;;  %v928_v18 = vpop.f32.mrf.mxu1  ;;  %v1338_v22 = vpop.f32.mrf.mxu3  ;;  %v7373_v55 = vpack.c.bf16 %v682_v36, %v681_v34 }
 0x16c   : > { %v929_v20 = vadd.f32 %v928_v18, %v788_v14 }
 0x16d   : > { %v7367_v25 = vadd.f32 %v1338_v22, %v1184_v12  ;;  %9831 = vst [vmem:[#allocation12_spill] sm:$0xff] %v7373_v55  ;;  %v7375_v12 = vpack.c.bf16 %v1013_v39, %v1012_v38 }
 0x16f   : > { %9830 = vst [vmem:[#allocation11_spill] sm:$0xff] %v7367_v25  ;;  %v7377_v25 = vpack.c.bf16 %v1235_v50, %v1234_v42  ;;  %v683_v42 = vld [vmem:[#allocation2 + $0x1c8] sm:$0xff]  ;;  %v684_v50 = vld [vmem:[#allocation2 + $0x1d0] sm:$0xff] }
 0x170   : > { %9832 = vst [vmem:[#allocation13_spill] sm:$0xff] %v7375_v12 }
 0x172   : > { %v1118_v52 = vpop.f32.mrf.mxu2  ;;  %v791_v9 = vpop.f32.mrf.mxu0 }
 0x173   : > { %v1185_v56 = vadd.f32 %v1118_v52, %v929_v20  ;;  %v931_v14 = vpop.f32.mrf.mxu1  ;;  %v1340_v22 = vpop.f32.mrf.mxu3  ;;  %v1014_v52 = vld [vmem:[#allocation2 + $0x1c9] sm:$0xff] }
 0x174   : > { %v932_v18 = vadd.f32 %v931_v14, %v791_v9  ;;  %v1236_v9 = vld [vmem:[#allocation2 + $0x1e7] sm:$0xff]  ;;  %v1237_v14 = vld [vmem:[#allocation2 + $0x1ef] sm:$0xff] }
 0x175   : > { %v7379_v3 = vadd.f32 %v1340_v22, %v1185_v56  ;;  %6201 = vmatmul.msk.bf16.gmra.mxu0 %vm467_vm1, %v7373_v55  ;;  %v1015_v56 = vld [vmem:[#allocation2 + $0x1d1] sm:$0xff] }
 0x176   : > { %6217 = vmatmul.msk.bf16.gmra.mxu1 %vm467_vm1, %v7355_v0  ;;  %v7393_v55 = vpack.c.bf16 %v1015_v56, %v1014_v52  ;;  %v6288_v56 = vld [vmem:[%s9825_s1 + $0xc] sm:$0x3] }
 0x177   : > { %9833 = vst [vmem:[#allocation14_spill] sm:$0xff] %v7379_v3  ;;  %6234 = vmatmul.msk.bf16.gmra.mxu2 %vm467_vm1, %v7375_v12  ;;  %v7391_v3 = vpack.c.bf16 %v684_v50, %v683_v42 }
 0x178   : > { %6251 = vmatmul.msk.bf16.gmra.mxu3 %vm467_vm1, %v7377_v25  ;;  %9836 = vst [vmem:[#allocation17_spill] sm:$0xff] %v7393_v55 }
 0x179   : > { %9835 = vst [vmem:[#allocation16_spill] sm:$0xff] %v7391_v3 }
 0x17a   : > { %v1121_v20 = vpop.f32.mrf.mxu2  ;;  %v793_v28 = vpop.f32.mrf.mxu0 }
 0x17b   : > { %v1186_v27 = vadd.f32 %v1121_v20, %v932_v18  ;;  %v933_v34 = vpop.f32.mrf.mxu1  ;;  %v1343_v38 = vpop.f32.mrf.mxu3 }
 0x17c   : > { %v934_v36 = vadd.f32 %v933_v34, %v793_v28  ;;  %v7395_v28 = vpack.c.bf16 %v1237_v14, %v1236_v9  ;;  %v6254_v34 = vld [vmem:[%s9825_s1 + $0x8] sm:$0x3]  ;;  %v1974_v9 = vsel %vm753_vm0, %v6288_v56, 0 }
 0x17d   : > { %v7389_v39 = vadd.f32 %v1343_v38, %v1186_v27  ;;  %v685_v14 = vld [vmem:[#allocation2 + $0x1e8] sm:$0xff]  ;;  %1983 = vmatpush.bf16.msrb.mxu2 %v1974_v9 }
 0x17f   : > { %9834 = vst [vmem:[#allocation15_spill] sm:$0xff] %v7389_v39 }
 0x182   : > { %v1123_v22 = vpop.f32.mrf.mxu2  ;;  %v796_v19 = vpop.f32.mrf.mxu0 }
 0x183   : > { %v1187_v12 = vadd.f32 %v1123_v22, %v934_v36  ;;  %v936_v62 = vpop.f32.mrf.mxu1  ;;  %v1345_v20 = vpop.f32.mrf.mxu3  ;;  %v686_v22 = vld [vmem:[#allocation2 + $0x1f0] sm:$0xff] }
 0x184   : > { %v937_v18 = vadd.f32 %v936_v62, %v796_v19  ;;  %v1529_v62 = vsel %vm753_vm0, %v6254_v34, 0  ;;  %v1017_v34 = vld [vmem:[#allocation2 + $0x1f1] sm:$0xff] }
 0x185   : > { %v7397_v27 = vadd.f32 %v1345_v20, %v1187_v12  ;;  %6202 = vmatmul.msk.bf16.gmra.mxu0 %vm467_vm1, %v7391_v3  ;;  %v1016_v20 = vld [vmem:[#allocation2 + $0x1e9] sm:$0xff] }
 0x186   : > { %6218 = vmatmul.msk.bf16.gmra.mxu1 %vm467_vm1, %v7377_v25  ;;  %1538 = vmatpush.bf16.msra.mxu0 %v1529_v62  ;;  %v1238_v62 = vld [vmem:[#allocation2 + $0x207] sm:$0xff] }
 0x187   : > { %9837 = vst [vmem:[#allocation18_spill] sm:$0xff] %v7397_v27  ;;  %6235 = vmatmul.msk.bf16.gmra.mxu2 %vm467_vm1, %v7393_v55  ;;  %v1239_v27 = vld [vmem:[#allocation2 + $0x20f] sm:$0xff] }
 0x188   : > { %6252 = vmatmul.msk.bf16.gmra.mxu3 %vm467_vm1, %v7395_v28  ;;  %v7425_v55 = vpack.c.bf16 %v1239_v27, %v1238_v62 }
 0x18a   : > { %v1126_v19 = vpop.f32.mrf.mxu2  ;;  %v798_v36 = vpop.f32.mrf.mxu0  ;;  %9839 = vst [vmem:[#allocation20_spill] sm:$0xff] %v7425_v55 }
 0x18b   : > { %v1188_v12 = vadd.f32 %v1126_v19, %v937_v18  ;;  %v938_v38 = vpop.f32.mrf.mxu1  ;;  %v1348_v50 = vpop.f32.mrf.mxu3  ;;  %v7417_v19 = vpack.c.bf16 %v686_v22, %v685_v14 }
 0x18c   : > { %v939_v42 = vadd.f32 %v938_v38, %v798_v36 }
 0x18d   : > { %v7411_v52 = vadd.f32 %v1348_v50, %v1188_v12  ;;  %v6305_v12 = vld [vmem:[%s9825_s1 + $0xe] sm:$0x3] }
 0x18e   : > { %v2196_v56 = vsel %vm753_vm0, %v6305_v12, 0 }
 0x18f   : > { %9838 = vst [vmem:[#allocation19_spill] sm:$0xff] %v7411_v52  ;;  %v7422_v52 = vpack.c.bf16 %v1017_v34, %v1016_v20  ;;  %2205 = vmatpush.bf16.msrb.mxu3 %v2196_v56 }
 0x192   : > { %v1128_v18 = vpop.f32.mrf.mxu2  ;;  %v801_v38 = vpop.f32.mrf.mxu0 }
 0x193   : > { %v1189_v36 = vadd.f32 %v1128_v18, %v939_v42  ;;  %v941_v50 = vpop.f32.mrf.mxu1  ;;  %v1350_v9 = vpop.f32.mrf.mxu3  ;;  %v6322_v18 = vld [vmem:[%s9825_s1 + $0x10] sm:$0x3] }
 0x194   : > { %v942_v39 = vadd.f32 %v941_v50, %v801_v38 }
 0x195   : > { %v7427_v3 = vadd.f32 %v1350_v9, %v1189_v36  ;;  %6203 = vmatmul.msk.bf16.gmra.mxu0 %vm467_vm1, %v7417_v19 }
 0x196   : > { %6219 = vmatmul.msk.bf16.gmra.mxu1 %vm467_vm1, %v7395_v28 }
 0x197   : > { %9840 = vst [vmem:[#allocation21_spill] sm:$0xff] %v7427_v3  ;;  %6236 = vmatmul.msk.bf16.gmra.mxu2 %vm467_vm1, %v7422_v52  ;;  %v2418_v3 = vsel %vm753_vm0, %v6322_v18, 0 }
 0x198   : > { %6253 = vmatmul.msk.bf16.gmra.mxu3 %vm467_vm1, %v7425_v55 }
 0x19a   : > { %v1131_v42 = vpop.f32.mrf.mxu2  ;;  %v803_v22 = vpop.f32.mrf.mxu0 }
 0x19b   : > { %v1190_v14 = vadd.f32 %v1131_v42, %v942_v39  ;;  %v943_v27 = vpop.f32.mrf.mxu1  ;;  %v1353_v34 = vpop.f32.mrf.mxu3 }
 0x19c   : > { %v944_v20 = vadd.f32 %v943_v27, %v803_v22 }
 0x19d   : > { %v7437_v62 = vadd.f32 %v1353_v34, %v1190_v14 }
 0x1a2   : > { %v1133_v12 = vpop.f32.mrf.mxu2  ;;  %v806_v38 = vpop.f32.mrf.mxu0 }
 0x1a3   : > { %v1191_v36 = vadd.f32 %v1133_v12, %v944_v20  ;;  %v946_v50 = vpop.f32.mrf.mxu1  ;;  %v1355_v9 = vpop.f32.mrf.mxu3 }
 0x1a4   : > { %v947_v56 = vadd.f32 %v946_v50, %v806_v38 }
 0x1a5   : > { %v7443_v55 = vadd.f32 %v1355_v9, %v1191_v36  ;;  %6238 = vmatmul.msk.bf16.vlgmr.msrb.gmra.mxu0 %vm467_vm1, %v7134_v32 }
 0x1a6   : > { %6272 = vmatmul.msk.bf16.vlgmr.msrb.gmra.mxu1 %vm467_vm1, %v7136_v35  ;;  %2427 = vmatpush.bf16.msrb.mxu0 %v2418_v3 }
 0x1a7   : > { %6289 = vmatmul.msk.bf16.vlgmr.msrb.gmra.mxu2 %vm467_vm1, %v7142_v37 }
 0x1a8   : > { %6306 = vmatmul.msk.bf16.vlgmr.msrb.gmra.mxu3 %vm467_vm1, %v7152_v46 }
 0x1aa   : > { %v1136_v39 = vpop.f32.mrf.mxu2  ;;  %v808_v14 = vpop.f32.mrf.mxu0 }
 0x1ab   : > { %v1192_v42 = vadd.f32 %v1136_v39, %v947_v56  ;;  %v948_v22 = vpop.f32.mrf.mxu1  ;;  %v1358_v20 = vpop.f32.mrf.mxu3 }
 0x1ac   : > { %v949_v27 = vadd.f32 %v948_v22, %v808_v14 }
 0x1ad   : > { %v7453_v34 = vadd.f32 %v1358_v20, %v1192_v42 }
 0x1b2   : > { %v1138_v18 = vpop.f32.mrf.mxu2  ;;  %v811_v12 = vpop.f32.mrf.mxu0 }
 0x1b3   : > { %v1193_v32 = vadd.f32 %v1138_v18, %v949_v27  ;;  %v951_v36 = vpop.f32.mrf.mxu1  ;;  %v1360_v38 = vpop.f32.mrf.mxu3 }
 0x1b4   : > { %v952_v35 = vadd.f32 %v951_v36, %v811_v12 }
 0x1b5   : > { %v7455_v50 = vadd.f32 %v1360_v38, %v1193_v32  ;;  %6255 = vmatmul.msk.bf16.vlgmr.msra.gmra.mxu0 %vm467_vm1, %v7132_v31 }
 0x1b6   : > { %6273 = vmatmul.msk.bf16.gmra.mxu1 %vm467_vm1, %v7154_v47 }
 0x1b7   : > { %6290 = vmatmul.msk.bf16.gmra.mxu2 %vm467_vm1, %v7156_v48 }
 0x1b8   : > { %6307 = vmatmul.msk.bf16.gmra.mxu3 %vm467_vm1, %v7170_v57 }
 0x1ba   : > { %v1141_v37 = vpop.f32.mrf.mxu2  ;;  %v813_v56 = vpop.f32.mrf.mxu0 }
 0x1bb   : > { %v1194_v3 = vadd.f32 %v1141_v37, %v952_v35  ;;  %v953_v9 = vpop.f32.mrf.mxu1  ;;  %v1363_v42 = vpop.f32.mrf.mxu3 }
 0x1bc   : > { %v954_v39 = vadd.f32 %v953_v9, %v813_v56 }
 0x1bd   : > { %v7465_v14 = vadd.f32 %v1363_v42, %v1194_v3 }
 0x1c2   : > { %v1143_v22 = vpop.f32.mrf.mxu2  ;;  %v816_v31 = vpop.f32.mrf.mxu0 }
 0x1c3   : > { %v1195_v27 = vadd.f32 %v1143_v22, %v954_v39  ;;  %v956_v20 = vpop.f32.mrf.mxu1  ;;  %v1365_v47 = vpop.f32.mrf.mxu3 }
 0x1c4   : > { %v957_v18 = vadd.f32 %v956_v20, %v816_v31 }
 0x1c5   : > { %v7467_v32 = vadd.f32 %v1365_v47, %v1195_v27  ;;  %6256 = vmatmul.msk.bf16.gmra.mxu0 %vm467_vm1, %v7152_v46 }
 0x1c6   : > { %6274 = vmatmul.msk.bf16.gmra.mxu1 %vm467_vm1, %v7172_v58 }
 0x1c7   : > { %6291 = vmatmul.msk.bf16.gmra.mxu2 %vm467_vm1, %v7174_v59 }
 0x1c8   : > { %6308 = vmatmul.msk.bf16.gmra.mxu3 %vm467_vm1, %v7188_v4 }
 0x1ca   : > { %v1146_v48 = vpop.f32.mrf.mxu2  ;;  %v818_v36 = vpop.f32.mrf.mxu0 }
 0x1cb   : > { %v1196_v12 = vadd.f32 %v1146_v48, %v957_v18  ;;  %v958_v35 = vpop.f32.mrf.mxu1  ;;  %v1368_v37 = vpop.f32.mrf.mxu3 }
 0x1cc   : > { %v959_v38 = vadd.f32 %v958_v35, %v818_v36 }
 0x1cd   : > { %v7477_v3 = vadd.f32 %v1368_v37, %v1196_v12 }
 0x1d2   : > { %v1148_v56 = vpop.f32.mrf.mxu2  ;;  %v821_v46 = vpop.f32.mrf.mxu0 }
 0x1d3   : > { %v1197_v9 = vadd.f32 %v1148_v56, %v959_v38  ;;  %v961_v39 = vpop.f32.mrf.mxu1  ;;  %v1370_v58 = vpop.f32.mrf.mxu3 }
 0x1d4   : > { %v962_v42 = vadd.f32 %v961_v39, %v821_v46 }
 0x1d5   : > { %v7479_v22 = vadd.f32 %v1370_v58, %v1197_v9  ;;  %6257 = vmatmul.msk.bf16.gmra.mxu0 %vm467_vm1, %v7170_v57 }
 0x1d6   : > { %6275 = vmatmul.msk.bf16.gmra.mxu1 %vm467_vm1, %v7190_v5 }
 0x1d7   : > { %6292 = vmatmul.msk.bf16.gmra.mxu2 %vm467_vm1, %v7192_v6 }
 0x1d8   : > { %6309 = vmatmul.msk.bf16.gmra.mxu3 %vm467_vm1, %v7206_v15 }
 0x1da   : > { %v1151_v59 = vpop.f32.mrf.mxu2  ;;  %v823_v31 = vpop.f32.mrf.mxu0 }
 0x1db   : > { %v1198_v27 = vadd.f32 %v1151_v59, %v962_v42  ;;  %v963_v20 = vpop.f32.mrf.mxu1  ;;  %v1373_v47 = vpop.f32.mrf.mxu3 }
 0x1dc   : > { %v964_v18 = vadd.f32 %v963_v20, %v823_v31 }
 0x1dd   : > { %v7489_v48 = vadd.f32 %v1373_v47, %v1198_v27 }
 0x1e2   : > { %v1153_v12 = vpop.f32.mrf.mxu2  ;;  %v826_v57 = vpop.f32.mrf.mxu0 }
 0x1e3   : > { %v1199_v36 = vadd.f32 %v1153_v12, %v964_v18  ;;  %v966_v35 = vpop.f32.mrf.mxu1  ;;  %v1375_v5 = vpop.f32.mrf.mxu3 }
 0x1e4   : > { %v967_v38 = vadd.f32 %v966_v35, %v826_v57 }
 0x1e5   : > { %v7491_v37 = vadd.f32 %v1375_v5, %v1199_v36  ;;  %6258 = vmatmul.msk.bf16.gmra.mxu0 %vm467_vm1, %v7188_v4 }
 0x1e6   : > { %6276 = vmatmul.msk.bf16.gmra.mxu1 %vm467_vm1, %v7208_v16 }
 0x1e7   : > { %6293 = vmatmul.msk.bf16.gmra.mxu2 %vm467_vm1, %v7210_v17 }
 0x1e8   : > { %6310 = vmatmul.msk.bf16.gmra.mxu3 %vm467_vm1, %v7224_v29 }
 0x1ea   : > { %v1156_v6 = vpop.f32.mrf.mxu2  ;;  %v828_v9 = vpop.f32.mrf.mxu0 }
 0x1eb   : > { %v1200_v56 = vadd.f32 %v1156_v6, %v967_v38  ;;  %v968_v46 = vpop.f32.mrf.mxu1  ;;  %v1378_v42 = vpop.f32.mrf.mxu3 }
 0x1ec   : > { %v969_v39 = vadd.f32 %v968_v46, %v828_v9 }
 0x1ed   : > { %v7501_v58 = vadd.f32 %v1378_v42, %v1200_v56 }
 0x1f2   : > { %v1158_v59 = vpop.f32.mrf.mxu2  ;;  %v831_v4 = vpop.f32.mrf.mxu0 }
 0x1f3   : > { %v1201_v27 = vadd.f32 %v1158_v59, %v969_v39  ;;  %v971_v31 = vpop.f32.mrf.mxu1  ;;  %v1380_v16 = vpop.f32.mrf.mxu3 }
 0x1f4   : > { %v972_v20 = vadd.f32 %v971_v31, %v831_v4 }
 0x1f5   : > { %v7503_v18 = vadd.f32 %v1380_v16, %v1201_v27  ;;  %6259 = vmatmul.msk.bf16.gmra.mxu0 %vm467_vm1, %v7206_v15  ;;  %v1667_v16 = vld [vmem:[#allocation2 + $0x111] sm:$0xff] }
 0x1f6   : > { %6277 = vmatmul.msk.bf16.gmra.mxu1 %vm467_vm1, %v7226_v30 }
 0x1f7   : > { %6294 = vmatmul.msk.bf16.gmra.mxu2 %vm467_vm1, %v7228_v33 }
 0x1f8   : > { %6311 = vmatmul.msk.bf16.gmra.mxu3 %vm467_vm1, %v7242_v44 }
 0x1fa   : > { %v1161_v17 = vpop.f32.mrf.mxu2  ;;  %v833_v12 = vpop.f32.mrf.mxu0 }
 0x1fb   : > { %v1202_v47 = vadd.f32 %v1161_v17, %v972_v20  ;;  %v973_v36 = vpop.f32.mrf.mxu1  ;;  %v1383_v35 = vpop.f32.mrf.mxu3  ;;  %v1666_v20 = vld [vmem:[#allocation2 + $0x109] sm:$0xff] }
 0x1fc   : > { %v974_v57 = vadd.f32 %v973_v36, %v833_v12  ;;  %v7527_v17 = vpack.c.bf16 %v1667_v16, %v1666_v20  ;;  %v6543_v16 = vld [vmem:[%s9841_s3] sm:$0xff] }
 0x1fd   : > { %v7513_v38 = vadd.f32 %v1383_v35, %v1202_v47  ;;  %2721 = vmatpush.bf16.msra.mxu1 %v6543_v16 }
 0x202   : > { %v1163_v5 = vpop.f32.mrf.mxu2  ;;  %v836_v15 = vpop.f32.mrf.mxu0 }
 0x203   : > { %v1203_v6 = vadd.f32 %v1163_v5, %v974_v57  ;;  %v976_v56 = vpop.f32.mrf.mxu1  ;;  %v1385_v30 = vpop.f32.mrf.mxu3 }
 0x204   : > { %v977_v9 = vadd.f32 %v976_v56, %v836_v15 }
 0x205   : > { %v7515_v46 = vadd.f32 %v1385_v30, %v1203_v6  ;;  %6260 = vmatmul.msk.bf16.gmra.mxu0 %vm467_vm1, %v7224_v29  ;;  %v1444_v30 = vld [vmem:[#allocation2 + $0x108] sm:$0xff] }
 0x206   : > { %6278 = vmatmul.msk.bf16.gmra.mxu1 %vm467_vm1, %v7244_v45 }
 0x207   : > { %6295 = vmatmul.msk.bf16.gmra.mxu2 %vm467_vm1, %v7246_v49 }
 0x208   : > { %6312 = vmatmul.msk.bf16.gmra.mxu3 %vm467_vm1, %v7262_v63 }
 0x20a   : > { %v1166_v33 = vpop.f32.mrf.mxu2  ;;  %v838_v42 = vpop.f32.mrf.mxu0 }
 0x20b   : > { %v1204_v39 = vadd.f32 %v1166_v33, %v977_v9  ;;  %v978_v59 = vpop.f32.mrf.mxu1  ;;  %v1388_v4 = vpop.f32.mrf.mxu3  ;;  %v1445_v33 = vld [vmem:[#allocation2 + $0x110] sm:$0xff] }
 0x20c   : > { %v979_v27 = vadd.f32 %v978_v59, %v838_v42 }
 0x20d   : > { %v7525_v31 = vadd.f32 %v1388_v4, %v1204_v39  ;;  %v1469_v39 = vpack.c.bf16 %v1445_v33, %v1444_v30 }
 0x212   : > { %v1168_v29 = vpop.f32.mrf.mxu2  ;;  %v841_v47 = vpop.f32.mrf.mxu0 }
 0x213   : > { %v1205_v45 = vadd.f32 %v1168_v29, %v979_v27  ;;  %v981_v12 = vpop.f32.mrf.mxu1  ;;  %v1390_v36 = vpop.f32.mrf.mxu3 }
 0x214   : > { %v982_v49 = vadd.f32 %v981_v12, %v841_v47 }
 0x215   : > { %v7529_v57 = vadd.f32 %v1390_v36, %v1205_v45  ;;  %6261 = vmatmul.msk.bf16.gmra.mxu0 %vm467_vm1, %v7242_v44 }
 0x216   : > { %6279 = vmatmul.msk.bf16.gmra.mxu1 %vm467_vm1, %v7527_v17 }
 0x217   : > { %6296 = vmatmul.msk.bf16.gmra.mxu2 %vm467_vm1, %v7264_v1 }
 0x218   : > { %6313 = vmatmul.msk.bf16.gmra.mxu3 %vm467_vm1, %v7287_v21 }
 0x21a   : > { %v1171_v63 = vpop.f32.mrf.mxu2  ;;  %v843_v5 = vpop.f32.mrf.mxu0 }
 0x21b   : > { %v1206_v35 = vadd.f32 %v1171_v63, %v982_v49  ;;  %v983_v6 = vpop.f32.mrf.mxu1  ;;  %v1393_v56 = vpop.f32.mrf.mxu3 }
 0x21c   : > { %v984_v15 = vadd.f32 %v983_v6, %v843_v5 }
 0x21d   : > { %v7539_v9 = vadd.f32 %v1393_v56, %v1206_v35  ;;  %v909_v35 = vadd.f32 %v7279_v8, %v7277_v7 }
 0x222   : > { %v1173_v44 = vpop.f32.mrf.mxu2  ;;  %v1318_v59 = vpop.f32.mrf.mxu0 }
 0x223   : > { %v1207_v42 = vadd.f32 %v1173_v44, %v984_v15  ;;  %v1762_v27 = vpop.f32.mrf.mxu1  ;;  %v1398_v1 = vadd.f32 %v1318_v59, %v7248_v51  ;;  %v1395_v4 = vpop.f32.mrf.mxu3 }
 0x225   : > { %v7542_v20 = vadd.f32 %v1395_v4, %v1207_v42  ;;  %6262 = vmatmul.msk.bf16.gmra.mxu0 %vm467_vm1, %v1469_v39 }
 0x226   : > { %6280 = vmatmul.msk.bf16.gmra.mxu1 %vm467_vm1, %v7289_v24 }
 0x227   : > { %6297 = vmatmul.msk.bf16.gmra.mxu2 %vm467_vm1, %v7291_v26  ;;  %v1177_v26 = vadd.f32 %v7284_v13, %v909_v35  ;;  %v9842_v35 = vld [vmem:[#allocation12_spill] sm:$0xff] }
 0x228   : > { %6314 = vmatmul.msk.bf16.gmra.mxu3 %vm467_vm1, %v7307_v60 }
 0x22a   : > { %v1985_v51 = vpop.f32.mrf.mxu2  ;;  %v1320_v29 = vpop.f32.mrf.mxu0 }
 0x22b   : > { %v1764_v45 = vpop.f32.mrf.mxu1  ;;  %v2207_v47 = vpop.f32.mrf.mxu3  ;;  %v1399_v15 = vadd.f32 %v1320_v29, %v1177_v26 }
 0x232   : > { %v1987_v12 = vpop.f32.mrf.mxu2  ;;  %v1540_v49 = vpop.f32.mrf.mxu0 }
 0x233   : > { %v1767_v36 = vpop.f32.mrf.mxu1  ;;  %v1620_v63 = vadd.f32 %v1540_v49, %v1398_v1  ;;  %v2209_v24 = vpop.f32.mrf.mxu3 }
 0x235   : > { %v1842_v5 = vadd.f32 %v1762_v27, %v1620_v63  ;;  %6263 = vmatmul.msk.bf16.gmra.mxu0 %vm467_vm1, %v7287_v21 }
 0x236   : > { %6281 = vmatmul.msk.bf16.gmra.mxu1 %vm467_vm1, %v7309_v2 }
 0x237   : > { %6298 = vmatmul.msk.bf16.gmra.mxu2 %vm467_vm1, %v7311_v10  ;;  %v2065_v6 = vadd.f32 %v1985_v51, %v1842_v5 }
 0x238   : > { %6315 = vmatmul.msk.bf16.gmra.mxu3 %vm467_vm1, %v7329_v43 }
 0x239   : > { %v7565_v56 = vadd.f32 %v2207_v47, %v2065_v6 }
 0x23a   : > { %v1990_v7 = vpop.f32.mrf.mxu2  ;;  %v1542_v8 = vpop.f32.mrf.mxu0 }
 0x23b   : > { %v1769_v30 = vpop.f32.mrf.mxu1  ;;  %v1621_v33 = vadd.f32 %v1542_v8, %v1399_v15  ;;  %v2212_v21 = vpop.f32.mrf.mxu3  ;;  %v9843_v15 = vld [vmem:[#allocation8_spill] sm:$0xff] }
 0x23d   : > { %v1843_v44 = vadd.f32 %v1764_v45, %v1621_v33 }
 0x23f   : > { %v2066_v39 = vadd.f32 %v1987_v12, %v1843_v44 }
 0x241   : > { %v7567_v2 = vadd.f32 %v2209_v24, %v2066_v39 }
 0x242   : > { %v1545_v42 = vpop.f32.mrf.mxu0  ;;  %v1992_v59 = vpop.f32.mrf.mxu2 }
 0x243   : > { %v1772_v10 = vpop.f32.mrf.mxu1  ;;  %v1622_v13 = vadd.f32 %v1545_v42, %v7301_v40  ;;  %v2214_v1 = vpop.f32.mrf.mxu3 }
 0x245   : > { %v1844_v27 = vadd.f32 %v1767_v36, %v1622_v13  ;;  %6264 = vmatmul.msk.bf16.gmra.mxu0 %vm467_vm1, %v7307_v60 }
 0x246   : > { %6282 = vmatmul.msk.bf16.gmra.mxu1 %vm467_vm1, %v7331_v54 }
 0x247   : > { %6299 = vmatmul.msk.bf16.gmra.mxu2 %vm467_vm1, %v7333_v61  ;;  %v2067_v4 = vadd.f32 %v1990_v7, %v1844_v27 }
 0x248   : > { %6316 = vmatmul.msk.bf16.gmra.mxu3 %vm467_vm1, %v7351_v41 }
 0x249   : > { %v7578_v16 = vadd.f32 %v2212_v21, %v2067_v4 }
 0x24a   : > { %v1547_v51 = vpop.f32.mrf.mxu0  ;;  %v1995_v47 = vpop.f32.mrf.mxu2 }
 0x24b   : > { %v1774_v40 = vpop.f32.mrf.mxu1  ;;  %v1623_v29 = vadd.f32 %v1547_v51, %v7313_v11  ;;  %v2217_v12 = vpop.f32.mrf.mxu3  ;;  %v9847_v51 = vld [vmem:[#allocation10_spill] sm:$0xff] }
 0x24d   : > { %v1845_v45 = vadd.f32 %v1769_v30, %v1623_v29 }
 0x24f   : > { %v2068_v60 = vadd.f32 %v1992_v59, %v1845_v45  ;;  %v9846_v59 = vld [vmem:[#allocation16_spill] sm:$0xff] }
 0x251   : > { %v7581_v49 = vadd.f32 %v2214_v1, %v2068_v60 }
 0x252   : > { %v1550_v54 = vpop.f32.mrf.mxu0  ;;  %v1997_v24 = vpop.f32.mrf.mxu2 }
 0x253   : > { %v1777_v36 = vpop.f32.mrf.mxu1  ;;  %v1624_v61 = vadd.f32 %v1550_v54, %v7323_v23  ;;  %v2219_v26 = vpop.f32.mrf.mxu3 }
 0x255   : > { %v1846_v63 = vadd.f32 %v1772_v10, %v1624_v61  ;;  %6265 = vmatmul.msk.bf16.gmra.mxu0 %vm467_vm1, %v7329_v43  ;;  %v9845_v10 = vld [vmem:[#allocation13_spill] sm:$0xff] }
 0x256   : > { %6283 = vmatmul.msk.bf16.gmra.mxu1 %vm467_vm1, %v7353_v53 }
 0x257   : > { %6300 = vmatmul.msk.bf16.gmra.mxu2 %vm467_vm1, %v7355_v0  ;;  %v2069_v11 = vadd.f32 %v1995_v47, %v1846_v63  ;;  %v9844_v0 = vld [vmem:[#allocation9_spill] sm:$0xff] }
 0x258   : > { %6317 = vmatmul.msk.bf16.gmra.mxu3 %vm467_vm1, %v9842_v35  ;;  %v9849_v63 = vld [vmem:[#allocation17_spill] sm:$0xff] }
 0x259   : > { %v7592_v5 = vadd.f32 %v2217_v12, %v2069_v11 }
 0x25a   : > { %v1552_v6 = vpop.f32.mrf.mxu0  ;;  %v2000_v53 = vpop.f32.mrf.mxu2 }
 0x25b   : > { %v1779_v23 = vpop.f32.mrf.mxu1  ;;  %v1625_v7 = vadd.f32 %v1552_v6, %v9843_v15  ;;  %v2222_v39 = vpop.f32.mrf.mxu3  ;;  %v2126_v15 = vld [vmem:[#allocation2 + $0x210] sm:$0xff] }
 0x25d   : > { %v1847_v8 = vadd.f32 %v1774_v40, %v1625_v7 }
 0x25f   : > { %v2070_v43 = vadd.f32 %v1997_v24, %v1847_v8 }
 0x261   : > { %v7595_v30 = vadd.f32 %v2219_v26, %v2070_v43  ;;  %v9850_v26 = vld [vmem:[#allocation14_spill] sm:$0xff] }
 0x262   : > { %v1555_v33 = vpop.f32.mrf.mxu0  ;;  %v2002_v29 = vpop.f32.mrf.mxu2 }
 0x263   : > { %v1782_v21 = vpop.f32.mrf.mxu1  ;;  %v1626_v44 = vadd.f32 %v1555_v33, %v9844_v0 }
 0x265   : > { %v1848_v42 = vadd.f32 %v1777_v36, %v1626_v44  ;;  %6266 = vmatmul.msk.bf16.gmra.mxu0 %vm467_vm1, %v7351_v41  ;;  %v2224_v41 = vpop.f32.mrf.mxu3  ;;  %v9853_v44 = vld [vmem:[#allocation18_spill] sm:$0xff] }
 0x266   : > { %6284 = vmatmul.msk.bf16.gmra.mxu1 %vm467_vm1, %v9845_v10  ;;  %v1683_v10 = vld [vmem:[#allocation2 + $0x211] sm:$0xff] }
 0x267   : > { %6301 = vmatmul.msk.bf16.gmra.mxu2 %vm467_vm1, %v7377_v25  ;;  %v2071_v13 = vadd.f32 %v2000_v53, %v1848_v42  ;;  %v9848_v25 = vld [vmem:[#allocation11_spill] sm:$0xff]  ;;  %v1682_v42 = vld [vmem:[#allocation2 + $0x209] sm:$0xff] }
 0x268   : > { %6318 = vmatmul.msk.bf16.gmra.mxu3 %vm467_vm1, %v9846_v59 }
 0x269   : > { %v7606_v27 = vadd.f32 %v2222_v39, %v2071_v13  ;;  %v1905_v13 = vld [vmem:[#allocation2 + $0x227] sm:$0xff] }
 0x26a   : > { %v1557_v1 = vpop.f32.mrf.mxu0 }
 0x26b   : > { %v7608_v4 = vpop.f32.mrf.mxu1  ;;  %v1627_v40 = vadd.f32 %v1557_v1, %v9847_v51  ;;  %v1906_v1 = vld [vmem:[#allocation2 + $0x22f] sm:$0xff] }
 0x26c   : > { %v2127_v51 = vld [vmem:[#allocation2 + $0x228] sm:$0xff] }
 0x26d   : > { %v1849_v45 = vadd.f32 %v1779_v23, %v1627_v40  ;;  %v2125_v23 = vld [vmem:[#allocation2 + $0x208] sm:$0xff]  ;;  %v7644_v40 = vpack.c.bf16 %v1683_v10, %v1682_v42 }
 0x26e   : > { %v2143_v53 = vpack.c.bf16 %v2126_v15, %v2125_v23 }
 0x26f   : > { %v2072_v47 = vadd.f32 %v2002_v29, %v1849_v45  ;;  %v1922_v29 = vpack.c.bf16 %v1906_v1, %v1905_v13 }
 0x271   : > { %v7611_v60 = vadd.f32 %v2224_v41, %v2072_v47  ;;  %v9854_v41 = vld [vmem:[#allocation19_spill] sm:$0xff] }
 0x272   : > { %v1560_v12 = vpop.f32.mrf.mxu0 }
 0x273   : > { %v1787_v54 = vpop.f32.mrf.mxu1  ;;  %v1628_v36 = vadd.f32 %v1560_v12, %v9848_v25 }
 0x275   : > { %v7614_v61 = vadd.f32 %v1782_v21, %v1628_v36  ;;  %6267 = vmatmul.msk.bf16.gmra.mxu0 %vm467_vm1, %v9842_v35  ;;  %v9851_v35 = vld [vmem:[#allocation15_spill] sm:$0xff] }
 0x276   : > { %6285 = vmatmul.msk.bf16.gmra.mxu1 %vm467_vm1, %v9849_v63  ;;  %v9855_v63 = vld [vmem:[#allocation21_spill] sm:$0xff] }
 0x277   : > { %6302 = vmatmul.msk.bf16.gmra.mxu2 %vm467_vm1, %v7395_v28  ;;  %v9852_v28 = vld [vmem:[#allocation20_spill] sm:$0xff] }
 0x278   : > { %6319 = vmatmul.msk.bf16.gmra.mxu3 %vm467_vm1, %v7417_v19 }
 0x27a   : > { %v1562_v11 = vpop.f32.mrf.mxu0 }
 0x27b   : > { %v7624_v24 = vpop.f32.mrf.mxu1  ;;  %v7627_v6 = vadd.f32 %v1562_v11, %v9850_v26 }
 0x282   : > { %v1565_v7 = vpop.f32.mrf.mxu0 }
 0x283   : > { %v1792_v8 = vpop.f32.mrf.mxu1  ;;  %v1630_v43 = vadd.f32 %v1565_v7, %v9851_v35 }
 0x285   : > { %v7630_v33 = vadd.f32 %v1787_v54, %v1630_v43  ;;  %6268 = vmatmul.msk.bf16.gmra.mxu0 %vm467_vm1, %v9846_v59  ;;  %v2128_v59 = vld [vmem:[#allocation2 + $0x230] sm:$0xff]  ;;  %v6359_v43 = vld [vmem:[%s9725_s5 + $0x2] sm:$0x3] }
 0x286   : > { %6286 = vmatmul.msk.bf16.gmra.mxu1 %vm467_vm1, %v7422_v52  ;;  %v2144_v12 = vpack.c.bf16 %v2128_v59, %v2127_v51  ;;  %v2321_v59 = vld [vmem:[#allocation2 + $0x69] sm:$0xff] }
 0x287   : > { %6303 = vmatmul.msk.bf16.gmra.mxu2 %vm467_vm1, %v9852_v28  ;;  %v3156_v28 = vsel %vm753_vm0, %v6359_v43, 0 }
 0x288   : > { %6320 = vmatmul.msk.bf16.gmra.mxu3 %vm467_vm1, %v2143_v53  ;;  %3165 = vmatpush.bf16.msra.mxu2 %v3156_v28 }
 0x28a   : > { %v1567_v21 = vpop.f32.mrf.mxu0 }
 0x28b   : > { %v7639_v0 = vpop.f32.mrf.mxu1  ;;  %v7642_v39 = vadd.f32 %v1567_v21, %v9853_v44  ;;  %v2319_v21 = vld [vmem:[#allocation2 + $0x49] sm:$0xff]  ;;  %v2320_v44 = vld [vmem:[#allocation2 + $0x51] sm:$0xff] }
 0x292   : > { %v1570_v52 = vpop.f32.mrf.mxu0 }
 0x293   : > { %v1797_v45 = vpop.f32.mrf.mxu1  ;;  %v1632_v47 = vadd.f32 %v1570_v52, %v9854_v41  ;;  %v2322_v52 = vld [vmem:[#allocation2 + $0x71] sm:$0xff] }
 0x295   : > { %v7647_v54 = vadd.f32 %v1792_v8, %v1632_v47  ;;  %6269 = vmatmul.msk.bf16.gmra.mxu0 %vm467_vm1, %v7417_v19 }
 0x296   : > { %6287 = vmatmul.msk.bf16.gmra.mxu1 %vm467_vm1, %v7644_v40 }
 0x297   : > { %6304 = vmatmul.msk.bf16.gmra.mxu2 %vm467_vm1, %v1922_v29  ;;  %v2352_v29 = vpack.c.bf16 %v2322_v52, %v2321_v59 }
 0x298   : > { %6321 = vmatmul.msk.bf16.gmra.mxu3 %vm467_vm1, %v2144_v12 }
 0x29a   : > { %v1572_v25 = vpop.f32.mrf.mxu0 }
 0x29b   : > { %v7655_v36 = vpop.f32.mrf.mxu1  ;;  %v7658_v11 = vadd.f32 %v1572_v25, %v9855_v63 }
 0x2a2   : > { %v1575_v26 = vpop.f32.mrf.mxu0 }
 0x2a3   : > { %v1802_v23 = vpop.f32.mrf.mxu1  ;;  %v1634_v15 = vadd.f32 %v1575_v26, %v7437_v62  ;;  %v2351_v62 = vpack.c.bf16 %v2320_v44, %v2319_v21  ;;  %v2323_v26 = vld [vmem:[#allocation2 + $0x89] sm:$0xff] }
 0x2a5   : > { %v7661_v7 = vadd.f32 %v1797_v45, %v1634_v15  ;;  %6270 = vmatmul.msk.bf16.gmra.mxu0 %vm467_vm1, %v2143_v53 }
 0x2aa   : > { %v1577_v19 = vpop.f32.mrf.mxu0 }
 0x2ab   : > { %v7664_v8 = vpop.f32.mrf.mxu1  ;;  %v7667_v35 = vadd.f32 %v1577_v19, %v7443_v55 }
 0x2b2   : > { %v1580_v42 = vpop.f32.mrf.mxu0 }
 0x2b3   : > { %v1807_v10 = vpop.f32.mrf.mxu1  ;;  %v1636_v53 = vadd.f32 %v1580_v42, %v7453_v34 }
 0x2b5   : > { %v7674_v13 = vadd.f32 %v1802_v23, %v1636_v53  ;;  %6323 = vmatmul.msk.bf16.vlgmr.msrb.gmra.mxu0 %vm467_vm1, %v2351_v62  ;;  %v2325_v62 = vld [vmem:[#allocation2 + $0xa9] sm:$0xff] }
 0x2ba   : > { %v1582_v55 = vpop.f32.mrf.mxu0 }
 0x2bb   : > { %v7677_v1 = vpop.f32.mrf.mxu1  ;;  %v7680_v51 = vadd.f32 %v1582_v55, %v7455_v50  ;;  %v2324_v50 = vld [vmem:[#allocation2 + $0x91] sm:$0xff] }
 0x2bc   : > { %v2353_v23 = vpack.c.bf16 %v2324_v50, %v2323_v26 }
 0x2c2   : > { %v1585_v45 = vpop.f32.mrf.mxu0 }
 0x2c3   : > { %v1812_v41 = vpop.f32.mrf.mxu1  ;;  %v1638_v47 = vadd.f32 %v1585_v45, %v7465_v14 }
 0x2c5   : > { %v7683_v12 = vadd.f32 %v1807_v10, %v1638_v47  ;;  %6324 = vmatmul.msk.bf16.gmra.mxu0 %vm467_vm1, %v2352_v29  ;;  %v2327_v29 = vld [vmem:[#allocation2 + $0xc9] sm:$0xff] }
 0x2ca   : > { %v1587_v34 = vpop.f32.mrf.mxu0 }
 0x2cb   : > { %v7686_v25 = vpop.f32.mrf.mxu1  ;;  %v7689_v63 = vadd.f32 %v1587_v34, %v7467_v32  ;;  %v2326_v32 = vld [vmem:[#allocation2 + $0xb1] sm:$0xff] }
 0x2cc   : > { %v2354_v42 = vpack.c.bf16 %v2326_v32, %v2325_v62 }
 0x2d2   : > { %v1590_v15 = vpop.f32.mrf.mxu0 }
 0x2d3   : > { %v1817_v19 = vpop.f32.mrf.mxu1  ;;  %v1640_v43 = vadd.f32 %v1590_v15, %v7477_v3  ;;  %v2329_v15 = vld [vmem:[#allocation2 + $0xe9] sm:$0xff] }
 0x2d5   : > { %v7692_v28 = vadd.f32 %v1812_v41, %v1640_v43  ;;  %6325 = vmatmul.msk.bf16.gmra.mxu0 %vm467_vm1, %v2353_v23 }
 0x2da   : > { %v1592_v14 = vpop.f32.mrf.mxu0 }
 0x2db   : > { %v7696_v21 = vadd.f32 %v1592_v14, %v7479_v22  ;;  %v7698_v44 = vpop.f32.mrf.mxu1  ;;  %v2328_v22 = vld [vmem:[#allocation2 + $0xd1] sm:$0xff] }
 0x2dc   : > { %v2355_v41 = vpack.c.bf16 %v2328_v22, %v2327_v29  ;;  %v2333_v22 = vld [vmem:[#allocation2 + $0x129] sm:$0xff] }
 0x2e2   : > { %v1595_v10 = vpop.f32.mrf.mxu0 }
 0x2e3   : > { %v1642_v53 = vadd.f32 %v1595_v10, %v7489_v48  ;;  %v1822_v3 = vpop.f32.mrf.mxu1 }
 0x2e5   : > { %v7701_v55 = vadd.f32 %v1817_v19, %v1642_v53  ;;  %6326 = vmatmul.msk.bf16.gmra.mxu0 %vm467_vm1, %v2354_v42 }
 0x2ea   : > { %v1597_v59 = vpop.f32.mrf.mxu0 }
 0x2eb   : > { %v7705_v52 = vadd.f32 %v1597_v59, %v7491_v37  ;;  %v7707_v45 = vpop.f32.mrf.mxu1  ;;  %v2330_v37 = vld [vmem:[#allocation2 + $0xf1] sm:$0xff] }
 0x2ec   : > { %v2356_v19 = vpack.c.bf16 %v2330_v37, %v2329_v15  ;;  %v2335_v15 = vld [vmem:[#allocation2 + $0x149] sm:$0xff]  ;;  %v2336_v37 = vld [vmem:[#allocation2 + $0x151] sm:$0xff] }
 0x2f2   : > { %v1600_v47 = vpop.f32.mrf.mxu0 }
 0x2f3   : > { %v1644_v34 = vadd.f32 %v1600_v47, %v7501_v58  ;;  %v1827_v50 = vpop.f32.mrf.mxu1 }
 0x2f5   : > { %v7710_v26 = vadd.f32 %v1822_v3, %v1644_v34  ;;  %6327 = vmatmul.msk.bf16.gmra.mxu0 %vm467_vm1, %v2355_v41  ;;  %v2334_v41 = vld [vmem:[#allocation2 + $0x131] sm:$0xff] }
 0x2f6   : > { %v2358_v47 = vpack.c.bf16 %v2334_v41, %v2333_v22  ;;  %v2337_v22 = vld [vmem:[#allocation2 + $0x169] sm:$0xff]  ;;  %v2338_v41 = vld [vmem:[#allocation2 + $0x171] sm:$0xff] }
 0x2fa   : > { %v1602_v48 = vpop.f32.mrf.mxu0 }
 0x2fb   : > { %v7714_v23 = vadd.f32 %v1602_v48, %v7503_v18  ;;  %v7717_v62 = vpop.f32.mrf.mxu1 }
 0x302   : > { %v1605_v43 = vpop.f32.mrf.mxu0 }
 0x303   : > { %v1646_v14 = vadd.f32 %v1605_v43, %v7513_v38  ;;  %v1832_v10 = vpop.f32.mrf.mxu1 }
 0x305   : > { %v7719_v32 = vadd.f32 %v1827_v50, %v1646_v14  ;;  %6328 = vmatmul.msk.bf16.gmra.mxu0 %vm467_vm1, %v2356_v19  ;;  %v2359_v19 = vpack.c.bf16 %v2336_v37, %v2335_v15  ;;  %v7746_v14 = vld [vmem:[%s9856_s2] ss:$0 sm:$0xff] }
 0x30a   : > { %v1607_v58 = vpop.f32.mrf.mxu0 }
 0x30b   : > { %v7723_v42 = vadd.f32 %v1607_v58, %v7515_v46  ;;  %v7730_v38 = vpop.f32.mrf.mxu1 }
 0x312   : > { %v1610_v53 = vpop.f32.mrf.mxu0 }
 0x313   : > { %v1648_v18 = vadd.f32 %v1610_v53, %v7525_v31  ;;  %v1837_v34 = vpop.f32.mrf.mxu1  ;;  %v7757_v53 = vpop.f32.mrf.mxu3 }
 0x315   : > { %v7726_v3 = vadd.f32 %v1832_v10, %v1648_v18  ;;  %6329 = vmatmul.msk.bf16.gmra.mxu0 %vm467_vm1, %v7527_v17  ;;  %v7755_v10 = vpop.f32.mrf.mxu2 }
 0x31a   : > { %v1612_v59 = vpop.f32.mrf.mxu0 }
 0x31b   : > { %v7733_v29 = vadd.f32 %v1612_v59, %v7529_v57  ;;  %v7773_v37 = vpop.f32.mrf.mxu3 }
 0x31d   : > { %v2007_v15 = vpop.f32.mrf.mxu2 }
 0x322   : > { %v1615_v46 = vpop.f32.mrf.mxu0 }
 0x323   : > { %v1650_v48 = vadd.f32 %v1615_v46, %v7539_v9 }
 0x325   : > { %v7736_v50 = vadd.f32 %v1837_v34, %v1650_v48  ;;  %6330 = vmatmul.msk.bf16.gmra.mxu0 %vm467_vm1, %v2358_v47  ;;  %v2360_v48 = vpack.c.bf16 %v2338_v41, %v2337_v22  ;;  %v2340_v22 = vld [vmem:[#allocation2 + $0x191] sm:$0xff]  ;;  %v7784_v41 = vpop.f32.mrf.mxu2 }
 0x32a   : > { %v1617_v31 = vpop.f32.mrf.mxu0 }
 0x32b   : > { %v7740_v17 = vadd.f32 %v1617_v31, %v7542_v20  ;;  %v7753_v20 = vld [vmem:[%s9856_s2 + $0x1] ss:$0 sm:$0xff] }
 0x332   : > { %v2429_v57 = vpop.f32.mrf.mxu0 }
 0x333   : > { %v2509_v43 = vadd.f32 %v2429_v57, %v7565_v56 }
 0x335   : > { %6331 = vmatmul.msk.bf16.gmra.mxu0 %vm467_vm1, %v2359_v19  ;;  %v2543_v9 = vmul.f32 %v7746_v14, %v2509_v43 }
 0x337   : > { %v7761_v18 = vadd.f32 %v7753_v20, %v2543_v9 }
 0x339   : > { %9857 = vst [vmem:[#allocation12_spill] sm:$0xff] %v7761_v18  ;;  %v9743_v46 = vmax.f32 %v7761_v18, 0.0 }
 0x33a   : > { %v2431_v58 = vpop.f32.mrf.mxu0 }
 0x33b   : > { %v2510_v56 = vadd.f32 %v2431_v58, %v7567_v2 }
 0x33d   : > { %v2544_v59 = vmul.f32 %v7746_v14, %v2510_v56 }
 0x33f   : > { %v7765_v47 = vadd.f32 %v7753_v20, %v2544_v59  ;;  %v2339_v59 = vld [vmem:[#allocation2 + $0x189] sm:$0xff] }
 0x341   : > { %9858 = vst [vmem:[#allocation8_spill] sm:$0xff] %v7765_v47  ;;  %v9742_v34 = vmax.f32 %v7765_v47, 0.0 }
 0x342   : > { %v2434_v31 = vpop.f32.mrf.mxu0 }
 0x343   : > { %v2641_v2 = vpack.c.bf16 %v9742_v34, %v9743_v46  ;;  %v2511_v19 = vadd.f32 %v2434_v31, %v7578_v16  ;;  %v7786_v34 = vpop.f32.mrf.mxu3 }
 0x345   : > { %6332 = vmatmul.msk.bf16.gmra.mxu0 %vm467_vm1, %v2360_v48  ;;  %6343 = vmatmul.msk.bf16.vlgmr.msra.gmra.mxu1 %vm2665_vm3, %v2641_v2  ;;  %v2545_v57 = vmul.f32 %v7746_v14, %v2511_v19  ;;  %v2361_v2 = vpack.c.bf16 %v2340_v22, %v2339_v59 }
 0x347   : > { %v7781_v58 = vadd.f32 %v7753_v20, %v2545_v57 }
 0x349   : > { %9859 = vst [vmem:[#allocation9_spill] sm:$0xff] %v7781_v58  ;;  %v9745_v48 = vmax.f32 %v7781_v58, 0.0 }
 0x34a   : > { %v2436_v43 = vpop.f32.mrf.mxu0 }
 0x34b   : > { %v2512_v9 = vadd.f32 %v2436_v43, %v7581_v49  ;;  %v7800_v43 = vpop.f32.mrf.mxu2 }
 0x34d   : > { %v2546_v56 = vmul.f32 %v7746_v14, %v2512_v9  ;;  %v7802_v9 = vpop.f32.mrf.mxu3 }
 0x34f   : > { %v7789_v16 = vadd.f32 %v7753_v20, %v2546_v56 }
 0x351   : > { %9860 = vst [vmem:[#allocation13_spill] sm:$0xff] %v7789_v16  ;;  %v9744_v31 = vmax.f32 %v7789_v16, 0.0 }
 0x352   : > { %v2439_v49 = vpop.f32.mrf.mxu0 }
 0x353   : > { %v2642_v19 = vpack.c.bf16 %v9744_v31, %v9745_v48  ;;  %v2513_v57 = vadd.f32 %v2439_v49, %v7592_v5  ;;  %v2341_v48 = vld [vmem:[#allocation2 + $0x1a9] sm:$0xff]  ;;  %v2342_v5 = vld [vmem:[#allocation2 + $0x1b1] sm:$0xff] }
 0x354   : > { %v2362_v16 = vpack.c.bf16 %v2342_v5, %v2341_v48 }
 0x355   : > { %6333 = vmatmul.msk.bf16.gmra.mxu0 %vm467_vm1, %v2361_v2  ;;  %6344 = vmatmul.msk.bf16.gmra.mxu1 %vm2665_vm3, %v2642_v19  ;;  %v2547_v56 = vmul.f32 %v7746_v14, %v2513_v57  ;;  %v2015_v57 = vpop.f32.mrf.mxu2  ;;  %v7815_v47 = vpop.f32.mrf.mxu3 }
 0x357   : > { %v7807_v22 = vadd.f32 %v7753_v20, %v2547_v56 }
 0x359   : > { %9861 = vst [vmem:[#allocation16_spill] sm:$0xff] %v7807_v22  ;;  %v9752_v49 = vmax.f32 %v7807_v22, 0.0 }
 0x35a   : > { %v2441_v46 = vpop.f32.mrf.mxu0 }
 0x35b   : > { %v2514_v59 = vadd.f32 %v2441_v46, %v7595_v30 }
 0x35d   : > { %v2548_v31 = vmul.f32 %v7746_v14, %v2514_v59  ;;  %v2017_v59 = vpop.f32.mrf.mxu2  ;;  %v7826_v5 = vpop.f32.mrf.mxu3 }
 0x35f   : > { %v7811_v2 = vadd.f32 %v7753_v20, %v2548_v31 }
 0x361   : > { %9862 = vst [vmem:[#allocation10_spill] sm:$0xff] %v7811_v2  ;;  %v9751_v19 = vmax.f32 %v7811_v2, 0.0 }
 0x362   : > { %v2444_v58 = vpop.f32.mrf.mxu0 }
 0x363   : > { %v2643_v30 = vpack.c.bf16 %v9751_v19, %v9752_v49  ;;  %v2515_v46 = vadd.f32 %v2444_v58, %v7606_v27  ;;  %v2343_v19 = vld [vmem:[#allocation2 + $0x1c9] sm:$0xff]  ;;  %v2344_v49 = vld [vmem:[#allocation2 + $0x1d1] sm:$0xff]  ;;  %v2073_v27 = vadd.f32 %v7755_v10, %v7614_v61 }
 0x365   : > { %6334 = vmatmul.msk.bf16.gmra.mxu0 %vm467_vm1, %v2362_v16  ;;  %6345 = vmatmul.msk.bf16.gmra.mxu1 %vm2665_vm3, %v2643_v30  ;;  %v2549_v31 = vmul.f32 %v7746_v14, %v2515_v46  ;;  %v1851_v16 = vadd.f32 %v7608_v4, %v7627_v6  ;;  %v2363_v46 = vpack.c.bf16 %v2344_v49, %v2343_v19  ;;  %v2020_v4 = vpop.f32.mrf.mxu2  ;;  %v7848_v6 = vpop.f32.mrf.mxu3 }
 0x367   : > { %v7829_v18 = vadd.f32 %v7753_v20, %v2549_v31  ;;  %v2074_v61 = vadd.f32 %v2007_v15, %v1851_v16  ;;  %v2345_v15 = vld [vmem:[#allocation2 + $0x1e9] sm:$0xff]  ;;  %v2346_v16 = vld [vmem:[#allocation2 + $0x1f1] sm:$0xff] }
 0x369   : > { %9863 = vst [vmem:[#allocation11_spill] sm:$0xff] %v7829_v18 }
 0x36a   : > { %v2446_v56 = vpop.f32.mrf.mxu0 }
 0x36b   : > { %v2516_v48 = vadd.f32 %v2446_v56, %v7611_v60  ;;  %v9772_v60 = vmax.f32 %v7829_v18, 0.0  ;;  %v2295_v56 = vadd.f32 %v7757_v53, %v2073_v27 }
 0x36d   : > { %v2550_v2 = vmul.f32 %v7746_v14, %v2516_v48 }
 0x36f   : > { %v7835_v58 = vadd.f32 %v7753_v20, %v2550_v2  ;;  %v2296_v2 = vadd.f32 %v7773_v37, %v2074_v61  ;;  %v1853_v37 = vadd.f32 %v7624_v24, %v7642_v39 }
 0x371   : > { %9864 = vst [vmem:[#allocation17_spill] sm:$0xff] %v7835_v58  ;;  %v9753_v30 = vmax.f32 %v7835_v58, 0.0 }
 0x372   : > { %v2449_v31 = vpop.f32.mrf.mxu0 }
 0x373   : > { %v2644_v48 = vpack.c.bf16 %v9753_v30, %v9772_v60  ;;  %v2517_v10 = vadd.f32 %v2449_v31, %v2295_v56  ;;  %v7863_v56 = vpop.f32.mrf.mxu2 }
 0x375   : > { %6335 = vmatmul.msk.bf16.gmra.mxu0 %vm467_vm1, %v2363_v46  ;;  %6346 = vmatmul.msk.bf16.gmra.mxu1 %vm2665_vm3, %v2644_v48  ;;  %v2551_v49 = vmul.f32 %v7746_v14, %v2517_v10  ;;  %v2075_v46 = vadd.f32 %v7784_v41, %v7630_v33  ;;  %v7865_v48 = vpop.f32.mrf.mxu3  ;;  %v2076_v41 = vadd.f32 %v7800_v43, %v1853_v37 }
 0x376   : > { %v2077_v37 = vadd.f32 %v2015_v57, %v7647_v54 }
 0x377   : > { %v7853_v27 = vadd.f32 %v7753_v20, %v2551_v49  ;;  %v2298_v39 = vadd.f32 %v7802_v9, %v2076_v41  ;;  %v1855_v9 = vadd.f32 %v7639_v0, %v7658_v11 }
 0x378   : > { %v2299_v41 = vadd.f32 %v7815_v47, %v2077_v37  ;;  %v2350_v37 = vld [vmem:[#allocation2 + $0x231] sm:$0xff] }
 0x379   : > { %9865 = vst [vmem:[#allocation14_spill] sm:$0xff] %v7853_v27  ;;  %v9769_v61 = vmax.f32 %v7853_v27, 0.0 }
 0x37a   : > { %v2451_v19 = vpop.f32.mrf.mxu0 }
 0x37b   : > { %v2518_v53 = vadd.f32 %v2451_v19, %v2296_v2  ;;  %v2364_v2 = vpack.c.bf16 %v2346_v16, %v2345_v15  ;;  %v2297_v19 = vadd.f32 %v7786_v34, %v2075_v46  ;;  %v7879_v15 = vpop.f32.mrf.mxu2 }
 0x37d   : > { %v2552_v30 = vmul.f32 %v7746_v14, %v2518_v53  ;;  %v7881_v34 = vpop.f32.mrf.mxu3 }
 0x37f   : > { %v7859_v31 = vadd.f32 %v7753_v20, %v2552_v30 }
 0x381   : > { %9866 = vst [vmem:[#allocation15_spill] sm:$0xff] %v7859_v31  ;;  %v9766_v10 = vmax.f32 %v7859_v31, 0.0 }
 0x382   : > { %v2454_v49 = vpop.f32.mrf.mxu0 }
 0x383   : > { %v2645_v33 = vpack.c.bf16 %v9766_v10, %v9769_v61  ;;  %v2519_v24 = vadd.f32 %v2454_v49, %v2297_v19  ;;  %v7900_v54 = vpop.f32.mrf.mxu2 }
 0x385   : > { %6336 = vmatmul.msk.bf16.gmra.mxu0 %vm467_vm1, %v2364_v2  ;;  %6347 = vmatmul.msk.bf16.gmra.mxu1 %vm2665_vm3, %v2645_v33  ;;  %v2553_v30 = vmul.f32 %v7746_v14, %v2519_v24  ;;  %v7902_v57 = vpop.f32.mrf.mxu3 }
 0x387   : > { %v7884_v46 = vadd.f32 %v7753_v20, %v2553_v30 }
 0x389   : > { %9867 = vst [vmem:[#allocation20_spill] sm:$0xff] %v7884_v46  ;;  %v9755_v49 = vmax.f32 %v7884_v46, 0.0 }
 0x38a   : > { %v2456_v53 = vpop.f32.mrf.mxu0 }
 0x38b   : > { %v2520_v16 = vadd.f32 %v2456_v53, %v2298_v39  ;;  %v2078_v39 = vadd.f32 %v2017_v59, %v1855_v9  ;;  %v2079_v9 = vadd.f32 %v2020_v4, %v7661_v7 }
 0x38d   : > { %v2554_v43 = vmul.f32 %v7746_v14, %v2520_v16  ;;  %v2300_v0 = vadd.f32 %v7826_v5, %v2078_v39  ;;  %v3056_v5 = vld [vmem:[%s9725_s5] sm:$0x3]  ;;  %v1857_v39 = vadd.f32 %v7655_v36, %v7667_v35 }
 0x38f   : > { %v7889_v2 = vadd.f32 %v7753_v20, %v2554_v43  ;;  %v2349_v43 = vld [vmem:[#allocation2 + $0x229] sm:$0xff]  ;;  %v2080_v35 = vadd.f32 %v7863_v56, %v1857_v39 }
 0x390   : > { %v2366_v4 = vpack.c.bf16 %v2350_v37, %v2349_v43 }
 0x391   : > { %9868 = vst [vmem:[#allocation18_spill] sm:$0xff] %v7889_v2  ;;  %v9754_v19 = vmax.f32 %v7889_v2, 0.0 }
 0x392   : > { %v2459_v33 = vpop.f32.mrf.mxu0 }
 0x393   : > { %v2646_v24 = vpack.c.bf16 %v9754_v19, %v9755_v49  ;;  %v2521_v30 = vadd.f32 %v2459_v33, %v2299_v41  ;;  %v7914_v33 = vpop.f32.mrf.mxu2  ;;  %v3009_v19 = vld [vmem:[#allocation3 + $0xf] sm:$0xff]  ;;  %v2301_v49 = vadd.f32 %v7848_v6, %v2079_v9  ;;  %v6392_v6 = vld [vmem:[%s9725_s5 + $0x4] sm:$0x3]  ;;  %v2302_v9 = vadd.f32 %v7865_v48, %v2080_v35 }
 0x394   : > { %v3486_v37 = vsel %vm753_vm0, %v6392_v6, 0  ;;  %v1859_v48 = vadd.f32 %v7664_v8, %v7680_v51  ;;  %v6409_v6 = vld [vmem:[%s9725_s5 + $0x6] sm:$0x3] }
 0x395   : > { %6337 = vmatmul.msk.bf16.gmra.mxu0 %vm467_vm1, %v7644_v40  ;;  %6348 = vmatmul.msk.bf16.gmra.mxu1 %vm2665_vm3, %v2646_v24  ;;  %v2555_v11 = vmul.f32 %v7746_v14, %v2521_v30  ;;  %v7916_v40 = vpop.f32.mrf.mxu3  ;;  %v3296_v24 = vsel %vm753_vm0, %v3056_v5, 0 }
 0x396   : > { %3305 = vmatpush.bf16.msra.mxu3 %v3296_v24  ;;  %3495 = vmatpush.bf16.msra.mxu0 %v3486_v37  ;;  %v3708_v37 = vsel %vm753_vm0, %v6409_v6, 0 }
 0x397   : > { %v7910_v16 = vadd.f32 %v7753_v20, %v2555_v11  ;;  %v3058_v11 = vld [vmem:[#allocation3 + $0x10] sm:$0xff]  ;;  %3717 = vmatpush.bf16.msrb.mxu1 %v3708_v37 }
 0x399   : > { %9869 = vst [vmem:[#allocation19_spill] sm:$0xff] %v7910_v16  ;;  %v9765_v30 = vmax.f32 %v7910_v16, 0.0 }
 0x39a   : > { %v2461_v47 = vpop.f32.mrf.mxu0 }
 0x39b   : > { %v2522_v53 = vadd.f32 %v2461_v47, %v2300_v0  ;;  %v3057_v0 = vld [vmem:[#allocation3 + $0x8] sm:$0xff] }
 0x39c   : > { %v3008_v47 = vld [vmem:[#allocation3 + $0x7] sm:$0xff] }
 0x39d   : > { %v2556_v59 = vmul.f32 %v7746_v14, %v2522_v53  ;;  %v3040_v36 = vpack.c.bf16 %v3009_v19, %v3008_v47  ;;  %v2032_v19 = vpop.f32.mrf.mxu2  ;;  %v2254_v24 = vpop.f32.mrf.mxu3  ;;  %v3388_v47 = vld [vmem:[#allocation3 + $0x11] sm:$0xff] }
 0x39f   : > { %v7919_v41 = vadd.f32 %v7753_v20, %v2556_v59  ;;  %v3089_v59 = vpack.c.bf16 %v3058_v11, %v3057_v0  ;;  %6376 = vmatmul.msk.bf16.vlgmr.msra.gmra.mxu3 %vm467_vm1, %v3040_v36  ;;  %v3387_v11 = vld [vmem:[#allocation3 + $0x9] sm:$0xff] }
 0x3a0   : > { %v3419_v35 = vpack.c.bf16 %v3388_v47, %v3387_v11  ;;  %v7976_v11 = vpop.f32.mrf.mxu1 }
 0x3a1   : > { %9870 = vst [vmem:[#allocation21_spill] sm:$0xff] %v7919_v41  ;;  %v9762_v7 = vmax.f32 %v7919_v41, 0.0  ;;  %6360 = vmatmul.msk.bf16.vlgmr.msra.gmra.mxu2 %vm467_vm1, %v3089_v59 }
 0x3a2   : > { %v2464_v53 = vpop.f32.mrf.mxu0 }
 0x3a3   : > { %v2647_v5 = vpack.c.bf16 %v9762_v7, %v9765_v30  ;;  %v2523_v43 = vadd.f32 %v2464_v53, %v2301_v49  ;;  %v2081_v53 = vadd.f32 %v7879_v15, %v7674_v13 }
 0x3a5   : > { %6338 = vmatmul.msk.bf16.gmra.mxu0 %vm467_vm1, %v2366_v4  ;;  %6349 = vmatmul.msk.bf16.gmra.mxu1 %vm2665_vm3, %v2647_v5  ;;  %v2557_v0 = vmul.f32 %v7746_v14, %v2523_v43  ;;  %v6426_v43 = vld [vmem:[%s9725_s5 + $0x8] sm:$0x3]  ;;  %v2303_v8 = vadd.f32 %v7881_v34, %v2081_v53  ;;  %v2035_v51 = vpop.f32.mrf.mxu2 }
 0x3a6   : > { %v3930_v15 = vsel %vm753_vm0, %v6426_v43, 0 }
 0x3a7   : > { %v7946_v39 = vadd.f32 %v7753_v20, %v2557_v0  ;;  %3939 = vmatpush.bf16.msrb.mxu2 %v3930_v15 }
 0x3a9   : > { %9871 = vst [vmem:[#allocation22_spill] sm:$0xff] %v7946_v39  ;;  %v9757_v5 = vmax.f32 %v7946_v39, 0.0 }
 0x3aa   : > { %v2466_v56 = vpop.f32.mrf.mxu0 }
 0x3ab   : > { %v2524_v49 = vadd.f32 %v2466_v56, %v2302_v9  ;;  %v2257_v9 = vpop.f32.mrf.mxu3  ;;  %v2082_v56 = vadd.f32 %v7900_v54, %v1859_v48  ;;  %v2083_v48 = vadd.f32 %v7914_v33, %v7683_v12 }
 0x3ad   : > { %v2558_v4 = vmul.f32 %v7746_v14, %v2524_v49  ;;  %v2037_v43 = vpop.f32.mrf.mxu2 }
 0x3af   : > { %v7952_v59 = vadd.f32 %v7753_v20, %v2558_v4  ;;  %v2304_v4 = vadd.f32 %v7902_v57, %v2082_v56  ;;  %v7990_v57 = vld [vmem:[%s9724_s4] ss:$0 sm:$0xff]  ;;  %v2305_v56 = vadd.f32 %v7916_v40, %v2083_v48 }
 0x3b1   : > { %9872 = vst [vmem:[#allocation23_spill] sm:$0xff] %v7952_v59  ;;  %v9756_v36 = vmax.f32 %v7952_v59, 0.0 }
 0x3b2   : > { %v2469_v13 = vpop.f32.mrf.mxu0 }
 0x3b3   : > { %v2648_v0 = vpack.c.bf16 %v9756_v36, %v9757_v5  ;;  %v2525_v49 = vadd.f32 %v2469_v13, %v2303_v8  ;;  %v2259_v6 = vpop.f32.mrf.mxu3  ;;  %v1861_v13 = vadd.f32 %v7677_v1, %v7689_v63 }
 0x3b5   : > { %6350 = vmatmul.msk.bf16.gmra.mxu1 %vm2665_vm3, %v2648_v0  ;;  %6393 = vmatmul.msk.bf16.vlgmr.msra.gmra.mxu0 %vm467_vm1, %v3419_v35  ;;  %v2559_v34 = vmul.f32 %v7746_v14, %v2525_v49  ;;  %v7999_v0 = vld [vmem:[%s9724_s4 + $0x1] ss:$0 sm:$0xff]  ;;  %v2084_v63 = vadd.f32 %v2032_v19, %v1861_v13 }
 0x3b7   : > { %v7979_v15 = vadd.f32 %v7753_v20, %v2559_v34  ;;  %v2306_v36 = vadd.f32 %v2254_v24, %v2084_v63 }
 0x3b9   : > { %9873 = vst [vmem:[#allocation24_spill] sm:$0xff] %v7979_v15  ;;  %v9759_v37 = vmax.f32 %v7979_v15, 0.0 }
 0x3ba   : > { %v2471_v47 = vpop.f32.mrf.mxu0 }
 0x3bb   : > { %v2526_v53 = vadd.f32 %v2471_v47, %v2304_v4  ;;  %v2040_v47 = vpop.f32.mrf.mxu2 }
 0x3bd   : > { %v2560_v54 = vmul.f32 %v7746_v14, %v2526_v53  ;;  %v8009_v53 = vpop.f32.mrf.mxu3 }
 0x3bf   : > { %v7985_v35 = vadd.f32 %v7753_v20, %v2560_v54 }
 0x3c1   : > { %9874 = vst [vmem:[#allocation25_spill] sm:$0xff] %v7985_v35  ;;  %v9758_v8 = vmax.f32 %v7985_v35, 0.0 }
 0x3c2   : > { %v2474_v12 = vpop.f32.mrf.mxu0  ;;  %v2723_v33 = vpop.f32.mrf.mxu1 }
 0x3c3   : > { %v2805_v49 = vmul.f32 %v7990_v57, %v2723_v33  ;;  %v2649_v1 = vpack.c.bf16 %v9758_v8, %v9759_v37  ;;  %v2527_v4 = vadd.f32 %v2474_v12, %v2305_v56  ;;  %v2085_v56 = vadd.f32 %v2035_v51, %v7692_v28  ;;  %v2042_v63 = vpop.f32.mrf.mxu2 }
 0x3c5   : > { %v2839_v34 = vadd.f32 %v7999_v0, %v2805_v49  ;;  %6351 = vmatmul.msk.bf16.gmra.mxu1 %vm2665_vm3, %v2649_v1  ;;  %v2561_v40 = vmul.f32 %v7746_v14, %v2527_v4  ;;  %v1863_v1 = vadd.f32 %v7686_v25, %v7696_v21 }
 0x3c7   : > { %v2871_v54 = vmax.f32 %v2839_v34, 0.0  ;;  %v8015_v19 = vadd.f32 %v7753_v20, %v2561_v40  ;;  %v2086_v40 = vadd.f32 %v2037_v43, %v1863_v1 }
 0x3c9   : > { %2976 = vst.msk [vmem:[#allocation3 + $0x28] sm:$0xff] %vm467_vm1, %v2871_v54  ;;  %v9761_v4 = vmax.f32 %v8015_v19, 0.0 }
 0x3ca   : > { %v2476_v48 = vpop.f32.mrf.mxu0  ;;  %v2725_v33 = vpop.f32.mrf.mxu1  ;;  %9875 = vst [vmem:[#allocation26_spill] sm:$0xff] %v8015_v19 }
 0x3cb   : > { %v2528_v5 = vadd.f32 %v2476_v48, %v2306_v36  ;;  %v2806_v8 = vmul.f32 %v7990_v57, %v2725_v33  ;;  %v2264_v36 = vpop.f32.mrf.mxu3 }
 0x3cd   : > { %v2562_v13 = vmul.f32 %v7746_v14, %v2528_v5  ;;  %v2840_v12 = vadd.f32 %v7999_v0, %v2806_v8  ;;  %v2307_v8 = vadd.f32 %v2257_v9, %v2085_v56  ;;  %v2308_v9 = vadd.f32 %v2259_v6, %v2086_v40 }
 0x3cf   : > { %v8021_v24 = vadd.f32 %v7753_v20, %v2562_v13  ;;  %v2872_v49 = vmax.f32 %v2840_v12, 0.0 }
 0x3d0   : > { %v3059_v33 = vld [vmem:[#allocation3 + $0x28] sm:$0xff] }
 0x3d1   : > { %9876 = vst [vmem:[#allocation27_spill] sm:$0xff] %v8021_v24  ;;  %v9760_v34 = vmax.f32 %v8021_v24, 0.0  ;;  %v3010_v13 = vld [vmem:[#allocation3 + $0x27] sm:$0xff] }
 0x3d2   : > { %2977 = vst.msk [vmem:[#allocation3 + $0x30] sm:$0xff] %vm467_vm1, %v2872_v49  ;;  %v2479_v5 = vpop.f32.mrf.mxu0  ;;  %v2728_v54 = vpop.f32.mrf.mxu1 }
 0x3d3   : > { %v2807_v28 = vmul.f32 %v7990_v57, %v2728_v54  ;;  %v2650_v51 = vpack.c.bf16 %v9760_v34, %v9761_v4  ;;  %v2529_v25 = vadd.f32 %v2479_v5, %v2307_v8 }
 0x3d5   : > { %v2841_v21 = vadd.f32 %v7999_v0, %v2807_v28  ;;  %6352 = vmatmul.msk.bf16.gmra.mxu1 %vm2665_vm3, %v2650_v51  ;;  %v2563_v56 = vmul.f32 %v7746_v14, %v2529_v25  ;;  %v2045_v28 = vpop.f32.mrf.mxu2  ;;  %v2267_v51 = vpop.f32.mrf.mxu3  ;;  %v2087_v25 = vadd.f32 %v2040_v47, %v7701_v55 }
 0x3d7   : > { %v2873_v48 = vmax.f32 %v2841_v21, 0.0  ;;  %v8051_v6 = vadd.f32 %v7753_v20, %v2563_v56 }
 0x3d9   : > { %v3060_v12 = vld [vmem:[#allocation3 + $0x30] sm:$0xff]  ;;  %2978 = vst.msk [vmem:[#allocation3 + $0x48] sm:$0xff] %vm467_vm1, %v2873_v48 }
 0x3da   : > { %v3011_v49 = vld [vmem:[#allocation3 + $0x2f] sm:$0xff]  ;;  %v8037_v54 = vpack.c.bf16 %v3060_v12, %v3059_v33  ;;  %v2481_v1 = vpop.f32.mrf.mxu0  ;;  %v2730_v5 = vpop.f32.mrf.mxu1  ;;  %9877 = vst [vmem:[#allocation28_spill] sm:$0xff] %v8051_v6  ;;  %v9764_v12 = vmax.f32 %v8051_v6, 0.0 }
 0x3db   : > { %v3389_v37 = vld [vmem:[#allocation3 + $0x29] sm:$0xff]  ;;  %v8039_v34 = vpack.c.bf16 %v3011_v49, %v3010_v13  ;;  %v3390_v43 = vld [vmem:[#allocation3 + $0x31] sm:$0xff]  ;;  %v2530_v21 = vadd.f32 %v2481_v1, %v2308_v9  ;;  %v2808_v4 = vmul.f32 %v7990_v57, %v2730_v5  ;;  %v1865_v13 = vadd.f32 %v7698_v44, %v7705_v52 }
 0x3dc   : > { %v8041_v8 = vpack.c.bf16 %v3390_v43, %v3389_v37  ;;  %6361 = vmatmul.msk.bf16.gmra.mxu2 %vm467_vm1, %v8037_v54  ;;  %v2309_v43 = vadd.f32 %v8009_v53, %v2087_v25 }
 0x3dd   : > { %6377 = vmatmul.msk.bf16.gmra.mxu3 %vm467_vm1, %v8039_v34  ;;  %v2564_v37 = vmul.f32 %v7746_v14, %v2530_v21  ;;  %v2842_v40 = vadd.f32 %v7999_v0, %v2808_v4  ;;  %v2088_v47 = vadd.f32 %v2042_v63, %v1865_v13  ;;  %v2047_v1 = vpop.f32.mrf.mxu2  ;;  %v2269_v44 = vpop.f32.mrf.mxu3 }
 0x3de   : > { %6394 = vmatmul.msk.bf16.gmra.mxu0 %vm467_vm1, %v8041_v8 }
 0x3df   : > { %v8057_v48 = vadd.f32 %v7753_v20, %v2564_v37  ;;  %v2874_v33 = vmax.f32 %v2842_v40, 0.0 }
 0x3e0   : > { %v3061_v37 = vld [vmem:[#allocation3 + $0x48] sm:$0xff] }
 0x3e1   : > { %9878 = vst [vmem:[#allocation29_spill] sm:$0xff] %v8057_v48  ;;  %v9763_v49 = vmax.f32 %v8057_v48, 0.0  ;;  %v3012_v40 = vld [vmem:[#allocation3 + $0x47] sm:$0xff] }
 0x3e2   : > { %2979 = vst.msk [vmem:[#allocation3 + $0x50] sm:$0xff] %vm467_vm1, %v2874_v33  ;;  %v2484_v9 = vpop.f32.mrf.mxu0  ;;  %v2733_v56 = vpop.f32.mrf.mxu1 }
 0x3e3   : > { %v2809_v4 = vmul.f32 %v7990_v57, %v2733_v56  ;;  %v2651_v55 = vpack.c.bf16 %v9763_v49, %v9764_v12  ;;  %v2531_v52 = vadd.f32 %v2484_v9, %v2309_v43  ;;  %v2310_v56 = vadd.f32 %v2264_v36, %v2088_v47 }
 0x3e5   : > { %v2843_v5 = vadd.f32 %v7999_v0, %v2809_v4  ;;  %6353 = vmatmul.msk.bf16.gmra.mxu1 %vm2665_vm3, %v2651_v55  ;;  %v2565_v7 = vmul.f32 %v7746_v14, %v2531_v52 }
 0x3e7   : > { %v2875_v21 = vmax.f32 %v2843_v5, 0.0  ;;  %v8088_v36 = vadd.f32 %v7753_v20, %v2565_v7 }
 0x3e9   : > { %v3062_v33 = vld [vmem:[#allocation3 + $0x50] sm:$0xff]  ;;  %2980 = vst.msk [vmem:[#allocation3 + $0x68] sm:$0xff] %vm467_vm1, %v2875_v21  ;;  %v2089_v21 = vadd.f32 %v2045_v28, %v7710_v26 }
 0x3ea   : > { %v3013_v53 = vld [vmem:[#allocation3 + $0x4f] sm:$0xff]  ;;  %v8074_v49 = vpack.c.bf16 %v3062_v33, %v3061_v37  ;;  %v2486_v9 = vpop.f32.mrf.mxu0  ;;  %v2735_v43 = vpop.f32.mrf.mxu1  ;;  %9879 = vst [vmem:[#allocation30_spill] sm:$0xff] %v8088_v36 }
 0x3eb   : > { %v3391_v25 = vld [vmem:[#allocation3 + $0x49] sm:$0xff]  ;;  %v8076_v63 = vpack.c.bf16 %v3013_v53, %v3012_v40  ;;  %v3392_v13 = vld [vmem:[#allocation3 + $0x51] sm:$0xff]  ;;  %v2532_v55 = vadd.f32 %v2486_v9, %v2310_v56  ;;  %v2810_v5 = vmul.f32 %v7990_v57, %v2735_v43  ;;  %v2050_v37 = vpop.f32.mrf.mxu2  ;;  %v2272_v40 = vpop.f32.mrf.mxu3  ;;  %v9768_v56 = vmax.f32 %v8088_v36, 0.0 }
 0x3ec   : > { %v8078_v4 = vpack.c.bf16 %v3392_v13, %v3391_v25  ;;  %6362 = vmatmul.msk.bf16.gmra.mxu2 %vm467_vm1, %v8074_v49  ;;  %v1867_v25 = vadd.f32 %v7707_v45, %v7714_v23  ;;  %v2311_v43 = vadd.f32 %v2267_v51, %v2089_v21 }
 0x3ed   : > { %6378 = vmatmul.msk.bf16.gmra.mxu3 %vm467_vm1, %v8076_v63  ;;  %v2566_v47 = vmul.f32 %v7746_v14, %v2532_v55  ;;  %v2844_v52 = vadd.f32 %v7999_v0, %v2810_v5 }
 0x3ee   : > { %6395 = vmatmul.msk.bf16.gmra.mxu0 %vm467_vm1, %v8078_v4  ;;  %v2090_v55 = vadd.f32 %v2047_v1, %v1867_v25 }
 0x3ef   : > { %v8094_v33 = vadd.f32 %v7753_v20, %v2566_v47  ;;  %v2876_v53 = vmax.f32 %v2844_v52, 0.0 }
 0x3f0   : > { %v3063_v47 = vld [vmem:[#allocation3 + $0x68] sm:$0xff]  ;;  %v2312_v51 = vadd.f32 %v2269_v44, %v2090_v55  ;;  %v2091_v55 = vadd.f32 %v2050_v37, %v7719_v32 }
 0x3f1   : > { %9880 = vst [vmem:[#allocation31_spill] sm:$0xff] %v8094_v33  ;;  %v9767_v7 = vmax.f32 %v8094_v33, 0.0  ;;  %v3014_v52 = vld [vmem:[#allocation3 + $0x67] sm:$0xff] }
 0x3f2   : > { %2981 = vst.msk [vmem:[#allocation3 + $0x70] sm:$0xff] %vm467_vm1, %v2876_v53  ;;  %v2489_v13 = vpop.f32.mrf.mxu0  ;;  %v2738_v9 = vpop.f32.mrf.mxu1 }
 0x3f3   : > { %v2811_v26 = vmul.f32 %v7990_v57, %v2738_v9  ;;  %v2652_v28 = vpack.c.bf16 %v9767_v7, %v9768_v56  ;;  %v2533_v5 = vadd.f32 %v2489_v13, %v2311_v43  ;;  %v2052_v21 = vpop.f32.mrf.mxu2  ;;  %v2274_v9 = vpop.f32.mrf.mxu3 }
 0x3f5   : > { %v2845_v45 = vadd.f32 %v7999_v0, %v2811_v26  ;;  %6354 = vmatmul.msk.bf16.gmra.mxu1 %vm2665_vm3, %v2652_v28  ;;  %v2567_v10 = vmul.f32 %v7746_v14, %v2533_v5 }
 0x3f7   : > { %v2877_v23 = vmax.f32 %v2845_v45, 0.0 }
 0x3f9   : > { %v3064_v53 = vld [vmem:[#allocation3 + $0x70] sm:$0xff]  ;;  %2982 = vst.msk [vmem:[#allocation3 + $0x88] sm:$0xff] %vm467_vm1, %v2877_v23 }
 0x3fa   : > { %v3015_v12 = vld [vmem:[#allocation3 + $0x6f] sm:$0xff]  ;;  %v8110_v7 = vpack.c.bf16 %v3064_v53, %v3063_v47  ;;  %v2491_v13 = vpop.f32.mrf.mxu0  ;;  %v2740_v43 = vpop.f32.mrf.mxu1  ;;  %v1869_v47 = vadd.f32 %v7717_v62, %v7723_v42 }
 0x3fb   : > { %v3393_v30 = vld [vmem:[#allocation3 + $0x69] sm:$0xff]  ;;  %v8112_v1 = vpack.c.bf16 %v3015_v12, %v3014_v52  ;;  %v3394_v25 = vld [vmem:[#allocation3 + $0x71] sm:$0xff]  ;;  %v2534_v28 = vadd.f32 %v2491_v13, %v2312_v51  ;;  %v2812_v45 = vmul.f32 %v7990_v57, %v2740_v43  ;;  %v8124_v12 = vadd.f32 %v7753_v20, %v2567_v10  ;;  %v2055_v13 = vpop.f32.mrf.mxu2  ;;  %v2277_v43 = vpop.f32.mrf.mxu3 }
 0x3fc   : > { %v8114_v26 = vpack.c.bf16 %v3394_v25, %v3393_v30  ;;  %6363 = vmatmul.msk.bf16.gmra.mxu2 %vm467_vm1, %v8110_v7  ;;  %v2313_v25 = vadd.f32 %v2272_v40, %v2091_v55 }
 0x3fd   : > { %6379 = vmatmul.msk.bf16.gmra.mxu3 %vm467_vm1, %v8112_v1  ;;  %9881 = vst [vmem:[#allocation32_spill] sm:$0xff] %v8124_v12  ;;  %v2568_v44 = vmul.f32 %v7746_v14, %v2534_v28  ;;  %v2846_v30 = vadd.f32 %v7999_v0, %v2812_v45  ;;  %v9771_v52 = vmax.f32 %v8124_v12, 0.0  ;;  %v2092_v28 = vadd.f32 %v2052_v21, %v1869_v47 }
 0x3fe   : > { %6396 = vmatmul.msk.bf16.gmra.mxu0 %vm467_vm1, %v8114_v26 }
 0x3ff   : > { %v8130_v5 = vadd.f32 %v7753_v20, %v2568_v44  ;;  %v2878_v23 = vmax.f32 %v2846_v30, 0.0  ;;  %v2314_v56 = vadd.f32 %v2274_v9, %v2092_v28 }
 0x400   : > { %v3065_v44 = vld [vmem:[#allocation3 + $0x88] sm:$0xff] }
 0x401   : > { %9882 = vst [vmem:[#allocation33_spill] sm:$0xff] %v8130_v5  ;;  %v9770_v53 = vmax.f32 %v8130_v5, 0.0  ;;  %v3016_v30 = vld [vmem:[#allocation3 + $0x87] sm:$0xff] }
 0x402   : > { %2983 = vst.msk [vmem:[#allocation3 + $0x90] sm:$0xff] %vm467_vm1, %v2878_v23  ;;  %v2494_v10 = vpop.f32.mrf.mxu0  ;;  %v2743_v51 = vpop.f32.mrf.mxu1 }
 0x403   : > { %v2813_v32 = vmul.f32 %v7990_v57, %v2743_v51  ;;  %v2653_v37 = vpack.c.bf16 %v9770_v53, %v9771_v52  ;;  %v2535_v62 = vadd.f32 %v2494_v10, %v2313_v25  ;;  %v2057_v9 = vpop.f32.mrf.mxu2  ;;  %v2279_v28 = vpop.f32.mrf.mxu3 }
 0x405   : > { %v2847_v42 = vadd.f32 %v7999_v0, %v2813_v32  ;;  %6355 = vmatmul.msk.bf16.gmra.mxu1 %vm2665_vm3, %v2653_v37  ;;  %v2569_v51 = vmul.f32 %v7746_v14, %v2535_v62 }
 0x407   : > { %v2879_v45 = vmax.f32 %v2847_v42, 0.0  ;;  %v8160_v62 = vadd.f32 %v7753_v20, %v2569_v51 }
 0x409   : > { %v3066_v23 = vld [vmem:[#allocation3 + $0x90] sm:$0xff]  ;;  %2984 = vst.msk [vmem:[#allocation3 + $0xa8] sm:$0xff] %vm467_vm1, %v2879_v45  ;;  %v2093_v45 = vadd.f32 %v2055_v13, %v7726_v3 }
 0x40a   : > { %v3017_v40 = vld [vmem:[#allocation3 + $0x8f] sm:$0xff]  ;;  %v8146_v61 = vpack.c.bf16 %v3066_v23, %v3065_v44  ;;  %v2496_v47 = vpop.f32.mrf.mxu0  ;;  %v2745_v10 = vpop.f32.mrf.mxu1  ;;  %9883 = vst [vmem:[#allocation34_spill] sm:$0xff] %v8160_v62  ;;  %v1871_v23 = vadd.f32 %v7730_v38, %v7733_v29 }
 0x40b   : > { %v3395_v55 = vld [vmem:[#allocation3 + $0x89] sm:$0xff]  ;;  %v8148_v53 = vpack.c.bf16 %v3017_v40, %v3016_v30  ;;  %v3396_v21 = vld [vmem:[#allocation3 + $0x91] sm:$0xff]  ;;  %v2536_v32 = vadd.f32 %v2496_v47, %v2314_v56  ;;  %v2814_v37 = vmul.f32 %v7990_v57, %v2745_v10  ;;  %v9774_v40 = vmax.f32 %v8160_v62, 0.0  ;;  %v2060_v29 = vpop.f32.mrf.mxu2 }
 0x40c   : > { %v8150_v25 = vpack.c.bf16 %v3396_v21, %v3395_v55  ;;  %6364 = vmatmul.msk.bf16.gmra.mxu2 %vm467_vm1, %v8146_v61  ;;  %v2315_v47 = vadd.f32 %v2277_v43, %v2093_v45  ;;  %v2094_v13 = vadd.f32 %v2057_v9, %v1871_v23 }
 0x40d   : > { %6380 = vmatmul.msk.bf16.gmra.mxu3 %vm467_vm1, %v8148_v53  ;;  %v2570_v42 = vmul.f32 %v7746_v14, %v2536_v32  ;;  %v2848_v56 = vadd.f32 %v7999_v0, %v2814_v37  ;;  %v2282_v37 = vpop.f32.mrf.mxu3 }
 0x40e   : > { %6397 = vmatmul.msk.bf16.gmra.mxu0 %vm467_vm1, %v8150_v25 }
 0x40f   : > { %v8166_v44 = vadd.f32 %v7753_v20, %v2570_v42  ;;  %v2880_v30 = vmax.f32 %v2848_v56, 0.0 }
 0x410   : > { %v3067_v56 = vld [vmem:[#allocation3 + $0xa8] sm:$0xff] }
 0x411   : > { %9884 = vst [vmem:[#allocation35_spill] sm:$0xff] %v8166_v44  ;;  %v9773_v55 = vmax.f32 %v8166_v44, 0.0 }
 0x412   : > { %2985 = vst.msk [vmem:[#allocation3 + $0xb0] sm:$0xff] %vm467_vm1, %v2880_v30  ;;  %v2499_v51 = vpop.f32.mrf.mxu0  ;;  %v2748_v21 = vpop.f32.mrf.mxu1  ;;  %v3018_v30 = vld [vmem:[#allocation3 + $0xa7] sm:$0xff] }
 0x413   : > { %v2815_v10 = vmul.f32 %v7990_v57, %v2748_v21  ;;  %v2654_v3 = vpack.c.bf16 %v9773_v55, %v9774_v40  ;;  %v2537_v32 = vadd.f32 %v2499_v51, %v2315_v47  ;;  %v2316_v21 = vadd.f32 %v2279_v28, %v2094_v13 }
 0x415   : > { %v2849_v38 = vadd.f32 %v7999_v0, %v2815_v10  ;;  %6356 = vmatmul.msk.bf16.gmra.mxu1 %vm2665_vm3, %v2654_v3  ;;  %v2571_v60 = vmul.f32 %v7746_v14, %v2537_v32  ;;  %v2095_v32 = vadd.f32 %v2060_v29, %v7736_v50 }
 0x417   : > { %v2881_v42 = vmax.f32 %v2849_v38, 0.0 }
 0x419   : > { %v3068_v52 = vld [vmem:[#allocation3 + $0xb0] sm:$0xff]  ;;  %2986 = vst.msk [vmem:[#allocation3 + $0xc8] sm:$0xff] %vm467_vm1, %v2881_v42 }
 0x41a   : > { %v3019_v43 = vld [vmem:[#allocation3 + $0xaf] sm:$0xff]  ;;  %v8182_v55 = vpack.c.bf16 %v3068_v52, %v3067_v56  ;;  %v2501_v51 = vpop.f32.mrf.mxu0  ;;  %v2750_v47 = vpop.f32.mrf.mxu1  ;;  %v8196_v52 = vadd.f32 %v7753_v20, %v2571_v60 }
 0x41b   : > { %v3397_v45 = vld [vmem:[#allocation3 + $0xa9] sm:$0xff]  ;;  %v8184_v9 = vpack.c.bf16 %v3019_v43, %v3018_v30  ;;  %v3398_v23 = vld [vmem:[#allocation3 + $0xb1] sm:$0xff]  ;;  %v2538_v3 = vadd.f32 %v2501_v51, %v2316_v21  ;;  %v2816_v38 = vmul.f32 %v7990_v57, %v2750_v47  ;;  %v1873_v30 = vadd.f32 %v7976_v11, %v7740_v17  ;;  %v2062_v43 = vpop.f32.mrf.mxu2 }
 0x41c   : > { %v8186_v10 = vpack.c.bf16 %v3398_v23, %v3397_v45  ;;  %6365 = vmatmul.msk.bf16.gmra.mxu2 %vm467_vm1, %v8182_v55  ;;  %9885 = vst [vmem:[#allocation36_spill] sm:$0xff] %v8196_v52  ;;  %v2284_v45 = vpop.f32.mrf.mxu3  ;;  %v9777_v21 = vmax.f32 %v8196_v52, 0.0  ;;  %v2317_v47 = vadd.f32 %v2282_v37, %v2095_v32 }
 0x41d   : > { %6381 = vmatmul.msk.bf16.gmra.mxu3 %vm467_vm1, %v8184_v9  ;;  %v2572_v28 = vmul.f32 %v7746_v14, %v2538_v3  ;;  %v2850_v13 = vadd.f32 %v7999_v0, %v2816_v38  ;;  %v2096_v3 = vadd.f32 %v2062_v43, %v1873_v30 }
 0x41e   : > { %6398 = vmatmul.msk.bf16.gmra.mxu0 %vm467_vm1, %v8186_v10 }
 0x41f   : > { %v8202_v42 = vadd.f32 %v7753_v20, %v2572_v28  ;;  %v2882_v56 = vmax.f32 %v2850_v13, 0.0  ;;  %v2318_v37 = vadd.f32 %v2284_v45, %v2096_v3 }
 0x420   : > { %v3069_v28 = vld [vmem:[#allocation3 + $0xc8] sm:$0xff] }
 0x421   : > { %9886 = vst [vmem:[#allocation37_spill] sm:$0xff] %v8202_v42  ;;  %v9776_v60 = vmax.f32 %v8202_v42, 0.0  ;;  %v3020_v13 = vld [vmem:[#allocation3 + $0xc7] sm:$0xff] }
 0x422   : > { %2987 = vst.msk [vmem:[#allocation3 + $0xd0] sm:$0xff] %vm467_vm1, %v2882_v56  ;;  %v2504_v23 = vpop.f32.mrf.mxu0  ;;  %v2753_v51 = vpop.f32.mrf.mxu1 }
 0x423   : > { %v2817_v50 = vmul.f32 %v7990_v57, %v2753_v51  ;;  %v2655_v29 = vpack.c.bf16 %v9776_v60, %v9777_v21  ;;  %v2539_v17 = vadd.f32 %v2504_v23, %v2317_v47 }
 0x424   : > { %v3167_v43 = vpop.f32.mrf.mxu2  ;;  %v3307_v23 = vpop.f32.mrf.mxu3 }
 0x425   : > { %v2851_v11 = vadd.f32 %v7999_v0, %v2817_v50  ;;  %6357 = vmatmul.msk.bf16.gmra.mxu1 %vm2665_vm3, %v2655_v29  ;;  %v2573_v32 = vmul.f32 %v7746_v14, %v2539_v17 }
 0x427   : > { %v2883_v38 = vmax.f32 %v2851_v11, 0.0  ;;  %v3308_v11 = vadd.f32 %v3307_v23, %v3167_v43 }
 0x429   : > { %v3070_v56 = vld [vmem:[#allocation3 + $0xd0] sm:$0xff]  ;;  %2988 = vst.msk [vmem:[#allocation3 + $0xe8] sm:$0xff] %vm467_vm1, %v2883_v38 }
 0x42a   : > { %v3021_v40 = vld [vmem:[#allocation3 + $0xcf] sm:$0xff]  ;;  %v8218_v51 = vpack.c.bf16 %v3070_v56, %v3069_v28  ;;  %v2506_v47 = vpop.f32.mrf.mxu0  ;;  %v2755_v50 = vpop.f32.mrf.mxu1 }
 0x42b   : > { %v3399_v44 = vld [vmem:[#allocation3 + $0xc9] sm:$0xff]  ;;  %v8220_v60 = vpack.c.bf16 %v3021_v40, %v3020_v13  ;;  %v3400_v30 = vld [vmem:[#allocation3 + $0xd1] sm:$0xff]  ;;  %v2540_v21 = vadd.f32 %v2506_v47, %v2318_v37  ;;  %v2818_v42 = vmul.f32 %v7990_v57, %v2755_v50  ;;  %v8232_v40 = vadd.f32 %v7753_v20, %v2573_v32 }
 0x42c   : > { %v8222_v29 = vpack.c.bf16 %v3400_v30, %v3399_v44  ;;  %6366 = vmatmul.msk.bf16.gmra.mxu2 %vm467_vm1, %v8218_v51 }
 0x42d   : > { %6382 = vmatmul.msk.bf16.gmra.mxu3 %vm467_vm1, %v8220_v60  ;;  %9887 = vst [vmem:[#allocation38_spill] sm:$0xff] %v8232_v40  ;;  %v2574_v45 = vmul.f32 %v7746_v14, %v2540_v21  ;;  %v2852_v44 = vadd.f32 %v7999_v0, %v2818_v42  ;;  %v9780_v38 = vmax.f32 %v8232_v40, 0.0 }
 0x42e   : > { %6399 = vmatmul.msk.bf16.gmra.mxu0 %vm467_vm1, %v8222_v29 }
 0x42f   : > { %v8237_v3 = vadd.f32 %v7753_v20, %v2574_v45  ;;  %v2884_v17 = vmax.f32 %v2852_v44, 0.0 }
 0x430   : > { %v3071_v32 = vld [vmem:[#allocation3 + $0xe8] sm:$0xff] }
 0x431   : > { %9888 = vst [vmem:[#allocation39_spill] sm:$0xff] %v8237_v3  ;;  %v9779_v28 = vmax.f32 %v8237_v3, 0.0  ;;  %v3022_v30 = vld [vmem:[#allocation3 + $0xe7] sm:$0xff] }
 0x432   : > { %2989 = vst.msk [vmem:[#allocation3 + $0xf0] sm:$0xff] %vm467_vm1, %v2884_v17  ;;  %v2758_v13 = vpop.f32.mrf.mxu1  ;;  %v3497_v56 = vpop.f32.mrf.mxu0 }
 0x433   : > { %v2819_v37 = vmul.f32 %v7990_v57, %v2758_v13  ;;  %v2656_v14 = vpack.c.bf16 %v9779_v28, %v9780_v38  ;;  %v8247_v42 = vadd.f32 %v3497_v56, %v3308_v11 }
 0x435   : > { %v2853_v20 = vadd.f32 %v7999_v0, %v2819_v37  ;;  %6358 = vmatmul.msk.bf16.gmra.mxu1 %vm2665_vm3, %v2656_v14 }
 0x437   : > { %v2885_v21 = vmax.f32 %v2853_v20, 0.0 }
 0x439   : > { %v3072_v43 = vld [vmem:[#allocation3 + $0xf0] sm:$0xff]  ;;  %2990 = vst.msk [vmem:[#allocation3 + $0x108] sm:$0xff] %vm467_vm1, %v2885_v21 }
 0x43a   : > { %v3023_v23 = vld [vmem:[#allocation3 + $0xef] sm:$0xff]  ;;  %v8252_v50 = vpack.c.bf16 %v3072_v43, %v3071_v32  ;;  %v2760_v17 = vpop.f32.mrf.mxu1 }
 0x43b   : > { %v3401_v47 = vld [vmem:[#allocation3 + $0xe9] sm:$0xff]  ;;  %v8254_v45 = vpack.c.bf16 %v3023_v23, %v3022_v30  ;;  %v3402_v44 = vld [vmem:[#allocation3 + $0xf1] sm:$0xff]  ;;  %v2820_v13 = vmul.f32 %v7990_v57, %v2760_v17 }
 0x43c   : > { %v8256_v11 = vpack.c.bf16 %v3402_v44, %v3401_v47  ;;  %6367 = vmatmul.msk.bf16.gmra.mxu2 %vm467_vm1, %v8252_v50 }
 0x43d   : > { %6383 = vmatmul.msk.bf16.gmra.mxu3 %vm467_vm1, %v8254_v45  ;;  %v2854_v56 = vadd.f32 %v7999_v0, %v2820_v13 }
 0x43e   : > { %6400 = vmatmul.msk.bf16.gmra.mxu0 %vm467_vm1, %v8256_v11 }
 0x43f   : > { %v2886_v37 = vmax.f32 %v2854_v56, 0.0 }
 0x440   : > { %v3073_v30 = vld [vmem:[#allocation3 + $0x108] sm:$0xff] }
 0x441   : > { %2991 = vst.msk [vmem:[#allocation3 + $0x110] sm:$0xff] %vm467_vm1, %v2886_v37  ;;  %v3024_v43 = vld [vmem:[#allocation3 + $0x107] sm:$0xff] }
 0x442   : > { %v2763_v14 = vpop.f32.mrf.mxu1 }
 0x443   : > { %v2821_v20 = vmul.f32 %v7990_v57, %v2763_v14 }
 0x445   : > { %v2855_v21 = vadd.f32 %v7999_v0, %v2821_v20  ;;  %6410 = vmatmul.msk.bf16.vlgmr.msrb.gmra.mxu1 %vm467_vm1, %v8039_v34 }
 0x447   : > { %v2887_v32 = vmax.f32 %v2855_v21, 0.0 }
 0x448   : > { %v3074_v23 = vld [vmem:[#allocation3 + $0x110] sm:$0xff] }
 0x449   : > { %v3025_v47 = vld [vmem:[#allocation3 + $0x10f] sm:$0xff]  ;;  %2992 = vst.msk [vmem:[#allocation3 + $0x128] sm:$0xff] %vm467_vm1, %v2887_v32  ;;  %v8272_v17 = vpack.c.bf16 %v3074_v23, %v3073_v30  ;;  %v8286_v32 = vpop.f32.mrf.mxu0 }
 0x44a   : > { %v3403_v44 = vld [vmem:[#allocation3 + $0x109] sm:$0xff]  ;;  %v8274_v13 = vpack.c.bf16 %v3025_v47, %v3024_v43  ;;  %v3404_v56 = vld [vmem:[#allocation3 + $0x111] sm:$0xff]  ;;  %v2765_v37 = vpop.f32.mrf.mxu1  ;;  %9889 = vst [vmem:[#allocation40_spill] sm:$0xff] %v8286_v32  ;;  %v8293_v47 = vpop.f32.mrf.mxu2 }
 0x44b   : > { %v8276_v14 = vpack.c.bf16 %v3404_v56, %v3403_v44  ;;  %v2822_v20 = vmul.f32 %v7990_v57, %v2765_v37  ;;  %v8295_v44 = vpop.f32.mrf.mxu3 }
 0x44c   : > { %6368 = vmatmul.msk.bf16.gmra.mxu2 %vm467_vm1, %v8272_v17  ;;  %9890 = vst [vmem:[#allocation41_spill] sm:$0xff] %v8295_v44 }
 0x44d   : > { %6384 = vmatmul.msk.bf16.gmra.mxu3 %vm467_vm1, %v8274_v13  ;;  %v2856_v34 = vadd.f32 %v7999_v0, %v2822_v20 }
 0x44e   : > { %6401 = vmatmul.msk.bf16.gmra.mxu0 %vm467_vm1, %v8276_v14 }
 0x44f   : > { %v2888_v21 = vmax.f32 %v2856_v34, 0.0 }
 0x450   : > { %v3075_v37 = vld [vmem:[#allocation3 + $0x128] sm:$0xff] }
 0x451   : > { %2993 = vst.msk [vmem:[#allocation3 + $0x130] sm:$0xff] %vm467_vm1, %v2888_v21  ;;  %v3026_v20 = vld [vmem:[#allocation3 + $0x127] sm:$0xff] }
 0x452   : > { %v2768_v30 = vpop.f32.mrf.mxu1 }
 0x453   : > { %v2823_v43 = vmul.f32 %v7990_v57, %v2768_v30 }
 0x455   : > { %v2857_v23 = vadd.f32 %v7999_v0, %v2823_v43  ;;  %6411 = vmatmul.msk.bf16.gmra.mxu1 %vm467_vm1, %v8076_v63 }
 0x457   : > { %v2889_v56 = vmax.f32 %v2857_v23, 0.0 }
 0x458   : > { %v3076_v34 = vld [vmem:[#allocation3 + $0x130] sm:$0xff] }
 0x459   : > { %v3027_v28 = vld [vmem:[#allocation3 + $0x12f] sm:$0xff]  ;;  %2994 = vst.msk [vmem:[#allocation3 + $0x148] sm:$0xff] %vm467_vm1, %v2889_v56  ;;  %v8298_v3 = vpack.c.bf16 %v3076_v34, %v3075_v37 }
 0x45a   : > { %v3405_v38 = vld [vmem:[#allocation3 + $0x129] sm:$0xff]  ;;  %v8300_v30 = vpack.c.bf16 %v3027_v28, %v3026_v20  ;;  %v3406_v43 = vld [vmem:[#allocation3 + $0x131] sm:$0xff]  ;;  %v2770_v40 = vpop.f32.mrf.mxu1 }
 0x45b   : > { %v3502_v21 = vpop.f32.mrf.mxu0  ;;  %v8302_v52 = vpack.c.bf16 %v3406_v43, %v3405_v38  ;;  %v2824_v62 = vmul.f32 %v7990_v57, %v2770_v40 }
 0x45c   : > { %6369 = vmatmul.msk.bf16.gmra.mxu2 %vm467_vm1, %v8298_v3 }
 0x45d   : > { %6385 = vmatmul.msk.bf16.gmra.mxu3 %vm467_vm1, %v8300_v30  ;;  %v2858_v23 = vadd.f32 %v7999_v0, %v2824_v62 }
 0x45e   : > { %6402 = vmatmul.msk.bf16.gmra.mxu0 %vm467_vm1, %v8302_v52 }
 0x45f   : > { %v3172_v56 = vpop.f32.mrf.mxu2  ;;  %v2890_v37 = vmax.f32 %v2858_v23, 0.0 }
 0x460   : > { %v3312_v28 = vpop.f32.mrf.mxu3  ;;  %v3077_v48 = vld [vmem:[#allocation3 + $0x148] sm:$0xff] }
 0x461   : > { %v3313_v20 = vadd.f32 %v3312_v28, %v3172_v56  ;;  %2995 = vst.msk [vmem:[#allocation3 + $0x150] sm:$0xff] %vm467_vm1, %v2890_v37  ;;  %v3028_v23 = vld [vmem:[#allocation3 + $0x147] sm:$0xff] }
 0x462   : > { %v2773_v40 = vpop.f32.mrf.mxu1 }
 0x463   : > { %v3504_v38 = vpop.f32.mrf.mxu0  ;;  %v8313_v34 = vadd.f32 %v3502_v21, %v3313_v20  ;;  %v2825_v43 = vmul.f32 %v7990_v57, %v2773_v40 }
 0x465   : > { %v2859_v5 = vadd.f32 %v7999_v0, %v2825_v43  ;;  %6412 = vmatmul.msk.bf16.gmra.mxu1 %vm467_vm1, %v8112_v1 }
 0x467   : > { %v3174_v12 = vpop.f32.mrf.mxu2  ;;  %v2891_v62 = vmax.f32 %v2859_v5, 0.0 }
 0x468   : > { %v3314_v33 = vpop.f32.mrf.mxu3  ;;  %v3078_v56 = vld [vmem:[#allocation3 + $0x150] sm:$0xff] }
 0x469   : > { %v3315_v36 = vadd.f32 %v3314_v33, %v3174_v12  ;;  %v3029_v28 = vld [vmem:[#allocation3 + $0x14f] sm:$0xff]  ;;  %2996 = vst.msk [vmem:[#allocation3 + $0x168] sm:$0xff] %vm467_vm1, %v2891_v62  ;;  %v8320_v20 = vpack.c.bf16 %v3078_v56, %v3077_v48 }
 0x46a   : > { %v3407_v37 = vld [vmem:[#allocation3 + $0x149] sm:$0xff]  ;;  %v8322_v40 = vpack.c.bf16 %v3029_v28, %v3028_v23  ;;  %v3408_v43 = vld [vmem:[#allocation3 + $0x151] sm:$0xff]  ;;  %v2775_v24 = vpop.f32.mrf.mxu1 }
 0x46b   : > { %v3507_v21 = vpop.f32.mrf.mxu0  ;;  %9891 = vst [vmem:[#allocation42_spill] sm:$0xff] %v8320_v20  ;;  %v8324_v6 = vadd.f32 %v3504_v38, %v3315_v36  ;;  %v8326_v19 = vpack.c.bf16 %v3408_v43, %v3407_v37  ;;  %v2826_v33 = vmul.f32 %v7990_v57, %v2775_v24 }
 0x46c   : > { %6370 = vmatmul.msk.bf16.gmra.mxu2 %vm467_vm1, %v8320_v20 }
 0x46d   : > { %9892 = vst [vmem:[#allocation43_spill] sm:$0xff] %v8326_v19  ;;  %6386 = vmatmul.msk.bf16.gmra.mxu3 %vm467_vm1, %v8322_v40  ;;  %v2860_v48 = vadd.f32 %v7999_v0, %v2826_v33 }
 0x46e   : > { %6403 = vmatmul.msk.bf16.gmra.mxu0 %vm467_vm1, %v8326_v19 }
 0x46f   : > { %v3177_v12 = vpop.f32.mrf.mxu2  ;;  %v2892_v36 = vmax.f32 %v2860_v48, 0.0 }
 0x470   : > { %v3317_v5 = vpop.f32.mrf.mxu3  ;;  %v3079_v15 = vld [vmem:[#allocation3 + $0x168] sm:$0xff] }
 0x471   : > { %v3318_v38 = vadd.f32 %v3317_v5, %v3177_v12  ;;  %2997 = vst.msk [vmem:[#allocation3 + $0x170] sm:$0xff] %vm467_vm1, %v2892_v36  ;;  %v3030_v48 = vld [vmem:[#allocation3 + $0x167] sm:$0xff] }
 0x472   : > { %v2778_v24 = vpop.f32.mrf.mxu1 }
 0x473   : > { %v3509_v62 = vpop.f32.mrf.mxu0  ;;  %v8337_v23 = vadd.f32 %v3507_v21, %v3318_v38  ;;  %v2827_v56 = vmul.f32 %v7990_v57, %v2778_v24 }
 0x475   : > { %v2861_v28 = vadd.f32 %v7999_v0, %v2827_v56  ;;  %6413 = vmatmul.msk.bf16.gmra.mxu1 %vm467_vm1, %v8148_v53 }
 0x477   : > { %v3179_v37 = vpop.f32.mrf.mxu2  ;;  %v2893_v33 = vmax.f32 %v2861_v28, 0.0 }
 0x478   : > { %v3319_v43 = vpop.f32.mrf.mxu3  ;;  %v3080_v12 = vld [vmem:[#allocation3 + $0x170] sm:$0xff] }
 0x479   : > { %v3320_v35 = vadd.f32 %v3319_v43, %v3179_v37  ;;  %v3031_v5 = vld [vmem:[#allocation3 + $0x16f] sm:$0xff]  ;;  %2998 = vst.msk [vmem:[#allocation3 + $0x188] sm:$0xff] %vm467_vm1, %v2893_v33  ;;  %v8344_v38 = vpack.c.bf16 %v3080_v12, %v3079_v15 }
 0x47a   : > { %v3409_v36 = vld [vmem:[#allocation3 + $0x169] sm:$0xff]  ;;  %v8346_v24 = vpack.c.bf16 %v3031_v5, %v3030_v48  ;;  %v3410_v56 = vld [vmem:[#allocation3 + $0x171] sm:$0xff]  ;;  %v2780_v39 = vpop.f32.mrf.mxu1 }
 0x47b   : > { %v3512_v21 = vpop.f32.mrf.mxu0  ;;  %9893 = vst [vmem:[#allocation44_spill] sm:$0xff] %v8344_v38  ;;  %v8348_v59 = vadd.f32 %v3509_v62, %v3320_v35  ;;  %v8350_v41 = vpack.c.bf16 %v3410_v56, %v3409_v36  ;;  %v2828_v28 = vmul.f32 %v7990_v57, %v2780_v39 }
 0x47c   : > { %6371 = vmatmul.msk.bf16.gmra.mxu2 %vm467_vm1, %v8344_v38 }
 0x47d   : > { %9894 = vst [vmem:[#allocation45_spill] sm:$0xff] %v8350_v41  ;;  %6387 = vmatmul.msk.bf16.gmra.mxu3 %vm467_vm1, %v8346_v24  ;;  %v2862_v15 = vadd.f32 %v7999_v0, %v2828_v28 }
 0x47e   : > { %6404 = vmatmul.msk.bf16.gmra.mxu0 %vm467_vm1, %v8350_v41  ;;  %v6608_v41 = vld [vmem:[%s9724_s4] ss:$0 sm:$0xff] }
 0x47f   : > { %v3182_v37 = vpop.f32.mrf.mxu2  ;;  %v2894_v35 = vmax.f32 %v2862_v15, 0.0 }
 0x480   : > { %v3322_v43 = vpop.f32.mrf.mxu3  ;;  %v3081_v2 = vld [vmem:[#allocation3 + $0x188] sm:$0xff] }
 0x481   : > { %v3323_v62 = vadd.f32 %v3322_v43, %v3182_v37  ;;  %2999 = vst.msk [vmem:[#allocation3 + $0x190] sm:$0xff] %vm467_vm1, %v2894_v35  ;;  %v3032_v15 = vld [vmem:[#allocation3 + $0x187] sm:$0xff] }
 0x482   : > { %v2783_v39 = vpop.f32.mrf.mxu1 }
 0x483   : > { %v3514_v33 = vpop.f32.mrf.mxu0  ;;  %v8361_v48 = vadd.f32 %v3512_v21, %v3323_v62  ;;  %v2829_v12 = vmul.f32 %v7990_v57, %v2783_v39 }
 0x485   : > { %v2863_v5 = vadd.f32 %v7999_v0, %v2829_v12  ;;  %6414 = vmatmul.msk.bf16.gmra.mxu1 %vm467_vm1, %v8184_v9 }
 0x487   : > { %v3184_v36 = vpop.f32.mrf.mxu2  ;;  %v2895_v28 = vmax.f32 %v2863_v5, 0.0 }
 0x488   : > { %v3324_v56 = vpop.f32.mrf.mxu3  ;;  %v3082_v37 = vld [vmem:[#allocation3 + $0x190] sm:$0xff] }
 0x489   : > { %v3325_v16 = vadd.f32 %v3324_v56, %v3184_v36  ;;  %v3033_v43 = vld [vmem:[#allocation3 + $0x18f] sm:$0xff]  ;;  %3000 = vst.msk [vmem:[#allocation3 + $0x1a8] sm:$0xff] %vm467_vm1, %v2895_v28  ;;  %v8368_v62 = vpack.c.bf16 %v3082_v37, %v3081_v2 }
 0x48a   : > { %v3411_v35 = vld [vmem:[#allocation3 + $0x189] sm:$0xff]  ;;  %v8370_v39 = vpack.c.bf16 %v3033_v43, %v3032_v15  ;;  %v3412_v12 = vld [vmem:[#allocation3 + $0x191] sm:$0xff]  ;;  %v2785_v31 = vpop.f32.mrf.mxu1 }
 0x48b   : > { %v3517_v21 = vpop.f32.mrf.mxu0  ;;  %9895 = vst [vmem:[#allocation46_spill] sm:$0xff] %v8368_v62  ;;  %v8372_v46 = vadd.f32 %v3514_v33, %v3325_v16  ;;  %v8374_v27 = vpack.c.bf16 %v3412_v12, %v3411_v35  ;;  %v2830_v5 = vmul.f32 %v7990_v57, %v2785_v31 }
 0x48c   : > { %6372 = vmatmul.msk.bf16.gmra.mxu2 %vm467_vm1, %v8368_v62 }
 0x48d   : > { %9896 = vst [vmem:[#allocation47_spill] sm:$0xff] %v8374_v27  ;;  %6388 = vmatmul.msk.bf16.gmra.mxu3 %vm467_vm1, %v8370_v39  ;;  %v2864_v2 = vadd.f32 %v7999_v0, %v2830_v5 }
 0x48e   : > { %6405 = vmatmul.msk.bf16.gmra.mxu0 %vm467_vm1, %v8374_v27 }
 0x48f   : > { %v3187_v36 = vpop.f32.mrf.mxu2  ;;  %v2896_v16 = vmax.f32 %v2864_v2, 0.0 }
 0x490   : > { %v3327_v56 = vpop.f32.mrf.mxu3  ;;  %v3083_v18 = vld [vmem:[#allocation3 + $0x1a8] sm:$0xff] }
 0x491   : > { %v3328_v33 = vadd.f32 %v3327_v56, %v3187_v36  ;;  %3001 = vst.msk [vmem:[#allocation3 + $0x1b0] sm:$0xff] %vm467_vm1, %v2896_v16  ;;  %v3034_v2 = vld [vmem:[#allocation3 + $0x1a7] sm:$0xff] }
 0x492   : > { %v2788_v31 = vpop.f32.mrf.mxu1 }
 0x493   : > { %v3519_v28 = vpop.f32.mrf.mxu0  ;;  %v8385_v15 = vadd.f32 %v3517_v21, %v3328_v33  ;;  %v2831_v37 = vmul.f32 %v7990_v57, %v2788_v31 }
 0x495   : > { %v2865_v43 = vadd.f32 %v7999_v0, %v2831_v37  ;;  %6415 = vmatmul.msk.bf16.gmra.mxu1 %vm467_vm1, %v8220_v60 }
 0x497   : > { %v3189_v35 = vpop.f32.mrf.mxu2  ;;  %v2897_v5 = vmax.f32 %v2865_v43, 0.0 }
 0x498   : > { %v3329_v12 = vpop.f32.mrf.mxu3  ;;  %v3084_v36 = vld [vmem:[#allocation3 + $0x1b0] sm:$0xff] }
 0x499   : > { %v3330_v58 = vadd.f32 %v3329_v12, %v3189_v35  ;;  %v3035_v56 = vld [vmem:[#allocation3 + $0x1af] sm:$0xff]  ;;  %3002 = vst.msk [vmem:[#allocation3 + $0x1c8] sm:$0xff] %vm467_vm1, %v2897_v5  ;;  %v8392_v33 = vpack.c.bf16 %v3084_v36, %v3083_v18 }
 0x49a   : > { %v3413_v16 = vld [vmem:[#allocation3 + $0x1a9] sm:$0xff]  ;;  %v8394_v31 = vpack.c.bf16 %v3035_v56, %v3034_v2  ;;  %v3414_v37 = vld [vmem:[#allocation3 + $0x1b1] sm:$0xff]  ;;  %v2790_v27 = vpop.f32.mrf.mxu1 }
 0x49b   : > { %v3522_v21 = vpop.f32.mrf.mxu0  ;;  %9897 = vst [vmem:[#allocation48_spill] sm:$0xff] %v8392_v33  ;;  %v8396_v22 = vadd.f32 %v3519_v28, %v3330_v58  ;;  %v8398_v62 = vpack.c.bf16 %v3414_v37, %v3413_v16  ;;  %v2832_v43 = vmul.f32 %v7990_v57, %v2790_v27  ;;  %v6443_v16 = vld [vmem:[%s9725_s5 + $0xa] sm:$0x3] }
 0x49c   : > { %6373 = vmatmul.msk.bf16.gmra.mxu2 %vm467_vm1, %v8392_v33 }
 0x49d   : > { %9898 = vst [vmem:[#allocation49_spill] sm:$0xff] %v8398_v62  ;;  %6389 = vmatmul.msk.bf16.gmra.mxu3 %vm467_vm1, %v8394_v31  ;;  %v2866_v18 = vadd.f32 %v7999_v0, %v2832_v43 }
 0x49e   : > { %6406 = vmatmul.msk.bf16.gmra.mxu0 %vm467_vm1, %v8398_v62 }
 0x49f   : > { %v3192_v35 = vpop.f32.mrf.mxu2  ;;  %v2898_v58 = vmax.f32 %v2866_v18, 0.0  ;;  %v4152_v18 = vsel %vm753_vm0, %v6443_v16, 0 }
 0x4a0   : > { %v3332_v12 = vpop.f32.mrf.mxu3  ;;  %4161 = vmatpush.bf16.msrb.mxu3 %v4152_v18 }
 0x4a1   : > { %v3333_v28 = vadd.f32 %v3332_v12, %v3192_v35  ;;  %3003 = vst.msk [vmem:[#allocation3 + $0x1d0] sm:$0xff] %vm467_vm1, %v2898_v58  ;;  %v3036_v58 = vld [vmem:[#allocation3 + $0x1c7] sm:$0xff] }
 0x4a2   : > { %v2793_v27 = vpop.f32.mrf.mxu1 }
 0x4a3   : > { %v3524_v5 = vpop.f32.mrf.mxu0  ;;  %v8409_v2 = vadd.f32 %v3522_v21, %v3333_v28  ;;  %v2833_v36 = vmul.f32 %v7990_v57, %v2793_v27  ;;  %v3085_v21 = vld [vmem:[#allocation3 + $0x1c8] sm:$0xff] }
 0x4a4   : > { %v6460_v57 = vld [vmem:[%s9725_s5 + $0xc] sm:$0x3] }
 0x4a5   : > { %v2867_v56 = vadd.f32 %v7999_v0, %v2833_v36  ;;  %6416 = vmatmul.msk.bf16.gmra.mxu1 %vm467_vm1, %v8254_v45  ;;  %v4375_v36 = vsel %vm753_vm0, %v6460_v57, 0 }
 0x4a6   : > { %4384 = vmatpush.bf16.msrb.mxu0 %v4375_v36 }
 0x4a7   : > { %v3194_v37 = vpop.f32.mrf.mxu2  ;;  %v2899_v35 = vmax.f32 %v2867_v56, 0.0 }
 0x4a8   : > { %v3334_v43 = vpop.f32.mrf.mxu3  ;;  %v3086_v0 = vld [vmem:[#allocation3 + $0x1d0] sm:$0xff] }
 0x4a9   : > { %v3335_v12 = vadd.f32 %v3334_v43, %v3194_v37  ;;  %v3037_v28 = vld [vmem:[#allocation3 + $0x1cf] sm:$0xff]  ;;  %3004 = vst.msk [vmem:[#allocation3 + $0x1e8] sm:$0xff] %vm467_vm1, %v2899_v35  ;;  %v8424_v33 = vpack.c.bf16 %v3086_v0, %v3085_v21  ;;  %v6609_v35 = vld [vmem:[%s9724_s4 + $0x1] ss:$0 sm:$0xff] }
 0x4aa   : > { %v3415_v27 = vld [vmem:[#allocation3 + $0x1c9] sm:$0xff]  ;;  %v8426_v16 = vpack.c.bf16 %v3037_v28, %v3036_v58  ;;  %v3416_v56 = vld [vmem:[#allocation3 + $0x1d1] sm:$0xff]  ;;  %v2795_v43 = vpop.f32.mrf.mxu1 }
 0x4ab   : > { %v3527_v62 = vpop.f32.mrf.mxu0  ;;  %9899 = vst [vmem:[#allocation50_spill] sm:$0xff] %v8424_v33  ;;  %v8428_v37 = vadd.f32 %v3524_v5, %v3335_v12  ;;  %v8430_v18 = vpack.c.bf16 %v3416_v56, %v3415_v27  ;;  %v2834_v38 = vmul.f32 %v6608_v41, %v2795_v43  ;;  %v6494_v5 = vld [vmem:[%s9725_s5 + $0x10] sm:$0x3]  ;;  %v6477_v27 = vld [vmem:[%s9725_s5 + $0xe] sm:$0x3] }
 0x4ac   : > { %6374 = vmatmul.msk.bf16.gmra.mxu2 %vm467_vm1, %v8424_v33  ;;  %v4819_v21 = vsel %vm753_vm0, %v6494_v5, 0  ;;  %v4597_v36 = vsel %vm753_vm0, %v6477_v27, 0 }
 0x4ad   : > { %9900 = vst [vmem:[#allocation51_spill] sm:$0xff] %v8430_v18  ;;  %6390 = vmatmul.msk.bf16.gmra.mxu3 %vm467_vm1, %v8426_v16  ;;  %v2868_v12 = vadd.f32 %v6609_v35, %v2834_v38  ;;  %4828 = vmatpush.bf16.msra.mxu2 %v4819_v21 }
 0x4ae   : > { %6407 = vmatmul.msk.bf16.gmra.mxu0 %vm467_vm1, %v8430_v18  ;;  %4606 = vmatpush.bf16.msra.mxu1 %v4597_v36 }
 0x4af   : > { %v3197_v58 = vpop.f32.mrf.mxu2  ;;  %v2900_v0 = vmax.f32 %v2868_v12, 0.0 }
 0x4b0   : > { %v3337_v57 = vpop.f32.mrf.mxu3  ;;  %v3087_v33 = vld [vmem:[#allocation3 + $0x1e8] sm:$0xff] }
 0x4b1   : > { %v3338_v28 = vadd.f32 %v3337_v57, %v3197_v58  ;;  %3005 = vst.msk [vmem:[#allocation3 + $0x1f0] sm:$0xff] %vm467_vm1, %v2900_v0  ;;  %v3038_v19 = vld [vmem:[#allocation3 + $0x1e7] sm:$0xff] }
 0x4b2   : > { %v2798_v38 = vpop.f32.mrf.mxu1 }
 0x4b3   : > { %v3529_v56 = vpop.f32.mrf.mxu0  ;;  %v8453_v43 = vadd.f32 %v3527_v62, %v3338_v28  ;;  %v2835_v18 = vmul.f32 %v6608_v41, %v2798_v38 }
 0x4b5   : > { %v2869_v5 = vadd.f32 %v6609_v35, %v2835_v18  ;;  %6417 = vmatmul.msk.bf16.gmra.mxu1 %vm467_vm1, %v8274_v13 }
 0x4b7   : > { %v3199_v12 = vpop.f32.mrf.mxu2  ;;  %v2901_v58 = vmax.f32 %v2869_v5, 0.0 }
 0x4b8   : > { %v3339_v21 = vpop.f32.mrf.mxu3  ;;  %v3088_v20 = vld [vmem:[#allocation3 + $0x1f0] sm:$0xff] }
 0x4b9   : > { %v3340_v57 = vadd.f32 %v3339_v21, %v3199_v12  ;;  %v3039_v27 = vld [vmem:[#allocation3 + $0x1ef] sm:$0xff]  ;;  %3006 = vst.msk [vmem:[#allocation3 + $0x208] sm:$0xff] %vm467_vm1, %v2901_v58  ;;  %v8458_v62 = vpack.c.bf16 %v3088_v20, %v3087_v33 }
 0x4ba   : > { %v3417_v32 = vld [vmem:[#allocation3 + $0x1e9] sm:$0xff]  ;;  %v8460_v28 = vpack.c.bf16 %v3039_v27, %v3038_v19  ;;  %v3418_v18 = vld [vmem:[#allocation3 + $0x1f1] sm:$0xff]  ;;  %v2800_v38 = vpop.f32.mrf.mxu1 }
 0x4bb   : > { %v3532_v0 = vpop.f32.mrf.mxu0  ;;  %v8462_v36 = vadd.f32 %v3529_v56, %v3340_v57  ;;  %v8464_v44 = vpack.c.bf16 %v3418_v18, %v3417_v32  ;;  %v2836_v5 = vmul.f32 %v6608_v41, %v2800_v38 }
 0x4bc   : > { %6375 = vmatmul.msk.bf16.gmra.mxu2 %vm467_vm1, %v8458_v62 }
 0x4bd   : > { %6391 = vmatmul.msk.bf16.gmra.mxu3 %vm467_vm1, %v8460_v28  ;;  %v2870_v20 = vadd.f32 %v6609_v35, %v2836_v5 }
 0x4be   : > { %6408 = vmatmul.msk.bf16.gmra.mxu0 %vm467_vm1, %v8464_v44 }
 0x4bf   : > { %v3202_v33 = vpop.f32.mrf.mxu2  ;;  %v2902_v12 = vmax.f32 %v2870_v20, 0.0 }
 0x4c0   : > { %v3342_v19 = vpop.f32.mrf.mxu3 }
 0x4c1   : > { %v3343_v21 = vadd.f32 %v3342_v19, %v3202_v33  ;;  %3007 = vst.msk [vmem:[#allocation3 + $0x210] sm:$0xff] %vm467_vm1, %v2902_v12 }
 0x4c2   : > { %v3719_v41 = vpop.f32.mrf.mxu1 }
 0x4c3   : > { %v3534_v56 = vpop.f32.mrf.mxu0  ;;  %v8473_v32 = vadd.f32 %v3532_v0, %v3343_v21  ;;  %v8476_v58 = vadd.f32 %v3719_v41, %v8247_v42 }
 0x4c5   : > { %6418 = vmatmul.msk.bf16.gmra.mxu1 %vm467_vm1, %v8300_v30 }
 0x4c7   : > { %v3204_v57 = vpop.f32.mrf.mxu2 }
 0x4c8   : > { %v3344_v27 = vpop.f32.mrf.mxu3 }
 0x4c9   : > { %v3345_v18 = vadd.f32 %v3344_v27, %v3204_v57 }
 0x4ca   : > { %v8482_v5 = vpop.f32.mrf.mxu1 }
 0x4cb   : > { %v3537_v35 = vpop.f32.mrf.mxu0  ;;  %v8480_v38 = vadd.f32 %v3534_v56, %v3345_v18 }
 0x4cc   : > { %6427 = vmatmul.msk.bf16.vlgmr.msrb.gmra.mxu2 %vm467_vm1, %v8037_v54 }
 0x4cd   : > { %6444 = vmatmul.msk.bf16.vlgmr.msrb.gmra.mxu3 %vm467_vm1, %v8041_v8 }
 0x4ce   : > { %6461 = vmatmul.msk.bf16.vlgmr.msrb.gmra.mxu0 %vm467_vm1, %v8076_v63 }
 0x4cf   : > { %v3207_v42 = vpop.f32.mrf.mxu2 }
 0x4d0   : > { %v3347_v0 = vpop.f32.mrf.mxu3 }
 0x4d1   : > { %v3348_v20 = vadd.f32 %v3347_v0, %v3207_v42 }
 0x4d2   : > { %v3724_v12 = vpop.f32.mrf.mxu1 }
 0x4d3   : > { %v3539_v33 = vpop.f32.mrf.mxu0  ;;  %v8490_v19 = vadd.f32 %v3537_v35, %v3348_v20  ;;  %v8493_v21 = vadd.f32 %v3724_v12, %v8313_v34 }
 0x4d5   : > { %6419 = vmatmul.msk.bf16.gmra.mxu1 %vm467_vm1, %v8322_v40 }
 0x4d7   : > { %v3209_v54 = vpop.f32.mrf.mxu2 }
 0x4d8   : > { %v3349_v56 = vpop.f32.mrf.mxu3 }
 0x4d9   : > { %v3350_v41 = vadd.f32 %v3349_v56, %v3209_v54 }
 0x4da   : > { %v3726_v63 = vpop.f32.mrf.mxu1 }
 0x4db   : > { %v3542_v8 = vpop.f32.mrf.mxu0  ;;  %v8497_v57 = vadd.f32 %v3539_v33, %v3350_v41  ;;  %v8500_v27 = vadd.f32 %v3726_v63, %v8324_v6 }
 0x4dc   : > { %6428 = vmatmul.msk.bf16.gmra.mxu2 %vm467_vm1, %v8074_v49 }
 0x4dd   : > { %6445 = vmatmul.msk.bf16.gmra.mxu3 %vm467_vm1, %v8078_v4 }
 0x4de   : > { %6462 = vmatmul.msk.bf16.gmra.mxu0 %vm467_vm1, %v8112_v1 }
 0x4df   : > { %v3212_v34 = vpop.f32.mrf.mxu2 }
 0x4e0   : > { %v3352_v18 = vpop.f32.mrf.mxu3 }
 0x4e1   : > { %v3353_v35 = vadd.f32 %v3352_v18, %v3212_v34 }
 0x4e2   : > { %v3729_v20 = vpop.f32.mrf.mxu1 }
 0x4e3   : > { %v3544_v42 = vpop.f32.mrf.mxu0  ;;  %v8508_v0 = vadd.f32 %v3542_v8, %v3353_v35  ;;  %v8511_v33 = vadd.f32 %v3729_v20, %v8337_v23 }
 0x4e5   : > { %6420 = vmatmul.msk.bf16.gmra.mxu1 %vm467_vm1, %v8346_v24 }
 0x4e7   : > { %v3214_v6 = vpop.f32.mrf.mxu2 }
 0x4e8   : > { %v3354_v49 = vpop.f32.mrf.mxu3 }
 0x4e9   : > { %v3355_v12 = vadd.f32 %v3354_v49, %v3214_v6 }
 0x4ea   : > { %v3731_v1 = vpop.f32.mrf.mxu1 }
 0x4eb   : > { %v3547_v4 = vpop.f32.mrf.mxu0  ;;  %v8515_v54 = vadd.f32 %v3544_v42, %v3355_v12  ;;  %v8518_v56 = vadd.f32 %v3731_v1, %v8348_v59 }
 0x4ec   : > { %6429 = vmatmul.msk.bf16.gmra.mxu2 %vm467_vm1, %v8110_v7 }
 0x4ed   : > { %6446 = vmatmul.msk.bf16.gmra.mxu3 %vm467_vm1, %v8114_v26 }
 0x4ee   : > { %6463 = vmatmul.msk.bf16.gmra.mxu0 %vm467_vm1, %v8148_v53 }
 0x4ef   : > { %v3217_v23 = vpop.f32.mrf.mxu2 }
 0x4f0   : > { %v3357_v41 = vpop.f32.mrf.mxu3 }
 0x4f1   : > { %v3358_v8 = vadd.f32 %v3357_v41, %v3217_v23 }
 0x4f2   : > { %v3734_v18 = vpop.f32.mrf.mxu1 }
 0x4f3   : > { %v3549_v63 = vpop.f32.mrf.mxu0  ;;  %v8526_v34 = vadd.f32 %v3547_v4, %v3358_v8  ;;  %v8529_v35 = vadd.f32 %v3734_v18, %v8361_v48 }
 0x4f5   : > { %6421 = vmatmul.msk.bf16.gmra.mxu1 %vm467_vm1, %v8370_v39 }
 0x4f7   : > { %v3219_v59 = vpop.f32.mrf.mxu2 }
 0x4f8   : > { %v3359_v7 = vpop.f32.mrf.mxu3 }
 0x4f9   : > { %v3360_v42 = vadd.f32 %v3359_v7, %v3219_v59 }
 0x4fa   : > { %v3736_v53 = vpop.f32.mrf.mxu1 }
 0x4fb   : > { %v3552_v26 = vpop.f32.mrf.mxu0  ;;  %v8533_v20 = vadd.f32 %v3549_v63, %v3360_v42  ;;  %v8536_v6 = vadd.f32 %v3736_v53, %v8372_v46 }
 0x4fc   : > { %6430 = vmatmul.msk.bf16.gmra.mxu2 %vm467_vm1, %v8146_v61 }
 0x4fd   : > { %6447 = vmatmul.msk.bf16.gmra.mxu3 %vm467_vm1, %v8150_v25 }
 0x4fe   : > { %6464 = vmatmul.msk.bf16.gmra.mxu0 %vm467_vm1, %v8184_v9 }
 0x4ff   : > { %v3222_v48 = vpop.f32.mrf.mxu2 }
 0x500   : > { %v3362_v49 = vpop.f32.mrf.mxu3 }
 0x501   : > { %v3363_v12 = vadd.f32 %v3362_v49, %v3222_v48 }
 0x502   : > { %v3739_v23 = vpop.f32.mrf.mxu1 }
 0x503   : > { %v3554_v4 = vpop.f32.mrf.mxu0  ;;  %v8544_v1 = vadd.f32 %v3552_v26, %v3363_v12  ;;  %v8547_v41 = vadd.f32 %v3739_v23, %v8385_v15 }
 0x505   : > { %6422 = vmatmul.msk.bf16.gmra.mxu1 %vm467_vm1, %v8394_v31 }
 0x507   : > { %v3224_v61 = vpop.f32.mrf.mxu2 }
 0x508   : > { %v3364_v46 = vpop.f32.mrf.mxu3 }
 0x509   : > { %v3365_v8 = vadd.f32 %v3364_v46, %v3224_v61 }
 0x50a   : > { %v3741_v9 = vpop.f32.mrf.mxu1 }
 0x50b   : > { %v3557_v25 = vpop.f32.mrf.mxu0  ;;  %v8551_v63 = vadd.f32 %v3554_v4, %v3365_v8  ;;  %v8554_v18 = vadd.f32 %v3741_v9, %v8396_v22 }
 0x50c   : > { %6431 = vmatmul.msk.bf16.gmra.mxu2 %vm467_vm1, %v8182_v55 }
 0x50d   : > { %6448 = vmatmul.msk.bf16.gmra.mxu3 %vm467_vm1, %v8186_v10 }
 0x50e   : > { %6465 = vmatmul.msk.bf16.gmra.mxu0 %vm467_vm1, %v8220_v60 }
 0x50f   : > { %v3227_v15 = vpop.f32.mrf.mxu2 }
 0x510   : > { %v3367_v59 = vpop.f32.mrf.mxu3 }
 0x511   : > { %v3368_v7 = vadd.f32 %v3367_v59, %v3227_v15 }
 0x512   : > { %v3744_v53 = vpop.f32.mrf.mxu1 }
 0x513   : > { %v3559_v42 = vpop.f32.mrf.mxu0  ;;  %v8562_v26 = vadd.f32 %v3557_v25, %v3368_v7  ;;  %v8565_v48 = vadd.f32 %v3744_v53, %v8409_v2 }
 0x515   : > { %6423 = vmatmul.msk.bf16.gmra.mxu1 %vm467_vm1, %v8426_v16 }
 0x517   : > { %v3229_v22 = vpop.f32.mrf.mxu2 }
 0x518   : > { %v3369_v55 = vpop.f32.mrf.mxu3 }
 0x519   : > { %v3370_v49 = vadd.f32 %v3369_v55, %v3229_v22  ;;  %v3640_v22 = vld [vmem:[#allocation3 + $0x20f] sm:$0xff] }
 0x51a   : > { %v3746_v60 = vpop.f32.mrf.mxu1 }
 0x51b   : > { %v3562_v10 = vpop.f32.mrf.mxu0  ;;  %v8569_v12 = vadd.f32 %v3559_v42, %v3370_v49  ;;  %v8572_v4 = vadd.f32 %v3746_v60, %v8428_v37  ;;  %v3639_v60 = vld [vmem:[#allocation3 + $0x207] sm:$0xff] }
 0x51c   : > { %6432 = vmatmul.msk.bf16.gmra.mxu2 %vm467_vm1, %v8218_v51 }
 0x51d   : > { %6449 = vmatmul.msk.bf16.gmra.mxu3 %vm467_vm1, %v8222_v29 }
 0x51e   : > { %6466 = vmatmul.msk.bf16.gmra.mxu0 %vm467_vm1, %v8254_v45 }
 0x51f   : > { %v3232_v2 = vpop.f32.mrf.mxu2 }
 0x520   : > { %v3372_v23 = vpop.f32.mrf.mxu3 }
 0x521   : > { %v3373_v61 = vadd.f32 %v3372_v23, %v3232_v2  ;;  %v8603_v2 = vpack.c.bf16 %v3640_v22, %v3639_v60 }
 0x522   : > { %v3749_v25 = vpop.f32.mrf.mxu1 }
 0x523   : > { %v3564_v46 = vpop.f32.mrf.mxu0  ;;  %v8580_v8 = vadd.f32 %v3562_v10, %v3373_v61  ;;  %v8583_v9 = vadd.f32 %v3749_v25, %v8453_v43 }
 0x525   : > { %6424 = vmatmul.msk.bf16.gmra.mxu1 %vm467_vm1, %v8460_v28 }
 0x527   : > { %v3234_v51 = vpop.f32.mrf.mxu2 }
 0x528   : > { %v3374_v37 = vpop.f32.mrf.mxu3 }
 0x529   : > { %v3375_v15 = vadd.f32 %v3374_v37, %v3234_v51 }
 0x52a   : > { %v3751_v45 = vpop.f32.mrf.mxu1 }
 0x52b   : > { %v3567_v29 = vpop.f32.mrf.mxu0  ;;  %v8587_v59 = vadd.f32 %v3564_v46, %v3375_v15  ;;  %v8590_v7 = vadd.f32 %v3751_v45, %v8462_v36  ;;  %v4499_v15 = vld [vmem:[#allocation3 + $0x50] sm:$0xff] }
 0x52c   : > { %6433 = vmatmul.msk.bf16.gmra.mxu2 %vm467_vm1, %v8252_v50 }
 0x52d   : > { %6450 = vmatmul.msk.bf16.gmra.mxu3 %vm467_vm1, %v8256_v11 }
 0x52e   : > { %6467 = vmatmul.msk.bf16.gmra.mxu0 %vm467_vm1, %v8274_v13 }
 0x52f   : > { %v3237_v43 = vpop.f32.mrf.mxu2 }
 0x530   : > { %v3377_v42 = vpop.f32.mrf.mxu3 }
 0x531   : > { %v3378_v53 = vadd.f32 %v3377_v42, %v3237_v43  ;;  %v4498_v42 = vld [vmem:[#allocation3 + $0x48] sm:$0xff] }
 0x532   : > { %v3754_v10 = vpop.f32.mrf.mxu1 }
 0x533   : > { %v3569_v55 = vpop.f32.mrf.mxu0  ;;  %v8598_v49 = vadd.f32 %v3567_v29, %v3378_v53  ;;  %v8601_v36 = vadd.f32 %v3754_v10, %v8473_v32  ;;  %v4530_v53 = vpack.c.bf16 %v4499_v15, %v4498_v42  ;;  %v9902_v15 = vld [vmem:[#allocation40_spill] sm:$0xff] }
 0x535   : > { %6425 = vmatmul.msk.bf16.gmra.mxu1 %vm467_vm1, %v8603_v2 }
 0x537   : > { %v3239_v50 = vpop.f32.mrf.mxu2 }
 0x538   : > { %v3379_v11 = vpop.f32.mrf.mxu3 }
 0x539   : > { %v3380_v13 = vadd.f32 %v3379_v11, %v3239_v50  ;;  %v9901_v11 = vld [vmem:[#allocation41_spill] sm:$0xff] }
 0x53a   : > { %v3756_v46 = vpop.f32.mrf.mxu1 }
 0x53b   : > { %v3572_v23 = vpop.f32.mrf.mxu0  ;;  %v8607_v61 = vadd.f32 %v3569_v55, %v3380_v13  ;;  %v8610_v25 = vadd.f32 %v3756_v46, %v8480_v38  ;;  %v3310_v13 = vadd.f32 %v9901_v11, %v8293_v47  ;;  %v4501_v46 = vld [vmem:[#allocation3 + $0x70] sm:$0xff] }
 0x53c   : > { %6434 = vmatmul.msk.bf16.gmra.mxu2 %vm467_vm1, %v8272_v17  ;;  %v4503_v11 = vld [vmem:[#allocation3 + $0x90] sm:$0xff] }
 0x53d   : > { %6451 = vmatmul.msk.bf16.gmra.mxu3 %vm467_vm1, %v8276_v14 }
 0x53e   : > { %6468 = vmatmul.msk.bf16.gmra.mxu0 %vm467_vm1, %v8300_v30 }
 0x53f   : > { %v3242_v32 = vpop.f32.mrf.mxu2 }
 0x540   : > { %v3382_v51 = vpop.f32.mrf.mxu3 }
 0x541   : > { %v3383_v37 = vadd.f32 %v3382_v51, %v3242_v32 }
 0x542   : > { %v3759_v43 = vpop.f32.mrf.mxu1 }
 0x543   : > { %v3574_v29 = vpop.f32.mrf.mxu0  ;;  %v8618_v45 = vadd.f32 %v3572_v23, %v3383_v37  ;;  %v8621_v38 = vadd.f32 %v3759_v43, %v8490_v19  ;;  %v4500_v37 = vld [vmem:[#allocation3 + $0x68] sm:$0xff] }
 0x545   : > { %6478 = vmatmul.msk.bf16.vlgmr.msra.gmra.mxu1 %vm467_vm1, %v4530_v53 }
 0x547   : > { %v3244_v17 = vpop.f32.mrf.mxu2 }
 0x548   : > { %v3384_v14 = vpop.f32.mrf.mxu3 }
 0x549   : > { %v3385_v22 = vadd.f32 %v3384_v14, %v3244_v17 }
 0x54a   : > { %v3761_v10 = vpop.f32.mrf.mxu1 }
 0x54b   : > { %v4386_v55 = vpop.f32.mrf.mxu0  ;;  %v8624_v30 = vadd.f32 %v3574_v29, %v3385_v22  ;;  %v8627_v60 = vadd.f32 %v3761_v10, %v8497_v57  ;;  %v9903_v10 = vld [vmem:[#allocation42_spill] sm:$0xff] }
 0x54c   : > { %6435 = vmatmul.msk.bf16.gmra.mxu2 %vm467_vm1, %v8298_v3  ;;  %v3578_v3 = vadd.f32 %v9902_v15, %v3310_v13 }
 0x54d   : > { %6452 = vmatmul.msk.bf16.gmra.mxu3 %vm467_vm1, %v8302_v52  ;;  %v4531_v52 = vpack.c.bf16 %v4501_v46, %v4500_v37  ;;  %v4502_v46 = vld [vmem:[#allocation3 + $0x88] sm:$0xff] }
 0x54e   : > { %6469 = vmatmul.msk.bf16.gmra.mxu0 %vm467_vm1, %v8322_v40  ;;  %v3800_v40 = vadd.f32 %v8482_v5, %v3578_v3 }
 0x54f   : > { %v3941_v19 = vpop.f32.mrf.mxu2 }
 0x550   : > { %v4163_v50 = vpop.f32.mrf.mxu3  ;;  %v4021_v23 = vadd.f32 %v3941_v19, %v8476_v58 }
 0x552   : > { %v4243_v32 = vadd.f32 %v4163_v50, %v4021_v23  ;;  %v3764_v51 = vpop.f32.mrf.mxu1 }
 0x553   : > { %v4388_v57 = vpop.f32.mrf.mxu0  ;;  %v8640_v29 = vadd.f32 %v3764_v51, %v8508_v0  ;;  %v9904_v0 = vld [vmem:[#allocation43_spill] sm:$0xff]  ;;  %v4532_v51 = vpack.c.bf16 %v4503_v11, %v4502_v46  ;;  %v9907_v46 = vld [vmem:[#allocation46_spill] sm:$0xff] }
 0x554   : > { %v8642_v43 = vadd.f32 %v4386_v55, %v4243_v32 }
 0x555   : > { %6479 = vmatmul.msk.bf16.gmra.mxu1 %vm467_vm1, %v4531_v52 }
 0x557   : > { %v3943_v47 = vpop.f32.mrf.mxu2 }
 0x558   : > { %v4165_v42 = vpop.f32.mrf.mxu3  ;;  %v4022_v58 = vadd.f32 %v3943_v47, %v3800_v40  ;;  %v9905_v47 = vld [vmem:[#allocation44_spill] sm:$0xff] }
 0x55a   : > { %v4244_v53 = vadd.f32 %v4165_v42, %v4022_v58  ;;  %v3766_v14 = vpop.f32.mrf.mxu1 }
 0x55b   : > { %v4391_v17 = vpop.f32.mrf.mxu0  ;;  %v8647_v22 = vadd.f32 %v3766_v14, %v8515_v54 }
 0x55c   : > { %6436 = vmatmul.msk.bf16.gmra.mxu2 %vm467_vm1, %v9903_v10  ;;  %v8653_v55 = vadd.f32 %v4388_v57, %v4244_v53 }
 0x55d   : > { %6453 = vmatmul.msk.bf16.gmra.mxu3 %vm467_vm1, %v9904_v0 }
 0x55e   : > { %6470 = vmatmul.msk.bf16.gmra.mxu0 %vm467_vm1, %v8346_v24 }
 0x55f   : > { %v3946_v5 = vpop.f32.mrf.mxu2 }
 0x560   : > { %v4168_v19 = vpop.f32.mrf.mxu3  ;;  %v4023_v50 = vadd.f32 %v3946_v5, %v8493_v21 }
 0x562   : > { %v4245_v13 = vadd.f32 %v4168_v19, %v4023_v50  ;;  %v3769_v54 = vpop.f32.mrf.mxu1 }
 0x563   : > { %v4393_v23 = vpop.f32.mrf.mxu0  ;;  %v8659_v32 = vadd.f32 %v3769_v54, %v8526_v34  ;;  %v9906_v34 = vld [vmem:[#allocation45_spill] sm:$0xff] }
 0x564   : > { %v8661_v37 = vadd.f32 %v4391_v17, %v4245_v13  ;;  %v4505_v17 = vld [vmem:[#allocation3 + $0xb0] sm:$0xff] }
 0x565   : > { %6480 = vmatmul.msk.bf16.gmra.mxu1 %vm467_vm1, %v4532_v51 }
 0x567   : > { %v3948_v57 = vpop.f32.mrf.mxu2 }
 0x568   : > { %v4170_v15 = vpop.f32.mrf.mxu3  ;;  %v4024_v24 = vadd.f32 %v3948_v57, %v8500_v27 }
 0x56a   : > { %v4246_v3 = vadd.f32 %v4170_v15, %v4024_v24  ;;  %v3771_v52 = vpop.f32.mrf.mxu1 }
 0x56b   : > { %v4396_v21 = vpop.f32.mrf.mxu0  ;;  %v8666_v40 = vadd.f32 %v3771_v52, %v8533_v20  ;;  %v4504_v20 = vld [vmem:[#allocation3 + $0xa8] sm:$0xff] }
 0x56c   : > { %6437 = vmatmul.msk.bf16.gmra.mxu2 %vm467_vm1, %v9905_v47  ;;  %v8672_v42 = vadd.f32 %v4393_v23, %v4246_v3  ;;  %v4533_v5 = vpack.c.bf16 %v4505_v17, %v4504_v20  ;;  %v4507_v3 = vld [vmem:[#allocation3 + $0xd0] sm:$0xff]  ;;  %v9909_v20 = vld [vmem:[#allocation48_spill] sm:$0xff] }
 0x56d   : > { %6454 = vmatmul.msk.bf16.gmra.mxu3 %vm467_vm1, %v9906_v34 }
 0x56e   : > { %6471 = vmatmul.msk.bf16.gmra.mxu0 %vm467_vm1, %v8370_v39 }
 0x56f   : > { %v3951_v58 = vpop.f32.mrf.mxu2 }
 0x570   : > { %v4173_v53 = vpop.f32.mrf.mxu3  ;;  %v4025_v27 = vadd.f32 %v3951_v58, %v8511_v33 }
 0x572   : > { %v4247_v14 = vadd.f32 %v4173_v53, %v4025_v27  ;;  %v3774_v10 = vpop.f32.mrf.mxu1 }
 0x573   : > { %v8678_v0 = vadd.f32 %v3774_v10, %v8544_v1  ;;  %v4398_v50 = vpop.f32.mrf.mxu0  ;;  %v9908_v1 = vld [vmem:[#allocation47_spill] sm:$0xff] }
 0x574   : > { %v8680_v19 = vadd.f32 %v4396_v21, %v4247_v14  ;;  %v4506_v21 = vld [vmem:[#allocation3 + $0xc8] sm:$0xff] }
 0x575   : > { %6481 = vmatmul.msk.bf16.gmra.mxu1 %vm467_vm1, %v4533_v5  ;;  %v4534_v34 = vpack.c.bf16 %v4507_v3, %v4506_v21 }
 0x577   : > { %v3953_v11 = vpop.f32.mrf.mxu2 }
 0x578   : > { %v4175_v13 = vpop.f32.mrf.mxu3  ;;  %v4026_v39 = vadd.f32 %v3953_v11, %v8518_v56  ;;  %v4509_v11 = vld [vmem:[#allocation3 + $0xf0] sm:$0xff] }
 0x57a   : > { %v4248_v23 = vadd.f32 %v4175_v13, %v4026_v39  ;;  %v3776_v54 = vpop.f32.mrf.mxu1  ;;  %v4508_v39 = vld [vmem:[#allocation3 + $0xe8] sm:$0xff] }
 0x57b   : > { %v8685_v33 = vadd.f32 %v3776_v54, %v8551_v63  ;;  %v4401_v24 = vpop.f32.mrf.mxu0 }
 0x57c   : > { %6438 = vmatmul.msk.bf16.gmra.mxu2 %vm467_vm1, %v9907_v46  ;;  %v8691_v51 = vadd.f32 %v4398_v50, %v4248_v23  ;;  %v4535_v23 = vpack.c.bf16 %v4509_v11, %v4508_v39  ;;  %v4515_v39 = vld [vmem:[#allocation3 + $0x150] sm:$0xff] }
 0x57d   : > { %6455 = vmatmul.msk.bf16.gmra.mxu3 %vm467_vm1, %v9908_v1 }
 0x57e   : > { %6472 = vmatmul.msk.bf16.gmra.mxu0 %vm467_vm1, %v8394_v31 }
 0x57f   : > { %v3956_v57 = vpop.f32.mrf.mxu2 }
 0x580   : > { %v4178_v15 = vpop.f32.mrf.mxu3  ;;  %v4027_v56 = vadd.f32 %v3956_v57, %v8529_v35  ;;  %v9911_v57 = vld [vmem:[#allocation50_spill] sm:$0xff] }
 0x582   : > { %v4249_v52 = vadd.f32 %v4178_v15, %v4027_v56  ;;  %v3779_v63 = vpop.f32.mrf.mxu1  ;;  %v4511_v56 = vld [vmem:[#allocation3 + $0x110] sm:$0xff] }
 0x583   : > { %v8697_v47 = vadd.f32 %v3779_v63, %v8562_v26  ;;  %v4403_v14 = vpop.f32.mrf.mxu0  ;;  %v9910_v26 = vld [vmem:[#allocation49_spill] sm:$0xff] }
 0x584   : > { %v8699_v58 = vadd.f32 %v4401_v24, %v4249_v52  ;;  %v4510_v24 = vld [vmem:[#allocation3 + $0x108] sm:$0xff] }
 0x585   : > { %6482 = vmatmul.msk.bf16.gmra.mxu1 %vm467_vm1, %v4534_v34  ;;  %v4513_v34 = vld [vmem:[#allocation3 + $0x130] sm:$0xff] }
 0x587   : > { %v3958_v53 = vpop.f32.mrf.mxu2 }
 0x588   : > { %v4028_v31 = vadd.f32 %v3958_v53, %v8536_v6  ;;  %v4180_v27 = vpop.f32.mrf.mxu3  ;;  %v4512_v53 = vld [vmem:[#allocation3 + $0x128] sm:$0xff] }
 0x58a   : > { %v4250_v17 = vadd.f32 %v4180_v27, %v4028_v31  ;;  %v3781_v35 = vpop.f32.mrf.mxu1  ;;  %v4307_v27 = vld [vmem:[#allocation3 + $0x22f] sm:$0xff] }
 0x58b   : > { %v8704_v10 = vadd.f32 %v3781_v35, %v8569_v12  ;;  %v4084_v35 = vld [vmem:[#allocation3 + $0x211] sm:$0xff] }
 0x58c   : > { %6439 = vmatmul.msk.bf16.gmra.mxu2 %vm467_vm1, %v9909_v20  ;;  %v8710_v5 = vadd.f32 %v4403_v14, %v4250_v17  ;;  %v4083_v14 = vld [vmem:[#allocation3 + $0x209] sm:$0xff] }
 0x58d   : > { %6456 = vmatmul.msk.bf16.gmra.mxu3 %vm467_vm1, %v9910_v26 }
 0x58e   : > { %6473 = vmatmul.msk.bf16.gmra.mxu0 %vm467_vm1, %v8426_v16 }
 0x58f   : > { %v3961_v50 = vpop.f32.mrf.mxu2 }
 0x590   : > { %v8715_v6 = vadd.f32 %v3961_v50, %v8547_v41  ;;  %v9912_v41 = vld [vmem:[#allocation51_spill] sm:$0xff]  ;;  %v8764_v50 = vpack.c.bf16 %v4084_v35, %v4083_v14  ;;  %v4518_v35 = vld [vmem:[#allocation3 + $0x188] sm:$0xff] }
 0x592   : > { %v3784_v13 = vpop.f32.mrf.mxu1 }
 0x593   : > { %v8718_v12 = vadd.f32 %v3784_v13, %v8580_v8 }
 0x595   : > { %6483 = vmatmul.msk.bf16.gmra.mxu1 %vm467_vm1, %v4535_v23 }
 0x597   : > { %v3963_v54 = vpop.f32.mrf.mxu2 }
 0x598   : > { %v8722_v46 = vadd.f32 %v3963_v54, %v8554_v18  ;;  %v4514_v54 = vld [vmem:[#allocation3 + $0x148] sm:$0xff] }
 0x59a   : > { %v3786_v1 = vpop.f32.mrf.mxu1 }
 0x59b   : > { %v8725_v16 = vadd.f32 %v3786_v1, %v8587_v59  ;;  %v4536_v59 = vpack.c.bf16 %v4511_v56, %v4510_v24 }
 0x59c   : > { %6440 = vmatmul.msk.bf16.gmra.mxu2 %vm467_vm1, %v9911_v57 }
 0x59d   : > { %6457 = vmatmul.msk.bf16.gmra.mxu3 %vm467_vm1, %v9912_v41  ;;  %v4720_v41 = vld [vmem:[#allocation3 + $0x49] sm:$0xff] }
 0x59e   : > { %6474 = vmatmul.msk.bf16.gmra.mxu0 %vm467_vm1, %v8460_v28 }
 0x59f   : > { %v3966_v8 = vpop.f32.mrf.mxu2 }
 0x5a0   : > { %v8734_v15 = vadd.f32 %v3966_v8, %v8565_v48  ;;  %v4721_v8 = vld [vmem:[#allocation3 + $0x51] sm:$0xff] }
 0x5a2   : > { %v3789_v18 = vpop.f32.mrf.mxu1 }
 0x5a3   : > { %v8737_v3 = vadd.f32 %v3789_v18, %v8598_v49  ;;  %v4752_v18 = vpack.c.bf16 %v4721_v8, %v4720_v41  ;;  %v4520_v41 = vld [vmem:[#allocation3 + $0x1a8] sm:$0xff] }
 0x5a5   : > { %6484 = vmatmul.msk.bf16.gmra.mxu1 %vm467_vm1, %v4536_v59 }
 0x5a7   : > { %v3968_v52 = vpop.f32.mrf.mxu2 }
 0x5a8   : > { %v8741_v63 = vadd.f32 %v3968_v52, %v8572_v4  ;;  %v4517_v52 = vld [vmem:[#allocation3 + $0x170] sm:$0xff] }
 0x5aa   : > { %v3791_v21 = vpop.f32.mrf.mxu1 }
 0x5ab   : > { %v8744_v28 = vadd.f32 %v3791_v21, %v8607_v61  ;;  %v4537_v61 = vpack.c.bf16 %v4513_v34, %v4512_v53  ;;  %v4722_v53 = vld [vmem:[#allocation3 + $0x69] sm:$0xff] }
 0x5ac   : > { %6441 = vmatmul.msk.bf16.gmra.mxu2 %vm467_vm1, %v8458_v62  ;;  %v4306_v62 = vld [vmem:[#allocation3 + $0x227] sm:$0xff] }
 0x5ad   : > { %6458 = vmatmul.msk.bf16.gmra.mxu3 %vm467_vm1, %v8464_v44  ;;  %v3862_v44 = vld [vmem:[#allocation3 + $0x210] sm:$0xff]  ;;  %v4323_v20 = vpack.c.bf16 %v4307_v27, %v4306_v62 }
 0x5ae   : > { %6475 = vmatmul.msk.bf16.gmra.mxu0 %vm467_vm1, %v8603_v2 }
 0x5af   : > { %v3971_v48 = vpop.f32.mrf.mxu2 }
 0x5b0   : > { %v8753_v49 = vadd.f32 %v3971_v48, %v8583_v9  ;;  %v3861_v9 = vld [vmem:[#allocation3 + $0x208] sm:$0xff] }
 0x5b1   : > { %v8762_v26 = vpack.c.bf16 %v3862_v44, %v3861_v9  ;;  %v4516_v48 = vld [vmem:[#allocation3 + $0x168] sm:$0xff]  ;;  %v4519_v44 = vld [vmem:[#allocation3 + $0x190] sm:$0xff] }
 0x5b2   : > { %v3794_v4 = vpop.f32.mrf.mxu1 }
 0x5b3   : > { %v8756_v31 = vadd.f32 %v3794_v4, %v8618_v45  ;;  %v4539_v4 = vpack.c.bf16 %v4517_v52, %v4516_v48 }
 0x5b5   : > { %6485 = vmatmul.msk.bf16.gmra.mxu1 %vm467_vm1, %v4537_v61  ;;  %v4723_v61 = vld [vmem:[#allocation3 + $0x71] sm:$0xff] }
 0x5b6   : > { %v4753_v62 = vpack.c.bf16 %v4723_v61, %v4722_v53 }
 0x5b7   : > { %v3973_v17 = vpop.f32.mrf.mxu2 }
 0x5b8   : > { %v8760_v2 = vadd.f32 %v3973_v17, %v8590_v7 }
 0x5ba   : > { %v3796_v45 = vpop.f32.mrf.mxu1 }
 0x5bb   : > { %v8767_v11 = vadd.f32 %v3796_v45, %v8624_v30  ;;  %v4538_v30 = vpack.c.bf16 %v4515_v39, %v4514_v54  ;;  %v4724_v45 = vld [vmem:[#allocation3 + $0x89] sm:$0xff] }
 0x5bc   : > { %6442 = vmatmul.msk.bf16.gmra.mxu2 %vm467_vm1, %v8762_v26 }
 0x5bd   : > { %6459 = vmatmul.msk.bf16.gmra.mxu3 %vm467_vm1, %v8764_v50 }
 0x5be   : > { %6476 = vmatmul.msk.bf16.gmra.mxu0 %vm467_vm1, %v4323_v20  ;;  %v4540_v20 = vpack.c.bf16 %v4519_v44, %v4518_v35 }
 0x5bf   : > { %v3976_v7 = vpop.f32.mrf.mxu2 }
 0x5c0   : > { %v8775_v13 = vadd.f32 %v3976_v7, %v8601_v36  ;;  %v4725_v7 = vld [vmem:[#allocation3 + $0x91] sm:$0xff] }
 0x5c1   : > { %v4754_v39 = vpack.c.bf16 %v4725_v7, %v4724_v45  ;;  %v4731_v45 = vld [vmem:[#allocation3 + $0xf1] sm:$0xff] }
 0x5c2   : > { %v4608_v23 = vpop.f32.mrf.mxu1 }
 0x5c3   : > { %v8778_v1 = vadd.f32 %v4608_v23, %v8642_v43 }
 0x5c5   : > { %6486 = vmatmul.msk.bf16.gmra.mxu1 %vm467_vm1, %v4538_v30  ;;  %v4521_v30 = vld [vmem:[#allocation3 + $0x1b0] sm:$0xff] }
 0x5c7   : > { %v3978_v57 = vpop.f32.mrf.mxu2 }
 0x5c8   : > { %v8782_v56 = vadd.f32 %v3978_v57, %v8610_v25 }
 0x5ca   : > { %v4610_v24 = vpop.f32.mrf.mxu1 }
 0x5cb   : > { %v8785_v36 = vadd.f32 %v4610_v24, %v8653_v55  ;;  %v4726_v24 = vld [vmem:[#allocation3 + $0xa9] sm:$0xff] }
 0x5cc   : > { %6495 = vmatmul.msk.bf16.vlgmr.msra.gmra.mxu2 %vm467_vm1, %v4752_v18  ;;  %v4541_v18 = vpack.c.bf16 %v4521_v30, %v4520_v41  ;;  %v4733_v30 = vld [vmem:[#allocation3 + $0x111] sm:$0xff] }
 0x5cf   : > { %v3981_v59 = vpop.f32.mrf.mxu2 }
 0x5d0   : > { %v8789_v43 = vadd.f32 %v3981_v59, %v8621_v38  ;;  %v4727_v59 = vld [vmem:[#allocation3 + $0xb1] sm:$0xff] }
 0x5d1   : > { %v4755_v52 = vpack.c.bf16 %v4727_v59, %v4726_v24 }
 0x5d2   : > { %v4613_v21 = vpop.f32.mrf.mxu1 }
 0x5d3   : > { %v8792_v34 = vadd.f32 %v4613_v21, %v8661_v37 }
 0x5d5   : > { %6487 = vmatmul.msk.bf16.gmra.mxu1 %vm467_vm1, %v4539_v4  ;;  %v4523_v4 = vld [vmem:[#allocation3 + $0x1d0] sm:$0xff] }
 0x5d7   : > { %v3983_v25 = vpop.f32.mrf.mxu2 }
 0x5d8   : > { %v8796_v55 = vadd.f32 %v3983_v25, %v8627_v60  ;;  %v4522_v25 = vld [vmem:[#allocation3 + $0x1c8] sm:$0xff] }
 0x5d9   : > { %v4542_v53 = vpack.c.bf16 %v4523_v4, %v4522_v25 }
 0x5da   : > { %v4615_v27 = vpop.f32.mrf.mxu1 }
 0x5db   : > { %v8799_v38 = vadd.f32 %v4615_v27, %v8672_v42 }
 0x5dc   : > { %6496 = vmatmul.msk.bf16.gmra.mxu2 %vm467_vm1, %v4753_v62  ;;  %v4728_v62 = vld [vmem:[#allocation3 + $0xc9] sm:$0xff] }
 0x5df   : > { %v3986_v17 = vpop.f32.mrf.mxu2 }
 0x5e0   : > { %v8803_v37 = vadd.f32 %v3986_v17, %v8640_v29 }
 0x5e2   : > { %v4618_v14 = vpop.f32.mrf.mxu1 }
 0x5e3   : > { %v8806_v9 = vadd.f32 %v4618_v14, %v8680_v19  ;;  %v4524_v14 = vld [vmem:[#allocation3 + $0x1e8] sm:$0xff] }
 0x5e5   : > { %6488 = vmatmul.msk.bf16.gmra.mxu1 %vm467_vm1, %v4540_v20 }
 0x5e7   : > { %v3988_v60 = vpop.f32.mrf.mxu2 }
 0x5e8   : > { %v8810_v42 = vadd.f32 %v3988_v60, %v8647_v22  ;;  %v4730_v60 = vld [vmem:[#allocation3 + $0xe9] sm:$0xff] }
 0x5ea   : > { %v4620_v23 = vpop.f32.mrf.mxu1 }
 0x5eb   : > { %v8813_v29 = vadd.f32 %v4620_v23, %v8691_v51 }
 0x5ec   : > { %6497 = vmatmul.msk.bf16.gmra.mxu2 %vm467_vm1, %v4754_v39 }
 0x5ef   : > { %v3991_v54 = vpop.f32.mrf.mxu2 }
 0x5f0   : > { %v8817_v19 = vadd.f32 %v3991_v54, %v8659_v32  ;;  %v4732_v54 = vld [vmem:[#allocation3 + $0x109] sm:$0xff] }
 0x5f1   : > { %v4758_v41 = vpack.c.bf16 %v4733_v30, %v4732_v54 }
 0x5f2   : > { %v4623_v57 = vpop.f32.mrf.mxu1 }
 0x5f3   : > { %v8820_v8 = vadd.f32 %v4623_v57, %v8699_v58 }
 0x5f5   : > { %6489 = vmatmul.msk.bf16.gmra.mxu1 %vm467_vm1, %v4541_v18  ;;  %v4528_v18 = vld [vmem:[#allocation3 + $0x228] sm:$0xff] }
 0x5f7   : > { %v3993_v22 = vpop.f32.mrf.mxu2 }
 0x5f8   : > { %v8824_v51 = vadd.f32 %v3993_v22, %v8666_v40  ;;  %v4729_v40 = vld [vmem:[#allocation3 + $0xd1] sm:$0xff] }
 0x5f9   : > { %v4756_v17 = vpack.c.bf16 %v4729_v40, %v4728_v62  ;;  %v4529_v22 = vld [vmem:[#allocation3 + $0x230] sm:$0xff] }
 0x5fa   : > { %v4625_v21 = vpop.f32.mrf.mxu1 }
 0x5fb   : > { %v8827_v32 = vadd.f32 %v4625_v21, %v8710_v5 }
 0x5fc   : > { %6498 = vmatmul.msk.bf16.gmra.mxu2 %vm467_vm1, %v4755_v52  ;;  %v4735_v52 = vld [vmem:[#allocation3 + $0x131] sm:$0xff] }
 0x5ff   : > { %v3996_v48 = vpop.f32.mrf.mxu2 }
 0x600   : > { %v8831_v58 = vadd.f32 %v3996_v48, %v8678_v0  ;;  %v4525_v0 = vld [vmem:[#allocation3 + $0x1f0] sm:$0xff] }
 0x601   : > { %v4543_v35 = vpack.c.bf16 %v4525_v0, %v4524_v14 }
 0x602   : > { %v8893_v54 = vpop.f32.mrf.mxu1 }
 0x605   : > { %6490 = vmatmul.msk.bf16.gmra.mxu1 %vm467_vm1, %v4542_v53  ;;  %v4736_v53 = vld [vmem:[#allocation3 + $0x149] sm:$0xff] }
 0x607   : > { %v3998_v61 = vpop.f32.mrf.mxu2 }
 0x608   : > { %v8835_v27 = vadd.f32 %v3998_v61, %v8685_v33  ;;  %v4757_v33 = vpack.c.bf16 %v4731_v45, %v4730_v60 }
 0x60c   : > { %6499 = vmatmul.msk.bf16.gmra.mxu2 %vm467_vm1, %v4756_v17 }
 0x60f   : > { %v4001_v5 = vpop.f32.mrf.mxu2 }
 0x610   : > { %v8839_v44 = vadd.f32 %v4001_v5, %v8697_v47 }
 0x615   : > { %6491 = vmatmul.msk.bf16.gmra.mxu1 %vm467_vm1, %v4543_v35  ;;  %v4738_v35 = vld [vmem:[#allocation3 + $0x169] sm:$0xff] }
 0x617   : > { %v4003_v20 = vpop.f32.mrf.mxu2 }
 0x618   : > { %v8843_v7 = vadd.f32 %v4003_v20, %v8704_v10  ;;  %v4739_v20 = vld [vmem:[#allocation3 + $0x171] sm:$0xff] }
 0x61c   : > { %6500 = vmatmul.msk.bf16.gmra.mxu2 %vm467_vm1, %v4757_v33  ;;  %v4761_v33 = vpack.c.bf16 %v4739_v20, %v4738_v35 }
 0x61f   : > { %v4006_v39 = vpop.f32.mrf.mxu2 }
 0x620   : > { %v8847_v23 = vadd.f32 %v4006_v39, %v8718_v12  ;;  %v4545_v12 = vpack.c.bf16 %v4529_v22, %v4528_v18  ;;  %v8889_v39 = vpop.f32.mrf.mxu0 }
 0x625   : > { %6492 = vmatmul.msk.bf16.gmra.mxu1 %vm467_vm1, %v8762_v26  ;;  %v4734_v26 = vld [vmem:[#allocation3 + $0x129] sm:$0xff] }
 0x627   : > { %v4008_v47 = vpop.f32.mrf.mxu2 }
 0x628   : > { %v8852_v57 = vadd.f32 %v4008_v47, %v8725_v16  ;;  %v4759_v16 = vpack.c.bf16 %v4735_v52, %v4734_v26  ;;  %v8908_v26 = vpop.f32.mrf.mxu1 }
 0x62c   : > { %6501 = vmatmul.msk.bf16.gmra.mxu2 %vm467_vm1, %v4758_v41 }
 0x62f   : > { %v4011_v10 = vpop.f32.mrf.mxu2 }
 0x630   : > { %v8856_v24 = vadd.f32 %v4011_v10, %v8737_v3  ;;  %v4737_v3 = vld [vmem:[#allocation3 + $0x151] sm:$0xff] }
 0x631   : > { %v4760_v62 = vpack.c.bf16 %v4737_v3, %v4736_v53 }
 0x635   : > { %6493 = vmatmul.msk.bf16.gmra.mxu1 %vm467_vm1, %v4545_v12  ;;  %v8904_v12 = vpop.f32.mrf.mxu0 }
 0x637   : > { %v4013_v59 = vpop.f32.mrf.mxu2 }
 0x638   : > { %v8860_v21 = vadd.f32 %v4013_v59, %v8744_v28  ;;  %v8873_v28 = vld [vmem:[%s9726_s6] ss:$0 sm:$0xff] }
 0x63c   : > { %6502 = vmatmul.msk.bf16.gmra.mxu2 %vm467_vm1, %v4759_v16  ;;  %v4740_v16 = vld [vmem:[#allocation3 + $0x189] sm:$0xff] }
 0x63f   : > { %v4016_v48 = vpop.f32.mrf.mxu2 }
 0x640   : > { %v8864_v4 = vadd.f32 %v4016_v48, %v8756_v31  ;;  %v8879_v31 = vld [vmem:[%s9726_s6 + $0x1] ss:$0 sm:$0xff]  ;;  %v4741_v48 = vld [vmem:[#allocation3 + $0x191] sm:$0xff] }
 0x641   : > { %v4762_v53 = vpack.c.bf16 %v4741_v48, %v4740_v16 }
 0x647   : > { %v4018_v25 = vpop.f32.mrf.mxu2 }
 0x648   : > { %v8867_v61 = vadd.f32 %v4018_v25, %v8767_v11 }
 0x64c   : > { %6503 = vmatmul.msk.bf16.gmra.mxu2 %vm467_vm1, %v4760_v62 }
 0x64f   : > { %v4830_v40 = vpop.f32.mrf.mxu2 }
 0x650   : > { %v4910_v17 = vadd.f32 %v4830_v40, %v8778_v1  ;;  %v4183_v1 = vpop.f32.mrf.mxu3 }
 0x652   : > { %v4944_v5 = vmul.f32 %v8873_v28, %v4910_v17 }
 0x654   : > { %v4978_v11 = vadd.f32 %v8879_v31, %v4944_v5  ;;  %v8918_v5 = vpop.f32.mrf.mxu0 }
 0x656   : > { %v8883_v0 = vmax.f32 %v4978_v11, 0.0 }
 0x657   : > { %v4832_v14 = vpop.f32.mrf.mxu2 }
 0x658   : > { %v4911_v60 = vadd.f32 %v4832_v14, %v8785_v36  ;;  %5074 = vrot.lane.b32.xlu0 %v8883_v0, %s9816_s28  ;;  %v8901_v18 = vpop.f32.mrf.mxu3 }
 0x65a   : > { %v4945_v45 = vmul.f32 %v8873_v28, %v4911_v60 }
 0x65c   : > { %v4979_v47 = vadd.f32 %v8879_v31, %v4945_v45  ;;  %6504 = vmatmul.msk.bf16.gmra.mxu2 %vm467_vm1, %v4761_v33  ;;  %v4742_v33 = vld [vmem:[#allocation3 + $0x1a9] sm:$0xff] }
 0x65e   : > { %v8895_v30 = vmax.f32 %v4979_v47, 0.0  ;;  %v4743_v47 = vld [vmem:[#allocation3 + $0x1b1] sm:$0xff] }
 0x65f   : > { %v4835_v41 = vpop.f32.mrf.mxu2 }
 0x660   : > { %v4912_v36 = vadd.f32 %v4835_v41, %v8792_v34  ;;  %5076 = vrot.lane.b32.xlu0 %v8895_v30, %s9816_s28  ;;  %v4188_v62 = vpop.f32.mrf.mxu3 }
 0x662   : > { %v4946_v10 = vmul.f32 %v8873_v28, %v4912_v36 }
 0x664   : > { %v4980_v22 = vadd.f32 %v8879_v31, %v4946_v10  ;;  %v4763_v10 = vpack.c.bf16 %v4743_v47, %v4742_v33  ;;  %v4251_v33 = vadd.f32 %v4183_v1, %v8715_v6  ;;  %v4252_v1 = vadd.f32 %v8901_v18, %v8722_v46 }
 0x665   : > { %v4253_v46 = vadd.f32 %v4188_v62, %v8734_v15 }
 0x666   : > { %v8906_v59 = vmax.f32 %v4980_v22, 0.0 }
 0x667   : > { %v4837_v52 = vpop.f32.mrf.mxu2 }
 0x668   : > { %v4913_v34 = vadd.f32 %v4837_v52, %v8799_v38  ;;  %5078 = vrot.lane.b32.xlu1 %v8906_v59, %s9816_s28  ;;  %v8923_v38 = vpop.f32.mrf.mxu1  ;;  %v8929_v60 = vpop.f32.mrf.mxu3 }
 0x66a   : > { %v4947_v25 = vmul.f32 %v8873_v28, %v4913_v34 }
 0x66c   : > { %v4981_v3 = vadd.f32 %v8879_v31, %v4947_v25  ;;  %6505 = vmatmul.msk.bf16.gmra.mxu2 %vm467_vm1, %v4762_v53 }
 0x66e   : > { %v8916_v40 = vmax.f32 %v4981_v3, 0.0 }
 0x66f   : > { %v4840_v17 = vpop.f32.mrf.mxu2 }
 0x670   : > { %v4914_v11 = vadd.f32 %v4840_v17, %v8806_v9  ;;  %5080 = vrot.lane.b32.xlu1 %v8916_v40, %s9816_s28  ;;  %v8934_v9 = vpop.f32.mrf.mxu0  ;;  %v8937_v22 = vpop.f32.mrf.mxu1 }
 0x672   : > { %v4948_v14 = vmul.f32 %v8873_v28, %v4914_v11 }
 0x674   : > { %v4982_v35 = vadd.f32 %v8879_v31, %v4948_v14 }
 0x676   : > { %v8927_v20 = vmax.f32 %v4982_v35, 0.0  ;;  %v4744_v35 = vld [vmem:[#allocation3 + $0x1c9] sm:$0xff] }
 0x677   : > { %v4842_v45 = vpop.f32.mrf.mxu2 }
 0x678   : > { %v4915_v41 = vadd.f32 %v4842_v45, %v8813_v29  ;;  %5082 = vrot.lane.b32.xlu2 %v8927_v20, %s9816_s28  ;;  %v4193_v29 = vpop.f32.mrf.mxu3  ;;  %v8947_v53 = vpop.f32.mrf.mxu0  ;;  %v4745_v45 = vld [vmem:[#allocation3 + $0x1d1] sm:$0xff] }
 0x679   : > { %v8950_v17 = vpop.f32.mrf.mxu1 }
 0x67a   : > { %v4949_v36 = vmul.f32 %v8873_v28, %v4915_v41  ;;  %v4764_v41 = vpack.c.bf16 %v4745_v45, %v4744_v35 }
 0x67c   : > { %v4983_v52 = vadd.f32 %v8879_v31, %v4949_v36  ;;  %6506 = vmatmul.msk.bf16.gmra.mxu2 %vm467_vm1, %v4763_v10  ;;  %v4474_v10 = vadd.f32 %v8889_v39, %v4251_v33 }
 0x67e   : > { %v8941_v16 = vmax.f32 %v4983_v52, 0.0 }
 0x67f   : > { %v4845_v48 = vpop.f32.mrf.mxu2 }
 0x680   : > { %v4916_v34 = vadd.f32 %v4845_v48, %v8820_v8  ;;  %5084 = vrot.lane.b32.xlu2 %v8941_v16, %s9816_s28  ;;  %v4195_v36 = vpop.f32.mrf.mxu3  ;;  %v4418_v48 = vpop.f32.mrf.mxu0 }
 0x681   : > { %v4640_v6 = vpop.f32.mrf.mxu1 }
 0x682   : > { %v4950_v25 = vmul.f32 %v8873_v28, %v4916_v34  ;;  %v4696_v34 = vadd.f32 %v8893_v54, %v4474_v10 }
 0x684   : > { %v4984_v3 = vadd.f32 %v8879_v31, %v4950_v25 }
 0x686   : > { %v8952_v11 = vmax.f32 %v4984_v3, 0.0 }
 0x687   : > { %v4847_v14 = vpop.f32.mrf.mxu2 }
 0x688   : > { %v4917_v8 = vadd.f32 %v4847_v14, %v8827_v32  ;;  %5086 = vrot.lane.b32.xlu0 %v8952_v11, %s9816_s28  ;;  %v4475_v14 = vadd.f32 %v8904_v12, %v4252_v1  ;;  %v4198_v45 = vpop.f32.mrf.mxu3  ;;  %v4421_v18 = vpop.f32.mrf.mxu0 }
 0x68a   : > { %v4951_v47 = vmul.f32 %v8873_v28, %v4917_v8  ;;  %v4697_v54 = vadd.f32 %v8908_v26, %v4475_v14 }
 0x68c   : > { %v4985_v52 = vadd.f32 %v8879_v31, %v4951_v47  ;;  %6507 = vmatmul.msk.bf16.gmra.mxu2 %vm467_vm1, %v4764_v41  ;;  %v4746_v47 = vld [vmem:[#allocation3 + $0x1e9] sm:$0xff]  ;;  %v4747_v41 = vld [vmem:[#allocation3 + $0x1f1] sm:$0xff] }
 0x68e   : > { %v8963_v25 = vmax.f32 %v4985_v52, 0.0  ;;  %v4643_v52 = vpop.f32.mrf.mxu1 }
 0x68f   : > { %v4850_v32 = vpop.f32.mrf.mxu2 }
 0x690   : > { %v4918_v3 = vadd.f32 %v4850_v32, %v4696_v34  ;;  %5088 = vrot.lane.b32.xlu1 %v8963_v25, %s9816_s28  ;;  %v4765_v34 = vpack.c.bf16 %v4747_v41, %v4746_v47  ;;  %v4476_v32 = vadd.f32 %v8918_v5, %v4253_v46  ;;  %v4200_v15 = vpop.f32.mrf.mxu3 }
 0x692   : > { %v4952_v39 = vmul.f32 %v8873_v28, %v4918_v3  ;;  %v4698_v1 = vadd.f32 %v8923_v38, %v4476_v32 }
 0x694   : > { %v4986_v35 = vadd.f32 %v8879_v31, %v4952_v39  ;;  %v4254_v39 = vadd.f32 %v8929_v60, %v8741_v63 }
 0x696   : > { %v8973_v33 = vmax.f32 %v4986_v35, 0.0  ;;  %v4423_v35 = vpop.f32.mrf.mxu0 }
 0x697   : > { %v4852_v8 = vpop.f32.mrf.mxu2 }
 0x698   : > { %v4919_v10 = vadd.f32 %v4852_v8, %v4697_v54  ;;  %5090 = vrot.lane.b32.xlu2 %v8973_v33, %s9816_s28  ;;  %v4645_v54 = vpop.f32.mrf.mxu1  ;;  %v4477_v8 = vadd.f32 %v8934_v9, %v4254_v39  ;;  %v4203_v60 = vpop.f32.mrf.mxu3 }
 0x69a   : > { %v4953_v12 = vmul.f32 %v8873_v28, %v4919_v10  ;;  %v4699_v38 = vadd.f32 %v8937_v22, %v4477_v8  ;;  %v4255_v10 = vadd.f32 %v4193_v29, %v8753_v49  ;;  %v4256_v29 = vadd.f32 %v4195_v36, %v8760_v2  ;;  %v4750_v8 = vld [vmem:[#allocation3 + $0x229] sm:$0xff] }
 0x69b   : > { %v4257_v2 = vadd.f32 %v4198_v45, %v8775_v13  ;;  %v5273_v13 = vld [vmem:[%s9727_s7] sm:$0x3] }
 0x69c   : > { %v4987_v26 = vadd.f32 %v8879_v31, %v4953_v12  ;;  %6508 = vmatmul.msk.bf16.gmra.mxu2 %vm467_vm1, %v4765_v34  ;;  %v4478_v32 = vadd.f32 %v8947_v53, %v4255_v10 }
 0x69e   : > { %v8983_v3 = vmax.f32 %v4987_v26, 0.0  ;;  %v4426_v34 = vpop.f32.mrf.mxu0  ;;  %v4700_v26 = vadd.f32 %v8950_v17, %v4478_v32 }
 0x69f   : > { %v4855_v62 = vpop.f32.mrf.mxu2 }
 0x6a0   : > { %v4920_v14 = vadd.f32 %v4855_v62, %v4698_v1  ;;  %5092 = vrot.lane.b32.xlu0 %v8983_v3, %s9816_s28  ;;  %v4648_v22 = vpop.f32.mrf.mxu1  ;;  %v4205_v53 = vpop.f32.mrf.mxu3 }
 0x6a2   : > { %v4954_v5 = vmul.f32 %v8873_v28, %v4920_v14  ;;  %v4479_v14 = vadd.f32 %v4418_v48, %v4256_v29  ;;  %v4480_v48 = vadd.f32 %v4421_v18, %v4257_v2  ;;  %v4258_v29 = vadd.f32 %v4200_v15, %v8782_v56 }
 0x6a3   : > { %v4259_v2 = vadd.f32 %v4203_v60, %v8789_v43 }
 0x6a4   : > { %v4988_v47 = vadd.f32 %v8879_v31, %v4954_v5 }
 0x6a6   : > { %v8993_v41 = vmax.f32 %v4988_v47, 0.0  ;;  %v4428_v47 = vpop.f32.mrf.mxu0 }
 0x6a7   : > { %v4857_v46 = vpop.f32.mrf.mxu2 }
 0x6a8   : > { %v4921_v63 = vadd.f32 %v4857_v46, %v4699_v38  ;;  %5094 = vrot.lane.b32.xlu1 %v8993_v41, %s9816_s28  ;;  %v4701_v38 = vadd.f32 %v4640_v6, %v4479_v14  ;;  %v4650_v46 = vpop.f32.mrf.mxu1  ;;  %v4702_v6 = vadd.f32 %v4643_v52, %v4480_v48  ;;  %v4481_v14 = vadd.f32 %v4423_v35, %v4258_v29 }
 0x6aa   : > { %v4955_v12 = vmul.f32 %v8873_v28, %v4921_v63 }
 0x6ac   : > { %v4989_v9 = vadd.f32 %v8879_v31, %v4955_v12  ;;  %6509 = vmatmul.msk.bf16.gmra.mxu2 %vm467_vm1, %v8764_v50  ;;  %v4751_v50 = vld [vmem:[#allocation3 + $0x231] sm:$0xff] }
 0x6ad   : > { %v4767_v63 = vpack.c.bf16 %v4751_v50, %v4750_v8  ;;  %v4703_v8 = vadd.f32 %v4645_v54, %v4481_v14 }
 0x6ae   : > { %v9004_v1 = vmax.f32 %v4989_v9, 0.0  ;;  %v4208_v9 = vpop.f32.mrf.mxu3 }
 0x6af   : > { %v4860_v49 = vpop.f32.mrf.mxu2  ;;  %v4261_v14 = vadd.f32 %v4208_v9, %v8803_v37 }
 0x6b0   : > { %v4922_v62 = vadd.f32 %v4860_v49, %v4700_v26  ;;  %5096 = vrot.lane.b32.xlu2 %v9004_v1, %s9816_s28  ;;  %v5278_v49 = vsel %vm753_vm0, %v5273_v13, 0  ;;  %v4653_v18 = vpop.f32.mrf.mxu1 }
 0x6b1   : > { %5287 = vmatpush.bf16.msra.mxu3 %v5278_v49 }
 0x6b2   : > { %v4956_v39 = vmul.f32 %v8873_v28, %v4922_v62  ;;  %v4431_v62 = vpop.f32.mrf.mxu0 }
 0x6b4   : > { %v4990_v5 = vadd.f32 %v8879_v31, %v4956_v39 }
 0x6b6   : > { %v9011_v17 = vmax.f32 %v4990_v5, 0.0 }
 0x6b7   : > { %v4862_v10 = vpop.f32.mrf.mxu2 }
 0x6b8   : > { %v4923_v36 = vadd.f32 %v4862_v10, %v4701_v38  ;;  %5098 = vrot.lane.b32.xlu0 %v9011_v17, %s9816_s28  ;;  %v4210_v38 = vpop.f32.mrf.mxu3 }
 0x6ba   : > { %v4957_v12 = vmul.f32 %v8873_v28, %v4923_v36  ;;  %v4433_v15 = vpop.f32.mrf.mxu0 }
 0x6bc   : > { %v4991_v32 = vadd.f32 %v8879_v31, %v4957_v12  ;;  %6510 = vmatmul.msk.bf16.gmra.mxu2 %vm467_vm1, %v4767_v63  ;;  %v4655_v63 = vpop.f32.mrf.mxu1  ;;  %v4482_v12 = vadd.f32 %v4426_v34, %v4259_v2 }
 0x6be   : > { %v9019_v26 = vmax.f32 %v4991_v32, 0.0  ;;  %v4704_v48 = vadd.f32 %v4648_v22, %v4482_v12  ;;  %v4262_v12 = vadd.f32 %v4210_v38, %v8810_v42 }
 0x6bf   : > { %v4865_v45 = vpop.f32.mrf.mxu2 }
 0x6c0   : > { %v4924_v39 = vadd.f32 %v4865_v45, %v4702_v6  ;;  %5100 = vrot.lane.b32.xlu1 %v9019_v26, %s9816_s28  ;;  %v4260_v6 = vadd.f32 %v4205_v53, %v8796_v55  ;;  %v4213_v43 = vpop.f32.mrf.mxu3  ;;  %v4485_v9 = vadd.f32 %v4433_v15, %v4262_v12 }
 0x6c2   : > { %v4958_v52 = vmul.f32 %v8873_v28, %v4924_v39  ;;  %v4436_v45 = vpop.f32.mrf.mxu0  ;;  %v4483_v49 = vadd.f32 %v4428_v47, %v4260_v6 }
 0x6c4   : > { %v4992_v5 = vadd.f32 %v8879_v31, %v4958_v52  ;;  %v4658_v34 = vpop.f32.mrf.mxu1  ;;  %v4705_v39 = vadd.f32 %v4650_v46, %v4483_v49 }
 0x6c6   : > { %v9030_v50 = vmax.f32 %v4992_v5, 0.0 }
 0x6c7   : > { %v4867_v10 = vpop.f32.mrf.mxu2 }
 0x6c8   : > { %v4925_v56 = vadd.f32 %v4867_v10, %v4703_v8  ;;  %5102 = vrot.lane.b32.xlu2 %v9030_v50, %s9816_s28  ;;  %v4215_v53 = vpop.f32.mrf.mxu3  ;;  %v4484_v8 = vadd.f32 %v4431_v62, %v4261_v14 }
 0x6ca   : > { %v4959_v36 = vmul.f32 %v8873_v28, %v4925_v56  ;;  %v4438_v47 = vpop.f32.mrf.mxu0  ;;  %v4706_v2 = vadd.f32 %v4653_v18, %v4484_v8 }
 0x6cc   : > { %v4993_v35 = vadd.f32 %v8879_v31, %v4959_v36  ;;  %v4660_v46 = vpop.f32.mrf.mxu1 }
 0x6ce   : > { %v9037_v32 = vmax.f32 %v4993_v35, 0.0 }
 0x6cf   : > { %v4870_v54 = vpop.f32.mrf.mxu2 }
 0x6d0   : > { %v4926_v13 = vadd.f32 %v4870_v54, %v4704_v48  ;;  %5104 = vrot.lane.b32.xlu0 %v9037_v32, %s9816_s28  ;;  %v4218_v62 = vpop.f32.mrf.mxu3  ;;  %v4707_v54 = vadd.f32 %v4655_v63, %v4485_v9 }
 0x6d1   : > { %v4265_v12 = vadd.f32 %v4218_v62, %v8831_v58 }
 0x6d2   : > { %v4960_v60 = vmul.f32 %v8873_v28, %v4926_v13  ;;  %v4263_v13 = vadd.f32 %v4213_v43, %v8817_v19 }
 0x6d4   : > { %v4994_v29 = vadd.f32 %v8879_v31, %v4960_v60  ;;  %v4441_v60 = vpop.f32.mrf.mxu0  ;;  %v4663_v42 = vpop.f32.mrf.mxu1 }
 0x6d5   : > { %v4488_v9 = vadd.f32 %v4441_v60, %v4265_v12 }
 0x6d6   : > { %v9044_v52 = vmax.f32 %v4994_v29, 0.0  ;;  %v4486_v29 = vadd.f32 %v4436_v45, %v4263_v13 }
 0x6d7   : > { %v4872_v22 = vpop.f32.mrf.mxu2 }
 0x6d8   : > { %v4927_v5 = vadd.f32 %v4872_v22, %v4705_v39  ;;  %5106 = vrot.lane.b32.xlu1 %v9044_v52, %s9816_s28  ;;  %v4708_v39 = vadd.f32 %v4658_v34, %v4486_v29  ;;  %v4220_v63 = vpop.f32.mrf.mxu3 }
 0x6d9   : > { %v4266_v13 = vadd.f32 %v4220_v63, %v8835_v27 }
 0x6da   : > { %v4961_v55 = vmul.f32 %v8873_v28, %v4927_v5  ;;  %v4264_v5 = vadd.f32 %v4215_v53, %v8824_v51 }
 0x6dc   : > { %v4995_v10 = vadd.f32 %v8879_v31, %v4961_v55  ;;  %v4443_v19 = vpop.f32.mrf.mxu0  ;;  %v4665_v8 = vpop.f32.mrf.mxu1 }
 0x6de   : > { %v9051_v56 = vmax.f32 %v4995_v10, 0.0  ;;  %v4487_v10 = vadd.f32 %v4438_v47, %v4264_v5 }
 0x6df   : > { %v4875_v36 = vpop.f32.mrf.mxu2 }
 0x6e0   : > { %v4928_v35 = vadd.f32 %v4875_v36, %v4706_v2  ;;  %5108 = vrot.lane.b32.xlu2 %v9051_v56, %s9816_s28  ;;  %v4709_v2 = vadd.f32 %v4660_v46, %v4487_v10  ;;  %v4223_v51 = vpop.f32.mrf.mxu3 }
 0x6e1   : > { %v4267_v5 = vadd.f32 %v4223_v51, %v8839_v44 }
 0x6e2   : > { %v4962_v37 = vmul.f32 %v8873_v28, %v4928_v35 }
 0x6e4   : > { %v4996_v48 = vadd.f32 %v8879_v31, %v4962_v37  ;;  %v4446_v37 = vpop.f32.mrf.mxu0  ;;  %v4668_v47 = vpop.f32.mrf.mxu1 }
 0x6e5   : > { %v4490_v63 = vadd.f32 %v4446_v37, %v4267_v5 }
 0x6e6   : > { %v9058_v6 = vmax.f32 %v4996_v48, 0.0 }
 0x6e7   : > { %v4877_v18 = vpop.f32.mrf.mxu2  ;;  %v4712_v10 = vadd.f32 %v4668_v47, %v4490_v63 }
 0x6e8   : > { %v4929_v49 = vadd.f32 %v4877_v18, %v4707_v54  ;;  %5110 = vrot.lane.b32.xlu0 %v9058_v6, %s9816_s28  ;;  %v4710_v54 = vadd.f32 %v4663_v42, %v4488_v9  ;;  %v4225_v62 = vpop.f32.mrf.mxu3 }
 0x6ea   : > { %v4963_v38 = vmul.f32 %v8873_v28, %v4929_v49 }
 0x6ec   : > { %v4997_v15 = vadd.f32 %v8879_v31, %v4963_v38  ;;  %v4489_v38 = vadd.f32 %v4443_v19, %v4266_v13  ;;  %v4448_v60 = vpop.f32.mrf.mxu0  ;;  %v4670_v42 = vpop.f32.mrf.mxu1 }
 0x6ee   : > { %v9065_v22 = vmax.f32 %v4997_v15, 0.0  ;;  %v4711_v15 = vadd.f32 %v4665_v8, %v4489_v38 }
 0x6ef   : > { %v4880_v14 = vpop.f32.mrf.mxu2 }
 0x6f0   : > { %v4930_v55 = vadd.f32 %v4880_v14, %v4708_v39  ;;  %5112 = vrot.lane.b32.xlu1 %v9065_v22, %s9816_s28  ;;  %v4228_v19 = vpop.f32.mrf.mxu3 }
 0x6f2   : > { %v4964_v43 = vmul.f32 %v8873_v28, %v4930_v55 }
 0x6f4   : > { %v4998_v45 = vadd.f32 %v8879_v31, %v4964_v43  ;;  %v4673_v44 = vpop.f32.mrf.mxu1 }
 0x6f6   : > { %v9072_v36 = vmax.f32 %v4998_v45, 0.0 }
 0x6f7   : > { %v4882_v34 = vpop.f32.mrf.mxu2 }
 0x6f8   : > { %v4931_v35 = vadd.f32 %v4882_v34, %v4709_v2  ;;  %5114 = vrot.lane.b32.xlu2 %v9072_v36, %s9816_s28  ;;  %v4268_v2 = vadd.f32 %v4225_v62, %v8843_v7  ;;  %v4451_v34 = vpop.f32.mrf.mxu0 }
 0x6fa   : > { %v4965_v53 = vmul.f32 %v8873_v28, %v4931_v35  ;;  %v4491_v51 = vadd.f32 %v4448_v60, %v4268_v2 }
 0x6fc   : > { %v4999_v48 = vadd.f32 %v8879_v31, %v4965_v53  ;;  %v4713_v37 = vadd.f32 %v4670_v42, %v4491_v51 }
 0x6fe   : > { %v9079_v18 = vmax.f32 %v4999_v48, 0.0  ;;  %v4230_v48 = vpop.f32.mrf.mxu3 }
 0x6ff   : > { %v4885_v46 = vpop.f32.mrf.mxu2 }
 0x700   : > { %v4932_v49 = vadd.f32 %v4885_v46, %v4710_v54  ;;  %5116 = vrot.lane.b32.xlu0 %v9079_v18, %s9816_s28  ;;  %v4269_v54 = vadd.f32 %v4228_v19, %v8847_v23  ;;  %v4453_v7 = vpop.f32.mrf.mxu0 }
 0x702   : > { %v4966_v58 = vmul.f32 %v8873_v28, %v4932_v49  ;;  %v4675_v49 = vpop.f32.mrf.mxu1 }
 0x704   : > { %v5000_v29 = vadd.f32 %v8879_v31, %v4966_v58  ;;  %v4492_v58 = vadd.f32 %v4451_v34, %v4269_v54 }
 0x706   : > { %v9086_v39 = vmax.f32 %v5000_v29, 0.0  ;;  %v4714_v38 = vadd.f32 %v4673_v44, %v4492_v58  ;;  %v4233_v23 = vpop.f32.mrf.mxu3 }
 0x707   : > { %v4887_v14 = vpop.f32.mrf.mxu2 }
 0x708   : > { %v4933_v55 = vadd.f32 %v4887_v14, %v4711_v15  ;;  %5118 = vrot.lane.b32.xlu1 %v9086_v39, %s9816_s28  ;;  %v4270_v15 = vadd.f32 %v4230_v48, %v8852_v57  ;;  %v4456_v5 = vpop.f32.mrf.mxu0 }
 0x70a   : > { %v4967_v27 = vmul.f32 %v8873_v28, %v4933_v55  ;;  %v4493_v55 = vadd.f32 %v4453_v7, %v4270_v15  ;;  %v4678_v63 = vpop.f32.mrf.mxu1 }
 0x70c   : > { %v5001_v43 = vadd.f32 %v8879_v31, %v4967_v27 }
 0x70e   : > { %v9093_v45 = vmax.f32 %v5001_v43, 0.0  ;;  %v4715_v43 = vadd.f32 %v4675_v49, %v4493_v55  ;;  %v4235_v34 = vpop.f32.mrf.mxu3 }
 0x70f   : > { %v4890_v8 = vpop.f32.mrf.mxu2 }
 0x710   : > { %v4934_v12 = vadd.f32 %v4890_v8, %v4712_v10  ;;  %5120 = vrot.lane.b32.xlu2 %v9093_v45, %s9816_s28  ;;  %v4271_v8 = vadd.f32 %v4233_v23, %v8856_v24 }
 0x712   : > { %v4968_v35 = vmul.f32 %v8873_v28, %v4934_v12  ;;  %v4494_v12 = vadd.f32 %v4456_v5, %v4271_v8 }
 0x714   : > { %v5002_v53 = vadd.f32 %v8879_v31, %v4968_v35  ;;  %v4458_v35 = vpop.f32.mrf.mxu0  ;;  %v4716_v51 = vadd.f32 %v4678_v63, %v4494_v12 }
 0x716   : > { %v9100_v9 = vmax.f32 %v5002_v53, 0.0 }
 0x717   : > { %v4892_v47 = vpop.f32.mrf.mxu2 }
 0x718   : > { %v4935_v46 = vadd.f32 %v4892_v47, %v4713_v37  ;;  %5122 = vrot.lane.b32.xlu0 %v9100_v9, %s9816_s28  ;;  %v4680_v37 = vpop.f32.mrf.mxu1  ;;  %v4272_v47 = vadd.f32 %v4235_v34, %v8860_v21 }
 0x71a   : > { %v4969_v13 = vmul.f32 %v8873_v28, %v4935_v46  ;;  %v4495_v46 = vadd.f32 %v4458_v35, %v4272_v47  ;;  %v5075_v47 = vpop.permute.xlu0 %5074 }
 0x71c   : > { %v5003_v62 = vadd.f32 %v8879_v31, %v4969_v13  ;;  %v4238_v13 = vpop.f32.mrf.mxu3  ;;  %v4717_v49 = vadd.f32 %v4680_v37, %v4495_v46 }
 0x71e   : > { %v9107_v29 = vmax.f32 %v5003_v62, 0.0  ;;  %v4461_v62 = vpop.f32.mrf.mxu0 }
 0x71f   : > { %v4895_v60 = vpop.f32.mrf.mxu2 }
 0x720   : > { %v4936_v42 = vadd.f32 %v4895_v60, %v4714_v38  ;;  %5124 = vrot.lane.b32.xlu1 %v9107_v29, %s9816_s28  ;;  %v4273_v60 = vadd.f32 %v4238_v13, %v8864_v4  ;;  %v4683_v21 = vpop.f32.mrf.mxu1 }
 0x722   : > { %v4970_v14 = vmul.f32 %v8873_v28, %v4936_v42  ;;  %v4496_v23 = vadd.f32 %v4461_v62, %v4273_v60 }
 0x724   : > { %v5004_v27 = vadd.f32 %v8879_v31, %v4970_v14  ;;  %v4718_v5 = vadd.f32 %v4683_v21, %v4496_v23 }
 0x726   : > { %v9114_v19 = vmax.f32 %v5004_v27, 0.0  ;;  %v4240_v27 = vpop.f32.mrf.mxu3  ;;  %v4463_v4 = vpop.f32.mrf.mxu0 }
 0x727   : > { %v4897_v10 = vpop.f32.mrf.mxu2 }
 0x728   : > { %v4937_v2 = vadd.f32 %v4897_v10, %v4715_v43  ;;  %5126 = vrot.lane.b32.xlu2 %v9114_v19, %s9816_s28  ;;  %v4274_v43 = vadd.f32 %v4240_v27, %v8867_v61 }
 0x72a   : > { %v4971_v57 = vmul.f32 %v8873_v28, %v4937_v2  ;;  %v4685_v2 = vpop.f32.mrf.mxu1 }
 0x72c   : > { %v5005_v44 = vadd.f32 %v8879_v31, %v4971_v57  ;;  %v4497_v57 = vadd.f32 %v4463_v4, %v4274_v43 }
 0x72e   : > { %v9121_v53 = vmax.f32 %v5005_v44, 0.0  ;;  %v4719_v12 = vadd.f32 %v4685_v2, %v4497_v57 }
 0x72f   : > { %v4900_v48 = vpop.f32.mrf.mxu2 }
 0x730   : > { %v4938_v54 = vadd.f32 %v4900_v48, %v4716_v51  ;;  %5128 = vrot.lane.b32.xlu0 %v9121_v53, %s9816_s28 }
 0x732   : > { %v4972_v24 = vmul.f32 %v8873_v28, %v4938_v54  ;;  %v5079_v54 = vpop.permute.xlu1 %5078 }
 0x733   : > { %v5172_v62 = vadd.f32 %v5079_v54, %v8906_v59 }
 0x734   : > { %v5006_v7 = vadd.f32 %v8879_v31, %v4972_v24  ;;  %v5077_v24 = vpop.permute.xlu0 %5076 }
 0x735   : > { %v5171_v46 = vadd.f32 %v5077_v24, %v8895_v30  ;;  %v5205_v60 = vsel %vm467_vm1, %v5172_v62, 0.0 }
 0x736   : > { %v9128_v58 = vmax.f32 %v5006_v7, 0.0  ;;  %v5083_v7 = vpop.permute.xlu2 %5082 }
 0x737   : > { %v4902_v38 = vpop.f32.mrf.mxu2  ;;  %v5174_v23 = vadd.f32 %v5083_v7, %v8927_v20 }
 0x738   : > { %v4939_v15 = vadd.f32 %v4902_v38, %v4717_v49  ;;  %5130 = vrot.lane.b32.xlu1 %v9128_v58, %s9816_s28  ;;  %v5170_v49 = vadd.f32 %v5075_v47, %v8883_v0 }
 0x739   : > { %v5209_v43 = vsel %vm467_vm1, %v5174_v23, 0.0 }
 0x73a   : > { %v4973_v42 = vmul.f32 %v8873_v28, %v4939_v15  ;;  %v5081_v13 = vpop.permute.xlu1 %5080  ;;  %v5202_v38 = vsel %vm467_vm1, %v5170_v49, 0.0 }
 0x73c   : > { %v5007_v14 = vadd.f32 %v8879_v31, %v4973_v42  ;;  %v5087_v27 = vpop.permute.xlu0 %5086 }
 0x73d   : > { %v5176_v4 = vadd.f32 %v5087_v27, %v8952_v11 }
 0x73e   : > { %v9135_v55 = vmax.f32 %v5007_v14, 0.0  ;;  %v5085_v14 = vpop.permute.xlu2 %5084 }
 0x73f   : > { %v4905_v63 = vpop.f32.mrf.mxu2 }
 0x740   : > { %v4940_v10 = vadd.f32 %v4905_v63, %v4718_v5  ;;  %5132 = vrot.lane.b32.xlu2 %v9135_v55, %s9816_s28 }
 0x742   : > { %v4974_v8 = vmul.f32 %v8873_v28, %v4940_v10  ;;  %v5089_v63 = vpop.permute.xlu1 %5088  ;;  %v5175_v10 = vadd.f32 %v5085_v14, %v8941_v16 }
 0x743   : > { %v5177_v2 = vadd.f32 %v5089_v63, %v8963_v25 }
 0x744   : > { %v5008_v34 = vadd.f32 %v8879_v31, %v4974_v8  ;;  %v5211_v57 = vsel %vm467_vm1, %v5175_v10, 0.0 }
 0x746   : > { %v9142_v44 = vmax.f32 %v5008_v34, 0.0  ;;  %v5213_v34 = vsel %vm467_vm1, %v5176_v4, 0.0 }
 0x747   : > { %v4907_v35 = vpop.f32.mrf.mxu2 }
 0x748   : > { %v4941_v51 = vadd.f32 %v4907_v35, %v4719_v12  ;;  %5134 = vrot.lane.b32.xlu0 %v9142_v44, %s9816_s28  ;;  %v5091_v12 = vpop.permute.xlu2 %5090 }
 0x749   : > { %v5178_v54 = vadd.f32 %v5091_v12, %v8973_v33 }
 0x74a   : > { %v4975_v61 = vmul.f32 %v8873_v28, %v4941_v51  ;;  %v5203_v28 = vsel %vm467_vm1, %v5171_v46, 0.0  ;;  %v5093_v51 = vpop.permute.xlu0 %5092  ;;  %v5095_v47 = vpop.permute.xlu1 %5094 }
 0x74b   : > { %v5204_v15 = vadd.f32 %v5203_v28, %v5202_v38  ;;  %v5179_v24 = vadd.f32 %v5093_v51, %v8983_v3  ;;  %v5180_v7 = vadd.f32 %v5095_v47, %v8993_v41 }
 0x74c   : > { %v5009_v37 = vadd.f32 %v8879_v31, %v4975_v61  ;;  %v5173_v31 = vadd.f32 %v5081_v13, %v8916_v40  ;;  %v5215_v61 = vsel %vm467_vm1, %v5177_v2, 0.0  ;;  %v5217_v13 = vsel %vm467_vm1, %v5178_v54, 0.0 }
 0x74d   : > { %v5206_v42 = vadd.f32 %v5205_v60, %v5204_v15  ;;  %v5219_v49 = vsel %vm467_vm1, %v5179_v24, 0.0  ;;  %v5221_v38 = vsel %vm467_vm1, %v5180_v7, 0.0 }
 0x74e   : > { %v9148_v48 = vmax.f32 %v5009_v37, 0.0  ;;  %v5207_v21 = vsel %vm467_vm1, %v5173_v31, 0.0 }
 0x74f   : > { %v5208_v5 = vadd.f32 %v5207_v21, %v5206_v42 }
 0x750   : > { %5136 = vrot.lane.b32.xlu1 %v9148_v48, %s9816_s28  ;;  %v5097_v62 = vpop.permute.xlu2 %5096 }
 0x751   : > { %v5210_v8 = vadd.f32 %v5209_v43, %v5208_v5  ;;  %v5181_v21 = vadd.f32 %v5097_v62, %v9004_v1 }
 0x752   : > { %v5099_v31 = vpop.permute.xlu0 %5098  ;;  %v5101_v15 = vpop.permute.xlu1 %5100 }
 0x753   : > { %v5212_v35 = vadd.f32 %v5211_v57, %v5210_v8  ;;  %v5182_v42 = vadd.f32 %v5099_v31, %v9011_v17  ;;  %v5183_v14 = vadd.f32 %v5101_v15, %v9019_v26  ;;  %v5223_v5 = vsel %vm467_vm1, %v5181_v21, 0.0 }
 0x755   : > { %v5214_v37 = vadd.f32 %v5213_v34, %v5212_v35  ;;  %v5225_v27 = vsel %vm467_vm1, %v5182_v42, 0.0  ;;  %v5227_v4 = vsel %vm467_vm1, %v5183_v14, 0.0 }
 0x757   : > { %v5216_v46 = vadd.f32 %v5215_v61, %v5214_v37 }
 0x758   : > { %v5103_v63 = vpop.permute.xlu2 %5102 }
 0x759   : > { %v5218_v28 = vadd.f32 %v5217_v13, %v5216_v46  ;;  %v5184_v57 = vadd.f32 %v5103_v63, %v9030_v50 }
 0x75a   : > { %v5105_v10 = vpop.permute.xlu0 %5104  ;;  %v5107_v2 = vpop.permute.xlu1 %5106 }
 0x75b   : > { %v5220_v60 = vadd.f32 %v5219_v49, %v5218_v28  ;;  %v5185_v34 = vadd.f32 %v5105_v10, %v9037_v32  ;;  %v5186_v35 = vadd.f32 %v5107_v2, %v9044_v52  ;;  %v5229_v51 = vsel %vm467_vm1, %v5184_v57, 0.0 }
 0x75d   : > { %v5222_v23 = vadd.f32 %v5221_v38, %v5220_v60  ;;  %v5231_v61 = vsel %vm467_vm1, %v5185_v34, 0.0  ;;  %v5233_v24 = vsel %vm467_vm1, %v5186_v35, 0.0 }
 0x75f   : > { %v5224_v43 = vadd.f32 %v5223_v5, %v5222_v23 }
 0x760   : > { %v5109_v37 = vpop.permute.xlu2 %5108 }
 0x761   : > { %v5226_v8 = vadd.f32 %v5225_v27, %v5224_v43  ;;  %v5187_v13 = vadd.f32 %v5109_v37, %v9051_v56 }
 0x762   : > { %v5111_v54 = vpop.permute.xlu0 %5110  ;;  %v5113_v7 = vpop.permute.xlu1 %5112 }
 0x763   : > { %v5228_v12 = vadd.f32 %v5227_v4, %v5226_v8  ;;  %v5188_v49 = vadd.f32 %v5111_v54, %v9058_v6  ;;  %v5189_v28 = vadd.f32 %v5113_v7, %v9065_v22  ;;  %v5235_v31 = vsel %vm467_vm1, %v5187_v13, 0.0 }
 0x765   : > { %v5230_v47 = vadd.f32 %v5229_v51, %v5228_v12  ;;  %v5237_v38 = vsel %vm467_vm1, %v5188_v49, 0.0  ;;  %v5239_v42 = vsel %vm467_vm1, %v5189_v28, 0.0 }
 0x767   : > { %v5232_v46 = vadd.f32 %v5231_v61, %v5230_v47 }
 0x768   : > { %v5115_v60 = vpop.permute.xlu2 %5114 }
 0x769   : > { %v5234_v62 = vadd.f32 %v5233_v24, %v5232_v46  ;;  %v5190_v5 = vadd.f32 %v5115_v60, %v9072_v36 }
 0x76b   : > { %v5236_v15 = vadd.f32 %v5235_v31, %v5234_v62  ;;  %v5241_v10 = vsel %vm467_vm1, %v5190_v5, 0.0 }
 0x76d   : > { %v5238_v23 = vadd.f32 %v5237_v38, %v5236_v15 }
 0x76f   : > { %v5240_v63 = vadd.f32 %v5239_v42, %v5238_v23 }
 0x770   : > { %v5121_v8 = vpop.permute.xlu2 %5120 }
 0x771   : > { %v5242_v2 = vadd.f32 %v5241_v10, %v5240_v63  ;;  %v5193_v51 = vadd.f32 %v5121_v8, %v9093_v45 }
 0x772   : > { %v5117_v21 = vpop.permute.xlu0 %5116 }
 0x773   : > { %v5191_v27 = vadd.f32 %v5117_v21, %v9079_v18  ;;  %v5247_v54 = vsel %vm467_vm1, %v5193_v51, 0.0  ;;  %v6545_v21 = vld [vmem:[%s9729_s9 + $0x8] sm:$0xff] }
 0x774   : > { %5326 = vmatpush.bf16.msrb.mxu3 %v6545_v21 }
 0x775   : > { %v5243_v4 = vsel %vm467_vm1, %v5191_v27, 0.0 }
 0x776   : > { %v5244_v12 = vadd.f32 %v5243_v4, %v5242_v2 }
 0x77a   : > { %v5119_v14 = vpop.permute.xlu1 %5118 }
 0x77b   : > { %v5192_v43 = vadd.f32 %v5119_v14, %v9086_v39 }
 0x77d   : > { %v5245_v34 = vsel %vm467_vm1, %v5192_v43, 0.0 }
 0x77e   : > { %v5246_v37 = vadd.f32 %v5245_v34, %v5244_v12 }
 0x780   : > { %v5248_v7 = vadd.f32 %v5247_v54, %v5246_v37 }
 0x782   : > { %v5127_v46 = vpop.permute.xlu2 %5126 }
 0x783   : > { %v5196_v31 = vadd.f32 %v5127_v46, %v9114_v19 }
 0x785   : > { %v5253_v42 = vsel %vm467_vm1, %v5196_v31, 0.0  ;;  %v5293_v31 = vld [vmem:[%s9728_s8] sm:$0x1] }
 0x78a   : > { %v5123_v57 = vpop.permute.xlu0 %5122 }
 0x78b   : > { %v5194_v61 = vadd.f32 %v5123_v57, %v9100_v9 }
 0x78d   : > { %v5249_v24 = vsel %vm467_vm1, %v5194_v61, 0.0 }
 0x78e   : > { %v5250_v62 = vadd.f32 %v5249_v24, %v5248_v7 }
 0x792   : > { %v5125_v35 = vpop.permute.xlu1 %5124 }
 0x793   : > { %v5195_v47 = vadd.f32 %v5125_v35, %v9107_v29 }
 0x795   : > { %v5251_v49 = vsel %vm467_vm1, %v5195_v47, 0.0 }
 0x796   : > { %v5252_v60 = vadd.f32 %v5251_v49, %v5250_v62 }
 0x798   : > { %v5254_v5 = vadd.f32 %v5253_v42, %v5252_v60  ;;  %v5295_v60 = vld [vmem:[%s9728_s8 + $0x1] sm:$0x1] }
 0x79a   : > { %v5133_v14 = vpop.permute.xlu2 %5132 }
 0x79b   : > { %v5199_v10 = vadd.f32 %v5133_v14, %v9135_v55 }
 0x79d   : > { %v5259_v2 = vsel %vm467_vm1, %v5199_v10, 0.0 }
 0x7a2   : > { %v5129_v13 = vpop.permute.xlu0 %5128 }
 0x7a3   : > { %v5197_v38 = vadd.f32 %v5129_v13, %v9121_v53 }
 0x7a5   : > { %v5255_v23 = vsel %vm467_vm1, %v5197_v38, 0.0 }
 0x7a6   : > { %v5256_v43 = vadd.f32 %v5255_v23, %v5254_v5  ;;  %v5303_v5 = vld [vmem:[%s9730_s10] sm:$0x1] }
 0x7aa   : > { %v5131_v28 = vpop.permute.xlu1 %5130 }
 0x7ab   : > { %v5198_v15 = vadd.f32 %v5131_v28, %v9128_v58  ;;  %v6544_v28 = vld [vmem:[%s9729_s9] sm:$0xff] }
 0x7ac   : > { %5327 = vmatpush.bf16.msrb.mxu3 %v6544_v28 }
 0x7ad   : > { %v5257_v63 = vsel %vm467_vm1, %v5198_v15, 0.0 }
 0x7ae   : > { %v5258_v8 = vadd.f32 %v5257_v63, %v5256_v43 }
 0x7b0   : > { %v5260_v34 = vadd.f32 %v5259_v2, %v5258_v8 }
 0x7ba   : > { %v5135_v27 = vpop.permute.xlu0 %5134 }
 0x7bb   : > { %v5200_v4 = vadd.f32 %v5135_v27, %v9142_v44 }
 0x7bd   : > { %v5261_v57 = vsel %vm467_vm1, %v5200_v4, 0.0 }
 0x7be   : > { %v5262_v51 = vadd.f32 %v5261_v57, %v5260_v34 }
 0x7c2   : > { %v5137_v12 = vpop.permute.xlu1 %5136 }
 0x7c3   : > { %v5201_v35 = vadd.f32 %v5137_v12, %v9148_v48 }
 0x7c5   : > { %v5263_v61 = vsel %vm467_vm1, %v5201_v35, 0.0 }
 0x7c6   : > { %v5264_v37 = vadd.f32 %v5263_v61, %v5262_v51 }
 0x7c8   : > { %v5265_v47 = vrot.slane %v5264_v37, 4 }
 0x7ca   : > { %v5266_v54 = vadd.f32 %v5265_v47, %v5264_v37 }
 0x7cc   : > { %v5267_v24 = vrot.slane %v5266_v54, 2 }
 0x7ce   : > { %v5268_v46 = vadd.f32 %v5267_v24, %v5266_v54 }
 0x7d0   : > { %v5269_v7 = vrot.slane %v5268_v46, 1 }
 0x7d2   : > { %v5270_v13 = vadd.f32 %v5269_v7, %v5268_v46 }
 0x7d4   : > { %v5271_v49 = vmul.f32 0.00390625, %v5270_v13 }
 0x7d6   : > { %v5272_v62 = vpack.c.bf16 %v5271_v49, %v5271_v49 }
 0x7d8   : > { %6511 = vmatmul.msk.bf16.vlgmr.msra.gmra.mxu3 %vm467_vm1, %v5272_v62 }
 0x85b   : > { %v5289_v38 = vpop.f32.mrf.mxu3 }
 0x85c   : > { %v5294_v15 = vmul.f32 %v5293_v31, %v5289_v38 }
 0x85e   : > { %v5296_v21 = vadd.f32 %v5295_v60, %v5294_v15 }
 0x860   : > { %v5297_v42 = vmax.f32 %v5296_v21, 0.0 }
 0x862   : > { %v5298_v23 = vpack.c.bf16 %v5297_v42, %v5297_v42 }
 0x863   : > { %v5291_v14 = vpop.f32.mrf.mxu3 }
 0x864   : > { %6520 = vmatmul.msk.bf16.vlgmr.msrb.gmra.mxu3 %vm5316_vm4, %v5298_v23 }
 0x8e7   : > { %v5329_v27 = vpop.f32.mrf.mxu3 }
 0x8e8   : > { %v5330_v63 = vadd.f32 %v5329_v27, %v5303_v5 }
 0x8ea   : > { %5334 = vrot.lane.b32.xlu2 %v5330_v63, %s9913_s27 }
 0x8ef   : > { %v5331_v43 = vpop.f32.mrf.mxu3 }
 0x944   : > { %v5335_v10 = vpop.permute.xlu2 %5334 }
 0x945   : > { %v5337_v4 = vmax.f32 %v5330_v63, %v5335_v10 }
 0x947   : > { %5342 = vrot.lane.b32.xlu0 %v5337_v4, %s6676_s18  ;;  %v5338_v12 = vsub.f32 %v5330_v63, %v5337_v4 }
 0x949   : > { %v5339_v35 = vmul.f32 1.442695, %v5338_v12 }
 0x9b9   : > { %v5343_v8 = vpop.permute.xlu0 %5342 }
 0x9ba   : > { %v5345_v2 = vsub.f32 %v5330_v63, %v5343_v8 }
 0x9bc   : > { %v5346_v57 = vmul.f32 1.442695, %v5345_v2 }
 0x9be   : > { %6602 = vpow2.f32 %v5346_v57 }
 0x9bf   : > { %6604 = vpow2.f32 %v5339_v35 }
 0x9c4   : > { %v6603_v34 = vpop.eup %6602 }
 0x9c5   : > { %5349 = vrot.lane.b32.xlu1 %v6603_v34, %s9913_s27  ;;  %v6605_v51 = vpop.eup %6604 }
 0xa37   : > { %v5350_v61 = vpop.permute.xlu1 %5349 }
 0xa38   : > { %v5352_v37 = vadd.f32 %v6605_v51, %v5350_v61 }
 0xa3a   : > { %6606 = vrcp.f32 %v5352_v37 }
 0xa40   : > { %v6607_v47 = vpop.eup %6606 }
 0xa41   : > { %v9234_v54 = vmul.f32 %v6607_v47, %v6605_v51  ;;  %5389 = vrot.lane.b32.xlu2 %v6607_v47, %s6676_s18  ;;  %v5602_v47 = vld [vmem:[%s9731_s11] sm:$0x3]  ;;  %s6546_s18 = sshll.u32 %s6775_s17, 6  ;;  %s6103_s17 = scalar_lea.sflag [#allocation6], %s9978_s0 }
 0xa42   : > { %s6114_s21 = scalar_lea.hbm %s9734_s14, %s6546_s18 }
 0xa43   : > { %s6117_s25 = sshll.u32 %s6114_s21, 4  ;;  %s6630_s21 = scalar_lea.hbm %s9734_s14, 128  ;;  %s6118_s25 = int_to_ptr.hbm [resolvable:$true] %s6117_s25 }
 0xa44   : > { %s6624_s1 = sshra.s32 %s6118_s25, 4  ;;  %s6625_s1 = int_to_ptr.hbm [resolvable:$true] %s6624_s1 }
 0xa45   : > { %s6626_s28 = scalar_lea.hbm %s6625_s1, 64  ;;  %p6631_p0 = scmp.lt.s32.totalorder %s6625_s1, %s9734_s14 }
 0xa46   : > { %p6627_p11 = scmp.ne.s32.totalorder %s6625_s1, %s6626_s28  ;;  %p6632_p1 = scmp.lt.s32.totalorder %s6630_s21, %s6626_s28 }
 0xa48   : > { %p6628_p12 = pnand %p6627_p11, %p6792_p5  ;;  %p6633_p2 = por %p6632_p1, %p6631_p0 }
 0xa4a   : > { %p6629_p13 = pneg %p6628_p12 }
 0xa4c   : > { %p6634_p3 = pnand %p6633_p2, %p6629_p13 }
 0xa9b   : > { %v5390_v24 = vpop.permute.xlu2 %5389 }
 0xa9c   : > { %v5392_v46 = vmul.f32 %v6603_v34, %v5390_v24  ;;  %v5652_v24 = vsel %vm753_vm0, %v5602_v47, 0 }
 0xa9d   : > { %5661 = vmatpush.bf16.msra.mxu3 %v5652_v24 }
 0xa9e   : > { %v9236_v7 = vperm.slane %v5392_v46, 0 }
 0xaa0   : > { %v5396_v13 = vmul.f32 %v9236_v7, %v8906_v59  ;;  %v5395_v49 = vmul.f32 %v9236_v7, %v8895_v30  ;;  %v5394_v62 = vmul.f32 %v9236_v7, %v8883_v0  ;;  %v5399_v28 = vmul.f32 %v9236_v7, %v8941_v16 }
 0xaa1   : > { %v5398_v31 = vmul.f32 %v9236_v7, %v8927_v20  ;;  %v5397_v38 = vmul.f32 %v9236_v7, %v8916_v40  ;;  %v5402_v60 = vmul.f32 %v9236_v7, %v8973_v33  ;;  %v5401_v15 = vmul.f32 %v9236_v7, %v8963_v25 }
 0xaa2   : > { %5462 = vrot.lane.b32.xlu2 %v5396_v13, %s9913_s27  ;;  %5460 = vrot.lane.b32.xlu1 %v5395_v49, %s9913_s27  ;;  %v5400_v21 = vmul.f32 %v9236_v7, %v8952_v11  ;;  %v5405_v42 = vmul.f32 %v9236_v7, %v9004_v1  ;;  %v5404_v23 = vmul.f32 %v9236_v7, %v8993_v41 }
 0xaa3   : > { %5458 = vrot.lane.b32.xlu0 %v5394_v62, %s9913_s27  ;;  %v5403_v14 = vmul.f32 %v9236_v7, %v8983_v3  ;;  %v5408_v5 = vmul.f32 %v9236_v7, %v9030_v50  ;;  %v5407_v27 = vmul.f32 %v9236_v7, %v9019_v26  ;;  %v5406_v63 = vmul.f32 %v9236_v7, %v9011_v17 }
 0xaa4   : > { %v5411_v43 = vmul.f32 %v9236_v7, %v9051_v56  ;;  %v5410_v10 = vmul.f32 %v9236_v7, %v9044_v52  ;;  %v5409_v4 = vmul.f32 %v9236_v7, %v9037_v32  ;;  %v5414_v8 = vmul.f32 %v9236_v7, %v9072_v36 }
 0xaa5   : > { %v5413_v2 = vmul.f32 %v9236_v7, %v9065_v22  ;;  %v5412_v57 = vmul.f32 %v9236_v7, %v9058_v6  ;;  %v5417_v34 = vmul.f32 %v9236_v7, %v9093_v45  ;;  %v5416_v12 = vmul.f32 %v9236_v7, %v9086_v39 }
 0xaa6   : > { %v5415_v35 = vmul.f32 %v9236_v7, %v9079_v18  ;;  %v5420_v51 = vmul.f32 %v9236_v7, %v9114_v19  ;;  %v5419_v61 = vmul.f32 %v9236_v7, %v9107_v29  ;;  %v5418_v37 = vmul.f32 %v9236_v7, %v9100_v9 }
 0xaa7   : > { %v5423_v46 = vmul.f32 %v9236_v7, %v9135_v55  ;;  %v5422_v13 = vmul.f32 %v9236_v7, %v9128_v58  ;;  %v5421_v49 = vmul.f32 %v9236_v7, %v9121_v53  ;;  %v5425_v62 = vmul.f32 %v9236_v7, %v9148_v48 }
 0xaaa   : > { %5468 = vrot.lane.b32.xlu2 %v5399_v28, %s9913_s27  ;;  %5466 = vrot.lane.b32.xlu1 %v5398_v31, %s9913_s27  ;;  %v5424_v28 = vmul.f32 %v9236_v7, %v9142_v44  ;;  %v9339_v31 = vperm.slane %v9234_v54, 0 }
 0xaab   : > { %5464 = vrot.lane.b32.xlu0 %v5397_v38, %s9913_s27 }
 0xaac   : > { %v5357_v38 = vmul.f32 %v9339_v31, %v8895_v30  ;;  %v5358_v54 = vmul.f32 %v9339_v31, %v8906_v59  ;;  %v5364_v24 = vmul.f32 %v9339_v31, %v8973_v33 }
 0xab2   : > { %5474 = vrot.lane.b32.xlu2 %v5402_v60, %s9913_s27  ;;  %5472 = vrot.lane.b32.xlu1 %v5401_v15, %s9913_s27  ;;  %v5356_v15 = vmul.f32 %v9339_v31, %v8883_v0 }
 0xab3   : > { %5470 = vrot.lane.b32.xlu0 %v5400_v21, %s9913_s27 }
 0xaba   : > { %5480 = vrot.lane.b32.xlu2 %v5405_v42, %s9913_s27  ;;  %5478 = vrot.lane.b32.xlu1 %v5404_v23, %s9913_s27 }
 0xabb   : > { %5476 = vrot.lane.b32.xlu0 %v5403_v14, %s9913_s27 }
 0xac2   : > { %5486 = vrot.lane.b32.xlu2 %v5408_v5, %s9913_s27  ;;  %5484 = vrot.lane.b32.xlu1 %v5407_v27, %s9913_s27  ;;  %v5359_v5 = vmul.f32 %v9339_v31, %v8916_v40 }
 0xac3   : > { %5482 = vrot.lane.b32.xlu0 %v5406_v63, %s9913_s27 }
 0xaca   : > { %5492 = vrot.lane.b32.xlu2 %v5411_v43, %s9913_s27  ;;  %5490 = vrot.lane.b32.xlu1 %v5410_v10, %s9913_s27  ;;  %v5360_v10 = vmul.f32 %v9339_v31, %v8927_v20 }
 0xacb   : > { %5488 = vrot.lane.b32.xlu0 %v5409_v4, %s9913_s27 }
 0xad2   : > { %5498 = vrot.lane.b32.xlu2 %v5414_v8, %s9913_s27  ;;  %5496 = vrot.lane.b32.xlu1 %v5413_v2, %s9913_s27  ;;  %v5361_v8 = vmul.f32 %v9339_v31, %v8941_v16  ;;  %v5365_v16 = vmul.f32 %v9339_v31, %v8983_v3 }
 0xad3   : > { %5494 = vrot.lane.b32.xlu0 %v5412_v57, %s9913_s27 }
 0xada   : > { %5504 = vrot.lane.b32.xlu2 %v5417_v34, %s9913_s27  ;;  %5502 = vrot.lane.b32.xlu1 %v5416_v12, %s9913_s27  ;;  %v5363_v12 = vmul.f32 %v9339_v31, %v8963_v25 }
 0xadb   : > { %5500 = vrot.lane.b32.xlu0 %v5415_v35, %s9913_s27  ;;  %v5362_v35 = vmul.f32 %v9339_v31, %v8952_v11  ;;  %v5366_v11 = vmul.f32 %v9339_v31, %v8993_v41 }
 0xae2   : > { %5510 = vrot.lane.b32.xlu2 %v5420_v51, %s9913_s27  ;;  %5508 = vrot.lane.b32.xlu1 %v5419_v61, %s9913_s27 }
 0xae3   : > { %5506 = vrot.lane.b32.xlu0 %v5418_v37, %s9913_s27 }
 0xaea   : > { %5516 = vrot.lane.b32.xlu2 %v5423_v46, %s9913_s27  ;;  %5514 = vrot.lane.b32.xlu1 %v5422_v13, %s9913_s27 }
 0xaeb   : > { %5512 = vrot.lane.b32.xlu0 %v5421_v49, %s9913_s27 }
 0xaf2   : > { %5520 = vrot.lane.b32.xlu1 %v5425_v62, %s9913_s27 }
 0xaf3   : > { %5518 = vrot.lane.b32.xlu0 %v5424_v28, %s9913_s27  ;;  %v5367_v28 = vmul.f32 %v9339_v31, %v9004_v1  ;;  %v5371_v1 = vmul.f32 %v9339_v31, %v9037_v32  ;;  %s9467_s27 = scalar_lea.vmem [#allocation5], %s6184_s26 }
 0xaf4   : > { %s6115_s26 = sshll.u32 %s9467_s27, 4  ;;  %s6116_s26 = int_to_ptr.vmem [resolvable:$true] %s6115_s26 }
 0xafc   : > { %v5463_v27 = vpop.permute.xlu2 %5462 }
 0xafd   : > { %v5556_v30 = vadd.f32 %v5463_v27, %v5358_v54  ;;  %v5370_v27 = vmul.f32 %v9339_v31, %v9030_v50  ;;  %v9389_v50 = vld [vmem:[%s9732_s12] ss:$0 sm:$0xff] }
 0xb04   : > { %v5469_v4 = vpop.permute.xlu2 %5468 }
 0xb05   : > { %v5559_v57 = vadd.f32 %v5469_v4, %v5361_v8  ;;  %v9394_v8 = vld [vmem:[%s9732_s12 + $0x1] ss:$0 sm:$0xff] }
 0xb0c   : > { %v5475_v47 = vpop.permute.xlu2 %5474 }
 0xb0d   : > { %v5562_v13 = vadd.f32 %v5475_v47, %v5364_v24  ;;  %v9412_v47 = vld [vmem:[%s9733_s13 + $0x1] ss:$0 sm:$0xff] }
 0xb14   : > { %v5461_v60 = vpop.permute.xlu1 %5460  ;;  %v5481_v62 = vpop.permute.xlu2 %5480 }
 0xb15   : > { %v5555_v21 = vadd.f32 %v5461_v60, %v5357_v38  ;;  %v5459_v42 = vpop.permute.xlu0 %5458  ;;  %v5565_v60 = vadd.f32 %v5481_v62, %v5367_v28 }
 0xb16   : > { %v5554_v23 = vadd.f32 %v5459_v42, %v5356_v15  ;;  %v5368_v42 = vmul.f32 %v9339_v31, %v9011_v17  ;;  %v5372_v17 = vmul.f32 %v9339_v31, %v9044_v52 }
 0xb18   : > { %v5586_v14 = vpack.c.bf16 %v5555_v21, %v5554_v23  ;;  %v5369_v21 = vmul.f32 %v9339_v31, %v9019_v26 }
 0xb1a   : > { %6521 = vmatmul.msk.bf16.vlgmr.msra.gmra.mxu3 %vm467_vm1, %v5586_v14 }
 0xb1c   : > { %v5467_v0 = vpop.permute.xlu1 %5466 }
 0xb1d   : > { %v5465_v7 = vpop.permute.xlu0 %5464  ;;  %v5558_v2 = vadd.f32 %v5467_v0, %v5360_v10  ;;  %v5373_v0 = vmul.f32 %v9339_v31, %v9051_v56 }
 0xb1e   : > { %v5557_v63 = vadd.f32 %v5465_v7, %v5359_v5  ;;  %v5487_v5 = vpop.permute.xlu2 %5486 }
 0xb1f   : > { %v5588_v40 = vpack.c.bf16 %v5559_v57, %v5558_v2 }
 0xb20   : > { %v5587_v43 = vpack.c.bf16 %v5557_v63, %v5556_v30  ;;  %v5568_v63 = vadd.f32 %v5487_v5, %v5370_v27  ;;  %v5376_v27 = vmul.f32 %v9339_v31, %v9072_v36 }
 0xb24   : > { %v5473_v34 = vpop.permute.xlu1 %5472 }
 0xb25   : > { %v5471_v59 = vpop.permute.xlu0 %5470  ;;  %v5561_v51 = vadd.f32 %v5473_v34, %v5363_v12  ;;  %v5375_v34 = vmul.f32 %v9339_v31, %v9065_v22  ;;  %v9914_v12 = vld [vmem:[#allocation12_spill] sm:$0xff] }
 0xb26   : > { %v5560_v61 = vadd.f32 %v5471_v59, %v5362_v35  ;;  %v5374_v59 = vmul.f32 %v9339_v31, %v9058_v6  ;;  %v9915_v35 = vmax.f32 %v9914_v12, 0.0 }
 0xb28   : > { %v5589_v20 = vpack.c.bf16 %v5561_v51, %v5560_v61  ;;  %v9407_v61 = vld [vmem:[%s9733_s13] ss:$0 sm:$0xff] }
 0xb2a   : > { %6522 = vmatmul.msk.bf16.gmra.mxu3 %vm467_vm1, %v5587_v43  ;;  %v5493_v43 = vpop.permute.xlu2 %5492 }
 0xb2b   : > { %v5571_v4 = vadd.f32 %v5493_v43, %v5373_v0 }
 0xb2c   : > { %v5479_v25 = vpop.permute.xlu1 %5478 }
 0xb2d   : > { %v5477_v37 = vpop.permute.xlu0 %5476  ;;  %v5564_v38 = vadd.f32 %v5479_v25, %v5366_v11  ;;  %v9916_v11 = vld [vmem:[#allocation8_spill] sm:$0xff] }
 0xb2e   : > { %v5563_v46 = vadd.f32 %v5477_v37, %v5365_v16  ;;  %v9917_v62 = vmax.f32 %v9916_v11, 0.0 }
 0xb2f   : > { %v5591_v3 = vpack.c.bf16 %v5565_v60, %v5564_v38 }
 0xb30   : > { %v5590_v49 = vpack.c.bf16 %v5563_v46, %v5562_v13 }
 0xb32   : > { %v5499_v5 = vpop.permute.xlu2 %5498 }
 0xb34   : > { %v5485_v15 = vpop.permute.xlu1 %5484 }
 0xb35   : > { %v5483_v33 = vpop.permute.xlu0 %5482  ;;  %v5567_v23 = vadd.f32 %v5485_v15, %v5369_v21 }
 0xb36   : > { %v5566_v14 = vadd.f32 %v5483_v33, %v5368_v42 }
 0xb38   : > { %v5592_v41 = vpack.c.bf16 %v5567_v23, %v5566_v14  ;;  %v5377_v23 = vmul.f32 %v9339_v31, %v9079_v18 }
 0xb3a   : > { %6523 = vmatmul.msk.bf16.gmra.mxu3 %vm467_vm1, %v5588_v40 }
 0xb3c   : > { %v5491_v26 = vpop.permute.xlu1 %5490 }
 0xb3d   : > { %v5489_v7 = vpop.permute.xlu0 %5488  ;;  %v5570_v10 = vadd.f32 %v5491_v26, %v5372_v17  ;;  %v5574_v26 = vadd.f32 %v5499_v5, %v5376_v27 }
 0xb3e   : > { %v5569_v54 = vadd.f32 %v5489_v7, %v5371_v1 }
 0xb3f   : > { %v5594_v32 = vpack.c.bf16 %v5571_v4, %v5570_v10 }
 0xb40   : > { %v5593_v30 = vpack.c.bf16 %v5569_v54, %v5568_v63 }
 0xb44   : > { %v5497_v57 = vpop.permute.xlu1 %5496 }
 0xb45   : > { %v5495_v40 = vpop.permute.xlu0 %5494 }
 0xb46   : > { %v5572_v37 = vadd.f32 %v5495_v40, %v5374_v59 }
 0xb4a   : > { %6524 = vmatmul.msk.bf16.gmra.mxu3 %vm467_vm1, %v5589_v20  ;;  %v5573_v20 = vadd.f32 %v5497_v57, %v5375_v34 }
 0xb4c   : > { %v5595_v46 = vpack.c.bf16 %v5573_v20, %v5572_v37  ;;  %v5503_v12 = vpop.permute.xlu1 %5502  ;;  %v9922_v20 = vld [vmem:[#allocation16_spill] sm:$0xff] }
 0xb4d   : > { %v5501_v42 = vpop.permute.xlu0 %5500  ;;  %v9923_v37 = vmax.f32 %v9922_v20, 0.0 }
 0xb4e   : > { %v5575_v54 = vadd.f32 %v5501_v42, %v5377_v23 }
 0xb50   : > { %v5596_v0 = vpack.c.bf16 %v5575_v54, %v5574_v26 }
 0xb55   : > { %v5507_v26 = vpop.permute.xlu0 %5506 }
 0xb5a   : > { %6525 = vmatmul.msk.bf16.gmra.mxu3 %vm467_vm1, %v5590_v49 }
 0xb6a   : > { %6526 = vmatmul.msk.bf16.gmra.mxu3 %vm467_vm1, %v5591_v3 }
 0xb7a   : > { %6527 = vmatmul.msk.bf16.gmra.mxu3 %vm467_vm1, %v5592_v41  ;;  %v9918_v41 = vld [vmem:[#allocation9_spill] sm:$0xff] }
 0xb7b   : > { %v9919_v7 = vmax.f32 %v9918_v41, 0.0 }
 0xb8a   : > { %6528 = vmatmul.msk.bf16.gmra.mxu3 %vm467_vm1, %v5593_v30 }
 0xb9a   : > { %6529 = vmatmul.msk.bf16.gmra.mxu3 %vm467_vm1, %v5594_v32  ;;  %v9920_v32 = vld [vmem:[#allocation13_spill] sm:$0xff] }
 0xb9d   : > { %v5663_v52 = vpop.f32.mrf.mxu3 }
 0xb9e   : > { %v5745_v2 = vmul.f32 %v9389_v50, %v5663_v52  ;;  %v9921_v52 = vmax.f32 %v9920_v32, 0.0 }
 0xba0   : > { %v5779_v56 = vadd.f32 %v9394_v8, %v5745_v2 }
 0xba2   : > { %v5811_v51 = vadd.f32 %v5779_v56, %v9915_v35  ;;  %v5378_v35 = vmul.f32 %v9339_v31, %v9086_v39 }
 0xba4   : > { %v5843_v16 = vmax.f32 %v5811_v51, 0.0 }
 0xba5   : > { %v5665_v22 = vpop.f32.mrf.mxu3 }
 0xba6   : > { %v5877_v24 = vmul.f32 %v9407_v61, %v5843_v16  ;;  %v5746_v6 = vmul.f32 %v9389_v50, %v5665_v22  ;;  %v5505_v22 = vpop.permute.xlu2 %5504 }
 0xba8   : > { %v5911_v13 = vadd.f32 %v9412_v47, %v5877_v24  ;;  %v5780_v49 = vadd.f32 %v9394_v8, %v5746_v6  ;;  %v5379_v24 = vmul.f32 %v9339_v31, %v9093_v45  ;;  %v5576_v6 = vadd.f32 %v5503_v12, %v5378_v35 }
 0xbaa   : > { %v5943_v25 = vmax.f32 %v5911_v13, 0.0  ;;  %v5812_v28 = vadd.f32 %v5780_v49, %v9917_v62  ;;  %6530 = vmatmul.msk.bf16.gmra.mxu3 %vm467_vm1, %v5595_v46  ;;  %v5577_v49 = vadd.f32 %v5505_v22, %v5379_v24 }
 0xbac   : > { %5975 = vst.msk [vmem:[#allocation4] sm:$0xff] %vm2665_vm3, %v5943_v25  ;;  %v5844_v38 = vmax.f32 %v5812_v28, 0.0  ;;  %v5597_v39 = vpack.c.bf16 %v5577_v49, %v5576_v6  ;;  %v5513_v6 = vpop.permute.xlu0 %5512  ;;  %v9930_v49 = vld [vmem:[#allocation14_spill] sm:$0xff] }
 0xbad   : > { %v5668_v60 = vpop.f32.mrf.mxu3 }
 0xbae   : > { %v5878_v3 = vmul.f32 %v9407_v61, %v5844_v38  ;;  %v5747_v15 = vmul.f32 %v9389_v50, %v5668_v60 }
 0xbb0   : > { %v5912_v33 = vadd.f32 %v9412_v47, %v5878_v3  ;;  %v5781_v21 = vadd.f32 %v9394_v8, %v5747_v15  ;;  %v9924_v3 = vld [vmem:[#allocation10_spill] sm:$0xff] }
 0xbb1   : > { %v9925_v15 = vmax.f32 %v9924_v3, 0.0 }
 0xbb2   : > { %v5944_v14 = vmax.f32 %v5912_v33, 0.0  ;;  %v5813_v1 = vadd.f32 %v5781_v21, %v9919_v7 }
 0xbb4   : > { %5976 = vst.msk [vmem:[#allocation4 + $0x8] sm:$0xff] %vm2665_vm3, %v5944_v14  ;;  %v5845_v63 = vmax.f32 %v5813_v1, 0.0 }
 0xbb5   : > { %v5670_v30 = vpop.f32.mrf.mxu3 }
 0xbb6   : > { %v5879_v17 = vmul.f32 %v9407_v61, %v5845_v63  ;;  %v5748_v43 = vmul.f32 %v9389_v50, %v5670_v30  ;;  %v5509_v30 = vpop.permute.xlu1 %5508 }
 0xbb8   : > { %v5913_v18 = vadd.f32 %v9412_v47, %v5879_v17  ;;  %v5782_v10 = vadd.f32 %v9394_v8, %v5748_v43  ;;  %v5381_v17 = vmul.f32 %v9339_v31, %v9107_v29  ;;  %v5380_v43 = vmul.f32 %v9339_v31, %v9100_v9 }
 0xbba   : > { %v5945_v4 = vmax.f32 %v5913_v18, 0.0  ;;  %v5814_v2 = vadd.f32 %v5782_v10, %v9921_v52  ;;  %6531 = vmatmul.msk.bf16.gmra.mxu3 %vm467_vm1, %v5596_v0  ;;  %v9926_v18 = vld [vmem:[#allocation11_spill] sm:$0xff]  ;;  %v5579_v32 = vadd.f32 %v5509_v30, %v5381_v17  ;;  %v5578_v52 = vadd.f32 %v5507_v26, %v5380_v43 }
 0xbbb   : > { %v6007_v38 = vld [vmem:[#allocation4] ss:$2 sm:$0xff]  ;;  %v6039_v60 = vld [vmem:[#allocation4 + $0x1] ss:$2 sm:$0xff]  ;;  %v9927_v10 = vmax.f32 %v9926_v18, 0.0 }
 0xbbc   : > { %5977 = vst.msk [vmem:[#allocation4 + $0x10] sm:$0xff] %vm2665_vm3, %v5945_v4  ;;  %v5846_v36 = vmax.f32 %v5814_v2, 0.0  ;;  %v6070_v23 = vmax.f32 %v6007_v38, %v6039_v60 }
 0xbbd   : > { %v5673_v56 = vpop.f32.mrf.mxu3 }
 0xbbe   : > { %v5880_v57 = vmul.f32 %v9407_v61, %v5846_v36  ;;  %v5749_v40 = vmul.f32 %v9389_v50, %v5673_v56 }
 0xbc0   : > { %v5914_v34 = vadd.f32 %v9412_v47, %v5880_v57  ;;  %v5783_v59 = vadd.f32 %v9394_v8, %v5749_v40  ;;  %v5598_v40 = vpack.c.bf16 %v5579_v32, %v5578_v52  ;;  %v9934_v52 = vld [vmem:[#allocation20_spill] sm:$0xff] }
 0xbc2   : > { %v5946_v51 = vmax.f32 %v5914_v34, 0.0  ;;  %v5815_v16 = vadd.f32 %v5783_v59, %v9923_v37  ;;  %v9928_v59 = vld [vmem:[#allocation17_spill] sm:$0xff] }
 0xbc3   : > { %v9929_v12 = vmax.f32 %v9928_v59, 0.0 }
 0xbc4   : > { %5978 = vst.msk [vmem:[#allocation4 + $0x18] sm:$0xff] %vm2665_vm3, %v5946_v51  ;;  %v5847_v46 = vmax.f32 %v5815_v16, 0.0 }
 0xbc5   : > { %v5675_v13 = vpop.f32.mrf.mxu3 }
 0xbc6   : > { %v5881_v25 = vmul.f32 %v9407_v61, %v5847_v46  ;;  %v5750_v11 = vmul.f32 %v9389_v50, %v5675_v13  ;;  %v5383_v46 = vmul.f32 %v9339_v31, %v9121_v53 }
 0xbc8   : > { %v5915_v62 = vadd.f32 %v9412_v47, %v5881_v25  ;;  %v5784_v28 = vadd.f32 %v9394_v8, %v5750_v11  ;;  %v9931_v25 = vmax.f32 %v9930_v49, 0.0 }
 0xbca   : > { %v5947_v45 = vmax.f32 %v5915_v62, 0.0  ;;  %v5816_v33 = vadd.f32 %v5784_v28, %v9925_v15  ;;  %6532 = vmatmul.msk.bf16.gmra.mxu3 %vm467_vm1, %v5597_v39  ;;  %v5511_v39 = vpop.permute.xlu2 %5510  ;;  %v5382_v62 = vmul.f32 %v9339_v31, %v9114_v19  ;;  %v5581_v28 = vadd.f32 %v5513_v6, %v5383_v46  ;;  %v9932_v19 = vld [vmem:[#allocation15_spill] sm:$0xff] }
 0xbcb   : > { %v6009_v21 = vld [vmem:[#allocation4 + $0x10] ss:$2 sm:$0xff]  ;;  %v6041_v42 = vld [vmem:[#allocation4 + $0x11] ss:$2 sm:$0xff] }
 0xbcc   : > { %v6071_v14 = vmax.f32 %v6009_v21, %v6041_v42  ;;  %5979 = vst.msk [vmem:[#allocation4 + $0x20] sm:$0xff] %vm2665_vm3, %v5947_v45  ;;  %v5848_v41 = vmax.f32 %v5816_v33, 0.0  ;;  %v5580_v45 = vadd.f32 %v5511_v39, %v5382_v62  ;;  %v5387_v39 = vmul.f32 %v9339_v31, %v9148_v48 }
 0xbcd   : > { %v5678_v7 = vpop.f32.mrf.mxu3  ;;  %v5386_v62 = vmul.f32 %v9339_v31, %v9142_v44 }
 0xbce   : > { %v5882_v1 = vmul.f32 %v9407_v61, %v5848_v41  ;;  %v5751_v5 = vmul.f32 %v9389_v50, %v5678_v7  ;;  %v6086_v27 = vmax.f32 %v6070_v23, %v6071_v14  ;;  %v5599_v33 = vpack.c.bf16 %v5581_v28, %v5580_v45 }
 0xbcf   : > { %v9933_v41 = vmax.f32 %v9932_v19, 0.0 }
 0xbd0   : > { %v5916_v54 = vadd.f32 %v9412_v47, %v5882_v1  ;;  %v5785_v63 = vadd.f32 %v9394_v8, %v5751_v5  ;;  %6094 = vst.msk [vmem:[%s9467_s27] sm:$0xff] %vm2665_vm3, %v6086_v27 }
 0xbd2   : > { %v5948_v0 = vmax.f32 %v5916_v54, 0.0  ;;  %v5817_v4 = vadd.f32 %v5785_v63, %v9927_v10  ;;  %v5515_v10 = vpop.permute.xlu1 %5514 }
 0xbd4   : > { %5980 = vst.msk [vmem:[#allocation4 + $0x28] sm:$0xff] %vm2665_vm3, %v5948_v0  ;;  %v5849_v2 = vmax.f32 %v5817_v4, 0.0  ;;  %v5384_v4 = vmul.f32 %v9339_v31, %v9128_v58 }
 0xbd5   : > { %v5680_v36 = vpop.f32.mrf.mxu3 }
 0xbd6   : > { %v5883_v56 = vmul.f32 %v9407_v61, %v5849_v2  ;;  %v5752_v57 = vmul.f32 %v9389_v50, %v5680_v36  ;;  %v9935_v2 = vmax.f32 %v9934_v52, 0.0 }
 0xbd8   : > { %v5917_v29 = vadd.f32 %v9412_v47, %v5883_v56  ;;  %v5786_v34 = vadd.f32 %v9394_v8, %v5752_v57  ;;  %v5517_v56 = vpop.permute.xlu2 %5516  ;;  %v5385_v57 = vmul.f32 %v9339_v31, %v9135_v55 }
 0xbda   : > { %v5949_v9 = vmax.f32 %v5917_v29, 0.0  ;;  %v5818_v35 = vadd.f32 %v5786_v34, %v9929_v12  ;;  %6533 = vmatmul.msk.bf16.gmra.mxu3 %vm467_vm1, %v5598_v40  ;;  %v5582_v40 = vadd.f32 %v5515_v10, %v5384_v4 }
 0xbdb   : > { %v6011_v42 = vld [vmem:[#allocation4 + $0x20] ss:$2 sm:$0xff]  ;;  %v6043_v23 = vld [vmem:[#allocation4 + $0x21] ss:$2 sm:$0xff] }
 0xbdc   : > { %5981 = vst.msk [vmem:[#allocation4 + $0x30] sm:$0xff] %vm2665_vm3, %v5949_v9  ;;  %v5850_v51 = vmax.f32 %v5818_v35, 0.0  ;;  %v6072_v27 = vmax.f32 %v6011_v42, %v6043_v23  ;;  %v5583_v9 = vadd.f32 %v5517_v56, %v5385_v57 }
 0xbdd   : > { %v5683_v20 = vpop.f32.mrf.mxu3 }
 0xbde   : > { %v5884_v37 = vmul.f32 %v9407_v61, %v5850_v51  ;;  %v5753_v16 = vmul.f32 %v9389_v50, %v5683_v20  ;;  %v5600_v35 = vpack.c.bf16 %v5583_v9, %v5582_v40 }
 0xbe0   : > { %v5918_v22 = vadd.f32 %v9412_v47, %v5884_v37  ;;  %v5787_v24 = vadd.f32 %v9394_v8, %v5753_v16  ;;  %v9936_v37 = vld [vmem:[#allocation18_spill] sm:$0xff] }
 0xbe1   : > { %v9937_v16 = vmax.f32 %v9936_v37, 0.0 }
 0xbe2   : > { %v5950_v13 = vmax.f32 %v5918_v22, 0.0  ;;  %v5819_v11 = vadd.f32 %v5787_v24, %v9931_v25  ;;  %v5521_v25 = vpop.permute.xlu1 %5520 }
 0xbe4   : > { %5982 = vst.msk [vmem:[#allocation4 + $0x38] sm:$0xff] %vm2665_vm3, %v5950_v13  ;;  %v5851_v38 = vmax.f32 %v5819_v11, 0.0  ;;  %v5519_v11 = vpop.permute.xlu0 %5518 }
 0xbe5   : > { %v5685_v60 = vpop.f32.mrf.mxu3 }
 0xbe6   : > { %v5885_v3 = vmul.f32 %v9407_v61, %v5851_v38  ;;  %v5754_v15 = vmul.f32 %v9389_v50, %v5685_v60  ;;  %v9938_v38 = vld [vmem:[#allocation19_spill] sm:$0xff] }
 0xbe7   : > { %v9939_v60 = vmax.f32 %v9938_v38, 0.0 }
 0xbe8   : > { %v5919_v53 = vadd.f32 %v9412_v47, %v5885_v3  ;;  %v5788_v21 = vadd.f32 %v9394_v8, %v5754_v15  ;;  %v5585_v3 = vadd.f32 %v5521_v25, %v5387_v39  ;;  %v5584_v15 = vadd.f32 %v5519_v11, %v5386_v62 }
 0xbea   : > { %v5951_v14 = vmax.f32 %v5919_v53, 0.0  ;;  %v5820_v7 = vadd.f32 %v5788_v21, %v9933_v41  ;;  %6534 = vmatmul.msk.bf16.gmra.mxu3 %vm467_vm1, %v5599_v33  ;;  %v5601_v23 = vpack.c.bf16 %v5585_v3, %v5584_v15  ;;  %v9940_v41 = vld [vmem:[#allocation21_spill] sm:$0xff] }
 0xbeb   : > { %v6013_v1 = vld [vmem:[#allocation4 + $0x30] ss:$2 sm:$0xff]  ;;  %v6045_v5 = vld [vmem:[#allocation4 + $0x31] ss:$2 sm:$0xff] }
 0xbec   : > { %v6073_v54 = vmax.f32 %v6013_v1, %v6045_v5  ;;  %5983 = vst.msk [vmem:[#allocation4 + $0x40] sm:$0xff] %vm2665_vm3, %v5951_v14  ;;  %v5852_v63 = vmax.f32 %v5820_v7, 0.0  ;;  %v9941_v7 = vmax.f32 %v9940_v41, 0.0 }
 0xbed   : > { %v5688_v30 = vpop.f32.mrf.mxu3 }
 0xbee   : > { %v5886_v26 = vmul.f32 %v9407_v61, %v5852_v63  ;;  %v5755_v17 = vmul.f32 %v9389_v50, %v5688_v30  ;;  %v6087_v43 = vmax.f32 %v6072_v27, %v6073_v54 }
 0xbf0   : > { %v5920_v0 = vadd.f32 %v9412_v47, %v5886_v26  ;;  %v5789_v18 = vadd.f32 %v9394_v8, %v5755_v17  ;;  %6095 = vst.msk [vmem:[%s9467_s27 + $0x8] sm:$0xff] %vm2665_vm3, %v6087_v43 }
 0xbf2   : > { %v5952_v32 = vmax.f32 %v5920_v0, 0.0  ;;  %v5821_v36 = vadd.f32 %v5789_v18, %v9935_v2 }
 0xbf4   : > { %5984 = vst.msk [vmem:[#allocation4 + $0x48] sm:$0xff] %vm2665_vm3, %v5952_v32  ;;  %v5853_v29 = vmax.f32 %v5821_v36, 0.0  ;;  %v9942_v32 = vld [vmem:[#allocation22_spill] sm:$0xff] }
 0xbf5   : > { %v5690_v34 = vpop.f32.mrf.mxu3  ;;  %v9943_v52 = vmax.f32 %v9942_v32, 0.0 }
 0xbf6   : > { %v5887_v59 = vmul.f32 %v9407_v61, %v5853_v29  ;;  %v5756_v12 = vmul.f32 %v9389_v50, %v5690_v34 }
 0xbf8   : > { %v5921_v58 = vadd.f32 %v9412_v47, %v5887_v59  ;;  %v5790_v51 = vadd.f32 %v9394_v8, %v5756_v12  ;;  %v9944_v59 = vld [vmem:[#allocation23_spill] sm:$0xff] }
 0xbf9   : > { %v9945_v12 = vmax.f32 %v9944_v59, 0.0 }
 0xbfa   : > { %v5953_v20 = vmax.f32 %v5921_v58, 0.0  ;;  %v5822_v22 = vadd.f32 %v5790_v51, %v9937_v16  ;;  %6535 = vmatmul.msk.bf16.gmra.mxu3 %vm467_vm1, %v5600_v35 }
 0xbfb   : > { %v6015_v44 = vld [vmem:[#allocation4 + $0x40] ss:$2 sm:$0xff]  ;;  %v6047_v31 = vld [vmem:[#allocation4 + $0x41] ss:$2 sm:$0xff] }
 0xbfc   : > { %5985 = vst.msk [vmem:[#allocation4 + $0x50] sm:$0xff] %vm2665_vm3, %v5953_v20  ;;  %v5854_v55 = vmax.f32 %v5822_v22, 0.0  ;;  %v6074_v54 = vmax.f32 %v6015_v44, %v6047_v31 }
 0xbfd   : > { %v5693_v24 = vpop.f32.mrf.mxu3 }
 0xbfe   : > { %v5888_v6 = vmul.f32 %v9407_v61, %v5854_v55  ;;  %v5757_v46 = vmul.f32 %v9389_v50, %v5693_v24  ;;  %v9946_v24 = vld [vmem:[#allocation24_spill] sm:$0xff] }
 0xc00   : > { %v5922_v13 = vadd.f32 %v9412_v47, %v5888_v6  ;;  %v5791_v49 = vadd.f32 %v9394_v8, %v5757_v46  ;;  %v9947_v6 = vmax.f32 %v9946_v24, 0.0 }
 0xc02   : > { %v5954_v28 = vmax.f32 %v5922_v13, 0.0  ;;  %v5823_v45 = vadd.f32 %v5791_v49, %v9939_v60 }
 0xc04   : > { %5986 = vst.msk [vmem:[#allocation4 + $0x58] sm:$0xff] %vm2665_vm3, %v5954_v28  ;;  %v5855_v33 = vmax.f32 %v5823_v45, 0.0  ;;  %v9948_v45 = vld [vmem:[#allocation25_spill] sm:$0xff] }
 0xc05   : > { %v5695_v53 = vpop.f32.mrf.mxu3  ;;  %v9949_v3 = vmax.f32 %v9948_v45, 0.0 }
 0xc06   : > { %v5889_v21 = vmul.f32 %v9407_v61, %v5855_v33  ;;  %v5758_v42 = vmul.f32 %v9389_v50, %v5695_v53 }
 0xc08   : > { %v5923_v48 = vadd.f32 %v9412_v47, %v5889_v21  ;;  %v5792_v14 = vadd.f32 %v9394_v8, %v5758_v42 }
 0xc0a   : > { %v5955_v19 = vmax.f32 %v5923_v48, 0.0  ;;  %v5824_v1 = vadd.f32 %v5792_v14, %v9941_v7  ;;  %6536 = vmatmul.msk.bf16.gmra.mxu3 %vm467_vm1, %v5601_v23 }
 0xc0b   : > { %v6017_v5 = vld [vmem:[#allocation4 + $0x50] ss:$2 sm:$0xff]  ;;  %v6049_v27 = vld [vmem:[#allocation4 + $0x51] ss:$2 sm:$0xff] }
 0xc0c   : > { %v6075_v63 = vmax.f32 %v6017_v5, %v6049_v27  ;;  %5987 = vst.msk [vmem:[#allocation4 + $0x60] sm:$0xff] %vm2665_vm3, %v5955_v19  ;;  %v5856_v30 = vmax.f32 %v5824_v1, 0.0  ;;  %v9950_v1 = vld [vmem:[#allocation26_spill] sm:$0xff] }
 0xc0d   : > { %v5698_v26 = vpop.f32.mrf.mxu3  ;;  %v9951_v5 = vmax.f32 %v9950_v1, 0.0 }
 0xc0e   : > { %v5890_v17 = vmul.f32 %v9407_v61, %v5856_v30  ;;  %v5759_v43 = vmul.f32 %v9389_v50, %v5698_v26  ;;  %v6088_v0 = vmax.f32 %v6074_v54, %v6075_v63 }
 0xc10   : > { %v5924_v18 = vadd.f32 %v9412_v47, %v5890_v17  ;;  %v5793_v10 = vadd.f32 %v9394_v8, %v5759_v43  ;;  %6096 = vst.msk [vmem:[%s9467_s27 + $0x10] sm:$0xff] %vm2665_vm3, %v6088_v0 }
 0xc12   : > { %v5956_v4 = vmax.f32 %v5924_v18, 0.0  ;;  %v5825_v2 = vadd.f32 %v5793_v10, %v9943_v52  ;;  %v9952_v18 = vld [vmem:[#allocation27_spill] sm:$0xff] }
 0xc13   : > { %v9953_v10 = vmax.f32 %v9952_v18, 0.0 }
 0xc14   : > { %5988 = vst.msk [vmem:[#allocation4 + $0x68] sm:$0xff] %vm2665_vm3, %v5956_v4  ;;  %v5857_v36 = vmax.f32 %v5825_v2, 0.0 }
 0xc15   : > { %v5700_v56 = vpop.f32.mrf.mxu3 }
 0xc16   : > { %v5891_v57 = vmul.f32 %v9407_v61, %v5857_v36  ;;  %v5760_v40 = vmul.f32 %v9389_v50, %v5700_v56 }
 0xc18   : > { %v5925_v29 = vadd.f32 %v9412_v47, %v5891_v57  ;;  %v5794_v34 = vadd.f32 %v9394_v8, %v5760_v40 }
 0xc1a   : > { %v5957_v9 = vmax.f32 %v5925_v29, 0.0  ;;  %v5826_v35 = vadd.f32 %v5794_v34, %v9945_v12  ;;  %v9954_v29 = vld [vmem:[#allocation28_spill] sm:$0xff] }
 0xc1b   : > { %v6019_v28 = vld [vmem:[#allocation4 + $0x60] ss:$2 sm:$0xff]  ;;  %v6051_v38 = vld [vmem:[#allocation4 + $0x61] ss:$2 sm:$0xff]  ;;  %v9955_v34 = vmax.f32 %v9954_v29, 0.0 }
 0xc1c   : > { %5989 = vst.msk [vmem:[#allocation4 + $0x70] sm:$0xff] %vm2665_vm3, %v5957_v9  ;;  %v5858_v58 = vmax.f32 %v5826_v35, 0.0  ;;  %v6076_v21 = vmax.f32 %v6019_v28, %v6051_v38 }
 0xc1d   : > { %v5703_v51 = vpop.f32.mrf.mxu3 }
 0xc1e   : > { %v5892_v20 = vmul.f32 %v9407_v61, %v5858_v58  ;;  %v5761_v37 = vmul.f32 %v9389_v50, %v5703_v51 }
 0xc20   : > { %v5926_v16 = vadd.f32 %v9412_v47, %v5892_v20  ;;  %v5795_v22 = vadd.f32 %v9394_v8, %v5761_v37 }
 0xc22   : > { %v5958_v55 = vmax.f32 %v5926_v16, 0.0  ;;  %v5827_v46 = vadd.f32 %v5795_v22, %v9947_v6 }
 0xc24   : > { %5990 = vst.msk [vmem:[#allocation4 + $0x78] sm:$0xff] %vm2665_vm3, %v5958_v55  ;;  %v5859_v13 = vmax.f32 %v5827_v46, 0.0  ;;  %v9956_v55 = vld [vmem:[#allocation29_spill] sm:$0xff] }
 0xc25   : > { %v5705_v49 = vpop.f32.mrf.mxu3  ;;  %v9957_v24 = vmax.f32 %v9956_v55, 0.0 }
 0xc26   : > { %v5893_v25 = vmul.f32 %v9407_v61, %v5859_v13  ;;  %v5762_v11 = vmul.f32 %v9389_v50, %v5705_v49 }
 0xc28   : > { %v5927_v39 = vadd.f32 %v9412_v47, %v5893_v25  ;;  %v5796_v62 = vadd.f32 %v9394_v8, %v5762_v11 }
 0xc2a   : > { %v5959_v60 = vmax.f32 %v5927_v39, 0.0  ;;  %v5828_v15 = vadd.f32 %v5796_v62, %v9949_v3 }
 0xc2b   : > { %v6021_v33 = vld [vmem:[#allocation4 + $0x70] ss:$2 sm:$0xff]  ;;  %v6053_v53 = vld [vmem:[#allocation4 + $0x71] ss:$2 sm:$0xff] }
 0xc2c   : > { %v6077_v42 = vmax.f32 %v6021_v33, %v6053_v53  ;;  %5991 = vst.msk [vmem:[#allocation4 + $0x80] sm:$0xff] %vm2665_vm3, %v5959_v60  ;;  %v5860_v23 = vmax.f32 %v5828_v15, 0.0  ;;  %v9958_v15 = vld [vmem:[#allocation30_spill] sm:$0xff] }
 0xc2d   : > { %v5708_v48 = vpop.f32.mrf.mxu3  ;;  %v9959_v33 = vmax.f32 %v9958_v15, 0.0 }
 0xc2e   : > { %v5894_v14 = vmul.f32 %v9407_v61, %v5860_v23  ;;  %v5763_v44 = vmul.f32 %v9389_v50, %v5708_v48  ;;  %v6089_v31 = vmax.f32 %v6076_v21, %v6077_v42 }
 0xc30   : > { %v5928_v19 = vadd.f32 %v9412_v47, %v5894_v14  ;;  %v5797_v41 = vadd.f32 %v9394_v8, %v5763_v44  ;;  %6097 = vst.msk [vmem:[%s9467_s27 + $0x18] sm:$0xff] %vm2665_vm3, %v6089_v31 }
 0xc32   : > { %v5960_v7 = vmax.f32 %v5928_v19, 0.0  ;;  %v5829_v27 = vadd.f32 %v5797_v41, %v9951_v5  ;;  %v9960_v19 = vld [vmem:[#allocation31_spill] sm:$0xff] }
 0xc33   : > { %v9961_v41 = vmax.f32 %v9960_v19, 0.0 }
 0xc34   : > { %5992 = vst.msk [vmem:[#allocation4 + $0x88] sm:$0xff] %vm2665_vm3, %v5960_v7  ;;  %v5861_v54 = vmax.f32 %v5829_v27, 0.0 }
 0xc35   : > { %v5710_v63 = vpop.f32.mrf.mxu3 }
 0xc36   : > { %v5895_v30 = vmul.f32 %v9407_v61, %v5861_v54  ;;  %v5764_v26 = vmul.f32 %v9389_v50, %v5710_v63 }
 0xc38   : > { %v5929_v17 = vadd.f32 %v9412_v47, %v5895_v30  ;;  %v5798_v43 = vadd.f32 %v9394_v8, %v5764_v26 }
 0xc3a   : > { %v5961_v0 = vmax.f32 %v5929_v17, 0.0  ;;  %v5830_v4 = vadd.f32 %v5798_v43, %v9953_v10  ;;  %v9962_v17 = vld [vmem:[#allocation32_spill] sm:$0xff] }
 0xc3b   : > { %v6023_v37 = vld [vmem:[#allocation4 + $0x80] ss:$2 sm:$0xff]  ;;  %v6055_v16 = vld [vmem:[#allocation4 + $0x81] ss:$2 sm:$0xff]  ;;  %v9963_v43 = vmax.f32 %v9962_v17, 0.0 }
 0xc3c   : > { %5993 = vst.msk [vmem:[#allocation4 + $0x90] sm:$0xff] %vm2665_vm3, %v5961_v0  ;;  %v5862_v32 = vmax.f32 %v5830_v4, 0.0  ;;  %v6078_v49 = vmax.f32 %v6023_v37, %v6055_v16 }
 0xc3d   : > { %v5713_v52 = vpop.f32.mrf.mxu3 }
 0xc3e   : > { %v5896_v2 = vmul.f32 %v9407_v61, %v5862_v32  ;;  %v5765_v36 = vmul.f32 %v9389_v50, %v5713_v52 }
 0xc40   : > { %v5930_v56 = vadd.f32 %v9412_v47, %v5896_v2  ;;  %v5799_v57 = vadd.f32 %v9394_v8, %v5765_v36 }
 0xc42   : > { %v5962_v40 = vmax.f32 %v5930_v56, 0.0  ;;  %v5831_v9 = vadd.f32 %v5799_v57, %v9955_v34 }
 0xc44   : > { %5994 = vst.msk [vmem:[#allocation4 + $0x98] sm:$0xff] %vm2665_vm3, %v5962_v40  ;;  %v5863_v59 = vmax.f32 %v5831_v9, 0.0  ;;  %v9964_v40 = vld [vmem:[#allocation33_spill] sm:$0xff] }
 0xc45   : > { %v5715_v12 = vpop.f32.mrf.mxu3  ;;  %v9965_v29 = vmax.f32 %v9964_v40, 0.0 }
 0xc46   : > { %v5897_v35 = vmul.f32 %v9407_v61, %v5863_v59  ;;  %v5766_v58 = vmul.f32 %v9389_v50, %v5715_v12 }
 0xc48   : > { %v5931_v51 = vadd.f32 %v9412_v47, %v5897_v35  ;;  %v5800_v20 = vadd.f32 %v9394_v8, %v5766_v58 }
 0xc4a   : > { %v5963_v22 = vmax.f32 %v5931_v51, 0.0  ;;  %v5832_v6 = vadd.f32 %v5800_v20, %v9957_v24 }
 0xc4b   : > { %v6025_v46 = vld [vmem:[#allocation4 + $0x90] ss:$2 sm:$0xff]  ;;  %v6057_v13 = vld [vmem:[#allocation4 + $0x91] ss:$2 sm:$0xff] }
 0xc4c   : > { %v6079_v25 = vmax.f32 %v6025_v46, %v6057_v13  ;;  %5995 = vst.msk [vmem:[#allocation4 + $0xa0] sm:$0xff] %vm2665_vm3, %v5963_v22  ;;  %v5864_v11 = vmax.f32 %v5832_v6, 0.0  ;;  %v9966_v6 = vld [vmem:[#allocation34_spill] sm:$0xff] }
 0xc4d   : > { %v5718_v39 = vpop.f32.mrf.mxu3  ;;  %v9967_v46 = vmax.f32 %v9966_v6, 0.0 }
 0xc4e   : > { %v5898_v62 = vmul.f32 %v9407_v61, %v5864_v11  ;;  %v5767_v28 = vmul.f32 %v9389_v50, %v5718_v39  ;;  %v6090_v38 = vmax.f32 %v6078_v49, %v6079_v25 }
 0xc50   : > { %v5932_v60 = vadd.f32 %v9412_v47, %v5898_v62  ;;  %v5801_v45 = vadd.f32 %v9394_v8, %v5767_v28  ;;  %6098 = vst.msk [vmem:[%s9467_s27 + $0x20] sm:$0xff] %vm2665_vm3, %v6090_v38 }
 0xc52   : > { %v5964_v3 = vmax.f32 %v5932_v60, 0.0  ;;  %v5833_v53 = vadd.f32 %v5801_v45, %v9959_v33  ;;  %v9968_v60 = vld [vmem:[#allocation35_spill] sm:$0xff] }
 0xc53   : > { %v9969_v45 = vmax.f32 %v9968_v60, 0.0 }
 0xc54   : > { %5996 = vst.msk [vmem:[#allocation4 + $0xa8] sm:$0xff] %vm2665_vm3, %v5964_v3  ;;  %v5865_v21 = vmax.f32 %v5833_v53, 0.0 }
 0xc55   : > { %v5720_v42 = vpop.f32.mrf.mxu3 }
 0xc56   : > { %v5899_v23 = vmul.f32 %v9407_v61, %v5865_v21  ;;  %v5768_v48 = vmul.f32 %v9389_v50, %v5720_v42 }
 0xc58   : > { %v5933_v14 = vadd.f32 %v9412_v47, %v5899_v23  ;;  %v5802_v44 = vadd.f32 %v9394_v8, %v5768_v48 }
 0xc5a   : > { %v5965_v31 = vmax.f32 %v5933_v14, 0.0  ;;  %v5834_v7 = vadd.f32 %v5802_v44, %v9961_v41  ;;  %v9970_v14 = vld [vmem:[#allocation36_spill] sm:$0xff] }
 0xc5b   : > { %v6027_v36 = vld [vmem:[#allocation4 + $0xa0] ss:$2 sm:$0xff]  ;;  %v6059_v56 = vld [vmem:[#allocation4 + $0xa1] ss:$2 sm:$0xff]  ;;  %v9971_v44 = vmax.f32 %v9970_v14, 0.0 }
 0xc5c   : > { %5997 = vst.msk [vmem:[#allocation4 + $0xb0] sm:$0xff] %vm2665_vm3, %v5965_v31  ;;  %v5866_v1 = vmax.f32 %v5834_v7, 0.0  ;;  %v6080_v12 = vmax.f32 %v6027_v36, %v6059_v56 }
 0xc5d   : > { %v5723_v5 = vpop.f32.mrf.mxu3 }
 0xc5e   : > { %v5900_v27 = vmul.f32 %v9407_v61, %v5866_v1  ;;  %v5769_v54 = vmul.f32 %v9389_v50, %v5723_v5 }
 0xc60   : > { %v5934_v63 = vadd.f32 %v9412_v47, %v5900_v27  ;;  %v5803_v30 = vadd.f32 %v9394_v8, %v5769_v54 }
 0xc62   : > { %v5966_v26 = vmax.f32 %v5934_v63, 0.0  ;;  %v5835_v0 = vadd.f32 %v5803_v30, %v9963_v43 }
 0xc64   : > { %5998 = vst.msk [vmem:[#allocation4 + $0xb8] sm:$0xff] %vm2665_vm3, %v5966_v26  ;;  %v5867_v18 = vmax.f32 %v5835_v0, 0.0  ;;  %v9972_v26 = vld [vmem:[#allocation37_spill] sm:$0xff] }
 0xc65   : > { %v5725_v10 = vpop.f32.mrf.mxu3  ;;  %v9973_v17 = vmax.f32 %v9972_v26, 0.0 }
 0xc66   : > { %v5901_v4 = vmul.f32 %v9407_v61, %v5867_v18  ;;  %v5770_v32 = vmul.f32 %v9389_v50, %v5725_v10 }
 0xc68   : > { %v5935_v52 = vadd.f32 %v9412_v47, %v5901_v4  ;;  %v5804_v2 = vadd.f32 %v9394_v8, %v5770_v32 }
 0xc6a   : > { %v5967_v57 = vmax.f32 %v5935_v52, 0.0  ;;  %v5836_v34 = vadd.f32 %v5804_v2, %v9965_v29 }
 0xc6b   : > { %v6029_v9 = vld [vmem:[#allocation4 + $0xb0] ss:$2 sm:$0xff]  ;;  %v6061_v59 = vld [vmem:[#allocation4 + $0xb1] ss:$2 sm:$0xff] }
 0xc6c   : > { %v6081_v35 = vmax.f32 %v6029_v9, %v6061_v59  ;;  %5999 = vst.msk [vmem:[#allocation4 + $0xc0] sm:$0xff] %vm2665_vm3, %v5967_v57  ;;  %v5868_v58 = vmax.f32 %v5836_v34, 0.0  ;;  %v9974_v34 = vld [vmem:[#allocation38_spill] sm:$0xff] }
 0xc6d   : > { %v5728_v51 = vpop.f32.mrf.mxu3  ;;  %v9975_v9 = vmax.f32 %v9974_v34, 0.0 }
 0xc6e   : > { %v5902_v20 = vmul.f32 %v9407_v61, %v5868_v58  ;;  %v5771_v37 = vmul.f32 %v9389_v50, %v5728_v51  ;;  %v6091_v16 = vmax.f32 %v6080_v12, %v6081_v35 }
 0xc70   : > { %v5936_v22 = vadd.f32 %v9412_v47, %v5902_v20  ;;  %v5805_v55 = vadd.f32 %v9394_v8, %v5771_v37  ;;  %6099 = vst.msk [vmem:[%s9467_s27 + $0x28] sm:$0xff] %vm2665_vm3, %v6091_v16 }
 0xc72   : > { %v5968_v24 = vmax.f32 %v5936_v22, 0.0  ;;  %v5837_v13 = vadd.f32 %v5805_v55, %v9967_v46  ;;  %v9976_v22 = vld [vmem:[#allocation39_spill] sm:$0xff] }
 0xc73   : > { %v9977_v55 = vmax.f32 %v9976_v22, 0.0 }
 0xc74   : > { %6000 = vst.msk [vmem:[#allocation4 + $0xc8] sm:$0xff] %vm2665_vm3, %v5968_v24  ;;  %v5869_v49 = vmax.f32 %v5837_v13, 0.0 }
 0xc75   : > { %v5730_v25 = vpop.f32.mrf.mxu3 }
 0xc76   : > { %v5903_v11 = vmul.f32 %v9407_v61, %v5869_v49  ;;  %v5772_v39 = vmul.f32 %v9389_v50, %v5730_v25 }
 0xc78   : > { %v5937_v62 = vadd.f32 %v9412_v47, %v5903_v11  ;;  %v5806_v28 = vadd.f32 %v9394_v8, %v5772_v39 }
 0xc7a   : > { %v5969_v38 = vmax.f32 %v5937_v62, 0.0  ;;  %v5838_v3 = vadd.f32 %v5806_v28, %v9969_v45 }
 0xc7b   : > { %v6031_v54 = vld [vmem:[#allocation4 + $0xc0] ss:$2 sm:$0xff]  ;;  %v6063_v63 = vld [vmem:[#allocation4 + $0xc1] ss:$2 sm:$0xff] }
 0xc7c   : > { %6001 = vst.msk [vmem:[#allocation4 + $0xd0] sm:$0xff] %vm2665_vm3, %v5969_v38  ;;  %v5870_v15 = vmax.f32 %v5838_v3, 0.0  ;;  %v6082_v10 = vmax.f32 %v6031_v54, %v6063_v63 }
 0xc7d   : > { %v5733_v33 = vpop.f32.mrf.mxu3 }
 0xc7e   : > { %v5904_v53 = vmul.f32 %v9407_v61, %v5870_v15  ;;  %v5773_v21 = vmul.f32 %v9389_v50, %v5733_v33 }
 0xc80   : > { %v5938_v42 = vadd.f32 %v9412_v47, %v5904_v53  ;;  %v5807_v23 = vadd.f32 %v9394_v8, %v5773_v21 }
 0xc82   : > { %v5970_v48 = vmax.f32 %v5938_v42, 0.0  ;;  %v5839_v31 = vadd.f32 %v5807_v23, %v9971_v44 }
 0xc84   : > { %6002 = vst.msk [vmem:[#allocation4 + $0xd8] sm:$0xff] %vm2665_vm3, %v5970_v48  ;;  %v5871_v19 = vmax.f32 %v5839_v31, 0.0 }
 0xc85   : > { %v5735_v41 = vpop.f32.mrf.mxu3 }
 0xc86   : > { %v5905_v7 = vmul.f32 %v9407_v61, %v5871_v19  ;;  %v5774_v1 = vmul.f32 %v9389_v50, %v5735_v41 }
 0xc88   : > { %v5939_v5 = vadd.f32 %v9412_v47, %v5905_v7  ;;  %v5808_v27 = vadd.f32 %v9394_v8, %v5774_v1 }
 0xc8a   : > { %v5971_v30 = vmax.f32 %v5939_v5, 0.0  ;;  %v5840_v43 = vadd.f32 %v5808_v27, %v9973_v17 }
 0xc8b   : > { %v6033_v0 = vld [vmem:[#allocation4 + $0xd0] ss:$2 sm:$0xff]  ;;  %v6065_v18 = vld [vmem:[#allocation4 + $0xd1] ss:$2 sm:$0xff] }
 0xc8c   : > { %v6083_v4 = vmax.f32 %v6033_v0, %v6065_v18  ;;  %6003 = vst.msk [vmem:[#allocation4 + $0xe0] sm:$0xff] %vm2665_vm3, %v5971_v30  ;;  %v5872_v32 = vmax.f32 %v5840_v43, 0.0 }
 0xc8d   : > { %v5738_v52 = vpop.f32.mrf.mxu3 }
 0xc8e   : > { %v5906_v2 = vmul.f32 %v9407_v61, %v5872_v32  ;;  %v5775_v36 = vmul.f32 %v9389_v50, %v5738_v52  ;;  %v6092_v56 = vmax.f32 %v6082_v10, %v6083_v4 }
 0xc90   : > { %v5940_v57 = vadd.f32 %v9412_v47, %v5906_v2  ;;  %v5809_v40 = vadd.f32 %v9394_v8, %v5775_v36  ;;  %6100 = vst.msk [vmem:[%s9467_s27 + $0x30] sm:$0xff] %vm2665_vm3, %v6092_v56 }
 0xc92   : > { %v5972_v29 = vmax.f32 %v5940_v57, 0.0  ;;  %v5841_v59 = vadd.f32 %v5809_v40, %v9975_v9 }
 0xc94   : > { %6004 = vst.msk [vmem:[#allocation4 + $0xe8] sm:$0xff] %vm2665_vm3, %v5972_v29  ;;  %v5873_v12 = vmax.f32 %v5841_v59, 0.0 }
 0xc95   : > { %v5740_v35 = vpop.f32.mrf.mxu3 }
 0xc96   : > { %v5907_v58 = vmul.f32 %v9407_v61, %v5873_v12  ;;  %v5776_v51 = vmul.f32 %v9389_v50, %v5740_v35 }
 0xc98   : > { %v5941_v20 = vadd.f32 %v9412_v47, %v5907_v58  ;;  %v5810_v37 = vadd.f32 %v9394_v8, %v5776_v51 }
 0xc9a   : > { %v5973_v16 = vmax.f32 %v5941_v20, 0.0  ;;  %v5842_v24 = vadd.f32 %v5810_v37, %v9977_v55 }
 0xc9b   : > { %v6035_v50 = vld [vmem:[#allocation4 + $0xe0] ss:$2 sm:$0xff]  ;;  %v6067_v8 = vld [vmem:[#allocation4 + $0xe1] ss:$2 sm:$0xff] }
 0xc9c   : > { %6005 = vst.msk [vmem:[#allocation4 + $0xf0] sm:$0xff] %vm2665_vm3, %v5973_v16  ;;  %v5874_v6 = vmax.f32 %v5842_v24, 0.0 }
 0xc9e   : > { %v5908_v46 = vmul.f32 %v9407_v61, %v5874_v6  ;;  %v6084_v61 = vmax.f32 %v6035_v50, %v6067_v8 }
 0xca0   : > { %v5942_v13 = vadd.f32 %v9412_v47, %v5908_v46 }
 0xca2   : > { %v5974_v49 = vmax.f32 %v5942_v13, 0.0 }
 0xca4   : > { %6006 = vst.msk [vmem:[#allocation4 + $0xf8] sm:$0xff] %vm2665_vm3, %v5974_v49 }
 0xcab   : > { %v6037_v25 = vld [vmem:[#allocation4 + $0xf0] ss:$2 sm:$0xff]  ;;  %v6069_v11 = vld [vmem:[#allocation4 + $0xf1] ss:$2 sm:$0xff] }
 0xcac   : > { %v6085_v39 = vmax.f32 %v6037_v25, %v6069_v11 }
 0xcae   : > { %v6093_v47 = vmax.f32 %v6084_v61, %v6085_v39 }
 0xcb0   : > { %6101 = vst.msk [vmem:[%s9467_s27 + $0x38] sm:$0xff] %vm2665_vm3, %v6093_v47 }
 0xcb1   : > { %6637 = shalt.err (!%p6634_p3)
}
 0xcb2   : > { %s6677_s0 = smov 128   ;;  %s6678_s27 = smov 8  }
 0xcb3   : > { %6548 = dma.vmem_to_hbm [thread:$0]  (%p6792_p5), %s6116_s26, 1024, %s6118_s25, %s6103_s17, %s6677_s0, %s6677_s0, %s6678_s27  }
 0xcb4 PF: > { %p6554_p4 = scmp.ge.s32.totalorder %s6672_s16, 2  ;;  %s6132_s18 = sand.u32 1, %s6660_s29  }
 0xcb5   : > { %s6133_s2 = scalar_lea.sflag [#allocation6], %s6132_s18 }
 0xcb6   : > { %p6551_p7 = pnand %p6554_p4, %p6796_p6 }
 0xcb8   : > { %p6552_p8 = pneg %p6551_p7 }
 0xcba   : > { %6655 = dma.done.wait (%p6552_p8), %s6133_s2, 1024  }
 0xcbb   : > { %6657 = vsyncadd (%p6552_p8), %s6133_s2, 4294966272  ;;  %p24_p9 = scmp.ge.s32.totalorder %s6779_s19, 4   ;;  %s9979_s29 = smov %s6664_s30 }
 0xcbc   : > { %s9980_s30 = smov %s6668_s15  ;;  %s9981_s15 = smov %s6790_s22 }
 0xcbd   : > { %s9982_s16 = smov %s6779_s19  ;;  %26 = sbr.rel (!%p24_p9) target bundleno = 8 (0x8), region = 162 }
 0xcc2   :  { %6139 = vsyncpa [#allocation6], 1 }
 0xcc3   :  { %6141 = vsyncpa [#allocation6 + $0x1], 1 }

</bundles_post_ra>
